<compile_context>
chip_gen: v6e
topology: v6e:2x2x1
jax: 0.10.0
libtpu: 0.0.40
codegen_flags: <defaults>
</compile_context>

<pallas_src>
from functools import partial

import jax
import jax.numpy as jnp
from jax.experimental import pallas as pl
from jax.experimental.pallas import tpu as pltpu

D = 2          # input features (2-D points)
H = 32         # hidden width of each MLP (fused hidden width = 2H = 64)
K = 4          # output features
TM_MAX = 8192  # cap on rows-per-tile (keeps VMEM well under scoped limits)


# --------------------------------------------------------------------------
# device heuristics (perf-only; safe fallbacks)
# --------------------------------------------------------------------------
def _device_kind() -> str:
    try:
        return jax.devices()[0].device_kind.lower()
    except Exception:
        return ""


def _num_tensorcores(kind: str) -> int:
    # v7x has 2 TensorCores per chip; v5e / v6e have 1.
    return 2 if "7" in kind else 1


def _supports_bf16_compute(kind: str) -> bool:
    # v6e and v7x VPU/EUP have native bf16; v5e and older do not.
    return ("v6" in kind) or ("6e" in kind) or ("7" in kind)


def _round_up(x: int, m: int) -> int:
    return ((x + m - 1) // m) * m


def _pick_tm(n: int, num_cores: int) -> int:
    """Row-tile size.

    1-TC chips (v5e/v6e): single largest tile (grid=1 when it fits) -- no
    benefit from extra grid steps, only ~0.35us/step overhead.
    2-TC chips (v7x): two near-equal tiles so megacore sharding is balanced.
    """
    if num_cores >= 2 and n > 512:
        tm = _round_up(pl.cdiv(n, num_cores), 512)
    else:
        tm = _round_up(max(n, 1), 256)
    return max(256, min(tm, TM_MAX))


# --------------------------------------------------------------------------
# kernel
# --------------------------------------------------------------------------
def _make_diff_kernel(compute_dtype):
    def kernel(p_ref, wa_ref, ba_ref, wd_ref, bd_ref, o_ref):
        """One row-tile of fn1(p) - fn2(p), stored directly as (tm, K)."""
        p = p_ref[...].astype(compute_dtype)             # (TM, D), D == 2

        # First layer: contraction dim is only 2, so do it as VPU
        # broadcast-FMAs instead of paying MXU latency for a (TM,2)@(2,2H).
        z = (p[:, 0:1] * wa_ref[0:1, :]                  # (TM,1)*(1,2H)->(TM,2H)
             + p[:, 1:2] * wa_ref[1:2, :]
             + ba_ref[...])
        h = jnp.tanh(z)                                  # EUP, (TM, 2H)

        # Second layer: W_diff = [W1b; -W2b], b_diff = b1b - b2b -> this one
        # MXU matmul directly yields fn1(p) - fn2(p), accumulated in f32.
        y = jnp.dot(h, wd_ref[...],
                    preferred_element_type=jnp.float32)  # (TM, K)
        o_ref[...] = (y + bd_ref[...]).astype(o_ref.dtype)

    return kernel


# --------------------------------------------------------------------------
# wrapper
# --------------------------------------------------------------------------
@partial(jax.jit, static_argnames=("compute_dtype",))
def _diff_solution_impl(p, params1, params2, compute_dtype):
    N, d = p.shape
    assert d == D
    w1a, b1a, w1b, b1b = params1
    w2a, b2a, w2b, b2b = params2

    cdt = compute_dtype
    # ---- wrapper-side weight fusion (tiny, done once at trace time) ----
    wa = jnp.concatenate([w1a, w2a], axis=1).astype(cdt)   # (D, 2H)
    ba = jnp.concatenate([b1a, b2a], axis=1).astype(cdt)   # (1, 2H)
    wd = jnp.concatenate([w1b, -w2b], axis=0).astype(cdt)  # (2H, K) encodes "-"
    bd = (b1b - b2b).astype(jnp.float32)                   # (1, K) added post-acc

    kind = _device_kind()
    tm = _pick_tm(N, _num_tensorcores(kind))
    grid = (pl.cdiv(N, tm),)                               # ragged last tile OK

    cost = pl.CostEstimate(
        flops=int(N) * (2 * D * 2 * H + 2 * 2 * H * K),
        transcendentals=int(N) * 2 * H,
        bytes_accessed=int(N) * (D + K) * 4,
    )

    row_map = lambda i: (i, 0)
    rep_map = lambda i: (0, 0)

    out = pl.pallas_call(
        _make_diff_kernel(cdt),
        out_shape=jax.ShapeDtypeStruct((N, K), jnp.float32),
        grid=grid,
        in_specs=[
            pl.BlockSpec((tm, D), row_map),                # p row tile
            pl.BlockSpec((D, 2 * H), rep_map),             # fused first layer W
            pl.BlockSpec((1, 2 * H), rep_map),             # fused first layer b
            pl.BlockSpec((2 * H, K), rep_map),             # fused diff layer W
            pl.BlockSpec((1, K), rep_map),                 # fused diff layer b
        ],
        out_specs=pl.BlockSpec((tm, K), row_map),          # direct (N, K) store
        compiler_params=pltpu.CompilerParams(
            dimension_semantics=("parallel",),             # megacore-shardable
            vmem_limit_bytes=48 * 1024 * 1024,
        ),
        cost_estimate=cost,
    )(p, wa, ba, wd, bd)
    return out


def diff_solution(p, params1, params2, compute_dtype=None):
    """p: (N, D) float32. Returns fn1(p) - fn2(p), shape (N, K), float32."""
    if compute_dtype is None:
        compute_dtype = (jnp.bfloat16 if _supports_bf16_compute(_device_kind())
                         else jnp.float32)
    return _diff_solution_impl(p, params1, params2, compute_dtype)


# --------------------------------------------------------------------------
# example parameters + pure-JAX reference
# --------------------------------------------------------------------------
def _init_mlp(key):
    k1, k2, k3, k4 = jax.random.split(key, 4)
    w_a = jax.random.normal(k1, (D, H), jnp.float32) * 0.5
    b_a = jax.random.normal(k2, (1, H), jnp.float32) * 0.1
    w_b = jax.random.normal(k3, (H, K), jnp.float32) * 0.5
    b_b = jax.random.normal(k4, (1, K), jnp.float32) * 0.1
    return (w_a, b_a, w_b, b_b)


def _reference(p, params1, params2):
    def mlp(x, params):
        wa, ba, wb, bb = params
        return jnp.tanh(x @ wa + ba) @ wb + bb
    return mlp(p, params1) - mlp(p, params2)


if __name__ == "__main__":
    key = jax.random.PRNGKey(0)
    kp, k1, k2 = jax.random.split(key, 3)
    params1 = _init_mlp(k1)
    params2 = _init_mlp(k2)

    # Case 1: tile-friendly N, exact f32 compute path, tight check.
    N = 2048
    p = jax.random.uniform(kp, (N, D), jnp.float32)
    out = jax.block_until_ready(
        diff_solution(p, params1, params2, compute_dtype=jnp.float32))
    ref = _reference(p, params1, params2)
    assert out.shape == (N, K)
    assert jnp.allclose(out, ref, atol=2e-4, rtol=2e-4), "f32 mismatch vs reference"

    # Case 2: ragged N exercising the cdiv grid + masked final tile (no pad).
    N2 = 777
    p2 = jax.random.uniform(jax.random.PRNGKey(3), (N2, D), jnp.float32)
    out2 = jax.block_until_ready(
        diff_solution(p2, params1, params2, compute_dtype=jnp.float32))
    ref2 = _reference(p2, params1, params2)
    assert out2.shape == (N2, K)
    assert jnp.allclose(out2, ref2, atol=2e-4, rtol=2e-4), "ragged-N mismatch"

    # Case 3: auto compute dtype (bf16 on v6e/v7x, f32 on v5e/older) --
    # checked with a loose relative-L2 bound appropriate for bf16.
    out3 = jax.block_until_ready(diff_solution(p, params1, params2))
    assert out3.shape == (N, K)
    assert bool(jnp.isfinite(out3).all())
    rel = jnp.linalg.norm(out3.astype(jnp.float32) - ref) / jnp.linalg.norm(ref)
    assert float(rel) < 5e-2, f"auto-dtype relative L2 error too large: {float(rel)}"

    # TODO(synk): DiffSolution wraps arbitrary callables; only the canonical
    # Linear->Tanh->Linear Solution pair is fused here (and none of the
    # TensorMapping plotting / error-estimation helpers).

    print("KERNEL_OK")
</pallas_src>

<mosaic_0001>
module attributes {stable_mosaic.version = 11 : i64} {
  func.func @kernel(%arg0: i32, %arg1: memref<2048x2xf32, #tpu.memory_space<vmem>>, %arg2: memref<2x64xf32, #tpu.memory_space<vmem>>, %arg3: memref<1x64xf32, #tpu.memory_space<vmem>>, %arg4: memref<64x4xf32, #tpu.memory_space<vmem>>, %arg5: memref<1x4xf32, #tpu.memory_space<vmem>>, %arg6: memref<2048x4xf32, #tpu.memory_space<vmem>>) attributes {dimension_semantics = [#tpu.dimension_semantics<parallel>], iteration_bounds = array<i64: 1>, scalar_prefetch = 0 : i64, scratch_operands = 0 : i64, tpu.core_type = #tpu.core_type<tc>, window_params = [{transform_indices = @transform_0, window_bounds = array<i64: 2048, 2>}, {pipeline_mode = #tpu.pipeline_mode<synchronous>, transform_indices = @transform_1, window_bounds = array<i64: 2, 64>}, {pipeline_mode = #tpu.pipeline_mode<synchronous>, transform_indices = @transform_2, window_bounds = array<i64: 1, 64>}, {pipeline_mode = #tpu.pipeline_mode<synchronous>, transform_indices = @transform_3, window_bounds = array<i64: 64, 4>}, {pipeline_mode = #tpu.pipeline_mode<synchronous>, transform_indices = @transform_4, window_bounds = array<i64: 1, 4>}, {transform_indices = @transform_5, window_bounds = array<i64: 2048, 4>}]} {
    %c0 = arith.constant 0 : index
    %c0_0 = arith.constant 0 : index
    %0 = vector.load %arg1[%c0, %c0_0] : memref<2048x2xf32, #tpu.memory_space<vmem>>, vector<2048x2xf32>
    %1 = vector.extract_strided_slice %0 {offsets = [0, 0], sizes = [2048, 1], strides = [1, 1]} : vector<2048x2xf32> to vector<2048x1xf32>
    %c0_1 = arith.constant 0 : index
    %c0_2 = arith.constant 0 : index
    %2 = vector.load %arg2[%c0_1, %c0_2] : memref<2x64xf32, #tpu.memory_space<vmem>>, vector<1x64xf32>
    %3 = vector.broadcast %1 : vector<2048x1xf32> to vector<2048x64xf32>
    %4 = vector.broadcast %2 : vector<1x64xf32> to vector<2048x64xf32>
    %5 = arith.mulf %3, %4 : vector<2048x64xf32>
    %6 = vector.extract_strided_slice %0 {offsets = [0, 1], sizes = [2048, 1], strides = [1, 1]} : vector<2048x2xf32> to vector<2048x1xf32>
    %c1 = arith.constant 1 : index
    %c0_3 = arith.constant 0 : index
    %7 = vector.load %arg2[%c1, %c0_3] : memref<2x64xf32, #tpu.memory_space<vmem>>, vector<1x64xf32>
    %8 = vector.broadcast %6 : vector<2048x1xf32> to vector<2048x64xf32>
    %9 = vector.broadcast %7 : vector<1x64xf32> to vector<2048x64xf32>
    %10 = arith.mulf %8, %9 : vector<2048x64xf32>
    %11 = arith.addf %5, %10 : vector<2048x64xf32>
    %c0_4 = arith.constant 0 : index
    %c0_5 = arith.constant 0 : index
    %12 = vector.load %arg3[%c0_4, %c0_5] : memref<1x64xf32, #tpu.memory_space<vmem>>, vector<1x64xf32>
    %13 = vector.broadcast %12 : vector<1x64xf32> to vector<2048x64xf32>
    %14 = arith.addf %11, %13 : vector<2048x64xf32>
    %15 = math.tanh %14 : vector<2048x64xf32>
    %c0_6 = arith.constant 0 : index
    %c0_7 = arith.constant 0 : index
    %16 = vector.load %arg4[%c0_6, %c0_7] : memref<64x4xf32, #tpu.memory_space<vmem>>, vector<64x4xf32>
    %cst = arith.constant dense<0.000000e+00> : vector<2048x4xf32>
    %17 = tpu.matmul %15, %16, %cst {dimension_numbers = #tpu.dot_dimension_numbers<[1], [0], [0], [1], [0, 0, 1, 1], [], []>} : vector<2048x64xf32>, vector<64x4xf32>, vector<2048x4xf32> -> vector<2048x4xf32>
    %c0_8 = arith.constant 0 : index
    %c0_9 = arith.constant 0 : index
    %18 = vector.load %arg5[%c0_8, %c0_9] : memref<1x4xf32, #tpu.memory_space<vmem>>, vector<1x4xf32>
    %19 = vector.broadcast %18 : vector<1x4xf32> to vector<2048x4xf32>
    %20 = arith.addf %17, %19 : vector<2048x4xf32>
    %c0_10 = arith.constant 0 : index
    %c0_11 = arith.constant 0 : index
    %21 = vector.load %arg6[%c0_10, %c0_11] : memref<2048x4xf32, #tpu.memory_space<vmem>>, vector<2048x4xf32>
    tpu.vector_store %arg6[%c0_10, %c0_11], %20 {strides = array<i32>} : memref<2048x4xf32, #tpu.memory_space<vmem>>, vector<2048x4xf32>,
    return
  }
  func.func @transform_0(%arg0: i32) -> (i32, i32) {
    %c0_i32 = arith.constant 0 : i32
    %c0_i32_0 = arith.constant 0 : i32
    return %arg0, %c0_i32 : i32, i32
  }
  func.func @transform_1(%arg0: i32) -> (i32, i32) {
    %c0_i32 = arith.constant 0 : i32
    %c0_i32_0 = arith.constant 0 : i32
    %c0_i32_1 = arith.constant 0 : i32
    return %c0_i32, %c0_i32_0 : i32, i32
  }
  func.func @transform_2(%arg0: i32) -> (i32, i32) {
    %c0_i32 = arith.constant 0 : i32
    %c0_i32_0 = arith.constant 0 : i32
    %c0_i32_1 = arith.constant 0 : i32
    return %c0_i32, %c0_i32_0 : i32, i32
  }
  func.func @transform_3(%arg0: i32) -> (i32, i32) {
    %c0_i32 = arith.constant 0 : i32
    %c0_i32_0 = arith.constant 0 : i32
    %c0_i32_1 = arith.constant 0 : i32
    return %c0_i32, %c0_i32_0 : i32, i32
  }
  func.func @transform_4(%arg0: i32) -> (i32, i32) {
    %c0_i32 = arith.constant 0 : i32
    %c0_i32_0 = arith.constant 0 : i32
    %c0_i32_1 = arith.constant 0 : i32
    return %c0_i32, %c0_i32_0 : i32, i32
  }
  func.func @transform_5(%arg0: i32) -> (i32, i32) {
    %c0_i32 = arith.constant 0 : i32
    %c0_i32_0 = arith.constant 0 : i32
    return %arg0, %c0_i32 : i32, i32
  }
}

</mosaic_0001>

<bundles_post_ra>
// kernel: sub.1
= control target key start
LH: loop header
LB: loop body
LE: loop exit
PB: predicated region body
PF: predicated region fallthrough
CT: control target
= control target key end

     0   :  { %s34_s0 = inlined_call_operand.vmem [shape: f32[1,4], index: 0, kind: input, shape index: {}]   ;;  %s35_s1 = inlined_call_operand.vmem [shape: f32[1,4], index: 1, kind: input, shape index: {}]   ;;  %s36_s2 = inlined_call_operand.vmem [shape: f32[1,4], index: 2, kind: output, shape index: {}]  }
   0x1   :  { %v3_v0 = vld [vmem:[%s34_s0] sm:$0x1] }
   0x2   :  { %v4_v1 = vld [vmem:[%s35_s1] sm:$0x1] }
   0x3   :  { %v7_v2 = vsub.f32 %v3_v0, %v4_v1 }
   0x5   :  { %9 = vst [vmem:[%s36_s2] sm:$0x1] %v7_v2 }

// kernel: neg.1
= control target key start
LH: loop header
LB: loop body
LE: loop exit
PB: predicated region body
PF: predicated region fallthrough
CT: control target
= control target key end

     0   :  { %s24_s0 = inlined_call_operand.vmem [shape: f32[32,4], index: 0, kind: input, shape index: {}]   ;;  %s25_s1 = inlined_call_operand.vmem [shape: f32[32,4], index: 1, kind: output, shape index: {}]  }
   0x1   :  { %v2_v0 = vld [vmem:[%s24_s0] sm:$0xf] }
   0x2   :  { %v5_v1 = vxor.u32 2147483648, %v2_v0 }
   0x4   :  { %7 = vst [vmem:[%s25_s1] sm:$0xf] %v5_v1 }

// kernel: _diff_solution_impl.1
= control target key start
LH: loop header
LB: loop body
LE: loop exit
PB: predicated region body
PF: predicated region fallthrough
CT: control target
= control target key end

     0   :  { %v8000_v0 = vmov 0   ;;  %vm3892_vm0 = vcmask 523264   ;;  %vm6006_vm1 = vcmask 31744   ;;  %s12757_s0 = inlined_call_operand.vmem [shape: f32[2048,2], index: 0, kind: input, shape index: {}]   ;;  %s12758_s3 = inlined_call_operand.vmem [shape: f32[64,4], index: 3, kind: input, shape index: {}]   ;;  %s12759_s1 = inlined_call_operand.vmem [shape: f32[2,64], index: 1, kind: input, shape index: {}]   ;;  %s12760_s2 = inlined_call_operand.vmem [shape: f32[1,64], index: 2, kind: input, shape index: {}]   ;;  %s12761_s4 = inlined_call_operand.vmem [shape: f32[1,4], index: 4, kind: input, shape index: {}]   ;;  %s12762_s5 = inlined_call_operand.vmem [shape: f32[2048,4], index: 5, kind: output, shape index: {}]  }
   0x1   :  { %7210 = vset.pattern.permute.xlu1 %v8000_v0  ;;  %7209 = vset.pattern.permute.xlu0 %v8000_v0  ;;  %v22_v1 = vld [vmem:[%s12757_s0 + $0x10] sm:$0xff]  ;;  %v20_v2 = vld [vmem:[%s12757_s0] sm:$0xff]  ;;  %v23_v3 = vld [vmem:[%s12757_s0 + $0x18] sm:$0xff] }
   0x2   :  { %289 = vperm.xlu1 %7210, %v22_v1   ;;  %279 = vperm.xlu0 %7209, %v20_v2   ;;  %v21_v4 = vld [vmem:[%s12757_s0 + $0x8] sm:$0xff]  ;;  %v24_v6 = vld [vmem:[%s12757_s0 + $0x20] sm:$0xff]  ;;  %v27_v7 = vld [vmem:[%s12757_s0 + $0x38] sm:$0xff] }
   0x3   :  { %v25_v5 = vld [vmem:[%s12757_s0 + $0x28] sm:$0xff]  ;;  %v26_v8 = vld [vmem:[%s12757_s0 + $0x30] sm:$0xff]  ;;  %v28_v10 = vld [vmem:[%s12757_s0 + $0x40] sm:$0xff] }
   0x4   :  { %v29_v9 = vld [vmem:[%s12757_s0 + $0x48] sm:$0xff]  ;;  %v31_v11 = vld [vmem:[%s12757_s0 + $0x58] sm:$0xff]  ;;  %v30_v12 = vld [vmem:[%s12757_s0 + $0x50] sm:$0xff] }
   0x5   :  { %v33_v13 = vld [vmem:[%s12757_s0 + $0x68] sm:$0xff]  ;;  %v32_v14 = vld [vmem:[%s12757_s0 + $0x60] sm:$0xff]  ;;  %v35_v15 = vld [vmem:[%s12757_s0 + $0x78] sm:$0xff] }
   0x6   :  { %294 = vperm.xlu1 %7210, %v23_v3   ;;  %284 = vperm.xlu0 %7209, %v21_v4   ;;  %v34_v16 = vld [vmem:[%s12757_s0 + $0x70] sm:$0xff]  ;;  %v37_v17 = vld [vmem:[%s12757_s0 + $0x88] sm:$0xff]  ;;  %v36_v18 = vld [vmem:[%s12757_s0 + $0x80] sm:$0xff] }
   0x7   :  { %v39_v19 = vld [vmem:[%s12757_s0 + $0x98] sm:$0xff]  ;;  %v38_v20 = vld [vmem:[%s12757_s0 + $0x90] sm:$0xff]  ;;  %v41_v21 = vld [vmem:[%s12757_s0 + $0xa8] sm:$0xff] }
   0x8   :  { %v40_v22 = vld [vmem:[%s12757_s0 + $0xa0] sm:$0xff]  ;;  %v43_v23 = vld [vmem:[%s12757_s0 + $0xb8] sm:$0xff]  ;;  %v42_v24 = vld [vmem:[%s12757_s0 + $0xb0] sm:$0xff] }
   0x9   :  { %v45_v25 = vld [vmem:[%s12757_s0 + $0xc8] sm:$0xff]  ;;  %v44_v26 = vld [vmem:[%s12757_s0 + $0xc0] sm:$0xff]  ;;  %v47_v27 = vld [vmem:[%s12757_s0 + $0xd8] sm:$0xff] }
   0xa   :  { %304 = vperm.xlu1 %7210, %v25_v5   ;;  %299 = vperm.xlu0 %7209, %v24_v6   ;;  %v46_v28 = vld [vmem:[%s12757_s0 + $0xd0] sm:$0xff]  ;;  %v49_v29 = vld [vmem:[%s12757_s0 + $0xe8] sm:$0xff]  ;;  %v48_v30 = vld [vmem:[%s12757_s0 + $0xe0] sm:$0xff] }
   0xb   :  { %v51_v31 = vld [vmem:[%s12757_s0 + $0xf8] sm:$0xff]  ;;  %v50_v32 = vld [vmem:[%s12757_s0 + $0xf0] sm:$0xff]  ;;  %v53_v33 = vld [vmem:[%s12757_s0 + $0x108] sm:$0xff] }
   0xc   :  { %v52_v34 = vld [vmem:[%s12757_s0 + $0x100] sm:$0xff]  ;;  %v55_v35 = vld [vmem:[%s12757_s0 + $0x118] sm:$0xff]  ;;  %v54_v36 = vld [vmem:[%s12757_s0 + $0x110] sm:$0xff] }
   0xd   :  { %v57_v37 = vld [vmem:[%s12757_s0 + $0x128] sm:$0xff]  ;;  %v56_v38 = vld [vmem:[%s12757_s0 + $0x120] sm:$0xff]  ;;  %v59_v39 = vld [vmem:[%s12757_s0 + $0x138] sm:$0xff] }
   0xe   :  { %314 = vperm.xlu1 %7210, %v27_v7   ;;  %309 = vperm.xlu0 %7209, %v26_v8   ;;  %v58_v40 = vld [vmem:[%s12757_s0 + $0x130] sm:$0xff]  ;;  %v61_v41 = vld [vmem:[%s12757_s0 + $0x148] sm:$0xff]  ;;  %v60_v42 = vld [vmem:[%s12757_s0 + $0x140] sm:$0xff] }
   0xf   :  { %v63_v43 = vld [vmem:[%s12757_s0 + $0x158] sm:$0xff]  ;;  %v62_v44 = vld [vmem:[%s12757_s0 + $0x150] sm:$0xff]  ;;  %v65_v45 = vld [vmem:[%s12757_s0 + $0x168] sm:$0xff] }
  0x10   :  { %v64_v46 = vld [vmem:[%s12757_s0 + $0x160] sm:$0xff]  ;;  %v67_v47 = vld [vmem:[%s12757_s0 + $0x178] sm:$0xff]  ;;  %v66_v48 = vld [vmem:[%s12757_s0 + $0x170] sm:$0xff] }
  0x11   :  { %v69_v49 = vld [vmem:[%s12757_s0 + $0x188] sm:$0xff]  ;;  %v68_v50 = vld [vmem:[%s12757_s0 + $0x180] sm:$0xff]  ;;  %v71_v51 = vld [vmem:[%s12757_s0 + $0x198] sm:$0xff] }
  0x12   :  { %324 = vperm.xlu1 %7210, %v29_v9   ;;  %319 = vperm.xlu0 %7209, %v28_v10   ;;  %v70_v52 = vld [vmem:[%s12757_s0 + $0x190] sm:$0xff]  ;;  %v73_v53 = vld [vmem:[%s12757_s0 + $0x1a8] sm:$0xff]  ;;  %v72_v54 = vld [vmem:[%s12757_s0 + $0x1a0] sm:$0xff] }
  0x13   :  { %v75_v55 = vld [vmem:[%s12757_s0 + $0x1b8] sm:$0xff]  ;;  %v74_v56 = vld [vmem:[%s12757_s0 + $0x1b0] sm:$0xff]  ;;  %v77_v57 = vld [vmem:[%s12757_s0 + $0x1c8] sm:$0xff] }
  0x14   :  { %v76_v58 = vld [vmem:[%s12757_s0 + $0x1c0] sm:$0xff]  ;;  %v79_v59 = vld [vmem:[%s12757_s0 + $0x1d8] sm:$0xff]  ;;  %v78_v60 = vld [vmem:[%s12757_s0 + $0x1d0] sm:$0xff] }
  0x15   :  { %v81_v61 = vld [vmem:[%s12757_s0 + $0x1e8] sm:$0xff]  ;;  %v80_v62 = vld [vmem:[%s12757_s0 + $0x1e0] sm:$0xff]  ;;  %v83_v63 = vld [vmem:[%s12757_s0 + $0x1f8] sm:$0xff] }
  0x16   :  { %334 = vperm.xlu1 %7210, %v31_v11   ;;  %329 = vperm.xlu0 %7209, %v30_v12   ;;  %v82_v0 = vld [vmem:[%s12757_s0 + $0x1f0] sm:$0xff]  ;;  %v85_v3 = vld [vmem:[%s12757_s0 + $0x208] sm:$0xff]  ;;  %v84_v4 = vld [vmem:[%s12757_s0 + $0x200] sm:$0xff] }
  0x17   :  { %v87_v7 = vld [vmem:[%s12757_s0 + $0x218] sm:$0xff]  ;;  %v86_v8 = vld [vmem:[%s12757_s0 + $0x210] sm:$0xff]  ;;  %v89_v11 = vld [vmem:[%s12757_s0 + $0x228] sm:$0xff] }
  0x18   :  { %v88_v12 = vld [vmem:[%s12757_s0 + $0x220] sm:$0xff] }
  0x1a   :  { %344 = vperm.xlu1 %7210, %v33_v13   ;;  %339 = vperm.xlu0 %7209, %v32_v14  }
  0x1e   :  { %354 = vperm.xlu1 %7210, %v35_v15   ;;  %349 = vperm.xlu0 %7209, %v34_v16   ;;  %v91_v15 = vld [vmem:[%s12757_s0 + $0x238] sm:$0xff]  ;;  %v90_v16 = vld [vmem:[%s12757_s0 + $0x230] sm:$0xff] }
  0x22   :  { %364 = vperm.xlu1 %7210, %v37_v17   ;;  %359 = vperm.xlu0 %7209, %v36_v18  }
  0x26   :  { %374 = vperm.xlu1 %7210, %v39_v19   ;;  %369 = vperm.xlu0 %7209, %v38_v20   ;;  %v93_v19 = vld [vmem:[%s12757_s0 + $0x248] sm:$0xff]  ;;  %v92_v20 = vld [vmem:[%s12757_s0 + $0x240] sm:$0xff] }
  0x2a   :  { %384 = vperm.xlu1 %7210, %v41_v21   ;;  %379 = vperm.xlu0 %7209, %v40_v22  }
  0x2e   :  { %394 = vperm.xlu1 %7210, %v43_v23   ;;  %389 = vperm.xlu0 %7209, %v42_v24   ;;  %v95_v23 = vld [vmem:[%s12757_s0 + $0x258] sm:$0xff]  ;;  %v94_v24 = vld [vmem:[%s12757_s0 + $0x250] sm:$0xff] }
  0x32   :  { %404 = vperm.xlu1 %7210, %v45_v25   ;;  %399 = vperm.xlu0 %7209, %v44_v26  }
  0x36   :  { %414 = vperm.xlu1 %7210, %v47_v27   ;;  %409 = vperm.xlu0 %7209, %v46_v28   ;;  %v97_v27 = vld [vmem:[%s12757_s0 + $0x268] sm:$0xff]  ;;  %v96_v28 = vld [vmem:[%s12757_s0 + $0x260] sm:$0xff] }
  0x3a   :  { %424 = vperm.xlu1 %7210, %v49_v29   ;;  %419 = vperm.xlu0 %7209, %v48_v30  }
  0x3e   :  { %434 = vperm.xlu1 %7210, %v51_v31   ;;  %429 = vperm.xlu0 %7209, %v50_v32   ;;  %v99_v31 = vld [vmem:[%s12757_s0 + $0x278] sm:$0xff]  ;;  %v98_v32 = vld [vmem:[%s12757_s0 + $0x270] sm:$0xff] }
  0x42   :  { %444 = vperm.xlu1 %7210, %v53_v33   ;;  %439 = vperm.xlu0 %7209, %v52_v34  }
  0x46   :  { %454 = vperm.xlu1 %7210, %v55_v35   ;;  %449 = vperm.xlu0 %7209, %v54_v36   ;;  %v101_v35 = vld [vmem:[%s12757_s0 + $0x288] sm:$0xff]  ;;  %v100_v36 = vld [vmem:[%s12757_s0 + $0x280] sm:$0xff] }
  0x4a   :  { %464 = vperm.xlu1 %7210, %v57_v37   ;;  %459 = vperm.xlu0 %7209, %v56_v38  }
  0x4e   :  { %474 = vperm.xlu1 %7210, %v59_v39   ;;  %469 = vperm.xlu0 %7209, %v58_v40   ;;  %v103_v39 = vld [vmem:[%s12757_s0 + $0x298] sm:$0xff]  ;;  %v102_v40 = vld [vmem:[%s12757_s0 + $0x290] sm:$0xff] }
  0x52   :  { %484 = vperm.xlu1 %7210, %v61_v41   ;;  %479 = vperm.xlu0 %7209, %v60_v42  }
  0x56   :  { %494 = vperm.xlu1 %7210, %v63_v43   ;;  %489 = vperm.xlu0 %7209, %v62_v44   ;;  %v105_v43 = vld [vmem:[%s12757_s0 + $0x2a8] sm:$0xff]  ;;  %v104_v44 = vld [vmem:[%s12757_s0 + $0x2a0] sm:$0xff] }
  0x5a   :  { %504 = vperm.xlu1 %7210, %v65_v45   ;;  %499 = vperm.xlu0 %7209, %v64_v46  }
  0x5e   :  { %514 = vperm.xlu1 %7210, %v67_v47   ;;  %509 = vperm.xlu0 %7209, %v66_v48   ;;  %v107_v47 = vld [vmem:[%s12757_s0 + $0x2b8] sm:$0xff]  ;;  %v106_v48 = vld [vmem:[%s12757_s0 + $0x2b0] sm:$0xff] }
  0x62   :  { %524 = vperm.xlu1 %7210, %v69_v49   ;;  %519 = vperm.xlu0 %7209, %v68_v50  }
  0x66   :  { %534 = vperm.xlu1 %7210, %v71_v51   ;;  %529 = vperm.xlu0 %7209, %v70_v52   ;;  %v109_v51 = vld [vmem:[%s12757_s0 + $0x2c8] sm:$0xff]  ;;  %v108_v52 = vld [vmem:[%s12757_s0 + $0x2c0] sm:$0xff] }
  0x6a   :  { %544 = vperm.xlu1 %7210, %v73_v53   ;;  %539 = vperm.xlu0 %7209, %v72_v54  }
  0x6e   :  { %554 = vperm.xlu1 %7210, %v75_v55   ;;  %549 = vperm.xlu0 %7209, %v74_v56   ;;  %v111_v55 = vld [vmem:[%s12757_s0 + $0x2d8] sm:$0xff]  ;;  %v110_v56 = vld [vmem:[%s12757_s0 + $0x2d0] sm:$0xff] }
  0x72   :  { %564 = vperm.xlu1 %7210, %v77_v57   ;;  %559 = vperm.xlu0 %7209, %v76_v58  }
  0x76   :  { %574 = vperm.xlu1 %7210, %v79_v59   ;;  %569 = vperm.xlu0 %7209, %v78_v60   ;;  %v113_v59 = vld [vmem:[%s12757_s0 + $0x2e8] sm:$0xff]  ;;  %v112_v60 = vld [vmem:[%s12757_s0 + $0x2e0] sm:$0xff] }
  0x7a   :  { %584 = vperm.xlu1 %7210, %v81_v61   ;;  %579 = vperm.xlu0 %7209, %v80_v62  }
  0x7d   :  { %v8224_v1 = vpop.permute.xlu1 %289  ;;  %v8226_v2 = vpop.permute.xlu0 %279 }
  0x7e   :  { %594 = vperm.xlu1 %7210, %v83_v63   ;;  %589 = vperm.xlu0 %7209, %v82_v0   ;;  %v115_v63 = vld [vmem:[%s12757_s0 + $0x2f8] sm:$0xff]  ;;  %v114_v0 = vld [vmem:[%s12757_s0 + $0x2f0] sm:$0xff] }
  0x81   :  { %v8234_v5 = vpop.permute.xlu1 %294  ;;  %v8236_v6 = vpop.permute.xlu0 %284 }
  0x82   :  { %604 = vperm.xlu1 %7210, %v85_v3   ;;  %599 = vperm.xlu0 %7209, %v84_v4  }
  0x85   :  { %v8244_v9 = vpop.permute.xlu1 %304  ;;  %v8246_v10 = vpop.permute.xlu0 %299 }
  0x86   :  { %614 = vperm.xlu1 %7210, %v87_v7   ;;  %609 = vperm.xlu0 %7209, %v86_v8   ;;  %v117_v7 = vld [vmem:[%s12757_s0 + $0x308] sm:$0xff]  ;;  %v116_v8 = vld [vmem:[%s12757_s0 + $0x300] sm:$0xff] }
  0x89   :  { %v8254_v13 = vpop.permute.xlu1 %314  ;;  %v8256_v14 = vpop.permute.xlu0 %309 }
  0x8a   :  { %624 = vperm.xlu1 %7210, %v89_v11   ;;  %619 = vperm.xlu0 %7209, %v88_v12  }
  0x8d   :  { %v8264_v17 = vpop.permute.xlu1 %324  ;;  %v8266_v18 = vpop.permute.xlu0 %319 }
  0x8e   :  { %634 = vperm.xlu1 %7210, %v91_v15   ;;  %629 = vperm.xlu0 %7209, %v90_v16   ;;  %v119_v15 = vld [vmem:[%s12757_s0 + $0x318] sm:$0xff]  ;;  %v118_v16 = vld [vmem:[%s12757_s0 + $0x310] sm:$0xff] }
  0x91   :  { %v8274_v21 = vpop.permute.xlu1 %334  ;;  %v8276_v22 = vpop.permute.xlu0 %329 }
  0x92   :  { %644 = vperm.xlu1 %7210, %v93_v19   ;;  %639 = vperm.xlu0 %7209, %v92_v20  }
  0x95   :  { %v8284_v25 = vpop.permute.xlu1 %344  ;;  %v8286_v26 = vpop.permute.xlu0 %339 }
  0x96   :  { %654 = vperm.xlu1 %7210, %v95_v23   ;;  %649 = vperm.xlu0 %7209, %v94_v24   ;;  %v121_v23 = vld [vmem:[%s12757_s0 + $0x328] sm:$0xff]  ;;  %v120_v24 = vld [vmem:[%s12757_s0 + $0x320] sm:$0xff] }
  0x99   :  { %v8294_v29 = vpop.permute.xlu1 %354  ;;  %v8296_v30 = vpop.permute.xlu0 %349 }
  0x9a   :  { %664 = vperm.xlu1 %7210, %v97_v27   ;;  %659 = vperm.xlu0 %7209, %v96_v28  }
  0x9d   :  { %v8304_v33 = vpop.permute.xlu1 %364  ;;  %v8306_v34 = vpop.permute.xlu0 %359 }
  0x9e   :  { %674 = vperm.xlu1 %7210, %v99_v31   ;;  %669 = vperm.xlu0 %7209, %v98_v32   ;;  %v123_v31 = vld [vmem:[%s12757_s0 + $0x338] sm:$0xff]  ;;  %v122_v32 = vld [vmem:[%s12757_s0 + $0x330] sm:$0xff] }
  0xa1   :  { %v8314_v37 = vpop.permute.xlu1 %374  ;;  %v8316_v38 = vpop.permute.xlu0 %369 }
  0xa2   :  { %684 = vperm.xlu1 %7210, %v101_v35   ;;  %679 = vperm.xlu0 %7209, %v100_v36  }
  0xa5   :  { %v8324_v41 = vpop.permute.xlu1 %384  ;;  %v8326_v42 = vpop.permute.xlu0 %379 }
  0xa6   :  { %694 = vperm.xlu1 %7210, %v103_v39   ;;  %689 = vperm.xlu0 %7209, %v102_v40   ;;  %v125_v39 = vld [vmem:[%s12757_s0 + $0x348] sm:$0xff]  ;;  %v124_v40 = vld [vmem:[%s12757_s0 + $0x340] sm:$0xff] }
  0xa9   :  { %v8334_v45 = vpop.permute.xlu1 %394  ;;  %v8336_v46 = vpop.permute.xlu0 %389 }
  0xaa   :  { %704 = vperm.xlu1 %7210, %v105_v43   ;;  %699 = vperm.xlu0 %7209, %v104_v44  }
  0xad   :  { %v8344_v49 = vpop.permute.xlu1 %404  ;;  %v8346_v50 = vpop.permute.xlu0 %399 }
  0xae   :  { %714 = vperm.xlu1 %7210, %v107_v47   ;;  %709 = vperm.xlu0 %7209, %v106_v48   ;;  %v127_v47 = vld [vmem:[%s12757_s0 + $0x358] sm:$0xff]  ;;  %v126_v48 = vld [vmem:[%s12757_s0 + $0x350] sm:$0xff] }
  0xb1   :  { %v8354_v53 = vpop.permute.xlu1 %414  ;;  %v8356_v54 = vpop.permute.xlu0 %409 }
  0xb2   :  { %724 = vperm.xlu1 %7210, %v109_v51   ;;  %719 = vperm.xlu0 %7209, %v108_v52  }
  0xb5   :  { %v8364_v57 = vpop.permute.xlu1 %424  ;;  %v8366_v58 = vpop.permute.xlu0 %419 }
  0xb6   :  { %734 = vperm.xlu1 %7210, %v111_v55   ;;  %729 = vperm.xlu0 %7209, %v110_v56   ;;  %v129_v55 = vld [vmem:[%s12757_s0 + $0x368] sm:$0xff]  ;;  %v128_v56 = vld [vmem:[%s12757_s0 + $0x360] sm:$0xff] }
  0xb9   :  { %v8374_v61 = vpop.permute.xlu1 %434  ;;  %v8376_v62 = vpop.permute.xlu0 %429 }
  0xba   :  { %744 = vperm.xlu1 %7210, %v113_v59   ;;  %739 = vperm.xlu0 %7209, %v112_v60  }
  0xbd   :  { %v8384_v3 = vpop.permute.xlu1 %444  ;;  %v8386_v4 = vpop.permute.xlu0 %439 }
  0xbe   :  { %754 = vperm.xlu1 %7210, %v115_v63   ;;  %749 = vperm.xlu0 %7209, %v114_v0   ;;  %v131_v63 = vld [vmem:[%s12757_s0 + $0x378] sm:$0xff]  ;;  %v130_v0 = vld [vmem:[%s12757_s0 + $0x370] sm:$0xff] }
  0xc1   :  { %v8394_v11 = vpop.permute.xlu1 %454  ;;  %v8396_v12 = vpop.permute.xlu0 %449 }
  0xc2   :  { %764 = vperm.xlu1 %7210, %v117_v7   ;;  %759 = vperm.xlu0 %7209, %v116_v8  }
  0xc5   :  { %v8404_v19 = vpop.permute.xlu1 %464  ;;  %v8406_v20 = vpop.permute.xlu0 %459 }
  0xc6   :  { %774 = vperm.xlu1 %7210, %v119_v15   ;;  %769 = vperm.xlu0 %7209, %v118_v16   ;;  %v133_v15 = vld [vmem:[%s12757_s0 + $0x388] sm:$0xff]  ;;  %v132_v16 = vld [vmem:[%s12757_s0 + $0x380] sm:$0xff] }
  0xc9   :  { %v8414_v27 = vpop.permute.xlu1 %474  ;;  %v8416_v28 = vpop.permute.xlu0 %469 }
  0xca   :  { %784 = vperm.xlu1 %7210, %v121_v23   ;;  %779 = vperm.xlu0 %7209, %v120_v24  }
  0xcd   :  { %v8424_v35 = vpop.permute.xlu1 %484  ;;  %v8426_v36 = vpop.permute.xlu0 %479 }
  0xce   :  { %794 = vperm.xlu1 %7210, %v123_v31   ;;  %789 = vperm.xlu0 %7209, %v122_v32   ;;  %v135_v31 = vld [vmem:[%s12757_s0 + $0x398] sm:$0xff]  ;;  %v134_v32 = vld [vmem:[%s12757_s0 + $0x390] sm:$0xff] }
  0xd1   :  { %v8434_v43 = vpop.permute.xlu1 %494  ;;  %v8436_v44 = vpop.permute.xlu0 %489 }
  0xd2   :  { %804 = vperm.xlu1 %7210, %v125_v39   ;;  %799 = vperm.xlu0 %7209, %v124_v40  }
  0xd5   :  { %v8444_v51 = vpop.permute.xlu1 %504  ;;  %v8446_v52 = vpop.permute.xlu0 %499 }
  0xd6   :  { %814 = vperm.xlu1 %7210, %v127_v47   ;;  %809 = vperm.xlu0 %7209, %v126_v48   ;;  %v137_v47 = vld [vmem:[%s12757_s0 + $0x3a8] sm:$0xff]  ;;  %v136_v48 = vld [vmem:[%s12757_s0 + $0x3a0] sm:$0xff] }
  0xd9   :  { %v8454_v59 = vpop.permute.xlu1 %514  ;;  %v8456_v60 = vpop.permute.xlu0 %509 }
  0xda   :  { %824 = vperm.xlu1 %7210, %v129_v55   ;;  %819 = vperm.xlu0 %7209, %v128_v56  }
  0xdd   :  { %v8464_v7 = vpop.permute.xlu1 %524  ;;  %v8466_v8 = vpop.permute.xlu0 %519 }
  0xde   :  { %12763 = vst [vmem:[#allocation2_spill] sm:$0xff] %v8466_v8  ;;  %834 = vperm.xlu1 %7210, %v131_v63   ;;  %829 = vperm.xlu0 %7209, %v130_v0   ;;  %v139_v63 = vld [vmem:[%s12757_s0 + $0x3b8] sm:$0xff]  ;;  %v138_v0 = vld [vmem:[%s12757_s0 + $0x3b0] sm:$0xff] }
  0xe1   :  { %v8474_v23 = vpop.permute.xlu1 %534  ;;  %v8476_v24 = vpop.permute.xlu0 %529 }
  0xe2   :  { %12764 = vst [vmem:[#allocation3_spill] sm:$0xff] %v8474_v23  ;;  %12765 = vst [vmem:[#allocation4_spill] sm:$0xff] %v8476_v24  ;;  %844 = vperm.xlu1 %7210, %v133_v15   ;;  %839 = vperm.xlu0 %7209, %v132_v16  }
  0xe5   :  { %v8484_v39 = vpop.permute.xlu1 %544  ;;  %v8486_v40 = vpop.permute.xlu0 %539 }
  0xe6   :  { %12766 = vst [vmem:[#allocation5_spill] sm:$0xff] %v8484_v39  ;;  %12767 = vst [vmem:[#allocation6_spill] sm:$0xff] %v8486_v40  ;;  %854 = vperm.xlu1 %7210, %v135_v31   ;;  %849 = vperm.xlu0 %7209, %v134_v32   ;;  %v141_v31 = vld [vmem:[%s12757_s0 + $0x3c8] sm:$0xff]  ;;  %v140_v32 = vld [vmem:[%s12757_s0 + $0x3c0] sm:$0xff] }
  0xe9   :  { %v8494_v55 = vpop.permute.xlu1 %554  ;;  %v8496_v56 = vpop.permute.xlu0 %549 }
  0xea   :  { %12768 = vst [vmem:[#allocation7_spill] sm:$0xff] %v8494_v55  ;;  %12769 = vst [vmem:[#allocation8_spill] sm:$0xff] %v8496_v56  ;;  %864 = vperm.xlu1 %7210, %v137_v47   ;;  %859 = vperm.xlu0 %7209, %v136_v48   ;;  %v7788_v55 = vld [vmem:[%s12757_s0 + $0x1f8] sm:$0xff] }
  0xed   :  { %v8504_v15 = vpop.permute.xlu1 %564  ;;  %v8506_v16 = vpop.permute.xlu0 %559 }
  0xee   :  { %12770 = vst [vmem:[#allocation9_spill] sm:$0xff] %v8504_v15  ;;  %12771 = vst [vmem:[#allocation10_spill] sm:$0xff] %v8506_v16  ;;  %874 = vperm.xlu1 %7210, %v139_v63   ;;  %869 = vperm.xlu0 %7209, %v138_v0   ;;  %v143_v16 = vld [vmem:[%s12757_s0 + $0x3d8] sm:$0xff]  ;;  %v142_v63 = vld [vmem:[%s12757_s0 + $0x3d0] sm:$0xff] }
  0xf1   :  { %v8514_v47 = vpop.permute.xlu1 %574  ;;  %v8516_v48 = vpop.permute.xlu0 %569 }
  0xf2   :  { %12772 = vst [vmem:[#allocation11_spill] sm:$0xff] %v8514_v47  ;;  %12773 = vst [vmem:[#allocation12_spill] sm:$0xff] %v8516_v48  ;;  %884 = vperm.xlu1 %7210, %v141_v31   ;;  %879 = vperm.xlu0 %7209, %v140_v32   ;;  %v145_v48 = vld [vmem:[%s12757_s0 + $0x3e8] sm:$0xff]  ;;  %v144_v31 = vld [vmem:[%s12757_s0 + $0x3e0] sm:$0xff] }
  0xf5   :  { %v8524_v0 = vpop.permute.xlu1 %584  ;;  %v8526_v15 = vpop.permute.xlu0 %579 }
  0xf6   :  { %12774 = vst [vmem:[#allocation13_spill] sm:$0xff] %v8524_v0  ;;  %12775 = vst [vmem:[#allocation14_spill] sm:$0xff] %v8526_v15  ;;  %894 = vperm.xlu1 %7210, %v143_v16   ;;  %889 = vperm.xlu0 %7209, %v142_v63   ;;  %v147_v15 = vld [vmem:[%s12757_s0 + $0x3f8] sm:$0xff]  ;;  %v146_v16 = vld [vmem:[%s12757_s0 + $0x3f0] sm:$0xff] }
  0xf9   :  { %v8534_v32 = vpop.permute.xlu1 %594  ;;  %v8536_v47 = vpop.permute.xlu0 %589 }
  0xfa   :  { %12776 = vst [vmem:[#allocation15_spill] sm:$0xff] %v8534_v32  ;;  %12777 = vst [vmem:[#allocation16_spill] sm:$0xff] %v8536_v47  ;;  %904 = vperm.xlu1 %7210, %v145_v48   ;;  %899 = vperm.xlu0 %7209, %v144_v31   ;;  %v149_v47 = vld [vmem:[%s12757_s0 + $0x408] sm:$0xff]  ;;  %v148_v48 = vld [vmem:[%s12757_s0 + $0x400] sm:$0xff] }
  0xfd   :  { %v8544_v63 = vpop.permute.xlu1 %604  ;;  %v8546_v0 = vpop.permute.xlu0 %599 }
  0xfe   :  { %12778 = vst [vmem:[#allocation17_spill] sm:$0xff] %v8544_v63  ;;  %12779 = vst [vmem:[#allocation18_spill] sm:$0xff] %v8546_v0  ;;  %914 = vperm.xlu1 %7210, %v147_v15   ;;  %909 = vperm.xlu0 %7209, %v146_v16   ;;  %v151_v63 = vld [vmem:[%s12757_s0 + $0x418] sm:$0xff]  ;;  %v150_v15 = vld [vmem:[%s12757_s0 + $0x410] sm:$0xff] }
 0x101   :  { %v8554_v31 = vpop.permute.xlu1 %614  ;;  %v8556_v32 = vpop.permute.xlu0 %609 }
 0x102   :  { %12780 = vst [vmem:[#allocation19_spill] sm:$0xff] %v8554_v31  ;;  %12781 = vst [vmem:[#allocation20_spill] sm:$0xff] %v8556_v32  ;;  %924 = vperm.xlu1 %7210, %v149_v47   ;;  %919 = vperm.xlu0 %7209, %v148_v48   ;;  %v153_v31 = vld [vmem:[%s12757_s0 + $0x428] sm:$0xff]  ;;  %v152_v47 = vld [vmem:[%s12757_s0 + $0x420] sm:$0xff] }
 0x105   :  { %v8564_v16 = vpop.permute.xlu1 %624  ;;  %v8566_v0 = vpop.permute.xlu0 %619 }
 0x106   :  { %12782 = vst [vmem:[#allocation21_spill] sm:$0xff] %v8564_v16  ;;  %12783 = vst [vmem:[#allocation22_spill] sm:$0xff] %v8566_v0  ;;  %934 = vperm.xlu1 %7210, %v151_v63   ;;  %929 = vperm.xlu0 %7209, %v150_v15   ;;  %v155_v16 = vld [vmem:[%s12757_s0 + $0x438] sm:$0xff]  ;;  %v154_v63 = vld [vmem:[%s12757_s0 + $0x430] sm:$0xff] }
 0x109   :  { %v8574_v48 = vpop.permute.xlu1 %634  ;;  %v8576_v32 = vpop.permute.xlu0 %629 }
 0x10a   :  { %12784 = vst [vmem:[#allocation23_spill] sm:$0xff] %v8574_v48  ;;  %12785 = vst [vmem:[#allocation24_spill] sm:$0xff] %v8576_v32  ;;  %944 = vperm.xlu1 %7210, %v153_v31   ;;  %939 = vperm.xlu0 %7209, %v152_v47   ;;  %v157_v48 = vld [vmem:[%s12757_s0 + $0x448] sm:$0xff]  ;;  %v156_v31 = vld [vmem:[%s12757_s0 + $0x440] sm:$0xff] }
 0x10d   :  { %v8584_v15 = vpop.permute.xlu1 %644  ;;  %v8586_v0 = vpop.permute.xlu0 %639 }
 0x10e   :  { %12786 = vst [vmem:[#allocation25_spill] sm:$0xff] %v8584_v15  ;;  %12787 = vst [vmem:[#allocation26_spill] sm:$0xff] %v8586_v0  ;;  %954 = vperm.xlu1 %7210, %v155_v16   ;;  %949 = vperm.xlu0 %7209, %v154_v63   ;;  %v159_v15 = vld [vmem:[%s12757_s0 + $0x458] sm:$0xff]  ;;  %v158_v16 = vld [vmem:[%s12757_s0 + $0x450] sm:$0xff] }
 0x111   :  { %v8594_v47 = vpop.permute.xlu1 %654  ;;  %v8596_v32 = vpop.permute.xlu0 %649 }
 0x112   :  { %12788 = vst [vmem:[#allocation27_spill] sm:$0xff] %v8594_v47  ;;  %12789 = vst [vmem:[#allocation28_spill] sm:$0xff] %v8596_v32  ;;  %964 = vperm.xlu1 %7210, %v157_v48   ;;  %959 = vperm.xlu0 %7209, %v156_v31   ;;  %v161_v47 = vld [vmem:[%s12757_s0 + $0x468] sm:$0xff]  ;;  %v160_v48 = vld [vmem:[%s12757_s0 + $0x460] sm:$0xff] }
 0x115   :  { %v8604_v63 = vpop.permute.xlu1 %664  ;;  %v8606_v0 = vpop.permute.xlu0 %659 }
 0x116   :  { %12790 = vst [vmem:[#allocation29_spill] sm:$0xff] %v8604_v63  ;;  %12791 = vst [vmem:[#allocation30_spill] sm:$0xff] %v8606_v0  ;;  %974 = vperm.xlu1 %7210, %v159_v15   ;;  %969 = vperm.xlu0 %7209, %v158_v16   ;;  %v163_v63 = vld [vmem:[%s12757_s0 + $0x478] sm:$0xff]  ;;  %v162_v15 = vld [vmem:[%s12757_s0 + $0x470] sm:$0xff] }
 0x119   :  { %v8614_v31 = vpop.permute.xlu1 %674  ;;  %v8616_v32 = vpop.permute.xlu0 %669 }
 0x11a   :  { %12792 = vst [vmem:[#allocation31_spill] sm:$0xff] %v8614_v31  ;;  %12793 = vst [vmem:[#allocation32_spill] sm:$0xff] %v8616_v32  ;;  %984 = vperm.xlu1 %7210, %v161_v47   ;;  %979 = vperm.xlu0 %7209, %v160_v48   ;;  %v165_v31 = vld [vmem:[%s12757_s0 + $0x488] sm:$0xff]  ;;  %v164_v47 = vld [vmem:[%s12757_s0 + $0x480] sm:$0xff] }
 0x11d   :  { %v8624_v16 = vpop.permute.xlu1 %684  ;;  %v8626_v0 = vpop.permute.xlu0 %679 }
 0x11e   :  { %12794 = vst [vmem:[#allocation33_spill] sm:$0xff] %v8624_v16  ;;  %12795 = vst [vmem:[#allocation34_spill] sm:$0xff] %v8626_v0  ;;  %994 = vperm.xlu1 %7210, %v163_v63   ;;  %989 = vperm.xlu0 %7209, %v162_v15   ;;  %v167_v16 = vld [vmem:[%s12757_s0 + $0x498] sm:$0xff]  ;;  %v166_v63 = vld [vmem:[%s12757_s0 + $0x490] sm:$0xff] }
 0x121   :  { %v8634_v48 = vpop.permute.xlu1 %694  ;;  %v8636_v32 = vpop.permute.xlu0 %689 }
 0x122   :  { %12796 = vst [vmem:[#allocation35_spill] sm:$0xff] %v8634_v48  ;;  %12797 = vst [vmem:[#allocation36_spill] sm:$0xff] %v8636_v32  ;;  %1004 = vperm.xlu1 %7210, %v165_v31   ;;  %999 = vperm.xlu0 %7209, %v164_v47   ;;  %v169_v48 = vld [vmem:[%s12757_s0 + $0x4a8] sm:$0xff]  ;;  %v168_v31 = vld [vmem:[%s12757_s0 + $0x4a0] sm:$0xff] }
 0x125   :  { %v8644_v15 = vpop.permute.xlu1 %704  ;;  %v8646_v0 = vpop.permute.xlu0 %699 }
 0x126   :  { %12798 = vst [vmem:[#allocation37_spill] sm:$0xff] %v8644_v15  ;;  %12799 = vst [vmem:[#allocation38_spill] sm:$0xff] %v8646_v0  ;;  %1014 = vperm.xlu1 %7210, %v167_v16   ;;  %1009 = vperm.xlu0 %7209, %v166_v63   ;;  %v171_v15 = vld [vmem:[%s12757_s0 + $0x4b8] sm:$0xff]  ;;  %v170_v16 = vld [vmem:[%s12757_s0 + $0x4b0] sm:$0xff] }
 0x129   :  { %v8654_v47 = vpop.permute.xlu1 %714  ;;  %v8656_v32 = vpop.permute.xlu0 %709 }
 0x12a   :  { %12800 = vst [vmem:[#allocation39_spill] sm:$0xff] %v8654_v47  ;;  %12801 = vst [vmem:[#allocation40_spill] sm:$0xff] %v8656_v32  ;;  %1024 = vperm.xlu1 %7210, %v169_v48   ;;  %1019 = vperm.xlu0 %7209, %v168_v31   ;;  %v173_v47 = vld [vmem:[%s12757_s0 + $0x4c8] sm:$0xff]  ;;  %v172_v48 = vld [vmem:[%s12757_s0 + $0x4c0] sm:$0xff] }
 0x12d   :  { %v8664_v63 = vpop.permute.xlu1 %724  ;;  %v8666_v0 = vpop.permute.xlu0 %719 }
 0x12e   :  { %12802 = vst [vmem:[#allocation41_spill] sm:$0xff] %v8664_v63  ;;  %12803 = vst [vmem:[#allocation42_spill] sm:$0xff] %v8666_v0  ;;  %1034 = vperm.xlu1 %7210, %v171_v15   ;;  %1029 = vperm.xlu0 %7209, %v170_v16   ;;  %v175_v63 = vld [vmem:[%s12757_s0 + $0x4d8] sm:$0xff]  ;;  %v174_v15 = vld [vmem:[%s12757_s0 + $0x4d0] sm:$0xff] }
 0x131   :  { %v8674_v31 = vpop.permute.xlu1 %734  ;;  %v8676_v32 = vpop.permute.xlu0 %729 }
 0x132   :  { %12804 = vst [vmem:[#allocation43_spill] sm:$0xff] %v8674_v31  ;;  %12805 = vst [vmem:[#allocation44_spill] sm:$0xff] %v8676_v32  ;;  %1044 = vperm.xlu1 %7210, %v173_v47   ;;  %1039 = vperm.xlu0 %7209, %v172_v48   ;;  %v177_v31 = vld [vmem:[%s12757_s0 + $0x4e8] sm:$0xff]  ;;  %v176_v47 = vld [vmem:[%s12757_s0 + $0x4e0] sm:$0xff] }
 0x135   :  { %v8684_v16 = vpop.permute.xlu1 %744  ;;  %v8686_v0 = vpop.permute.xlu0 %739 }
 0x136   :  { %12806 = vst [vmem:[#allocation45_spill] sm:$0xff] %v8684_v16  ;;  %12807 = vst [vmem:[#allocation46_spill] sm:$0xff] %v8686_v0  ;;  %1054 = vperm.xlu1 %7210, %v175_v63   ;;  %1049 = vperm.xlu0 %7209, %v174_v15   ;;  %v179_v16 = vld [vmem:[%s12757_s0 + $0x4f8] sm:$0xff]  ;;  %v178_v63 = vld [vmem:[%s12757_s0 + $0x4f0] sm:$0xff] }
 0x139   :  { %v8694_v48 = vpop.permute.xlu1 %754  ;;  %v8696_v32 = vpop.permute.xlu0 %749 }
 0x13a   :  { %12808 = vst [vmem:[#allocation47_spill] sm:$0xff] %v8694_v48  ;;  %12809 = vst [vmem:[#allocation48_spill] sm:$0xff] %v8696_v32  ;;  %1064 = vperm.xlu1 %7210, %v177_v31   ;;  %1059 = vperm.xlu0 %7209, %v176_v47   ;;  %v181_v48 = vld [vmem:[%s12757_s0 + $0x508] sm:$0xff]  ;;  %v180_v31 = vld [vmem:[%s12757_s0 + $0x500] sm:$0xff] }
 0x13d   :  { %v8704_v15 = vpop.permute.xlu1 %764  ;;  %v8706_v0 = vpop.permute.xlu0 %759 }
 0x13e   :  { %12810 = vst [vmem:[#allocation49_spill] sm:$0xff] %v8704_v15  ;;  %12811 = vst [vmem:[#allocation50_spill] sm:$0xff] %v8706_v0  ;;  %1074 = vperm.xlu1 %7210, %v179_v16   ;;  %1069 = vperm.xlu0 %7209, %v178_v63   ;;  %v183_v15 = vld [vmem:[%s12757_s0 + $0x518] sm:$0xff]  ;;  %v182_v16 = vld [vmem:[%s12757_s0 + $0x510] sm:$0xff] }
 0x141   :  { %v8714_v47 = vpop.permute.xlu1 %774  ;;  %v8716_v32 = vpop.permute.xlu0 %769 }
 0x142   :  { %12812 = vst [vmem:[#allocation51_spill] sm:$0xff] %v8714_v47  ;;  %12813 = vst [vmem:[#allocation52_spill] sm:$0xff] %v8716_v32  ;;  %1084 = vperm.xlu1 %7210, %v181_v48   ;;  %1079 = vperm.xlu0 %7209, %v180_v31   ;;  %v185_v47 = vld [vmem:[%s12757_s0 + $0x528] sm:$0xff]  ;;  %v184_v48 = vld [vmem:[%s12757_s0 + $0x520] sm:$0xff] }
 0x145   :  { %v8724_v63 = vpop.permute.xlu1 %784  ;;  %v8726_v0 = vpop.permute.xlu0 %779 }
 0x146   :  { %12814 = vst [vmem:[#allocation53_spill] sm:$0xff] %v8724_v63  ;;  %12815 = vst [vmem:[#allocation54_spill] sm:$0xff] %v8726_v0  ;;  %1094 = vperm.xlu1 %7210, %v183_v15   ;;  %1089 = vperm.xlu0 %7209, %v182_v16   ;;  %v187_v63 = vld [vmem:[%s12757_s0 + $0x538] sm:$0xff]  ;;  %v186_v15 = vld [vmem:[%s12757_s0 + $0x530] sm:$0xff] }
 0x149   :  { %v8734_v31 = vpop.permute.xlu1 %794  ;;  %v8736_v32 = vpop.permute.xlu0 %789 }
 0x14a   :  { %12816 = vst [vmem:[#allocation55_spill] sm:$0xff] %v8734_v31  ;;  %12817 = vst [vmem:[#allocation56_spill] sm:$0xff] %v8736_v32  ;;  %1104 = vperm.xlu1 %7210, %v185_v47   ;;  %1099 = vperm.xlu0 %7209, %v184_v48   ;;  %v189_v31 = vld [vmem:[%s12757_s0 + $0x548] sm:$0xff]  ;;  %v188_v47 = vld [vmem:[%s12757_s0 + $0x540] sm:$0xff] }
 0x14d   :  { %v8744_v16 = vpop.permute.xlu1 %804  ;;  %v8746_v0 = vpop.permute.xlu0 %799 }
 0x14e   :  { %12818 = vst [vmem:[#allocation57_spill] sm:$0xff] %v8744_v16  ;;  %12819 = vst [vmem:[#allocation58_spill] sm:$0xff] %v8746_v0  ;;  %1114 = vperm.xlu1 %7210, %v187_v63   ;;  %1109 = vperm.xlu0 %7209, %v186_v15   ;;  %v191_v16 = vld [vmem:[%s12757_s0 + $0x558] sm:$0xff]  ;;  %v190_v63 = vld [vmem:[%s12757_s0 + $0x550] sm:$0xff] }
 0x151   :  { %v8754_v48 = vpop.permute.xlu1 %814  ;;  %v8756_v32 = vpop.permute.xlu0 %809 }
 0x152   :  { %12820 = vst [vmem:[#allocation59_spill] sm:$0xff] %v8754_v48  ;;  %12821 = vst [vmem:[#allocation60_spill] sm:$0xff] %v8756_v32  ;;  %1124 = vperm.xlu1 %7210, %v189_v31   ;;  %1119 = vperm.xlu0 %7209, %v188_v47   ;;  %v193_v48 = vld [vmem:[%s12757_s0 + $0x568] sm:$0xff]  ;;  %v192_v31 = vld [vmem:[%s12757_s0 + $0x560] sm:$0xff] }
 0x155   :  { %v8764_v15 = vpop.permute.xlu1 %824  ;;  %v8766_v0 = vpop.permute.xlu0 %819 }
 0x156   :  { %12822 = vst [vmem:[#allocation61_spill] sm:$0xff] %v8764_v15  ;;  %12823 = vst [vmem:[#allocation62_spill] sm:$0xff] %v8766_v0  ;;  %1134 = vperm.xlu1 %7210, %v191_v16   ;;  %1129 = vperm.xlu0 %7209, %v190_v63   ;;  %v195_v15 = vld [vmem:[%s12757_s0 + $0x578] sm:$0xff]  ;;  %v194_v16 = vld [vmem:[%s12757_s0 + $0x570] sm:$0xff] }
 0x159   :  { %v8774_v47 = vpop.permute.xlu1 %834  ;;  %v8776_v32 = vpop.permute.xlu0 %829 }
 0x15a   :  { %12824 = vst [vmem:[#allocation63_spill] sm:$0xff] %v8774_v47  ;;  %12825 = vst [vmem:[#allocation64_spill] sm:$0xff] %v8776_v32  ;;  %1144 = vperm.xlu1 %7210, %v193_v48   ;;  %1139 = vperm.xlu0 %7209, %v192_v31   ;;  %v197_v47 = vld [vmem:[%s12757_s0 + $0x588] sm:$0xff]  ;;  %v196_v48 = vld [vmem:[%s12757_s0 + $0x580] sm:$0xff] }
 0x15d   :  { %v8784_v63 = vpop.permute.xlu1 %844  ;;  %v8786_v0 = vpop.permute.xlu0 %839 }
 0x15e   :  { %12826 = vst [vmem:[#allocation65_spill] sm:$0xff] %v8784_v63  ;;  %12827 = vst [vmem:[#allocation66_spill] sm:$0xff] %v8786_v0  ;;  %1154 = vperm.xlu1 %7210, %v195_v15   ;;  %1149 = vperm.xlu0 %7209, %v194_v16   ;;  %v199_v63 = vld [vmem:[%s12757_s0 + $0x598] sm:$0xff]  ;;  %v198_v15 = vld [vmem:[%s12757_s0 + $0x590] sm:$0xff] }
 0x161   :  { %v8794_v31 = vpop.permute.xlu1 %854  ;;  %v8796_v32 = vpop.permute.xlu0 %849 }
 0x162   :  { %12828 = vst [vmem:[#allocation67_spill] sm:$0xff] %v8794_v31  ;;  %12829 = vst [vmem:[#allocation68_spill] sm:$0xff] %v8796_v32  ;;  %1164 = vperm.xlu1 %7210, %v197_v47   ;;  %1159 = vperm.xlu0 %7209, %v196_v48   ;;  %v201_v31 = vld [vmem:[%s12757_s0 + $0x5a8] sm:$0xff]  ;;  %v200_v47 = vld [vmem:[%s12757_s0 + $0x5a0] sm:$0xff] }
 0x165   :  { %v8804_v16 = vpop.permute.xlu1 %864  ;;  %v8806_v0 = vpop.permute.xlu0 %859 }
 0x166   :  { %12830 = vst [vmem:[#allocation69_spill] sm:$0xff] %v8804_v16  ;;  %12831 = vst [vmem:[#allocation70_spill] sm:$0xff] %v8806_v0  ;;  %1174 = vperm.xlu1 %7210, %v199_v63   ;;  %1169 = vperm.xlu0 %7209, %v198_v15   ;;  %v203_v16 = vld [vmem:[%s12757_s0 + $0x5b8] sm:$0xff]  ;;  %v202_v63 = vld [vmem:[%s12757_s0 + $0x5b0] sm:$0xff] }
 0x169   :  { %v8814_v48 = vpop.permute.xlu1 %874  ;;  %v8816_v32 = vpop.permute.xlu0 %869 }
 0x16a   :  { %12832 = vst [vmem:[#allocation71_spill] sm:$0xff] %v8814_v48  ;;  %12833 = vst [vmem:[#allocation72_spill] sm:$0xff] %v8816_v32  ;;  %1184 = vperm.xlu1 %7210, %v201_v31   ;;  %1179 = vperm.xlu0 %7209, %v200_v47   ;;  %v205_v48 = vld [vmem:[%s12757_s0 + $0x5c8] sm:$0xff]  ;;  %v204_v31 = vld [vmem:[%s12757_s0 + $0x5c0] sm:$0xff] }
 0x16d   :  { %v8824_v15 = vpop.permute.xlu1 %884  ;;  %v8826_v0 = vpop.permute.xlu0 %879 }
 0x16e   :  { %12834 = vst [vmem:[#allocation73_spill] sm:$0xff] %v8824_v15  ;;  %12835 = vst [vmem:[#allocation74_spill] sm:$0xff] %v8826_v0  ;;  %1194 = vperm.xlu1 %7210, %v203_v16   ;;  %1189 = vperm.xlu0 %7209, %v202_v63   ;;  %v207_v15 = vld [vmem:[%s12757_s0 + $0x5d8] sm:$0xff]  ;;  %v206_v16 = vld [vmem:[%s12757_s0 + $0x5d0] sm:$0xff] }
 0x171   :  { %v8834_v47 = vpop.permute.xlu1 %894  ;;  %v8836_v32 = vpop.permute.xlu0 %889 }
 0x172   :  { %12836 = vst [vmem:[#allocation75_spill] sm:$0xff] %v8834_v47  ;;  %12837 = vst [vmem:[#allocation76_spill] sm:$0xff] %v8836_v32  ;;  %1204 = vperm.xlu1 %7210, %v205_v48   ;;  %1199 = vperm.xlu0 %7209, %v204_v31   ;;  %v209_v47 = vld [vmem:[%s12757_s0 + $0x5e8] sm:$0xff]  ;;  %v208_v48 = vld [vmem:[%s12757_s0 + $0x5e0] sm:$0xff] }
 0x175   :  { %v8844_v63 = vpop.permute.xlu1 %904  ;;  %v8846_v0 = vpop.permute.xlu0 %899 }
 0x176   :  { %12838 = vst [vmem:[#allocation77_spill] sm:$0xff] %v8844_v63  ;;  %12839 = vst [vmem:[#allocation78_spill] sm:$0xff] %v8846_v0  ;;  %1214 = vperm.xlu1 %7210, %v207_v15   ;;  %1209 = vperm.xlu0 %7209, %v206_v16   ;;  %v211_v63 = vld [vmem:[%s12757_s0 + $0x5f8] sm:$0xff]  ;;  %v210_v15 = vld [vmem:[%s12757_s0 + $0x5f0] sm:$0xff] }
 0x179   :  { %v8854_v31 = vpop.permute.xlu1 %914  ;;  %v8856_v32 = vpop.permute.xlu0 %909 }
 0x17a   :  { %12840 = vst [vmem:[#allocation79_spill] sm:$0xff] %v8854_v31  ;;  %12841 = vst [vmem:[#allocation80_spill] sm:$0xff] %v8856_v32  ;;  %1224 = vperm.xlu1 %7210, %v209_v47   ;;  %1219 = vperm.xlu0 %7209, %v208_v48   ;;  %v213_v31 = vld [vmem:[%s12757_s0 + $0x608] sm:$0xff]  ;;  %v212_v47 = vld [vmem:[%s12757_s0 + $0x600] sm:$0xff] }
 0x17d   :  { %v8864_v16 = vpop.permute.xlu1 %924  ;;  %v8866_v0 = vpop.permute.xlu0 %919 }
 0x17e   :  { %12842 = vst [vmem:[#allocation81_spill] sm:$0xff] %v8864_v16  ;;  %12843 = vst [vmem:[#allocation82_spill] sm:$0xff] %v8866_v0  ;;  %1234 = vperm.xlu1 %7210, %v211_v63   ;;  %1229 = vperm.xlu0 %7209, %v210_v15   ;;  %v215_v16 = vld [vmem:[%s12757_s0 + $0x618] sm:$0xff]  ;;  %v214_v63 = vld [vmem:[%s12757_s0 + $0x610] sm:$0xff] }
 0x181   :  { %v8874_v48 = vpop.permute.xlu1 %934  ;;  %v8876_v32 = vpop.permute.xlu0 %929 }
 0x182   :  { %12844 = vst [vmem:[#allocation83_spill] sm:$0xff] %v8874_v48  ;;  %12845 = vst [vmem:[#allocation84_spill] sm:$0xff] %v8876_v32  ;;  %1244 = vperm.xlu1 %7210, %v213_v31   ;;  %1239 = vperm.xlu0 %7209, %v212_v47   ;;  %v217_v48 = vld [vmem:[%s12757_s0 + $0x628] sm:$0xff]  ;;  %v216_v31 = vld [vmem:[%s12757_s0 + $0x620] sm:$0xff] }
 0x185   :  { %v8884_v15 = vpop.permute.xlu1 %944  ;;  %v8886_v0 = vpop.permute.xlu0 %939 }
 0x186   :  { %12846 = vst [vmem:[#allocation85_spill] sm:$0xff] %v8884_v15  ;;  %12847 = vst [vmem:[#allocation86_spill] sm:$0xff] %v8886_v0  ;;  %1254 = vperm.xlu1 %7210, %v215_v16   ;;  %1249 = vperm.xlu0 %7209, %v214_v63   ;;  %v219_v15 = vld [vmem:[%s12757_s0 + $0x638] sm:$0xff]  ;;  %v218_v16 = vld [vmem:[%s12757_s0 + $0x630] sm:$0xff] }
 0x189   :  { %v8894_v47 = vpop.permute.xlu1 %954  ;;  %v8896_v32 = vpop.permute.xlu0 %949 }
 0x18a   :  { %12848 = vst [vmem:[#allocation87_spill] sm:$0xff] %v8894_v47  ;;  %12849 = vst [vmem:[#allocation88_spill] sm:$0xff] %v8896_v32  ;;  %1264 = vperm.xlu1 %7210, %v217_v48   ;;  %1259 = vperm.xlu0 %7209, %v216_v31   ;;  %v221_v47 = vld [vmem:[%s12757_s0 + $0x648] sm:$0xff]  ;;  %v220_v48 = vld [vmem:[%s12757_s0 + $0x640] sm:$0xff] }
 0x18d   :  { %v8904_v63 = vpop.permute.xlu1 %964  ;;  %v8906_v0 = vpop.permute.xlu0 %959 }
 0x18e   :  { %12850 = vst [vmem:[#allocation89_spill] sm:$0xff] %v8904_v63  ;;  %12851 = vst [vmem:[#allocation90_spill] sm:$0xff] %v8906_v0  ;;  %1274 = vperm.xlu1 %7210, %v219_v15   ;;  %1269 = vperm.xlu0 %7209, %v218_v16   ;;  %v223_v63 = vld [vmem:[%s12757_s0 + $0x658] sm:$0xff]  ;;  %v222_v15 = vld [vmem:[%s12757_s0 + $0x650] sm:$0xff] }
 0x191   :  { %v8914_v31 = vpop.permute.xlu1 %974  ;;  %v8916_v32 = vpop.permute.xlu0 %969 }
 0x192   :  { %12852 = vst [vmem:[#allocation91_spill] sm:$0xff] %v8914_v31  ;;  %12853 = vst [vmem:[#allocation92_spill] sm:$0xff] %v8916_v32  ;;  %1284 = vperm.xlu1 %7210, %v221_v47   ;;  %1279 = vperm.xlu0 %7209, %v220_v48   ;;  %v225_v31 = vld [vmem:[%s12757_s0 + $0x668] sm:$0xff]  ;;  %v224_v47 = vld [vmem:[%s12757_s0 + $0x660] sm:$0xff] }
 0x195   :  { %v8924_v16 = vpop.permute.xlu1 %984  ;;  %v8926_v0 = vpop.permute.xlu0 %979 }
 0x196   :  { %12854 = vst [vmem:[#allocation93_spill] sm:$0xff] %v8924_v16  ;;  %12855 = vst [vmem:[#allocation94_spill] sm:$0xff] %v8926_v0  ;;  %1294 = vperm.xlu1 %7210, %v223_v63   ;;  %1289 = vperm.xlu0 %7209, %v222_v15   ;;  %v227_v16 = vld [vmem:[%s12757_s0 + $0x678] sm:$0xff]  ;;  %v226_v63 = vld [vmem:[%s12757_s0 + $0x670] sm:$0xff] }
 0x199   :  { %v8934_v48 = vpop.permute.xlu1 %994  ;;  %v8936_v32 = vpop.permute.xlu0 %989 }
 0x19a   :  { %12856 = vst [vmem:[#allocation95_spill] sm:$0xff] %v8934_v48  ;;  %12857 = vst [vmem:[#allocation96_spill] sm:$0xff] %v8936_v32  ;;  %1304 = vperm.xlu1 %7210, %v225_v31   ;;  %1299 = vperm.xlu0 %7209, %v224_v47   ;;  %v229_v48 = vld [vmem:[%s12757_s0 + $0x688] sm:$0xff]  ;;  %v228_v31 = vld [vmem:[%s12757_s0 + $0x680] sm:$0xff] }
 0x19d   :  { %v8944_v15 = vpop.permute.xlu1 %1004  ;;  %v8946_v0 = vpop.permute.xlu0 %999 }
 0x19e   :  { %12858 = vst [vmem:[#allocation97_spill] sm:$0xff] %v8944_v15  ;;  %12859 = vst [vmem:[#allocation98_spill] sm:$0xff] %v8946_v0  ;;  %1314 = vperm.xlu1 %7210, %v227_v16   ;;  %1309 = vperm.xlu0 %7209, %v226_v63   ;;  %v231_v15 = vld [vmem:[%s12757_s0 + $0x698] sm:$0xff]  ;;  %v230_v16 = vld [vmem:[%s12757_s0 + $0x690] sm:$0xff] }
 0x1a1   :  { %v8954_v47 = vpop.permute.xlu1 %1014  ;;  %v8956_v32 = vpop.permute.xlu0 %1009 }
 0x1a2   :  { %12860 = vst [vmem:[#allocation99_spill] sm:$0xff] %v8954_v47  ;;  %12861 = vst [vmem:[#allocation100_spill] sm:$0xff] %v8956_v32  ;;  %1324 = vperm.xlu1 %7210, %v229_v48   ;;  %1319 = vperm.xlu0 %7209, %v228_v31   ;;  %v233_v47 = vld [vmem:[%s12757_s0 + $0x6a8] sm:$0xff]  ;;  %v232_v48 = vld [vmem:[%s12757_s0 + $0x6a0] sm:$0xff] }
 0x1a5   :  { %v8964_v63 = vpop.permute.xlu1 %1024  ;;  %v8966_v0 = vpop.permute.xlu0 %1019 }
 0x1a6   :  { %12862 = vst [vmem:[#allocation101_spill] sm:$0xff] %v8964_v63  ;;  %12863 = vst [vmem:[#allocation102_spill] sm:$0xff] %v8966_v0  ;;  %1334 = vperm.xlu1 %7210, %v231_v15   ;;  %1329 = vperm.xlu0 %7209, %v230_v16   ;;  %v235_v63 = vld [vmem:[%s12757_s0 + $0x6b8] sm:$0xff]  ;;  %v234_v15 = vld [vmem:[%s12757_s0 + $0x6b0] sm:$0xff] }
 0x1a9   :  { %v8974_v31 = vpop.permute.xlu1 %1034  ;;  %v8976_v32 = vpop.permute.xlu0 %1029 }
 0x1aa   :  { %12864 = vst [vmem:[#allocation103_spill] sm:$0xff] %v8974_v31  ;;  %12865 = vst [vmem:[#allocation104_spill] sm:$0xff] %v8976_v32  ;;  %1344 = vperm.xlu1 %7210, %v233_v47   ;;  %1339 = vperm.xlu0 %7209, %v232_v48   ;;  %v237_v31 = vld [vmem:[%s12757_s0 + $0x6c8] sm:$0xff]  ;;  %v236_v47 = vld [vmem:[%s12757_s0 + $0x6c0] sm:$0xff] }
 0x1ad   :  { %v8984_v16 = vpop.permute.xlu1 %1044  ;;  %v8986_v0 = vpop.permute.xlu0 %1039 }
 0x1ae   :  { %12866 = vst [vmem:[#allocation105_spill] sm:$0xff] %v8984_v16  ;;  %12867 = vst [vmem:[#allocation106_spill] sm:$0xff] %v8986_v0  ;;  %1354 = vperm.xlu1 %7210, %v235_v63   ;;  %1349 = vperm.xlu0 %7209, %v234_v15   ;;  %v239_v16 = vld [vmem:[%s12757_s0 + $0x6d8] sm:$0xff]  ;;  %v238_v63 = vld [vmem:[%s12757_s0 + $0x6d0] sm:$0xff] }
 0x1b1   :  { %v8994_v48 = vpop.permute.xlu1 %1054  ;;  %v8996_v32 = vpop.permute.xlu0 %1049 }
 0x1b2   :  { %12868 = vst [vmem:[#allocation107_spill] sm:$0xff] %v8994_v48  ;;  %12869 = vst [vmem:[#allocation108_spill] sm:$0xff] %v8996_v32  ;;  %1364 = vperm.xlu1 %7210, %v237_v31   ;;  %1359 = vperm.xlu0 %7209, %v236_v47   ;;  %v241_v48 = vld [vmem:[%s12757_s0 + $0x6e8] sm:$0xff]  ;;  %v240_v31 = vld [vmem:[%s12757_s0 + $0x6e0] sm:$0xff] }
 0x1b5   :  { %v9004_v15 = vpop.permute.xlu1 %1064  ;;  %v9006_v0 = vpop.permute.xlu0 %1059 }
 0x1b6   :  { %12870 = vst [vmem:[#allocation109_spill] sm:$0xff] %v9004_v15  ;;  %12871 = vst [vmem:[#allocation110_spill] sm:$0xff] %v9006_v0  ;;  %1374 = vperm.xlu1 %7210, %v239_v16   ;;  %1369 = vperm.xlu0 %7209, %v238_v63   ;;  %v243_v15 = vld [vmem:[%s12757_s0 + $0x6f8] sm:$0xff]  ;;  %v242_v16 = vld [vmem:[%s12757_s0 + $0x6f0] sm:$0xff] }
 0x1b9   :  { %v9014_v47 = vpop.permute.xlu1 %1074  ;;  %v9016_v32 = vpop.permute.xlu0 %1069 }
 0x1ba   :  { %12872 = vst [vmem:[#allocation111_spill] sm:$0xff] %v9014_v47  ;;  %12873 = vst [vmem:[#allocation112_spill] sm:$0xff] %v9016_v32  ;;  %1384 = vperm.xlu1 %7210, %v241_v48   ;;  %1379 = vperm.xlu0 %7209, %v240_v31   ;;  %v245_v47 = vld [vmem:[%s12757_s0 + $0x708] sm:$0xff]  ;;  %v244_v48 = vld [vmem:[%s12757_s0 + $0x700] sm:$0xff] }
 0x1bd   :  { %v9024_v63 = vpop.permute.xlu1 %1084  ;;  %v9026_v0 = vpop.permute.xlu0 %1079 }
 0x1be   :  { %12874 = vst [vmem:[#allocation113_spill] sm:$0xff] %v9024_v63  ;;  %12875 = vst [vmem:[#allocation114_spill] sm:$0xff] %v9026_v0  ;;  %1394 = vperm.xlu1 %7210, %v243_v15   ;;  %1389 = vperm.xlu0 %7209, %v242_v16   ;;  %v247_v63 = vld [vmem:[%s12757_s0 + $0x718] sm:$0xff]  ;;  %v246_v15 = vld [vmem:[%s12757_s0 + $0x710] sm:$0xff] }
 0x1c1   :  { %v9034_v31 = vpop.permute.xlu1 %1094  ;;  %v9036_v32 = vpop.permute.xlu0 %1089 }
 0x1c2   :  { %12876 = vst [vmem:[#allocation115_spill] sm:$0xff] %v9034_v31  ;;  %12877 = vst [vmem:[#allocation116_spill] sm:$0xff] %v9036_v32  ;;  %1404 = vperm.xlu1 %7210, %v245_v47   ;;  %1399 = vperm.xlu0 %7209, %v244_v48   ;;  %v249_v31 = vld [vmem:[%s12757_s0 + $0x728] sm:$0xff]  ;;  %v248_v47 = vld [vmem:[%s12757_s0 + $0x720] sm:$0xff] }
 0x1c5   :  { %v9044_v16 = vpop.permute.xlu1 %1104  ;;  %v9046_v0 = vpop.permute.xlu0 %1099 }
 0x1c6   :  { %12878 = vst [vmem:[#allocation117_spill] sm:$0xff] %v9044_v16  ;;  %12879 = vst [vmem:[#allocation118_spill] sm:$0xff] %v9046_v0  ;;  %1414 = vperm.xlu1 %7210, %v247_v63   ;;  %1409 = vperm.xlu0 %7209, %v246_v15   ;;  %v251_v16 = vld [vmem:[%s12757_s0 + $0x738] sm:$0xff]  ;;  %v250_v63 = vld [vmem:[%s12757_s0 + $0x730] sm:$0xff] }
 0x1c9   :  { %v9054_v48 = vpop.permute.xlu1 %1114  ;;  %v9056_v32 = vpop.permute.xlu0 %1109 }
 0x1ca   :  { %12880 = vst [vmem:[#allocation119_spill] sm:$0xff] %v9054_v48  ;;  %12881 = vst [vmem:[#allocation120_spill] sm:$0xff] %v9056_v32  ;;  %1424 = vperm.xlu1 %7210, %v249_v31   ;;  %1419 = vperm.xlu0 %7209, %v248_v47   ;;  %v253_v48 = vld [vmem:[%s12757_s0 + $0x748] sm:$0xff]  ;;  %v252_v31 = vld [vmem:[%s12757_s0 + $0x740] sm:$0xff] }
 0x1cd   :  { %v9064_v15 = vpop.permute.xlu1 %1124  ;;  %v9066_v0 = vpop.permute.xlu0 %1119 }
 0x1ce   :  { %12882 = vst [vmem:[#allocation121_spill] sm:$0xff] %v9064_v15  ;;  %12883 = vst [vmem:[#allocation122_spill] sm:$0xff] %v9066_v0  ;;  %1434 = vperm.xlu1 %7210, %v251_v16   ;;  %1429 = vperm.xlu0 %7209, %v250_v63   ;;  %v255_v15 = vld [vmem:[%s12757_s0 + $0x758] sm:$0xff]  ;;  %v254_v16 = vld [vmem:[%s12757_s0 + $0x750] sm:$0xff] }
 0x1d1   :  { %v9074_v47 = vpop.permute.xlu1 %1134  ;;  %v9076_v32 = vpop.permute.xlu0 %1129 }
 0x1d2   :  { %12884 = vst [vmem:[#allocation123_spill] sm:$0xff] %v9074_v47  ;;  %12885 = vst [vmem:[#allocation124_spill] sm:$0xff] %v9076_v32  ;;  %1444 = vperm.xlu1 %7210, %v253_v48   ;;  %1439 = vperm.xlu0 %7209, %v252_v31   ;;  %v257_v47 = vld [vmem:[%s12757_s0 + $0x768] sm:$0xff]  ;;  %v256_v48 = vld [vmem:[%s12757_s0 + $0x760] sm:$0xff] }
 0x1d5   :  { %v9084_v63 = vpop.permute.xlu1 %1144  ;;  %v9086_v0 = vpop.permute.xlu0 %1139 }
 0x1d6   :  { %12886 = vst [vmem:[#allocation125_spill] sm:$0xff] %v9084_v63  ;;  %12887 = vst [vmem:[#allocation126_spill] sm:$0xff] %v9086_v0  ;;  %1454 = vperm.xlu1 %7210, %v255_v15   ;;  %1449 = vperm.xlu0 %7209, %v254_v16   ;;  %v259_v63 = vld [vmem:[%s12757_s0 + $0x778] sm:$0xff]  ;;  %v258_v15 = vld [vmem:[%s12757_s0 + $0x770] sm:$0xff] }
 0x1d9   :  { %v9094_v31 = vpop.permute.xlu1 %1154  ;;  %v9096_v32 = vpop.permute.xlu0 %1149 }
 0x1da   :  { %12888 = vst [vmem:[#allocation127_spill] sm:$0xff] %v9094_v31  ;;  %12889 = vst [vmem:[#allocation128_spill] sm:$0xff] %v9096_v32  ;;  %1464 = vperm.xlu1 %7210, %v257_v47   ;;  %1459 = vperm.xlu0 %7209, %v256_v48   ;;  %v261_v31 = vld [vmem:[%s12757_s0 + $0x788] sm:$0xff]  ;;  %v260_v47 = vld [vmem:[%s12757_s0 + $0x780] sm:$0xff] }
 0x1dd   :  { %v9104_v16 = vpop.permute.xlu1 %1164  ;;  %v9106_v0 = vpop.permute.xlu0 %1159 }
 0x1de   :  { %12890 = vst [vmem:[#allocation129_spill] sm:$0xff] %v9104_v16  ;;  %12891 = vst [vmem:[#allocation130_spill] sm:$0xff] %v9106_v0  ;;  %1474 = vperm.xlu1 %7210, %v259_v63   ;;  %1469 = vperm.xlu0 %7209, %v258_v15   ;;  %v263_v16 = vld [vmem:[%s12757_s0 + $0x798] sm:$0xff]  ;;  %v262_v63 = vld [vmem:[%s12757_s0 + $0x790] sm:$0xff] }
 0x1e1   :  { %v9114_v48 = vpop.permute.xlu1 %1174  ;;  %v9116_v32 = vpop.permute.xlu0 %1169 }
 0x1e2   :  { %12892 = vst [vmem:[#allocation131_spill] sm:$0xff] %v9114_v48  ;;  %12893 = vst [vmem:[#allocation132_spill] sm:$0xff] %v9116_v32  ;;  %1484 = vperm.xlu1 %7210, %v261_v31   ;;  %1479 = vperm.xlu0 %7209, %v260_v47   ;;  %v265_v48 = vld [vmem:[%s12757_s0 + $0x7a8] sm:$0xff]  ;;  %v264_v31 = vld [vmem:[%s12757_s0 + $0x7a0] sm:$0xff] }
 0x1e5   :  { %v9124_v15 = vpop.permute.xlu1 %1184  ;;  %v9126_v0 = vpop.permute.xlu0 %1179 }
 0x1e6   :  { %12894 = vst [vmem:[#allocation133_spill] sm:$0xff] %v9124_v15  ;;  %12895 = vst [vmem:[#allocation134_spill] sm:$0xff] %v9126_v0  ;;  %1494 = vperm.xlu1 %7210, %v263_v16   ;;  %1489 = vperm.xlu0 %7209, %v262_v63   ;;  %v267_v15 = vld [vmem:[%s12757_s0 + $0x7b8] sm:$0xff]  ;;  %v266_v16 = vld [vmem:[%s12757_s0 + $0x7b0] sm:$0xff] }
 0x1e9   :  { %v9134_v47 = vpop.permute.xlu1 %1194  ;;  %v9136_v32 = vpop.permute.xlu0 %1189 }
 0x1ea   :  { %12896 = vst [vmem:[#allocation135_spill] sm:$0xff] %v9134_v47  ;;  %12897 = vst [vmem:[#allocation136_spill] sm:$0xff] %v9136_v32  ;;  %1504 = vperm.xlu1 %7210, %v265_v48   ;;  %1499 = vperm.xlu0 %7209, %v264_v31   ;;  %v269_v47 = vld [vmem:[%s12757_s0 + $0x7c8] sm:$0xff]  ;;  %v268_v48 = vld [vmem:[%s12757_s0 + $0x7c0] sm:$0xff] }
 0x1ed   :  { %v9144_v63 = vpop.permute.xlu1 %1204  ;;  %v9146_v0 = vpop.permute.xlu0 %1199 }
 0x1ee   :  { %12898 = vst [vmem:[#allocation137_spill] sm:$0xff] %v9144_v63  ;;  %12899 = vst [vmem:[#allocation138_spill] sm:$0xff] %v9146_v0  ;;  %1514 = vperm.xlu1 %7210, %v267_v15   ;;  %1509 = vperm.xlu0 %7209, %v266_v16   ;;  %v271_v63 = vld [vmem:[%s12757_s0 + $0x7d8] sm:$0xff]  ;;  %v270_v15 = vld [vmem:[%s12757_s0 + $0x7d0] sm:$0xff] }
 0x1f1   :  { %v9154_v31 = vpop.permute.xlu1 %1214  ;;  %v9156_v32 = vpop.permute.xlu0 %1209 }
 0x1f2   :  { %12900 = vst [vmem:[#allocation139_spill] sm:$0xff] %v9154_v31  ;;  %12901 = vst [vmem:[#allocation140_spill] sm:$0xff] %v9156_v32  ;;  %1524 = vperm.xlu1 %7210, %v269_v47   ;;  %1519 = vperm.xlu0 %7209, %v268_v48   ;;  %v273_v31 = vld [vmem:[%s12757_s0 + $0x7e8] sm:$0xff]  ;;  %v272_v47 = vld [vmem:[%s12757_s0 + $0x7e0] sm:$0xff] }
 0x1f5   :  { %v9164_v16 = vpop.permute.xlu1 %1224  ;;  %v9166_v0 = vpop.permute.xlu0 %1219 }
 0x1f6   :  { %12902 = vst [vmem:[#allocation141_spill] sm:$0xff] %v9164_v16  ;;  %12903 = vst [vmem:[#allocation142_spill] sm:$0xff] %v9166_v0  ;;  %1534 = vperm.xlu1 %7210, %v271_v63   ;;  %1529 = vperm.xlu0 %7209, %v270_v15   ;;  %v275_v16 = vld [vmem:[%s12757_s0 + $0x7f8] sm:$0xff]  ;;  %v274_v63 = vld [vmem:[%s12757_s0 + $0x7f0] sm:$0xff] }
 0x1f9   :  { %v9174_v48 = vpop.permute.xlu1 %1234  ;;  %v9176_v32 = vpop.permute.xlu0 %1229 }
 0x1fa   :  { %12904 = vst [vmem:[#allocation143_spill] sm:$0xff] %v9174_v48  ;;  %12905 = vst [vmem:[#allocation144_spill] sm:$0xff] %v9176_v32  ;;  %1544 = vperm.xlu1 %7210, %v273_v31   ;;  %1539 = vperm.xlu0 %7209, %v272_v47   ;;  %v8001_v31 = vmov 1   ;;  %v7725_v47 = vld [vmem:[%s12757_s0 + $0x8] sm:$0xff] }
 0x1fd   :  { %v9184_v15 = vpop.permute.xlu1 %1244  ;;  %v9186_v0 = vpop.permute.xlu0 %1239 }
 0x1fe   :  { %12906 = vst [vmem:[#allocation145_spill] sm:$0xff] %v9184_v15  ;;  %12907 = vst [vmem:[#allocation146_spill] sm:$0xff] %v9186_v0  ;;  %1554 = vperm.xlu1 %7210, %v275_v16   ;;  %1549 = vperm.xlu0 %7209, %v274_v63   ;;  %v7726_v15 = vld [vmem:[%s12757_s0] sm:$0xff]  ;;  %v3884_v16 = vld [vmem:[%s12758_s3 + $0x38] sm:$0xff] }
 0x1ff   :  { %6791 = vmatprep.subr.mxu0 %v3884_v16  ;;  %7191 = vmatprep.subr.mxu1 %v3884_v16 }
 0x200   :  { %6792 = vmatpush3.msra.mxu0 %v3884_v16  ;;  %7199 = vmatpush3.msra.mxu1 %v3884_v16  ;;  %v3881_v16 = vld [vmem:[%s12758_s3 + $0x20] sm:$0xff] }
 0x201   :  { %v9188_v56 = vpop.permute.xlu1 %1254  ;;  %v9190_v48 = vpop.permute.xlu0 %1249 }
 0x202   :  { %12908 = vst [vmem:[#allocation147_spill] sm:$0xff] %v9188_v56  ;;  %12909 = vst [vmem:[#allocation148_spill] sm:$0xff] %v9190_v48  ;;  %7212 = vset.pattern.permute.xlu1 %v8001_v31  ;;  %7211 = vset.pattern.permute.xlu0 %v8001_v31  ;;  %v3883_v31 = vld [vmem:[%s12758_s3 + $0x30] sm:$0xff] }
 0x203   :  { %1823 = vperm.xlu1 %7212, %v7725_v47   ;;  %1819 = vperm.xlu0 %7211, %v7726_v15   ;;  %v7727_v15 = vld [vmem:[%s12757_s0 + $0x10] sm:$0xff]  ;;  %v7728_v47 = vld [vmem:[%s12757_s0 + $0x18] sm:$0xff] }
 0x204   :  { %6793 = vmatprep.subr.mxu0 %v3883_v31  ;;  %7192 = vmatprep.subr.mxu1 %v3883_v31 }
 0x205   :  { %v9201_v63 = vpop.permute.xlu1 %1264  ;;  %v9203_v56 = vpop.permute.xlu0 %1259  ;;  %6794 = vmatpush3.msra.mxu0 %v3883_v31  ;;  %7200 = vmatpush3.msra.mxu1 %v3883_v31 }
 0x206   :  { %12910 = vst [vmem:[#allocation149_spill] sm:$0xff] %v9201_v63  ;;  %12911 = vst [vmem:[#allocation150_spill] sm:$0xff] %v9203_v56  ;;  %v3882_v63 = vld [vmem:[%s12758_s3 + $0x28] sm:$0xff] }
 0x207   :  { %1827 = vperm.xlu1 %7212, %v7727_v15   ;;  %1831 = vperm.xlu0 %7211, %v7728_v47   ;;  %v7729_v15 = vld [vmem:[%s12757_s0 + $0x20] sm:$0xff]  ;;  %v7730_v47 = vld [vmem:[%s12757_s0 + $0x28] sm:$0xff] }
 0x208   :  { %6795 = vmatprep.subr.mxu0 %v3882_v63  ;;  %7193 = vmatprep.subr.mxu1 %v3882_v63 }
 0x209   :  { %v9217_v56 = vpop.permute.xlu1 %1274  ;;  %v9219_v48 = vpop.permute.xlu0 %1269  ;;  %6796 = vmatpush3.msra.mxu0 %v3882_v63  ;;  %7201 = vmatpush3.msra.mxu1 %v3882_v63  ;;  %v7732_v63 = vld [vmem:[%s12757_s0 + $0x38] sm:$0xff] }
 0x20a   :  { %12912 = vst [vmem:[#allocation151_spill] sm:$0xff] %v9217_v56  ;;  %12913 = vst [vmem:[#allocation152_spill] sm:$0xff] %v9219_v48  ;;  %6797 = vmatprep.subr.mxu0 %v3881_v16  ;;  %v3880_v48 = vld [vmem:[%s12758_s3 + $0x18] sm:$0xff]  ;;  %7194 = vmatprep.subr.mxu1 %v3881_v16 }
 0x20b   :  { %1835 = vperm.xlu1 %7212, %v7729_v15   ;;  %1839 = vperm.xlu0 %7211, %v7730_v47   ;;  %v7731_v15 = vld [vmem:[%s12757_s0 + $0x30] sm:$0xff] }
 0x20c   :  { %6798 = vmatpush3.msra.mxu0 %v3881_v16  ;;  %7202 = vmatpush3.msra.mxu1 %v3881_v16  ;;  %v3879_v47 = vld [vmem:[%s12758_s3 + $0x10] sm:$0xff]  ;;  %v3878_v16 = vld [vmem:[%s12758_s3 + $0x8] sm:$0xff] }
 0x20d   :  { %v9230_v56 = vpop.permute.xlu1 %1284  ;;  %v9232_v31 = vpop.permute.xlu0 %1279  ;;  %6799 = vmatprep.subr.mxu0 %v3880_v48  ;;  %7195 = vmatprep.subr.mxu1 %v3880_v48 }
 0x20e   :  { %12914 = vst [vmem:[#allocation153_spill] sm:$0xff] %v9230_v56  ;;  %12915 = vst [vmem:[#allocation154_spill] sm:$0xff] %v9232_v31  ;;  %6800 = vmatpush3.msra.mxu0 %v3880_v48  ;;  %7203 = vmatpush3.msra.mxu1 %v3880_v48 }
 0x20f   :  { %1843 = vperm.xlu1 %7212, %v7731_v15   ;;  %1847 = vperm.xlu0 %7211, %v7732_v63   ;;  %v7733_v15 = vld [vmem:[%s12757_s0 + $0x40] sm:$0xff]  ;;  %v7734_v63 = vld [vmem:[%s12757_s0 + $0x48] sm:$0xff] }
 0x210   :  { %6801 = vmatprep.subr.mxu0 %v3879_v47  ;;  %7196 = vmatprep.subr.mxu1 %v3879_v47 }
 0x211   :  { %v9246_v56 = vpop.permute.xlu1 %1294  ;;  %v9248_v31 = vpop.permute.xlu0 %1289  ;;  %6802 = vmatpush3.msra.mxu0 %v3879_v47  ;;  %7204 = vmatpush3.msra.mxu1 %v3879_v47  ;;  %v7736_v47 = vld [vmem:[%s12757_s0 + $0x58] sm:$0xff] }
 0x212   :  { %12916 = vst [vmem:[#allocation155_spill] sm:$0xff] %v9246_v56  ;;  %12917 = vst [vmem:[#allocation156_spill] sm:$0xff] %v9248_v31  ;;  %6803 = vmatprep.subr.mxu0 %v3878_v16  ;;  %v3877_v31 = vld [vmem:[%s12758_s3] sm:$0xff]  ;;  %7197 = vmatprep.subr.mxu1 %v3878_v16 }
 0x213   :  { %1851 = vperm.xlu1 %7212, %v7733_v15   ;;  %1855 = vperm.xlu0 %7211, %v7734_v63   ;;  %v7735_v15 = vld [vmem:[%s12757_s0 + $0x50] sm:$0xff] }
 0x214   :  { %6804 = vmatpush3.msra.mxu0 %v3878_v16  ;;  %7205 = vmatpush3.msra.mxu1 %v3878_v16  ;;  %v7737_v16 = vld [vmem:[%s12757_s0 + $0x60] sm:$0xff] }
 0x215   :  { %v9259_v56 = vpop.permute.xlu1 %1304  ;;  %v9261_v48 = vpop.permute.xlu0 %1299  ;;  %6805 = vmatprep.subr.mxu0 %v3877_v31  ;;  %7198 = vmatprep.subr.mxu1 %v3877_v31 }
 0x216   :  { %12918 = vst [vmem:[#allocation157_spill] sm:$0xff] %v9259_v56  ;;  %12919 = vst [vmem:[#allocation158_spill] sm:$0xff] %v9261_v48  ;;  %6806 = vmatpush3.msra.mxu0 %v3877_v31  ;;  %7206 = vmatpush3.msra.mxu1 %v3877_v31  ;;  %v7740_v31 = vld [vmem:[%s12757_s0 + $0x78] sm:$0xff] }
 0x217   :  { %1859 = vperm.xlu1 %7212, %v7735_v15   ;;  %1863 = vperm.xlu0 %7211, %v7736_v47   ;;  %v7738_v15 = vld [vmem:[%s12757_s0 + $0x68] sm:$0xff] }
 0x219   :  { %v9272_v63 = vpop.permute.xlu1 %1314  ;;  %v9274_v56 = vpop.permute.xlu0 %1309 }
 0x21a   :  { %12920 = vst [vmem:[#allocation159_spill] sm:$0xff] %v9272_v63  ;;  %12921 = vst [vmem:[#allocation160_spill] sm:$0xff] %v9274_v56  ;;  %v7739_v63 = vld [vmem:[%s12757_s0 + $0x70] sm:$0xff] }
 0x21b   :  { %1867 = vperm.xlu1 %7212, %v7737_v16   ;;  %1871 = vperm.xlu0 %7211, %v7738_v15   ;;  %v7741_v15 = vld [vmem:[%s12757_s0 + $0x80] sm:$0xff] }
 0x21d   :  { %v9282_v48 = vpop.permute.xlu1 %1324  ;;  %v9284_v47 = vpop.permute.xlu0 %1319 }
 0x21e   :  { %12922 = vst [vmem:[#allocation161_spill] sm:$0xff] %v9282_v48  ;;  %12923 = vst [vmem:[#allocation162_spill] sm:$0xff] %v9284_v47  ;;  %v7742_v48 = vld [vmem:[%s12757_s0 + $0x88] sm:$0xff] }
 0x21f   :  { %1875 = vperm.xlu1 %7212, %v7739_v63   ;;  %1879 = vperm.xlu0 %7211, %v7740_v31   ;;  %v7743_v31 = vld [vmem:[%s12757_s0 + $0x90] sm:$0xff] }
 0x221   :  { %v9292_v16 = vpop.permute.xlu1 %1334  ;;  %v9294_v56 = vpop.permute.xlu0 %1329 }
 0x222   :  { %12924 = vst [vmem:[#allocation163_spill] sm:$0xff] %v9292_v16  ;;  %12925 = vst [vmem:[#allocation164_spill] sm:$0xff] %v9294_v56  ;;  %v7744_v16 = vld [vmem:[%s12757_s0 + $0x98] sm:$0xff] }
 0x223   :  { %1883 = vperm.xlu1 %7212, %v7741_v15   ;;  %1887 = vperm.xlu0 %7211, %v7742_v48   ;;  %v7745_v48 = vld [vmem:[%s12757_s0 + $0xa0] sm:$0xff] }
 0x225   :  { %v9302_v63 = vpop.permute.xlu1 %1344  ;;  %v9304_v47 = vpop.permute.xlu0 %1339 }
 0x226   :  { %12926 = vst [vmem:[#allocation165_spill] sm:$0xff] %v9302_v63  ;;  %12927 = vst [vmem:[#allocation166_spill] sm:$0xff] %v9304_v47  ;;  %v7746_v63 = vld [vmem:[%s12757_s0 + $0xa8] sm:$0xff] }
 0x227   :  { %1891 = vperm.xlu1 %7212, %v7743_v31   ;;  %1895 = vperm.xlu0 %7211, %v7744_v16   ;;  %v7747_v16 = vld [vmem:[%s12757_s0 + $0xb0] sm:$0xff] }
 0x229   :  { %v9312_v15 = vpop.permute.xlu1 %1354  ;;  %v9314_v56 = vpop.permute.xlu0 %1349 }
 0x22a   :  { %12928 = vst [vmem:[#allocation167_spill] sm:$0xff] %v9312_v15  ;;  %12929 = vst [vmem:[#allocation168_spill] sm:$0xff] %v9314_v56  ;;  %v7748_v15 = vld [vmem:[%s12757_s0 + $0xb8] sm:$0xff] }
 0x22b   :  { %1899 = vperm.xlu1 %7212, %v7745_v48   ;;  %1903 = vperm.xlu0 %7211, %v7746_v63   ;;  %v7749_v63 = vld [vmem:[%s12757_s0 + $0xc0] sm:$0xff] }
 0x22d   :  { %v9322_v31 = vpop.permute.xlu1 %1364  ;;  %v9324_v47 = vpop.permute.xlu0 %1359 }
 0x22e   :  { %12930 = vst [vmem:[#allocation169_spill] sm:$0xff] %v9322_v31  ;;  %12931 = vst [vmem:[#allocation170_spill] sm:$0xff] %v9324_v47  ;;  %v7750_v31 = vld [vmem:[%s12757_s0 + $0xc8] sm:$0xff] }
 0x22f   :  { %1907 = vperm.xlu1 %7212, %v7747_v16   ;;  %1911 = vperm.xlu0 %7211, %v7748_v15   ;;  %v7751_v15 = vld [vmem:[%s12757_s0 + $0xd0] sm:$0xff] }
 0x231   :  { %v9332_v48 = vpop.permute.xlu1 %1374  ;;  %v9334_v56 = vpop.permute.xlu0 %1369 }
 0x232   :  { %12932 = vst [vmem:[#allocation171_spill] sm:$0xff] %v9332_v48  ;;  %12933 = vst [vmem:[#allocation172_spill] sm:$0xff] %v9334_v56  ;;  %v7752_v48 = vld [vmem:[%s12757_s0 + $0xd8] sm:$0xff] }
 0x233   :  { %1915 = vperm.xlu1 %7212, %v7749_v63   ;;  %1919 = vperm.xlu0 %7211, %v7750_v31   ;;  %v7753_v31 = vld [vmem:[%s12757_s0 + $0xe0] sm:$0xff] }
 0x235   :  { %v9342_v16 = vpop.permute.xlu1 %1384  ;;  %v9344_v47 = vpop.permute.xlu0 %1379 }
 0x236   :  { %12934 = vst [vmem:[#allocation173_spill] sm:$0xff] %v9342_v16  ;;  %12935 = vst [vmem:[#allocation174_spill] sm:$0xff] %v9344_v47  ;;  %v7754_v16 = vld [vmem:[%s12757_s0 + $0xe8] sm:$0xff] }
 0x237   :  { %1923 = vperm.xlu1 %7212, %v7751_v15   ;;  %1927 = vperm.xlu0 %7211, %v7752_v48   ;;  %v7755_v48 = vld [vmem:[%s12757_s0 + $0xf0] sm:$0xff] }
 0x239   :  { %v9352_v63 = vpop.permute.xlu1 %1394  ;;  %v9354_v56 = vpop.permute.xlu0 %1389 }
 0x23a   :  { %12936 = vst [vmem:[#allocation175_spill] sm:$0xff] %v9352_v63  ;;  %12937 = vst [vmem:[#allocation176_spill] sm:$0xff] %v9354_v56  ;;  %v7756_v63 = vld [vmem:[%s12757_s0 + $0xf8] sm:$0xff] }
 0x23b   :  { %1931 = vperm.xlu1 %7212, %v7753_v31   ;;  %1935 = vperm.xlu0 %7211, %v7754_v16   ;;  %v7757_v16 = vld [vmem:[%s12757_s0 + $0x100] sm:$0xff] }
 0x23d   :  { %v9362_v15 = vpop.permute.xlu1 %1404  ;;  %v9364_v47 = vpop.permute.xlu0 %1399 }
 0x23e   :  { %12938 = vst [vmem:[#allocation177_spill] sm:$0xff] %v9362_v15  ;;  %12939 = vst [vmem:[#allocation178_spill] sm:$0xff] %v9364_v47  ;;  %v7758_v15 = vld [vmem:[%s12757_s0 + $0x108] sm:$0xff] }
 0x23f   :  { %1939 = vperm.xlu1 %7212, %v7755_v48   ;;  %1943 = vperm.xlu0 %7211, %v7756_v63   ;;  %v7759_v63 = vld [vmem:[%s12757_s0 + $0x110] sm:$0xff] }
 0x241   :  { %v9372_v31 = vpop.permute.xlu1 %1414  ;;  %v9374_v56 = vpop.permute.xlu0 %1409 }
 0x242   :  { %12940 = vst [vmem:[#allocation179_spill] sm:$0xff] %v9372_v31  ;;  %12941 = vst [vmem:[#allocation180_spill] sm:$0xff] %v9374_v56  ;;  %v7760_v31 = vld [vmem:[%s12757_s0 + $0x118] sm:$0xff] }
 0x243   :  { %1947 = vperm.xlu1 %7212, %v7757_v16   ;;  %1951 = vperm.xlu0 %7211, %v7758_v15   ;;  %v7761_v15 = vld [vmem:[%s12757_s0 + $0x120] sm:$0xff] }
 0x245   :  { %v9382_v48 = vpop.permute.xlu1 %1424  ;;  %v9384_v47 = vpop.permute.xlu0 %1419 }
 0x246   :  { %12942 = vst [vmem:[#allocation181_spill] sm:$0xff] %v9382_v48  ;;  %12943 = vst [vmem:[#allocation182_spill] sm:$0xff] %v9384_v47  ;;  %v7762_v48 = vld [vmem:[%s12757_s0 + $0x128] sm:$0xff] }
 0x247   :  { %1955 = vperm.xlu1 %7212, %v7759_v63   ;;  %1959 = vperm.xlu0 %7211, %v7760_v31   ;;  %v7763_v31 = vld [vmem:[%s12757_s0 + $0x130] sm:$0xff] }
 0x249   :  { %v9392_v16 = vpop.permute.xlu1 %1434  ;;  %v9394_v56 = vpop.permute.xlu0 %1429 }
 0x24a   :  { %12944 = vst [vmem:[#allocation183_spill] sm:$0xff] %v9392_v16  ;;  %12945 = vst [vmem:[#allocation184_spill] sm:$0xff] %v9394_v56  ;;  %v7764_v16 = vld [vmem:[%s12757_s0 + $0x138] sm:$0xff] }
 0x24b   :  { %1963 = vperm.xlu1 %7212, %v7761_v15   ;;  %1967 = vperm.xlu0 %7211, %v7762_v48   ;;  %v7765_v48 = vld [vmem:[%s12757_s0 + $0x140] sm:$0xff] }
 0x24d   :  { %v9402_v63 = vpop.permute.xlu1 %1444  ;;  %v9404_v47 = vpop.permute.xlu0 %1439 }
 0x24e   :  { %12946 = vst [vmem:[#allocation185_spill] sm:$0xff] %v9402_v63  ;;  %12947 = vst [vmem:[#allocation186_spill] sm:$0xff] %v9404_v47  ;;  %v7766_v63 = vld [vmem:[%s12757_s0 + $0x148] sm:$0xff] }
 0x24f   :  { %1971 = vperm.xlu1 %7212, %v7763_v31   ;;  %1975 = vperm.xlu0 %7211, %v7764_v16   ;;  %v7767_v16 = vld [vmem:[%s12757_s0 + $0x150] sm:$0xff] }
 0x251   :  { %v9412_v15 = vpop.permute.xlu1 %1454  ;;  %v9414_v56 = vpop.permute.xlu0 %1449 }
 0x252   :  { %12948 = vst [vmem:[#allocation187_spill] sm:$0xff] %v9412_v15  ;;  %12949 = vst [vmem:[#allocation188_spill] sm:$0xff] %v9414_v56  ;;  %v7768_v15 = vld [vmem:[%s12757_s0 + $0x158] sm:$0xff] }
 0x253   :  { %1979 = vperm.xlu1 %7212, %v7765_v48   ;;  %1983 = vperm.xlu0 %7211, %v7766_v63   ;;  %v7769_v63 = vld [vmem:[%s12757_s0 + $0x160] sm:$0xff] }
 0x255   :  { %v9422_v31 = vpop.permute.xlu1 %1464  ;;  %v9424_v47 = vpop.permute.xlu0 %1459 }
 0x256   :  { %12950 = vst [vmem:[#allocation189_spill] sm:$0xff] %v9422_v31  ;;  %12951 = vst [vmem:[#allocation190_spill] sm:$0xff] %v9424_v47  ;;  %v7770_v31 = vld [vmem:[%s12757_s0 + $0x168] sm:$0xff] }
 0x257   :  { %1987 = vperm.xlu1 %7212, %v7767_v16   ;;  %1991 = vperm.xlu0 %7211, %v7768_v15   ;;  %v7771_v15 = vld [vmem:[%s12757_s0 + $0x170] sm:$0xff] }
 0x259   :  { %v9432_v48 = vpop.permute.xlu1 %1474  ;;  %v9434_v56 = vpop.permute.xlu0 %1469 }
 0x25a   :  { %12952 = vst [vmem:[#allocation191_spill] sm:$0xff] %v9432_v48  ;;  %12953 = vst [vmem:[#allocation192_spill] sm:$0xff] %v9434_v56  ;;  %v7772_v48 = vld [vmem:[%s12757_s0 + $0x178] sm:$0xff] }
 0x25b   :  { %1995 = vperm.xlu1 %7212, %v7769_v63   ;;  %1999 = vperm.xlu0 %7211, %v7770_v31   ;;  %v7773_v31 = vld [vmem:[%s12757_s0 + $0x180] sm:$0xff] }
 0x25d   :  { %v9442_v16 = vpop.permute.xlu1 %1484  ;;  %v9444_v47 = vpop.permute.xlu0 %1479 }
 0x25e   :  { %12954 = vst [vmem:[#allocation193_spill] sm:$0xff] %v9442_v16  ;;  %12955 = vst [vmem:[#allocation194_spill] sm:$0xff] %v9444_v47  ;;  %v7774_v16 = vld [vmem:[%s12757_s0 + $0x188] sm:$0xff] }
 0x25f   :  { %2003 = vperm.xlu1 %7212, %v7771_v15   ;;  %2007 = vperm.xlu0 %7211, %v7772_v48   ;;  %v7775_v48 = vld [vmem:[%s12757_s0 + $0x190] sm:$0xff] }
 0x261   :  { %v9452_v63 = vpop.permute.xlu1 %1494  ;;  %v9454_v56 = vpop.permute.xlu0 %1489 }
 0x262   :  { %12956 = vst [vmem:[#allocation195_spill] sm:$0xff] %v9452_v63  ;;  %12957 = vst [vmem:[#allocation196_spill] sm:$0xff] %v9454_v56  ;;  %v7776_v63 = vld [vmem:[%s12757_s0 + $0x198] sm:$0xff] }
 0x263   :  { %2011 = vperm.xlu1 %7212, %v7773_v31   ;;  %2015 = vperm.xlu0 %7211, %v7774_v16   ;;  %v7777_v16 = vld [vmem:[%s12757_s0 + $0x1a0] sm:$0xff] }
 0x265   :  { %v9462_v15 = vpop.permute.xlu1 %1504  ;;  %v9464_v47 = vpop.permute.xlu0 %1499 }
 0x266   :  { %12958 = vst [vmem:[#allocation197_spill] sm:$0xff] %v9462_v15  ;;  %12959 = vst [vmem:[#allocation198_spill] sm:$0xff] %v9464_v47  ;;  %v7778_v15 = vld [vmem:[%s12757_s0 + $0x1a8] sm:$0xff] }
 0x267   :  { %2019 = vperm.xlu1 %7212, %v7775_v48   ;;  %2023 = vperm.xlu0 %7211, %v7776_v63   ;;  %v7779_v63 = vld [vmem:[%s12757_s0 + $0x1b0] sm:$0xff] }
 0x269   :  { %v9472_v31 = vpop.permute.xlu1 %1514  ;;  %v9474_v56 = vpop.permute.xlu0 %1509 }
 0x26a   :  { %12960 = vst [vmem:[#allocation199_spill] sm:$0xff] %v9472_v31  ;;  %12961 = vst [vmem:[#allocation200_spill] sm:$0xff] %v9474_v56  ;;  %v7780_v31 = vld [vmem:[%s12757_s0 + $0x1b8] sm:$0xff] }
 0x26b   :  { %2027 = vperm.xlu1 %7212, %v7777_v16   ;;  %2031 = vperm.xlu0 %7211, %v7778_v15   ;;  %v7781_v15 = vld [vmem:[%s12757_s0 + $0x1c0] sm:$0xff] }
 0x26d   :  { %v9482_v48 = vpop.permute.xlu1 %1524  ;;  %v9484_v47 = vpop.permute.xlu0 %1519 }
 0x26e   :  { %12962 = vst [vmem:[#allocation201_spill] sm:$0xff] %v9482_v48  ;;  %12963 = vst [vmem:[#allocation202_spill] sm:$0xff] %v9484_v47  ;;  %v7782_v48 = vld [vmem:[%s12757_s0 + $0x1c8] sm:$0xff] }
 0x26f   :  { %2035 = vperm.xlu1 %7212, %v7779_v63   ;;  %2039 = vperm.xlu0 %7211, %v7780_v31   ;;  %v7783_v31 = vld [vmem:[%s12757_s0 + $0x1d0] sm:$0xff] }
 0x271   :  { %v9492_v16 = vpop.permute.xlu1 %1534  ;;  %v9494_v56 = vpop.permute.xlu0 %1529 }
 0x272   :  { %12964 = vst [vmem:[#allocation203_spill] sm:$0xff] %v9492_v16  ;;  %12965 = vst [vmem:[#allocation204_spill] sm:$0xff] %v9494_v56  ;;  %v7784_v16 = vld [vmem:[%s12757_s0 + $0x1d8] sm:$0xff] }
 0x273   :  { %2043 = vperm.xlu1 %7212, %v7781_v15   ;;  %2047 = vperm.xlu0 %7211, %v7782_v48   ;;  %v9519_v48 = vld [vmem:[%s12759_s1] ss:$0 sm:$0xff] }
 0x274   :  { %v1562_v0 = vmul.f32 %v9519_v48, %v8236_v6 }
 0x275   :  { %v9502_v63 = vpop.permute.xlu1 %1544  ;;  %v9504_v47 = vpop.permute.xlu0 %1539 }
 0x276   :  { %12966 = vst [vmem:[#allocation205_spill] sm:$0xff] %v9502_v63  ;;  %12967 = vst [vmem:[#allocation206_spill] sm:$0xff] %v9504_v47  ;;  %v7785_v63 = vld [vmem:[%s12757_s0 + $0x1e0] sm:$0xff] }
 0x277   :  { %2051 = vperm.xlu1 %7212, %v7783_v31   ;;  %2055 = vperm.xlu0 %7211, %v7784_v16   ;;  %v7786_v31 = vld [vmem:[%s12757_s0 + $0x1e8] sm:$0xff]  ;;  %v9530_v16 = vld [vmem:[%s12759_s1 + $0x1] ss:$0 sm:$0xff] }
 0x279   :  { %v9512_v15 = vpop.permute.xlu1 %1554  ;;  %v9514_v56 = vpop.permute.xlu0 %1549 }
 0x27a   :  { %12968 = vst [vmem:[#allocation207_spill] sm:$0xff] %v9512_v15  ;;  %12969 = vst [vmem:[#allocation208_spill] sm:$0xff] %v9514_v56  ;;  %v1561_v15 = vmul.f32 %v9519_v48, %v8226_v2  ;;  %v9547_v2 = vld [vmem:[%s12760_s2] ss:$0 sm:$0xff] }
 0x27b   :  { %2059 = vperm.xlu1 %7212, %v7785_v63   ;;  %2063 = vperm.xlu0 %7211, %v7786_v31   ;;  %v7787_v31 = vld [vmem:[%s12757_s0 + $0x1f0] sm:$0xff] }
 0x27e   :  { %v1824_v56 = vpop.permute.xlu1 %1823  ;;  %v1820_v47 = vpop.permute.xlu0 %1819 }
 0x27f   :  { %v2847_v63 = vmul.f32 %v9530_v16, %v1824_v56  ;;  %v2846_v32 = vmul.f32 %v9530_v16, %v1820_v47  ;;  %2067 = vperm.xlu1 %7212, %v7787_v31   ;;  %2071 = vperm.xlu0 %7211, %v7788_v55   ;;  %v1563_v56 = vmul.f32 %v9519_v48, %v8224_v1  ;;  %v7790_v1 = vld [vmem:[%s12757_s0 + $0x208] sm:$0xff] }
 0x280   :  { %v1564_v47 = vmul.f32 %v9519_v48, %v8234_v5 }
 0x281   :  { %v3103_v6 = vadd.f32 %v2847_v63, %v1562_v0  ;;  %v3102_v40 = vadd.f32 %v2846_v32, %v1561_v15  ;;  %v7789_v0 = vld [vmem:[%s12757_s0 + $0x200] sm:$0xff] }
 0x282   :  { %v1828_v39 = vpop.permute.xlu1 %1827  ;;  %v1832_v31 = vpop.permute.xlu0 %1831 }
 0x283   :  { %v3366_v24 = vadd.f32 %v9547_v2, %v3103_v6  ;;  %v3365_v23 = vadd.f32 %v9547_v2, %v3102_v40  ;;  %v2848_v55 = vmul.f32 %v9530_v16, %v1828_v39  ;;  %v2849_v8 = vmul.f32 %v9530_v16, %v1832_v31  ;;  %2075 = vperm.xlu1 %7212, %v7789_v0  }
 0x284   :  { %2079 = vperm.xlu0 %7211, %v7790_v1   ;;  %v1566_v40 = vmul.f32 %v9519_v48, %v8244_v9  ;;  %v1565_v39 = vmul.f32 %v9519_v48, %v8246_v10  ;;  %v7792_v9 = vld [vmem:[%s12757_s0 + $0x218] sm:$0xff] }
 0x285   :  { %7213 = vtanh.f32 %v3366_v24  ;;  %v3104_v5 = vadd.f32 %v2848_v55, %v1563_v56  ;;  %v3105_v32 = vadd.f32 %v2849_v8, %v1564_v47  ;;  %v7791_v8 = vld [vmem:[%s12757_s0 + $0x210] sm:$0xff]  ;;  %v1568_v24 = vmul.f32 %v9519_v48, %v8254_v13  ;;  %v7794_v13 = vld [vmem:[%s12757_s0 + $0x228] sm:$0xff] }
 0x286   :  { %7215 = vtanh.f32 %v3365_v23  ;;  %v1836_v15 = vpop.permute.xlu1 %1835  ;;  %v1840_v63 = vpop.permute.xlu0 %1839  ;;  %v1567_v56 = vmul.f32 %v9519_v48, %v8256_v14 }
 0x287   :  { %v3367_v6 = vadd.f32 %v9547_v2, %v3104_v5  ;;  %v3368_v31 = vadd.f32 %v9547_v2, %v3105_v32  ;;  %v2850_v0 = vmul.f32 %v9530_v16, %v1836_v15  ;;  %v2851_v1 = vmul.f32 %v9530_v16, %v1840_v63  ;;  %2083 = vperm.xlu1 %7212, %v7791_v8  }
 0x288   :  { %2087 = vperm.xlu0 %7211, %v7792_v9  }
 0x289   :  { %7217 = vtanh.f32 %v3367_v6  ;;  %v3106_v10 = vadd.f32 %v2850_v0, %v1565_v39  ;;  %v3107_v23 = vadd.f32 %v2851_v1, %v1566_v40  ;;  %v7793_v40 = vld [vmem:[%s12757_s0 + $0x220] sm:$0xff]  ;;  %v1570_v6 = vmul.f32 %v9519_v48, %v8264_v17  ;;  %v7796_v17 = vld [vmem:[%s12757_s0 + $0x238] sm:$0xff] }
 0x28a   :  { %7219 = vtanh.f32 %v3368_v31  ;;  %v1844_v47 = vpop.permute.xlu1 %1843  ;;  %v1848_v55 = vpop.permute.xlu0 %1847  ;;  %v1569_v31 = vmul.f32 %v9519_v48, %v8266_v18 }
 0x28b   :  { %v3369_v5 = vadd.f32 %v9547_v2, %v3106_v10  ;;  %v3370_v32 = vadd.f32 %v9547_v2, %v3107_v23  ;;  %v2852_v15 = vmul.f32 %v9530_v16, %v1844_v47  ;;  %v2853_v63 = vmul.f32 %v9530_v16, %v1848_v55  ;;  %2091 = vperm.xlu1 %7212, %v7793_v40  }
 0x28c   :  { %2095 = vperm.xlu0 %7211, %v7794_v13   ;;  %v1572_v55 = vmul.f32 %v9519_v48, %v8274_v21  ;;  %v7798_v21 = vld [vmem:[%s12757_s0 + $0x248] sm:$0xff] }
 0x28d   :  { %7221 = vtanh.f32 %v3369_v5  ;;  %v3108_v14 = vadd.f32 %v2852_v15, %v1567_v56  ;;  %v3109_v39 = vadd.f32 %v2853_v63, %v1568_v24  ;;  %v7795_v24 = vld [vmem:[%s12757_s0 + $0x230] sm:$0xff]  ;;  %v1571_v5 = vmul.f32 %v9519_v48, %v8276_v22 }
 0x28e   :  { %7223 = vtanh.f32 %v3370_v32  ;;  %v1852_v0 = vpop.permute.xlu1 %1851  ;;  %v1856_v1 = vpop.permute.xlu0 %1855 }
 0x28f   :  { %v3371_v8 = vadd.f32 %v9547_v2, %v3108_v14  ;;  %v3372_v9 = vadd.f32 %v9547_v2, %v3109_v39  ;;  %v2854_v10 = vmul.f32 %v9530_v16, %v1852_v0  ;;  %v2855_v23 = vmul.f32 %v9530_v16, %v1856_v1  ;;  %2099 = vperm.xlu1 %7212, %v7795_v24  }
 0x290   :  { %2103 = vperm.xlu0 %7211, %v7796_v17   ;;  %v1574_v1 = vmul.f32 %v9519_v48, %v8284_v25  ;;  %v7800_v25 = vld [vmem:[%s12757_s0 + $0x258] sm:$0xff] }
 0x291   :  { %7225 = vtanh.f32 %v3371_v8  ;;  %v3110_v18 = vadd.f32 %v2854_v10, %v1569_v31  ;;  %v3111_v56 = vadd.f32 %v2855_v23, %v1570_v6  ;;  %v7797_v6 = vld [vmem:[%s12757_s0 + $0x240] sm:$0xff]  ;;  %v1573_v8 = vmul.f32 %v9519_v48, %v8286_v26 }
 0x292   :  { %v7214_v47 = vpop.eup %7213  ;;  %7227 = vtanh.f32 %v3372_v9  ;;  %v1860_v32 = vpop.permute.xlu1 %1859 }
 0x293   :  { %v1864_v15 = vpop.permute.xlu0 %1863  ;;  %v7216_v63 = vpop.eup %7215  ;;  %v3373_v40 = vadd.f32 %v9547_v2, %v3110_v18  ;;  %v3374_v13 = vadd.f32 %v9547_v2, %v3111_v56  ;;  %v2856_v14 = vmul.f32 %v9530_v16, %v1860_v32  ;;  %2107 = vperm.xlu1 %7212, %v7797_v6   ;;  %v1576_v32 = vmul.f32 %v9519_v48, %v8294_v29  ;;  %v7802_v29 = vld [vmem:[%s12757_s0 + $0x268] sm:$0xff] }
 0x294   :  { %v2857_v39 = vmul.f32 %v9530_v16, %v1864_v15  ;;  %2111 = vperm.xlu0 %7211, %v7798_v21   ;;  %6807 = vmatprep.mubr.msk.f32.mxu0 %vm3892_vm0, %v7216_v63  ;;  %v1575_v15 = vmul.f32 %v9519_v48, %v8296_v30 }
 0x295   :  { %7229 = vtanh.f32 %v3373_v40  ;;  %v3112_v22 = vadd.f32 %v2856_v14, %v1571_v5  ;;  %6808 = vmatmul.mubr.msk.f32.vlgmr.msra.gmra.mxu0 %vm3892_vm0, %v7214_v47  ;;  %v7799_v47 = vld [vmem:[%s12757_s0 + $0x250] sm:$0xff] }
 0x296   :  { %v3113_v31 = vadd.f32 %v2857_v39, %v1572_v55  ;;  %v7218_v0 = vpop.eup %7217  ;;  %7231 = vtanh.f32 %v3374_v13  ;;  %v1868_v9 = vpop.permute.xlu1 %1867 }
 0x297   :  { %v1872_v10 = vpop.permute.xlu0 %1871  ;;  %v7220_v23 = vpop.eup %7219  ;;  %v3375_v24 = vadd.f32 %v9547_v2, %v3112_v22  ;;  %v2858_v18 = vmul.f32 %v9530_v16, %v1868_v9  ;;  %2115 = vperm.xlu1 %7212, %v7799_v47   ;;  %6810 = vmatprep.mubr.msk.f32.mxu0 %vm3892_vm0, %v7218_v0  ;;  %v7801_v22 = vld [vmem:[%s12757_s0 + $0x260] sm:$0xff]  ;;  %v7803_v47 = vld [vmem:[%s12757_s0 + $0x270] sm:$0xff] }
 0x298   :  { %v3376_v17 = vadd.f32 %v9547_v2, %v3113_v31  ;;  %v2859_v56 = vmul.f32 %v9530_v16, %v1872_v10  ;;  %2119 = vperm.xlu0 %7211, %v7800_v25  }
 0x299   :  { %7233 = vtanh.f32 %v3375_v24  ;;  %v3114_v26 = vadd.f32 %v2858_v18, %v1573_v8  ;;  %6811 = vmatmul.mubr.msk.f32.gmra.mxu0 %vm3892_vm0, %v7220_v23  ;;  %v1577_v8 = vmul.f32 %v9519_v48, %v8306_v34 }
 0x29a   :  { %v3115_v55 = vadd.f32 %v2859_v56, %v1574_v1  ;;  %v7222_v5 = vpop.eup %7221  ;;  %7235 = vtanh.f32 %v3376_v17  ;;  %v1876_v63 = vpop.permute.xlu1 %1875  ;;  %v1578_v1 = vmul.f32 %v9519_v48, %v8304_v33  ;;  %v7804_v33 = vld [vmem:[%s12757_s0 + $0x278] sm:$0xff] }
 0x29b   :  { %v1880_v40 = vpop.permute.xlu0 %1879  ;;  %v7224_v13 = vpop.eup %7223  ;;  %v3377_v14 = vadd.f32 %v9547_v2, %v3114_v26  ;;  %v2860_v6 = vmul.f32 %v9530_v16, %v1876_v63  ;;  %2123 = vperm.xlu1 %7212, %v7801_v22   ;;  %6813 = vmatprep.mubr.msk.f32.mxu0 %vm3892_vm0, %v7222_v5  ;;  %v1579_v5 = vmul.f32 %v9519_v48, %v8316_v38 }
 0x29c   :  { %v3378_v39 = vadd.f32 %v9547_v2, %v3115_v55  ;;  %v2861_v21 = vmul.f32 %v9530_v16, %v1880_v40  ;;  %2127 = vperm.xlu0 %7211, %v7802_v29   ;;  %v1580_v55 = vmul.f32 %v9519_v48, %v8314_v37  ;;  %v7806_v37 = vld [vmem:[%s12757_s0 + $0x288] sm:$0xff]  ;;  %v1582_v29 = vmul.f32 %v9519_v48, %v8324_v41  ;;  %v7808_v41 = vld [vmem:[%s12757_s0 + $0x298] sm:$0xff] }
 0x29d   :  { %7237 = vtanh.f32 %v3377_v14  ;;  %v3116_v30 = vadd.f32 %v2860_v6, %v1575_v15  ;;  %6814 = vmatmul.mubr.msk.f32.gmra.mxu0 %vm3892_vm0, %v7224_v13  ;;  %v7805_v6 = vld [vmem:[%s12757_s0 + $0x280] sm:$0xff] }
 0x29e   :  { %v3117_v31 = vadd.f32 %v2861_v21, %v1576_v32  ;;  %v7226_v0 = vpop.eup %7225  ;;  %7239 = vtanh.f32 %v3378_v39  ;;  %v1884_v9 = vpop.permute.xlu1 %1883 }
 0x29f   :  { %v1888_v10 = vpop.permute.xlu0 %1887  ;;  %v7228_v23 = vpop.eup %7227  ;;  %v3379_v24 = vadd.f32 %v9547_v2, %v3116_v30  ;;  %v2862_v18 = vmul.f32 %v9530_v16, %v1884_v9  ;;  %2131 = vperm.xlu1 %7212, %v7803_v47   ;;  %6816 = vmatprep.mubr.msk.f32.mxu0 %vm3892_vm0, %v7226_v0  ;;  %v1581_v30 = vmul.f32 %v9519_v48, %v8326_v42 }
 0x2a0   :  { %v3380_v17 = vadd.f32 %v9547_v2, %v3117_v31  ;;  %v2863_v56 = vmul.f32 %v9530_v16, %v1888_v10  ;;  %2135 = vperm.xlu0 %7211, %v7804_v33   ;;  %v1583_v47 = vmul.f32 %v9519_v48, %v8336_v46 }
 0x2a1   :  { %7241 = vtanh.f32 %v3379_v24  ;;  %v3118_v34 = vadd.f32 %v2862_v18, %v1577_v8  ;;  %6817 = vmatmul.mubr.msk.f32.gmra.mxu0 %vm3892_vm0, %v7228_v23  ;;  %v7807_v24 = vld [vmem:[%s12757_s0 + $0x290] sm:$0xff] }
 0x2a2   :  { %v3119_v25 = vadd.f32 %v2863_v56, %v1578_v1  ;;  %v7230_v26 = vpop.eup %7229  ;;  %7243 = vtanh.f32 %v3380_v17  ;;  %v1892_v32 = vpop.permute.xlu1 %1891  ;;  %v1584_v56 = vmul.f32 %v9519_v48, %v8334_v45  ;;  %v7810_v45 = vld [vmem:[%s12757_s0 + $0x2a8] sm:$0xff] }
 0x2a3   :  { %v1896_v15 = vpop.permute.xlu0 %1895  ;;  %v7232_v63 = vpop.eup %7231  ;;  %v3381_v40 = vadd.f32 %v9547_v2, %v3118_v34  ;;  %v2864_v14 = vmul.f32 %v9530_v16, %v1892_v32  ;;  %2139 = vperm.xlu1 %7212, %v7805_v6   ;;  %6819 = vmatprep.mubr.msk.f32.mxu0 %vm3892_vm0, %v7230_v26 }
 0x2a4   :  { %v3382_v13 = vadd.f32 %v9547_v2, %v3119_v25  ;;  %v2865_v39 = vmul.f32 %v9530_v16, %v1896_v15  ;;  %2143 = vperm.xlu0 %7211, %v7806_v37   ;;  %v7809_v15 = vld [vmem:[%s12757_s0 + $0x2a0] sm:$0xff] }
 0x2a5   :  { %7245 = vtanh.f32 %v3381_v40  ;;  %v3120_v38 = vadd.f32 %v2864_v14, %v1579_v5  ;;  %6820 = vmatmul.mubr.msk.f32.gmra.mxu0 %vm3892_vm0, %v7232_v63  ;;  %v1585_v14 = vmul.f32 %v9519_v48, %v8346_v50 }
 0x2a6   :  { %v3121_v21 = vadd.f32 %v2865_v39, %v1580_v55  ;;  %v7234_v22 = vpop.eup %7233  ;;  %7247 = vtanh.f32 %v3382_v13  ;;  %v1900_v31 = vpop.permute.xlu1 %1899  ;;  %v1586_v13 = vmul.f32 %v9519_v48, %v8344_v49  ;;  %v7812_v49 = vld [vmem:[%s12757_s0 + $0x2b8] sm:$0xff] }
 0x2a7   :  { %v1904_v0 = vpop.permute.xlu0 %1903  ;;  %v7236_v1 = vpop.eup %7235  ;;  %v3383_v8 = vadd.f32 %v9547_v2, %v3120_v38  ;;  %v2866_v10 = vmul.f32 %v9530_v16, %v1900_v31  ;;  %2147 = vperm.xlu1 %7212, %v7807_v24   ;;  %6822 = vmatprep.mubr.msk.f32.mxu0 %vm3892_vm0, %v7234_v22 }
 0x2a8   :  { %v3384_v9 = vadd.f32 %v9547_v2, %v3121_v21  ;;  %v2867_v23 = vmul.f32 %v9530_v16, %v1904_v0  ;;  %2151 = vperm.xlu0 %7211, %v7808_v41  }
 0x2a9   :  { %7249 = vtanh.f32 %v3383_v8  ;;  %v3122_v42 = vadd.f32 %v2866_v10, %v1581_v30  ;;  %6823 = vmatmul.mubr.msk.f32.gmra.mxu0 %vm3892_vm0, %v7236_v1  ;;  %v7811_v30 = vld [vmem:[%s12757_s0 + $0x2b0] sm:$0xff]  ;;  %v1588_v1 = vmul.f32 %v9519_v48, %v8354_v53  ;;  %v1587_v8 = vmul.f32 %v9519_v48, %v8356_v54  ;;  %v7814_v53 = vld [vmem:[%s12757_s0 + $0x2c8] sm:$0xff] }
 0x2aa   :  { %v3123_v17 = vadd.f32 %v2867_v23, %v1582_v29  ;;  %v7238_v18 = vpop.eup %7237  ;;  %7251 = vtanh.f32 %v3384_v9  ;;  %v1908_v33 = vpop.permute.xlu1 %1907 }
 0x2ab   :  { %v1912_v34 = vpop.permute.xlu0 %1911  ;;  %v7240_v25 = vpop.eup %7239  ;;  %v3385_v26 = vadd.f32 %v9547_v2, %v3122_v42  ;;  %v2868_v5 = vmul.f32 %v9530_v16, %v1908_v33  ;;  %2155 = vperm.xlu1 %7212, %v7809_v15   ;;  %6825 = vmatprep.mubr.msk.f32.mxu0 %vm3892_vm0, %v7238_v18  ;;  %v7813_v18 = vld [vmem:[%s12757_s0 + $0x2c0] sm:$0xff]  ;;  %v1590_v33 = vmul.f32 %v9519_v48, %v8364_v57  ;;  %v7816_v57 = vld [vmem:[%s12757_s0 + $0x2d8] sm:$0xff] }
 0x2ac   :  { %v3386_v55 = vadd.f32 %v9547_v2, %v3123_v17  ;;  %v2869_v32 = vmul.f32 %v9530_v16, %v1912_v34  ;;  %2159 = vperm.xlu0 %7211, %v7810_v45   ;;  %v1589_v34 = vmul.f32 %v9519_v48, %v8366_v58 }
 0x2ad   :  { %7253 = vtanh.f32 %v3385_v26  ;;  %v3124_v46 = vadd.f32 %v2868_v5, %v1583_v47  ;;  %6826 = vmatmul.mubr.msk.f32.gmra.mxu0 %vm3892_vm0, %v7240_v25 }
 0x2ae   :  { %v3125_v63 = vadd.f32 %v2869_v32, %v1584_v56  ;;  %v7242_v40 = vpop.eup %7241  ;;  %7255 = vtanh.f32 %v3386_v55  ;;  %v1916_v39 = vpop.permute.xlu1 %1915 }
 0x2af   :  { %v1920_v6 = vpop.permute.xlu0 %1919  ;;  %v7244_v37 = vpop.eup %7243  ;;  %v3387_v38 = vadd.f32 %v9547_v2, %v3124_v46  ;;  %v2870_v22 = vmul.f32 %v9530_v16, %v1916_v39  ;;  %2163 = vperm.xlu1 %7212, %v7811_v30   ;;  %6828 = vmatprep.mubr.msk.f32.mxu0 %vm3892_vm0, %v7242_v40  ;;  %v7815_v46 = vld [vmem:[%s12757_s0 + $0x2d0] sm:$0xff]  ;;  %v7817_v30 = vld [vmem:[%s12757_s0 + $0x2e0] sm:$0xff] }
 0x2b0   :  { %v3388_v21 = vadd.f32 %v9547_v2, %v3125_v63  ;;  %v2871_v29 = vmul.f32 %v9530_v16, %v1920_v6  ;;  %2167 = vperm.xlu0 %7211, %v7812_v49  }
 0x2b1   :  { %7257 = vtanh.f32 %v3387_v38  ;;  %v3126_v50 = vadd.f32 %v2870_v22, %v1585_v14  ;;  %6829 = vmatmul.mubr.msk.f32.gmra.mxu0 %vm3892_vm0, %v7244_v37  ;;  %v1591_v14 = vmul.f32 %v9519_v48, %v8376_v62 }
 0x2b2   :  { %v3127_v31 = vadd.f32 %v2871_v29, %v1586_v13  ;;  %v7246_v0 = vpop.eup %7245  ;;  %7259 = vtanh.f32 %v3388_v21  ;;  %v1924_v9 = vpop.permute.xlu1 %1923  ;;  %v1592_v13 = vmul.f32 %v9519_v48, %v8374_v61  ;;  %v7818_v61 = vld [vmem:[%s12757_s0 + $0x2e8] sm:$0xff] }
 0x2b3   :  { %v1928_v10 = vpop.permute.xlu0 %1927  ;;  %v7248_v23 = vpop.eup %7247  ;;  %v3389_v24 = vadd.f32 %v9547_v2, %v3126_v50  ;;  %v2872_v42 = vmul.f32 %v9530_v16, %v1924_v9  ;;  %2171 = vperm.xlu1 %7212, %v7813_v18   ;;  %6831 = vmatprep.mubr.msk.f32.mxu0 %vm3892_vm0, %v7246_v0  ;;  %v1593_v0 = vmul.f32 %v9519_v48, %v8386_v4 }
 0x2b4   :  { %v3390_v41 = vadd.f32 %v9547_v2, %v3127_v31  ;;  %v2873_v17 = vmul.f32 %v9530_v16, %v1928_v10  ;;  %2175 = vperm.xlu0 %7211, %v7814_v53   ;;  %v1594_v31 = vmul.f32 %v9519_v48, %v8384_v3  ;;  %v7820_v3 = vld [vmem:[%s12757_s0 + $0x2f8] sm:$0xff]  ;;  %v1596_v53 = vmul.f32 %v9519_v48, %v8394_v11  ;;  %v7822_v11 = vld [vmem:[%s12757_s0 + $0x308] sm:$0xff] }
 0x2b5   :  { %7261 = vtanh.f32 %v3389_v24  ;;  %v3128_v54 = vadd.f32 %v2872_v42, %v1587_v8  ;;  %6832 = vmatmul.mubr.msk.f32.gmra.mxu0 %vm3892_vm0, %v7248_v23  ;;  %v7819_v42 = vld [vmem:[%s12757_s0 + $0x2f0] sm:$0xff] }
 0x2b6   :  { %v3129_v56 = vadd.f32 %v2873_v17, %v1588_v1  ;;  %v7250_v47 = vpop.eup %7249  ;;  %7263 = vtanh.f32 %v3390_v41  ;;  %v1932_v25 = vpop.permute.xlu1 %1931 }
 0x2b7   :  { %v1936_v26 = vpop.permute.xlu0 %1935  ;;  %v7252_v55 = vpop.eup %7251  ;;  %v3391_v5 = vadd.f32 %v9547_v2, %v3128_v54  ;;  %v2874_v15 = vmul.f32 %v9530_v16, %v1932_v25  ;;  %2179 = vperm.xlu1 %7212, %v7815_v46   ;;  %6834 = vmatprep.mubr.msk.f32.mxu0 %vm3892_vm0, %v7250_v47  ;;  %v1595_v54 = vmul.f32 %v9519_v48, %v8396_v12 }
 0x2b8   :  { %v3392_v32 = vadd.f32 %v9547_v2, %v3129_v56  ;;  %v2875_v45 = vmul.f32 %v9530_v16, %v1936_v26  ;;  %2183 = vperm.xlu0 %7211, %v7816_v57   ;;  %v1597_v46 = vmul.f32 %v9519_v48, %v8406_v20 }
 0x2b9   :  { %7265 = vtanh.f32 %v3391_v5  ;;  %v3130_v58 = vadd.f32 %v2874_v15, %v1589_v34  ;;  %6835 = vmatmul.mubr.msk.f32.gmra.mxu0 %vm3892_vm0, %v7252_v55  ;;  %v7821_v5 = vld [vmem:[%s12757_s0 + $0x300] sm:$0xff] }
 0x2ba   :  { %v3131_v63 = vadd.f32 %v2875_v45, %v1590_v33  ;;  %v7254_v40 = vpop.eup %7253  ;;  %7267 = vtanh.f32 %v3392_v32  ;;  %v1940_v39 = vpop.permute.xlu1 %1939  ;;  %v1598_v45 = vmul.f32 %v9519_v48, %v8404_v19  ;;  %v7824_v19 = vld [vmem:[%s12757_s0 + $0x318] sm:$0xff] }
 0x2bb   :  { %v1944_v6 = vpop.permute.xlu0 %1943  ;;  %v7256_v37 = vpop.eup %7255  ;;  %v3393_v38 = vadd.f32 %v9547_v2, %v3130_v58  ;;  %v2876_v22 = vmul.f32 %v9530_v16, %v1940_v39  ;;  %2187 = vperm.xlu1 %7212, %v7817_v30   ;;  %6837 = vmatprep.mubr.msk.f32.mxu0 %vm3892_vm0, %v7254_v40 }
 0x2bc   :  { %v3394_v21 = vadd.f32 %v9547_v2, %v3131_v63  ;;  %v2877_v29 = vmul.f32 %v9530_v16, %v1944_v6  ;;  %2191 = vperm.xlu0 %7211, %v7818_v61   ;;  %v7823_v6 = vld [vmem:[%s12757_s0 + $0x310] sm:$0xff] }
 0x2bd   :  { %7269 = vtanh.f32 %v3393_v38  ;;  %v3132_v62 = vadd.f32 %v2876_v22, %v1591_v14  ;;  %6838 = vmatmul.mubr.msk.f32.gmra.mxu0 %vm3892_vm0, %v7256_v37  ;;  %v1599_v22 = vmul.f32 %v9519_v48, %v8416_v28 }
 0x2be   :  { %v3133_v49 = vadd.f32 %v2877_v29, %v1592_v13  ;;  %v7258_v50 = vpop.eup %7257  ;;  %7271 = vtanh.f32 %v3394_v21  ;;  %v1948_v1 = vpop.permute.xlu1 %1947  ;;  %v1600_v21 = vmul.f32 %v9519_v48, %v8414_v27  ;;  %v7826_v27 = vld [vmem:[%s12757_s0 + $0x328] sm:$0xff] }
 0x2bf   :  { %v1952_v8 = vpop.permute.xlu0 %1951  ;;  %v7260_v9 = vpop.eup %7259  ;;  %v3395_v10 = vadd.f32 %v9547_v2, %v3132_v62  ;;  %v2878_v24 = vmul.f32 %v9530_v16, %v1948_v1  ;;  %2195 = vperm.xlu1 %7212, %v7819_v42   ;;  %6840 = vmatprep.mubr.msk.f32.mxu0 %vm3892_vm0, %v7258_v50 }
 0x2c0   :  { %v3396_v23 = vadd.f32 %v9547_v2, %v3133_v49  ;;  %v2879_v41 = vmul.f32 %v9530_v16, %v1952_v8  ;;  %2199 = vperm.xlu0 %7211, %v7820_v3  }
 0x2c1   :  { %7273 = vtanh.f32 %v3395_v10  ;;  %v3134_v4 = vadd.f32 %v2878_v24, %v1593_v0  ;;  %6841 = vmatmul.mubr.msk.f32.gmra.mxu0 %vm3892_vm0, %v7260_v9  ;;  %v7825_v0 = vld [vmem:[%s12757_s0 + $0x320] sm:$0xff]  ;;  %v1602_v9 = vmul.f32 %v9519_v48, %v8424_v35  ;;  %v1601_v10 = vmul.f32 %v9519_v48, %v8426_v36  ;;  %v7828_v35 = vld [vmem:[%s12757_s0 + $0x338] sm:$0xff] }
 0x2c2   :  { %v3135_v17 = vadd.f32 %v2879_v41, %v1594_v31  ;;  %v7262_v18 = vpop.eup %7261  ;;  %7275 = vtanh.f32 %v3396_v23  ;;  %v1956_v56 = vpop.permute.xlu1 %1955 }
 0x2c3   :  { %v1960_v47 = vpop.permute.xlu0 %1959  ;;  %v7264_v33 = vpop.eup %7263  ;;  %v3397_v34 = vadd.f32 %v9547_v2, %v3134_v4  ;;  %v2880_v26 = vmul.f32 %v9530_v16, %v1956_v56  ;;  %2203 = vperm.xlu1 %7212, %v7821_v5   ;;  %6843 = vmatprep.mubr.msk.f32.mxu0 %vm3892_vm0, %v7262_v18  ;;  %v7827_v18 = vld [vmem:[%s12757_s0 + $0x330] sm:$0xff]  ;;  %v1604_v56 = vmul.f32 %v9519_v48, %v8434_v43  ;;  %v7830_v43 = vld [vmem:[%s12757_s0 + $0x348] sm:$0xff] }
 0x2c4   :  { %v3398_v25 = vadd.f32 %v9547_v2, %v3135_v17  ;;  %v2881_v55 = vmul.f32 %v9530_v16, %v1960_v47  ;;  %2207 = vperm.xlu0 %7211, %v7822_v11   ;;  %v1603_v47 = vmul.f32 %v9519_v48, %v8436_v44 }
 0x2c5   :  { %7277 = vtanh.f32 %v3397_v34  ;;  %v3136_v12 = vadd.f32 %v2880_v26, %v1595_v54  ;;  %6844 = vmatmul.mubr.msk.f32.gmra.mxu0 %vm3892_vm0, %v7264_v33 }
 0x2c6   :  { %v3137_v32 = vadd.f32 %v2881_v55, %v1596_v53  ;;  %v7266_v15 = vpop.eup %7265  ;;  %7279 = vtanh.f32 %v3398_v25  ;;  %v1964_v57 = vpop.permute.xlu1 %1963 }
 0x2c7   :  { %v1968_v58 = vpop.permute.xlu0 %1967  ;;  %v7268_v63 = vpop.eup %7267  ;;  %v3399_v40 = vadd.f32 %v9547_v2, %v3136_v12  ;;  %v2882_v14 = vmul.f32 %v9530_v16, %v1964_v57  ;;  %2211 = vperm.xlu1 %7212, %v7823_v6   ;;  %6846 = vmatprep.mubr.msk.f32.mxu0 %vm3892_vm0, %v7266_v15  ;;  %v7829_v12 = vld [vmem:[%s12757_s0 + $0x340] sm:$0xff]  ;;  %v7831_v6 = vld [vmem:[%s12757_s0 + $0x350] sm:$0xff] }
 0x2c8   :  { %v3400_v13 = vadd.f32 %v9547_v2, %v3137_v32  ;;  %v2883_v39 = vmul.f32 %v9530_v16, %v1968_v58  ;;  %2215 = vperm.xlu0 %7211, %v7824_v19  }
 0x2c9   :  { %7281 = vtanh.f32 %v3399_v40  ;;  %v3138_v20 = vadd.f32 %v2882_v14, %v1597_v46  ;;  %6847 = vmatmul.mubr.msk.f32.gmra.mxu0 %vm3892_vm0, %v7268_v63  ;;  %v1605_v46 = vmul.f32 %v9519_v48, %v8446_v52 }
 0x2ca   :  { %v3139_v37 = vadd.f32 %v2883_v39, %v1598_v45  ;;  %v7270_v38 = vpop.eup %7269  ;;  %7283 = vtanh.f32 %v3400_v13  ;;  %v1972_v29 = vpop.permute.xlu1 %1971  ;;  %v1606_v45 = vmul.f32 %v9519_v48, %v8444_v51  ;;  %v7832_v51 = vld [vmem:[%s12757_s0 + $0x358] sm:$0xff] }
 0x2cb   :  { %v1976_v30 = vpop.permute.xlu0 %1975  ;;  %v7272_v61 = vpop.eup %7271  ;;  %v3401_v62 = vadd.f32 %v9547_v2, %v3138_v20  ;;  %v2884_v50 = vmul.f32 %v9530_v16, %v1972_v29  ;;  %2219 = vperm.xlu1 %7212, %v7825_v0   ;;  %6849 = vmatprep.mubr.msk.f32.mxu0 %vm3892_vm0, %v7270_v38  ;;  %v1607_v38 = vmul.f32 %v9519_v48, %v8456_v60 }
 0x2cc   :  { %v3402_v49 = vadd.f32 %v9547_v2, %v3139_v37  ;;  %v2885_v31 = vmul.f32 %v9530_v16, %v1976_v30  ;;  %2223 = vperm.xlu0 %7211, %v7826_v27   ;;  %v1608_v37 = vmul.f32 %v9519_v48, %v8454_v59  ;;  %v7834_v59 = vld [vmem:[%s12757_s0 + $0x368] sm:$0xff]  ;;  %v1610_v27 = vmul.f32 %v9519_v48, %v8464_v7  ;;  %v7836_v7 = vld [vmem:[%s12757_s0 + $0x378] sm:$0xff] }
 0x2cd   :  { %7285 = vtanh.f32 %v3401_v62  ;;  %v3140_v28 = vadd.f32 %v2884_v50, %v1599_v22  ;;  %6850 = vmatmul.mubr.msk.f32.gmra.mxu0 %vm3892_vm0, %v7272_v61  ;;  %v7833_v50 = vld [vmem:[%s12757_s0 + $0x360] sm:$0xff] }
 0x2ce   :  { %v3141_v1 = vadd.f32 %v2885_v31, %v1600_v21  ;;  %v7274_v8 = vpop.eup %7273  ;;  %7287 = vtanh.f32 %v3402_v49  ;;  %v1980_v23 = vpop.permute.xlu1 %1979 }
 0x2cf   :  { %v1984_v24 = vpop.permute.xlu0 %1983  ;;  %v7276_v41 = vpop.eup %7275  ;;  %v3403_v42 = vadd.f32 %v9547_v2, %v3140_v28  ;;  %v2886_v4 = vmul.f32 %v9530_v16, %v1980_v23  ;;  %2227 = vperm.xlu1 %7212, %v7827_v18   ;;  %6852 = vmatprep.mubr.msk.f32.mxu0 %vm3892_vm0, %v7274_v8  ;;  %v12970_v28 = vld [vmem:[#allocation2_spill] sm:$0xff] }
 0x2d0   :  { %v3404_v3 = vadd.f32 %v9547_v2, %v3141_v1  ;;  %v2887_v17 = vmul.f32 %v9530_v16, %v1984_v24  ;;  %2231 = vperm.xlu0 %7211, %v7828_v35   ;;  %v1609_v1 = vmul.f32 %v9519_v48, %v12970_v28  ;;  %v12971_v35 = vld [vmem:[#allocation3_spill] sm:$0xff] }
 0x2d1   :  { %7289 = vtanh.f32 %v3403_v42  ;;  %v3142_v36 = vadd.f32 %v2886_v4, %v1601_v10  ;;  %6853 = vmatmul.mubr.msk.f32.gmra.mxu0 %vm3892_vm0, %v7276_v41 }
 0x2d2   :  { %v3143_v53 = vadd.f32 %v2887_v17, %v1602_v9  ;;  %v7278_v54 = vpop.eup %7277  ;;  %7291 = vtanh.f32 %v3404_v3  ;;  %v1988_v33 = vpop.permute.xlu1 %1987  ;;  %v7835_v3 = vld [vmem:[%s12757_s0 + $0x370] sm:$0xff] }
 0x2d3   :  { %v1992_v34 = vpop.permute.xlu0 %1991  ;;  %v7280_v25 = vpop.eup %7279  ;;  %v3405_v26 = vadd.f32 %v9547_v2, %v3142_v36  ;;  %v2888_v5 = vmul.f32 %v9530_v16, %v1988_v33  ;;  %2235 = vperm.xlu1 %7212, %v7829_v12   ;;  %6855 = vmatprep.mubr.msk.f32.mxu0 %vm3892_vm0, %v7278_v54  ;;  %v1612_v36 = vmul.f32 %v9519_v48, %v12971_v35 }
 0x2d4   :  { %v3406_v55 = vadd.f32 %v9547_v2, %v3143_v53  ;;  %v2889_v11 = vmul.f32 %v9530_v16, %v1992_v34  ;;  %2239 = vperm.xlu0 %7211, %v7830_v43   ;;  %v12972_v53 = vld [vmem:[#allocation4_spill] sm:$0xff] }
 0x2d5   :  { %7293 = vtanh.f32 %v3405_v26  ;;  %v3144_v44 = vadd.f32 %v2888_v5, %v1603_v47  ;;  %6856 = vmatmul.mubr.msk.f32.gmra.mxu0 %vm3892_vm0, %v7280_v25  ;;  %v1611_v54 = vmul.f32 %v9519_v48, %v12972_v53  ;;  %v7837_v5 = vld [vmem:[%s12757_s0 + $0x380] sm:$0xff] }
 0x2d6   :  { %v3145_v32 = vadd.f32 %v2889_v11, %v1604_v56  ;;  %v7282_v15 = vpop.eup %7281  ;;  %7295 = vtanh.f32 %v3406_v55  ;;  %v1996_v57 = vpop.permute.xlu1 %1995  ;;  %v7838_v11 = vld [vmem:[%s12757_s0 + $0x388] sm:$0xff] }
 0x2d7   :  { %v2000_v58 = vpop.permute.xlu0 %1999  ;;  %v7284_v63 = vpop.eup %7283  ;;  %v3407_v40 = vadd.f32 %v9547_v2, %v3144_v44  ;;  %v2890_v14 = vmul.f32 %v9530_v16, %v1996_v57  ;;  %2243 = vperm.xlu1 %7212, %v7831_v6   ;;  %6858 = vmatprep.mubr.msk.f32.mxu0 %vm3892_vm0, %v7282_v15  ;;  %v7839_v6 = vld [vmem:[%s12757_s0 + $0x390] sm:$0xff] }
 0x2d8   :  { %v3408_v13 = vadd.f32 %v9547_v2, %v3145_v32  ;;  %v2891_v39 = vmul.f32 %v9530_v16, %v2000_v58  ;;  %2247 = vperm.xlu0 %7211, %v7832_v51   ;;  %v12973_v32 = vld [vmem:[#allocation5_spill] sm:$0xff] }
 0x2d9   :  { %7297 = vtanh.f32 %v3407_v40  ;;  %v3146_v52 = vadd.f32 %v2890_v14, %v1605_v46  ;;  %6859 = vmatmul.mubr.msk.f32.gmra.mxu0 %vm3892_vm0, %v7284_v63  ;;  %v1614_v15 = vmul.f32 %v9519_v48, %v12973_v32  ;;  %v7840_v51 = vld [vmem:[%s12757_s0 + $0x398] sm:$0xff] }
 0x2da   :  { %v3147_v19 = vadd.f32 %v2891_v39, %v1606_v45  ;;  %v7286_v20 = vpop.eup %7285  ;;  %7299 = vtanh.f32 %v3408_v13  ;;  %v2004_v21 = vpop.permute.xlu1 %2003  ;;  %v12974_v45 = vld [vmem:[#allocation6_spill] sm:$0xff] }
 0x2db   :  { %v2008_v22 = vpop.permute.xlu0 %2007  ;;  %v7288_v29 = vpop.eup %7287  ;;  %v3409_v30 = vadd.f32 %v9547_v2, %v3146_v52  ;;  %v2892_v62 = vmul.f32 %v9530_v16, %v2004_v21  ;;  %2251 = vperm.xlu1 %7212, %v7833_v50   ;;  %6861 = vmatprep.mubr.msk.f32.mxu0 %vm3892_vm0, %v7286_v20  ;;  %v1613_v46 = vmul.f32 %v9519_v48, %v12974_v45  ;;  %v12976_v21 = vld [vmem:[#allocation8_spill] sm:$0xff] }
 0x2dc   :  { %v3410_v61 = vadd.f32 %v9547_v2, %v3147_v19  ;;  %v2893_v49 = vmul.f32 %v9530_v16, %v2008_v22  ;;  %2255 = vperm.xlu0 %7211, %v7834_v59   ;;  %v1615_v22 = vmul.f32 %v9519_v48, %v12976_v21 }
 0x2dd   :  { %7301 = vtanh.f32 %v3409_v30  ;;  %v3148_v60 = vadd.f32 %v2892_v62, %v1607_v38  ;;  %6862 = vmatmul.mubr.msk.f32.gmra.mxu0 %vm3892_vm0, %v7288_v29 }
 0x2de   :  { %v3149_v31 = vadd.f32 %v2893_v49, %v1608_v37  ;;  %v7290_v0 = vpop.eup %7289  ;;  %7303 = vtanh.f32 %v3410_v61  ;;  %v2012_v8 = vpop.permute.xlu1 %2011  ;;  %v12975_v37 = vld [vmem:[#allocation7_spill] sm:$0xff] }
 0x2df   :  { %v2016_v9 = vpop.permute.xlu0 %2015  ;;  %v7292_v10 = vpop.eup %7291  ;;  %v3411_v23 = vadd.f32 %v9547_v2, %v3148_v60  ;;  %v2894_v41 = vmul.f32 %v9530_v16, %v2012_v8  ;;  %2259 = vperm.xlu1 %7212, %v7835_v3   ;;  %6864 = vmatprep.mubr.msk.f32.mxu0 %vm3892_vm0, %v7290_v0  ;;  %v1616_v38 = vmul.f32 %v9519_v48, %v12975_v37  ;;  %v7841_v60 = vld [vmem:[%s12757_s0 + $0x3a0] sm:$0xff] }
 0x2e0   :  { %v3412_v24 = vadd.f32 %v9547_v2, %v3149_v31  ;;  %v2895_v42 = vmul.f32 %v9530_v16, %v2016_v9  ;;  %2263 = vperm.xlu0 %7211, %v7836_v7   ;;  %v7842_v31 = vld [vmem:[%s12757_s0 + $0x3a8] sm:$0xff]  ;;  %v12978_v9 = vld [vmem:[#allocation10_spill] sm:$0xff] }
 0x2e1   :  { %7305 = vtanh.f32 %v3411_v23  ;;  %v3150_v4 = vadd.f32 %v2894_v41, %v1609_v1  ;;  %6865 = vmatmul.mubr.msk.f32.gmra.mxu0 %vm3892_vm0, %v7292_v10  ;;  %v12977_v1 = vld [vmem:[#allocation9_spill] sm:$0xff]  ;;  %v1617_v10 = vmul.f32 %v9519_v48, %v12978_v9 }
 0x2e2   :  { %v3151_v17 = vadd.f32 %v2895_v42, %v1610_v27  ;;  %v7294_v18 = vpop.eup %7293  ;;  %7307 = vtanh.f32 %v3412_v24  ;;  %v2020_v56 = vpop.permute.xlu1 %2019  ;;  %v1618_v8 = vmul.f32 %v9519_v48, %v12977_v1 }
 0x2e3   :  { %v2024_v47 = vpop.permute.xlu0 %2023  ;;  %v7296_v33 = vpop.eup %7295  ;;  %v3413_v34 = vadd.f32 %v9547_v2, %v3150_v4  ;;  %v2896_v26 = vmul.f32 %v9530_v16, %v2020_v56  ;;  %2267 = vperm.xlu1 %7212, %v7837_v5   ;;  %6867 = vmatprep.mubr.msk.f32.mxu0 %vm3892_vm0, %v7294_v18  ;;  %v7844_v18 = vld [vmem:[%s12757_s0 + $0x3b8] sm:$0xff] }
 0x2e4   :  { %v3414_v25 = vadd.f32 %v9547_v2, %v3151_v17  ;;  %v2897_v55 = vmul.f32 %v9530_v16, %v2024_v47  ;;  %2271 = vperm.xlu0 %7211, %v7838_v11   ;;  %v7843_v17 = vld [vmem:[%s12757_s0 + $0x3b0] sm:$0xff] }
 0x2e5   :  { %7309 = vtanh.f32 %v3413_v34  ;;  %v3152_v12 = vadd.f32 %v2896_v26, %v1611_v54  ;;  %6868 = vmatmul.mubr.msk.f32.gmra.mxu0 %vm3892_vm0, %v7296_v33  ;;  %v12979_v54 = vld [vmem:[#allocation11_spill] sm:$0xff]  ;;  %v12980_v47 = vld [vmem:[#allocation12_spill] sm:$0xff] }
 0x2e6   :  { %v3153_v43 = vadd.f32 %v2897_v55, %v1612_v36  ;;  %v7298_v44 = vpop.eup %7297  ;;  %7311 = vtanh.f32 %v3414_v25  ;;  %v2028_v57 = vpop.permute.xlu1 %2027  ;;  %v1620_v56 = vmul.f32 %v9519_v48, %v12979_v54  ;;  %v1619_v33 = vmul.f32 %v9519_v48, %v12980_v47  ;;  %v7846_v48 = vld [vmem:[%s12757_s0 + $0x3c8] sm:$0xff] }
 0x2e7   :  { %v2032_v58 = vpop.permute.xlu0 %2031  ;;  %v7300_v63 = vpop.eup %7299  ;;  %v3415_v40 = vadd.f32 %v9547_v2, %v3152_v12  ;;  %v2898_v14 = vmul.f32 %v9530_v16, %v2028_v57  ;;  %2275 = vperm.xlu1 %7212, %v7839_v6   ;;  %6870 = vmatprep.mubr.msk.f32.mxu0 %vm3892_vm0, %v7298_v44  ;;  %v10024_v6 = vld [vmem:[%s12759_s1 + $0x1] ss:$0 sm:$0xff] }
 0x2e8   :  { %v3416_v13 = vadd.f32 %v9547_v2, %v3153_v43  ;;  %v2899_v39 = vmul.f32 %v9530_v16, %v2032_v58  ;;  %2279 = vperm.xlu0 %7211, %v7840_v51   ;;  %v7845_v43 = vld [vmem:[%s12757_s0 + $0x3c0] sm:$0xff] }
 0x2e9   :  { %7313 = vtanh.f32 %v3415_v40  ;;  %v3154_v52 = vadd.f32 %v2898_v14, %v1613_v46  ;;  %6871 = vmatmul.mubr.msk.f32.gmra.mxu0 %vm3892_vm0, %v7300_v63  ;;  %v12982_v46 = vld [vmem:[#allocation14_spill] sm:$0xff] }
 0x2ea   :  { %v3155_v19 = vadd.f32 %v2899_v39, %v1614_v15  ;;  %v7302_v20 = vpop.eup %7301  ;;  %7315 = vtanh.f32 %v3416_v13  ;;  %v2036_v29 = vpop.permute.xlu1 %2035  ;;  %v12981_v15 = vld [vmem:[#allocation13_spill] sm:$0xff]  ;;  %v10017_v13 = vld [vmem:[%s12760_s2] ss:$0 sm:$0xff] }
 0x2eb   :  { %v2040_v30 = vpop.permute.xlu0 %2039  ;;  %v7304_v61 = vpop.eup %7303  ;;  %v3417_v62 = vadd.f32 %v9547_v2, %v3154_v52  ;;  %v2900_v50 = vmul.f32 %v9530_v16, %v2036_v29  ;;  %2283 = vperm.xlu1 %7212, %v7841_v60   ;;  %6873 = vmatprep.mubr.msk.f32.mxu0 %vm3892_vm0, %v7302_v20  ;;  %v7851_v20 = vld [vmem:[%s12757_s0 + $0x400] sm:$0xff] }
 0x2ec   :  { %v3418_v49 = vadd.f32 %v9547_v2, %v3155_v19  ;;  %v2901_v59 = vmul.f32 %v9530_v16, %v2040_v30  ;;  %2287 = vperm.xlu0 %7211, %v7842_v31   ;;  %v7850_v19 = vld [vmem:[%s12757_s0 + $0x3d0] sm:$0xff] }
 0x2ed   :  { %7317 = vtanh.f32 %v3417_v62  ;;  %v3156_v0 = vadd.f32 %v2900_v50, %v1615_v22  ;;  %6874 = vmatmul.mubr.msk.f32.gmra.mxu0 %vm3892_vm0, %v7304_v61  ;;  %v12983_v22 = vld [vmem:[#allocation15_spill] sm:$0xff]  ;;  %v12984_v30 = vld [vmem:[#allocation16_spill] sm:$0xff] }
 0x2ee   :  { %v3157_v27 = vadd.f32 %v2901_v59, %v1616_v38  ;;  %v7306_v28 = vpop.eup %7305  ;;  %7319 = vtanh.f32 %v3418_v49  ;;  %v2044_v23 = vpop.permute.xlu1 %2043 }
 0x2ef   :  { %v2048_v24 = vpop.permute.xlu0 %2047  ;;  %v7308_v41 = vpop.eup %7307  ;;  %v3419_v42 = vadd.f32 %v9547_v2, %v3156_v0  ;;  %v2902_v7 = vmul.f32 %v9530_v16, %v2044_v23  ;;  %2291 = vperm.xlu1 %7212, %v7843_v17   ;;  %6876 = vmatprep.mubr.msk.f32.mxu0 %vm3892_vm0, %v7306_v28  ;;  %v7853_v28 = vld [vmem:[%s12757_s0 + $0x410] sm:$0xff]  ;;  %v7854_v17 = vld [vmem:[%s12757_s0 + $0x418] sm:$0xff] }
 0x2f0   :  { %v3420_v3 = vadd.f32 %v9547_v2, %v3157_v27  ;;  %v2903_v4 = vmul.f32 %v9530_v16, %v2048_v24  ;;  %2295 = vperm.xlu0 %7211, %v7844_v18   ;;  %v7852_v27 = vld [vmem:[%s12757_s0 + $0x408] sm:$0xff]  ;;  %v12986_v18 = vld [vmem:[#allocation17_spill] sm:$0xff] }
 0x2f1   :  { %7321 = vtanh.f32 %v3419_v42  ;;  %v3158_v35 = vadd.f32 %v2902_v7, %v1617_v10  ;;  %6877 = vmatmul.mubr.msk.f32.gmra.mxu0 %vm3892_vm0, %v7308_v41  ;;  %v12985_v10 = vld [vmem:[#allocation18_spill] sm:$0xff] }
 0x2f2   :  { %v3159_v36 = vadd.f32 %v2903_v4, %v1618_v8  ;;  %v7310_v53 = vpop.eup %7309  ;;  %7323 = vtanh.f32 %v3420_v3  ;;  %v2052_v34 = vpop.permute.xlu1 %2051 }
 0x2f3   :  { %v2056_v25 = vpop.permute.xlu0 %2055  ;;  %v7312_v26 = vpop.eup %7311  ;;  %v3421_v55 = vadd.f32 %v9547_v2, %v3158_v35  ;;  %v2904_v11 = vmul.f32 %v9530_v16, %v2052_v34  ;;  %2299 = vperm.xlu1 %7212, %v7845_v43   ;;  %6879 = vmatprep.mubr.msk.f32.mxu0 %vm3892_vm0, %v7310_v53  ;;  %v7855_v53 = vld [vmem:[%s12757_s0 + $0x420] sm:$0xff]  ;;  %v12988_v43 = vld [vmem:[#allocation19_spill] sm:$0xff] }
 0x2f4   :  { %v3422_v5 = vadd.f32 %v9547_v2, %v3159_v36  ;;  %v2905_v12 = vmul.f32 %v9530_v16, %v2056_v25  ;;  %2303 = vperm.xlu0 %7211, %v7846_v48   ;;  %v10008_v16 = vld [vmem:[%s12759_s1] ss:$0 sm:$0xff]  ;;  %v12987_v25 = vld [vmem:[#allocation20_spill] sm:$0xff] }
 0x2f5   :  { %7325 = vtanh.f32 %v3421_v55  ;;  %v3160_v44 = vadd.f32 %v2904_v11, %v1619_v33  ;;  %6880 = vmatmul.mubr.msk.f32.gmra.mxu0 %vm3892_vm0, %v7312_v26  ;;  %v1622_v45 = vmul.f32 %v10008_v16, %v12981_v15  ;;  %v1621_v57 = vmul.f32 %v10008_v16, %v12982_v46 }
 0x2f6   :  { %v3161_v32 = vadd.f32 %v2905_v12, %v1620_v56  ;;  %v7314_v2 = vpop.eup %7313  ;;  %7327 = vtanh.f32 %v3422_v5  ;;  %v2060_v58 = vpop.permute.xlu1 %2059  ;;  %v1624_v29 = vmul.f32 %v10008_v16, %v12983_v22  ;;  %v1623_v61 = vmul.f32 %v10008_v16, %v12984_v30  ;;  %v7856_v12 = vld [vmem:[%s12757_s0 + $0x428] sm:$0xff] }
 0x2f7   :  { %v2064_v63 = vpop.permute.xlu0 %2063  ;;  %v7316_v40 = vpop.eup %7315  ;;  %v3423_v14 = vadd.f32 %v10017_v13, %v3160_v44  ;;  %v2906_v51 = vmul.f32 %v10024_v6, %v2060_v58  ;;  %2307 = vperm.xlu1 %7212, %v7850_v19   ;;  %6882 = vmatprep.mubr.msk.f32.mxu0 %vm3892_vm0, %v7314_v2  ;;  %v1625_v23 = vmul.f32 %v10008_v16, %v12985_v10  ;;  %v7857_v2 = vld [vmem:[%s12757_s0 + $0x430] sm:$0xff]  ;;  %v12990_v19 = vld [vmem:[#allocation21_spill] sm:$0xff] }
 0x2f8   :  { %v3424_v39 = vadd.f32 %v10017_v13, %v3161_v32  ;;  %v2907_v52 = vmul.f32 %v10024_v6, %v2064_v63  ;;  %2331 = vperm.xlu0 %7211, %v7851_v20   ;;  %v1626_v35 = vmul.f32 %v10008_v16, %v12986_v18  ;;  %v1627_v26 = vmul.f32 %v10008_v16, %v12987_v25  ;;  %v12989_v63 = vld [vmem:[#allocation22_spill] sm:$0xff] }
 0x2f9   :  { %7329 = vtanh.f32 %v3423_v14  ;;  %v3162_v37 = vadd.f32 %v2906_v51, %v1621_v57  ;;  %6883 = vmatmul.mubr.msk.f32.gmra.mxu0 %vm3892_vm0, %v7316_v40  ;;  %v1628_v48 = vmul.f32 %v10008_v16, %v12988_v43  ;;  %v1629_v40 = vmul.f32 %v10008_v16, %v12989_v63 }
 0x2fa   :  { %v3163_v38 = vadd.f32 %v2907_v52, %v1622_v45  ;;  %v7318_v21 = vpop.eup %7317  ;;  %7331 = vtanh.f32 %v3424_v39  ;;  %v2068_v62 = vpop.permute.xlu1 %2067  ;;  %v7858_v52 = vld [vmem:[%s12757_s0 + $0x438] sm:$0xff]  ;;  %v1630_v20 = vmul.f32 %v10008_v16, %v12990_v19 }
 0x2fb   :  { %v2072_v49 = vpop.permute.xlu0 %2071  ;;  %v7320_v50 = vpop.eup %7319  ;;  %v3425_v59 = vadd.f32 %v10017_v13, %v3162_v37  ;;  %v2908_v31 = vmul.f32 %v10024_v6, %v2068_v62  ;;  %2335 = vperm.xlu1 %7212, %v7852_v27   ;;  %6885 = vmatprep.mubr.msk.f32.mxu0 %vm3892_vm0, %v7318_v21  ;;  %v7859_v21 = vld [vmem:[%s12757_s0 + $0x440] sm:$0xff]  ;;  %v12992_v27 = vld [vmem:[#allocation23_spill] sm:$0xff] }
 0x2fc   :  { %v3426_v60 = vadd.f32 %v10017_v13, %v3163_v38  ;;  %v2909_v0 = vmul.f32 %v10024_v6, %v2072_v49  ;;  %2339 = vperm.xlu0 %7211, %v7853_v28   ;;  %v12991_v49 = vld [vmem:[#allocation24_spill] sm:$0xff]  ;;  %v1632_v28 = vmul.f32 %v10008_v16, %v12992_v27 }
 0x2fd   :  { %7333 = vtanh.f32 %v3425_v59  ;;  %v3164_v1 = vadd.f32 %v2908_v31, %v1623_v61  ;;  %6886 = vmatmul.mubr.msk.f32.gmra.mxu0 %vm3892_vm0, %v7320_v50  ;;  %v1631_v50 = vmul.f32 %v10008_v16, %v12991_v49 }
 0x2fe   :  { %v3165_v8 = vadd.f32 %v2909_v0, %v1624_v29  ;;  %v7322_v9 = vpop.eup %7321  ;;  %7335 = vtanh.f32 %v3426_v60  ;;  %v2076_v24 = vpop.permute.xlu1 %2075  ;;  %v7860_v0 = vld [vmem:[%s12757_s0 + $0x448] sm:$0xff] }
 0x2ff   :  { %v7324_v41 = vpop.eup %7323  ;;  %v3427_v42 = vadd.f32 %v10017_v13, %v3164_v1  ;;  %v2910_v7 = vmul.f32 %v10024_v6, %v2076_v24  ;;  %v2080_v4 = vpop.permute.xlu0 %2079  ;;  %2343 = vperm.xlu1 %7212, %v7854_v17   ;;  %6888 = vmatprep.mubr.msk.f32.mxu0 %vm3892_vm0, %v7322_v9  ;;  %v7861_v9 = vld [vmem:[%s12757_s0 + $0x450] sm:$0xff] }
 0x300   :  { %v3428_v3 = vadd.f32 %v10017_v13, %v3165_v8  ;;  %v2911_v36 = vmul.f32 %v10024_v6, %v2080_v4  ;;  %2347 = vperm.xlu0 %7211, %v7855_v53  }
 0x301   :  { %7337 = vtanh.f32 %v3427_v42  ;;  %v3166_v54 = vadd.f32 %v2910_v7, %v1625_v23  ;;  %6889 = vmatmul.mubr.msk.f32.gmra.mxu0 %vm3892_vm0, %v7324_v41 }
 0x302   :  { %v7326_v56 = vpop.eup %7325  ;;  %7339 = vtanh.f32 %v3428_v3  ;;  %v3167_v47 = vadd.f32 %v2911_v36, %v1626_v35  ;;  %v2084_v33 = vpop.permute.xlu1 %2083  ;;  %v12993_v3 = vld [vmem:[#allocation26_spill] sm:$0xff]  ;;  %v7862_v35 = vld [vmem:[%s12757_s0 + $0x458] sm:$0xff] }
 0x303   :  { %v7328_v34 = vpop.eup %7327  ;;  %v3429_v55 = vadd.f32 %v10017_v13, %v3166_v54  ;;  %v2912_v5 = vmul.f32 %v10024_v6, %v2084_v33  ;;  %v2088_v11 = vpop.permute.xlu0 %2087  ;;  %2351 = vperm.xlu1 %7212, %v7856_v12   ;;  %6891 = vmatprep.mubr.msk.f32.mxu0 %vm3892_vm0, %v7326_v56  ;;  %v1633_v7 = vmul.f32 %v10008_v16, %v12993_v3  ;;  %v12994_v36 = vld [vmem:[#allocation25_spill] sm:$0xff] }
 0x304   :  { %v3430_v44 = vadd.f32 %v10017_v13, %v3167_v47  ;;  %v2913_v32 = vmul.f32 %v10024_v6, %v2088_v11  ;;  %2355 = vperm.xlu0 %7211, %v7857_v2   ;;  %v1634_v53 = vmul.f32 %v10008_v16, %v12994_v36  ;;  %v7863_v47 = vld [vmem:[%s12757_s0 + $0x460] sm:$0xff] }
 0x305   :  { %7341 = vtanh.f32 %v3429_v55  ;;  %v3168_v15 = vadd.f32 %v2912_v5, %v1627_v26  ;;  %6892 = vmatmul.mubr.msk.f32.gmra.mxu0 %vm3892_vm0, %v7328_v34  ;;  %v12995_v5 = vld [vmem:[#allocation28_spill] sm:$0xff] }
 0x306   :  { %v7330_v45 = vpop.eup %7329  ;;  %7343 = vtanh.f32 %v3430_v44  ;;  %v3169_v46 = vadd.f32 %v2913_v32, %v1628_v48  ;;  %v2092_v57 = vpop.permute.xlu1 %2091  ;;  %v1635_v11 = vmul.f32 %v10008_v16, %v12995_v5  ;;  %v7864_v44 = vld [vmem:[%s12757_s0 + $0x468] sm:$0xff] }
 0x307   :  { %v7332_v58 = vpop.eup %7331  ;;  %v3431_v14 = vadd.f32 %v10017_v13, %v3168_v15  ;;  %v2914_v39 = vmul.f32 %v10024_v6, %v2092_v57  ;;  %v2096_v51 = vpop.permute.xlu0 %2095  ;;  %2359 = vperm.xlu1 %7212, %v7858_v52   ;;  %6894 = vmatprep.mubr.msk.f32.mxu0 %vm3892_vm0, %v7330_v45  ;;  %v12996_v32 = vld [vmem:[#allocation27_spill] sm:$0xff] }
 0x308   :  { %v3432_v37 = vadd.f32 %v10017_v13, %v3169_v46  ;;  %v2915_v38 = vmul.f32 %v10024_v6, %v2096_v51  ;;  %2363 = vperm.xlu0 %7211, %v7859_v21   ;;  %v1636_v2 = vmul.f32 %v10008_v16, %v12996_v32  ;;  %v7865_v46 = vld [vmem:[%s12757_s0 + $0x470] sm:$0xff] }
 0x309   :  { %7345 = vtanh.f32 %v3431_v14  ;;  %v3170_v22 = vadd.f32 %v2914_v39, %v1629_v40  ;;  %6895 = vmatmul.mubr.msk.f32.gmra.mxu0 %vm3892_vm0, %v7332_v58  ;;  %v12997_v39 = vld [vmem:[#allocation30_spill] sm:$0xff] }
 0x30a   :  { %v7334_v29 = vpop.eup %7333  ;;  %7347 = vtanh.f32 %v3432_v37  ;;  %v3171_v30 = vadd.f32 %v2915_v38, %v1630_v20  ;;  %v2100_v61 = vpop.permute.xlu1 %2099  ;;  %v1637_v51 = vmul.f32 %v10008_v16, %v12997_v39  ;;  %v7866_v37 = vld [vmem:[%s12757_s0 + $0x478] sm:$0xff] }
 0x30b   :  { %v7336_v62 = vpop.eup %7335  ;;  %v3433_v59 = vadd.f32 %v10017_v13, %v3170_v22  ;;  %v2916_v60 = vmul.f32 %v10024_v6, %v2100_v61  ;;  %v2104_v31 = vpop.permute.xlu0 %2103  ;;  %2367 = vperm.xlu1 %7212, %v7860_v0   ;;  %6897 = vmatprep.mubr.msk.f32.mxu0 %vm3892_vm0, %v7334_v29  ;;  %v12998_v38 = vld [vmem:[#allocation29_spill] sm:$0xff] }
 0x30c   :  { %v3434_v1 = vadd.f32 %v10017_v13, %v3171_v30  ;;  %v2917_v8 = vmul.f32 %v10024_v6, %v2104_v31  ;;  %2371 = vperm.xlu0 %7211, %v7861_v9   ;;  %v1638_v21 = vmul.f32 %v10008_v16, %v12998_v38  ;;  %v7867_v30 = vld [vmem:[%s12757_s0 + $0x480] sm:$0xff] }
 0x30d   :  { %7349 = vtanh.f32 %v3433_v59  ;;  %v3172_v10 = vadd.f32 %v2916_v60, %v1631_v50  ;;  %6898 = vmatmul.mubr.msk.f32.gmra.mxu0 %vm3892_vm0, %v7336_v62  ;;  %v12999_v60 = vld [vmem:[#allocation32_spill] sm:$0xff] }
 0x30e   :  { %v7338_v23 = vpop.eup %7337  ;;  %7351 = vtanh.f32 %v3434_v1  ;;  %v3173_v24 = vadd.f32 %v2917_v8, %v1632_v28  ;;  %v2108_v41 = vpop.permute.xlu1 %2107  ;;  %v1639_v31 = vmul.f32 %v10008_v16, %v12999_v60  ;;  %v7868_v1 = vld [vmem:[%s12757_s0 + $0x488] sm:$0xff] }
 0x30f   :  { %v7340_v42 = vpop.eup %7339  ;;  %v3435_v4 = vadd.f32 %v10017_v13, %v3172_v10  ;;  %v2918_v17 = vmul.f32 %v10024_v6, %v2108_v41  ;;  %v2112_v18 = vpop.permute.xlu0 %2111  ;;  %2375 = vperm.xlu1 %7212, %v7862_v35   ;;  %6900 = vmatprep.mubr.msk.f32.mxu0 %vm3892_vm0, %v7338_v23  ;;  %v13000_v8 = vld [vmem:[#allocation31_spill] sm:$0xff] }
 0x310   :  { %v3436_v54 = vadd.f32 %v10017_v13, %v3173_v24  ;;  %v2919_v56 = vmul.f32 %v10024_v6, %v2112_v18  ;;  %2379 = vperm.xlu0 %7211, %v7863_v47   ;;  %v1640_v9 = vmul.f32 %v10008_v16, %v13000_v8  ;;  %v7869_v24 = vld [vmem:[%s12757_s0 + $0x490] sm:$0xff] }
 0x311   :  { %7353 = vtanh.f32 %v3435_v4  ;;  %v3174_v33 = vadd.f32 %v2918_v17, %v1633_v7  ;;  %6901 = vmatmul.mubr.msk.f32.gmra.mxu0 %vm3892_vm0, %v7340_v42  ;;  %v13001_v17 = vld [vmem:[#allocation34_spill] sm:$0xff] }
 0x312   :  { %v7342_v34 = vpop.eup %7341  ;;  %7355 = vtanh.f32 %v3436_v54  ;;  %v3175_v25 = vadd.f32 %v2919_v56, %v1634_v53  ;;  %v2116_v26 = vpop.permute.xlu1 %2115  ;;  %v1641_v18 = vmul.f32 %v10008_v16, %v13001_v17  ;;  %v7870_v54 = vld [vmem:[%s12757_s0 + $0x498] sm:$0xff] }
 0x313   :  { %v7344_v55 = vpop.eup %7343  ;;  %v3437_v12 = vadd.f32 %v10017_v13, %v3174_v33  ;;  %v2920_v43 = vmul.f32 %v10024_v6, %v2116_v26  ;;  %v2120_v48 = vpop.permute.xlu0 %2119  ;;  %2383 = vperm.xlu1 %7212, %v7864_v44   ;;  %6903 = vmatprep.mubr.msk.f32.mxu0 %vm3892_vm0, %v7342_v34  ;;  %v13002_v56 = vld [vmem:[#allocation33_spill] sm:$0xff] }
 0x314   :  { %v3438_v15 = vadd.f32 %v10017_v13, %v3175_v25  ;;  %v2921_v45 = vmul.f32 %v10024_v6, %v2120_v48  ;;  %2387 = vperm.xlu0 %7211, %v7865_v46   ;;  %v1642_v47 = vmul.f32 %v10008_v16, %v13002_v56  ;;  %v7871_v25 = vld [vmem:[%s12757_s0 + $0x4a0] sm:$0xff] }
 0x315   :  { %7357 = vtanh.f32 %v3437_v12  ;;  %v3176_v57 = vadd.f32 %v2920_v43, %v1635_v11  ;;  %6904 = vmatmul.mubr.msk.f32.gmra.mxu0 %vm3892_vm0, %v7344_v55  ;;  %v13003_v43 = vld [vmem:[#allocation36_spill] sm:$0xff] }
 0x316   :  { %v7346_v58 = vpop.eup %7345  ;;  %7359 = vtanh.f32 %v3438_v15  ;;  %v3177_v63 = vadd.f32 %v2921_v45, %v1636_v2  ;;  %v2124_v40 = vpop.permute.xlu1 %2123  ;;  %v1643_v48 = vmul.f32 %v10008_v16, %v13003_v43  ;;  %v7872_v15 = vld [vmem:[%s12757_s0 + $0x4a8] sm:$0xff] }
 0x317   :  { %v7348_v14 = vpop.eup %7347  ;;  %v3439_v52 = vadd.f32 %v10017_v13, %v3176_v57  ;;  %v2922_v19 = vmul.f32 %v10024_v6, %v2124_v40  ;;  %v2128_v20 = vpop.permute.xlu0 %2127  ;;  %2391 = vperm.xlu1 %7212, %v7866_v37   ;;  %6906 = vmatprep.mubr.msk.f32.mxu0 %vm3892_vm0, %v7346_v58  ;;  %v13004_v45 = vld [vmem:[#allocation35_spill] sm:$0xff] }
 0x318   :  { %v3440_v22 = vadd.f32 %v10017_v13, %v3177_v63  ;;  %v2923_v29 = vmul.f32 %v10024_v6, %v2128_v20  ;;  %2395 = vperm.xlu0 %7211, %v7867_v30   ;;  %v1644_v46 = vmul.f32 %v10008_v16, %v13004_v45  ;;  %v7873_v63 = vld [vmem:[%s12757_s0 + $0x4b0] sm:$0xff] }
 0x319   :  { %7361 = vtanh.f32 %v3439_v52  ;;  %v3178_v61 = vadd.f32 %v2922_v19, %v1637_v51  ;;  %6907 = vmatmul.mubr.msk.f32.gmra.mxu0 %vm3892_vm0, %v7348_v14  ;;  %v13005_v19 = vld [vmem:[#allocation38_spill] sm:$0xff] }
 0x31a   :  { %v7350_v62 = vpop.eup %7349  ;;  %7363 = vtanh.f32 %v3440_v22  ;;  %v3179_v49 = vadd.f32 %v2923_v29, %v1638_v21  ;;  %v2132_v50 = vpop.permute.xlu1 %2131  ;;  %v1645_v20 = vmul.f32 %v10008_v16, %v13005_v19  ;;  %v7874_v22 = vld [vmem:[%s12757_s0 + $0x4b8] sm:$0xff] }
 0x31b   :  { %v7352_v59 = vpop.eup %7351  ;;  %v3441_v0 = vadd.f32 %v10017_v13, %v3178_v61  ;;  %v2924_v27 = vmul.f32 %v10024_v6, %v2132_v50  ;;  %v2136_v28 = vpop.permute.xlu0 %2135  ;;  %2399 = vperm.xlu1 %7212, %v7868_v1   ;;  %6909 = vmatprep.mubr.msk.f32.mxu0 %vm3892_vm0, %v7350_v62  ;;  %v13006_v29 = vld [vmem:[#allocation37_spill] sm:$0xff] }
 0x31c   :  { %v3442_v10 = vadd.f32 %v10017_v13, %v3179_v49  ;;  %v2925_v23 = vmul.f32 %v10024_v6, %v2136_v28  ;;  %2403 = vperm.xlu0 %7211, %v7869_v24   ;;  %v1646_v30 = vmul.f32 %v10008_v16, %v13006_v29  ;;  %v7875_v49 = vld [vmem:[%s12757_s0 + $0x4c0] sm:$0xff] }
 0x31d   :  { %7365 = vtanh.f32 %v3441_v0  ;;  %v3180_v41 = vadd.f32 %v2924_v27, %v1639_v31  ;;  %6910 = vmatmul.mubr.msk.f32.gmra.mxu0 %vm3892_vm0, %v7352_v59  ;;  %v13007_v27 = vld [vmem:[#allocation40_spill] sm:$0xff] }
 0x31e   :  { %v7354_v42 = vpop.eup %7353  ;;  %7367 = vtanh.f32 %v3442_v10  ;;  %v3181_v3 = vadd.f32 %v2925_v23, %v1640_v9  ;;  %v2140_v7 = vpop.permute.xlu1 %2139  ;;  %v1647_v28 = vmul.f32 %v10008_v16, %v13007_v27  ;;  %v7876_v10 = vld [vmem:[%s12757_s0 + $0x4c8] sm:$0xff] }
 0x31f   :  { %v7356_v4 = vpop.eup %7355  ;;  %v3443_v35 = vadd.f32 %v10017_v13, %v3180_v41  ;;  %v2926_v36 = vmul.f32 %v10024_v6, %v2140_v7  ;;  %v2144_v53 = vpop.permute.xlu0 %2143  ;;  %2407 = vperm.xlu1 %7212, %v7870_v54   ;;  %6912 = vmatprep.mubr.msk.f32.mxu0 %vm3892_vm0, %v7354_v42  ;;  %v13008_v23 = vld [vmem:[#allocation39_spill] sm:$0xff] }
 0x320   :  { %v3444_v33 = vadd.f32 %v10017_v13, %v3181_v3  ;;  %v2927_v34 = vmul.f32 %v10024_v6, %v2144_v53  ;;  %2411 = vperm.xlu0 %7211, %v7871_v25   ;;  %v1648_v24 = vmul.f32 %v10008_v16, %v13008_v23  ;;  %v7877_v3 = vld [vmem:[%s12757_s0 + $0x4d0] sm:$0xff] }
 0x321   :  { %7369 = vtanh.f32 %v3443_v35  ;;  %v3182_v26 = vadd.f32 %v2926_v36, %v1641_v18  ;;  %6913 = vmatmul.mubr.msk.f32.gmra.mxu0 %vm3892_vm0, %v7356_v4  ;;  %v13009_v36 = vld [vmem:[#allocation42_spill] sm:$0xff] }
 0x322   :  { %v7358_v55 = vpop.eup %7357  ;;  %7371 = vtanh.f32 %v3444_v33  ;;  %v3183_v5 = vadd.f32 %v2927_v34, %v1642_v47  ;;  %v2148_v11 = vpop.permute.xlu1 %2147  ;;  %v1649_v53 = vmul.f32 %v10008_v16, %v13009_v36  ;;  %v7878_v33 = vld [vmem:[%s12757_s0 + $0x4d8] sm:$0xff] }
 0x323   :  { %v7360_v12 = vpop.eup %7359  ;;  %v3445_v44 = vadd.f32 %v10017_v13, %v3182_v26  ;;  %v2928_v32 = vmul.f32 %v10024_v6, %v2148_v11  ;;  %v2152_v2 = vpop.permute.xlu0 %2151  ;;  %2415 = vperm.xlu1 %7212, %v7872_v15   ;;  %6915 = vmatprep.mubr.msk.f32.mxu0 %vm3892_vm0, %v7358_v55  ;;  %v13010_v34 = vld [vmem:[#allocation41_spill] sm:$0xff] }
 0x324   :  { %v3446_v57 = vadd.f32 %v10017_v13, %v3183_v5  ;;  %v2929_v58 = vmul.f32 %v10024_v6, %v2152_v2  ;;  %2419 = vperm.xlu0 %7211, %v7873_v63   ;;  %v1650_v25 = vmul.f32 %v10008_v16, %v13010_v34  ;;  %v7879_v5 = vld [vmem:[%s12757_s0 + $0x4e0] sm:$0xff] }
 0x325   :  { %7373 = vtanh.f32 %v3445_v44  ;;  %v3184_v40 = vadd.f32 %v2928_v32, %v1643_v48  ;;  %6916 = vmatmul.mubr.msk.f32.gmra.mxu0 %vm3892_vm0, %v7360_v12  ;;  %v13011_v32 = vld [vmem:[#allocation44_spill] sm:$0xff] }
 0x326   :  { %v7362_v14 = vpop.eup %7361  ;;  %7375 = vtanh.f32 %v3446_v57  ;;  %v3185_v39 = vadd.f32 %v2929_v58, %v1644_v46  ;;  %v2156_v51 = vpop.permute.xlu1 %2155  ;;  %v1651_v2 = vmul.f32 %v10008_v16, %v13011_v32  ;;  %v7880_v57 = vld [vmem:[%s12757_s0 + $0x4e8] sm:$0xff] }
 0x327   :  { %v7364_v52 = vpop.eup %7363  ;;  %v3447_v37 = vadd.f32 %v10017_v13, %v3184_v40  ;;  %v2930_v38 = vmul.f32 %v10024_v6, %v2156_v51  ;;  %v2160_v21 = vpop.permute.xlu0 %2159  ;;  %2423 = vperm.xlu1 %7212, %v7874_v22   ;;  %6918 = vmatprep.mubr.msk.f32.mxu0 %vm3892_vm0, %v7362_v14  ;;  %v13012_v58 = vld [vmem:[#allocation43_spill] sm:$0xff] }
 0x328   :  { %v3448_v61 = vadd.f32 %v10017_v13, %v3185_v39  ;;  %v2931_v62 = vmul.f32 %v10024_v6, %v2160_v21  ;;  %2427 = vperm.xlu0 %7211, %v7875_v49   ;;  %v1652_v63 = vmul.f32 %v10008_v16, %v13012_v58  ;;  %v7881_v39 = vld [vmem:[%s12757_s0 + $0x4f0] sm:$0xff] }
 0x329   :  { %7377 = vtanh.f32 %v3447_v37  ;;  %v3186_v50 = vadd.f32 %v2930_v38, %v1645_v20  ;;  %6919 = vmatmul.mubr.msk.f32.gmra.mxu0 %vm3892_vm0, %v7364_v52  ;;  %v13013_v38 = vld [vmem:[#allocation46_spill] sm:$0xff] }
 0x32a   :  { %v7366_v59 = vpop.eup %7365  ;;  %7379 = vtanh.f32 %v3448_v61  ;;  %v3187_v60 = vadd.f32 %v2931_v62, %v1646_v30  ;;  %v2164_v31 = vpop.permute.xlu1 %2163  ;;  %v1653_v21 = vmul.f32 %v10008_v16, %v13013_v38  ;;  %v7882_v61 = vld [vmem:[%s12757_s0 + $0x4f8] sm:$0xff] }
 0x32b   :  { %v7368_v0 = vpop.eup %7367  ;;  %v3449_v1 = vadd.f32 %v10017_v13, %v3186_v50  ;;  %v2932_v8 = vmul.f32 %v10024_v6, %v2164_v31  ;;  %v2168_v9 = vpop.permute.xlu0 %2167  ;;  %2431 = vperm.xlu1 %7212, %v7876_v10   ;;  %6921 = vmatprep.mubr.msk.f32.mxu0 %vm3892_vm0, %v7366_v59  ;;  %v13014_v62 = vld [vmem:[#allocation45_spill] sm:$0xff] }
 0x32c   :  { %v3450_v41 = vadd.f32 %v10017_v13, %v3187_v60  ;;  %v2933_v42 = vmul.f32 %v10024_v6, %v2168_v9  ;;  %2435 = vperm.xlu0 %7211, %v7877_v3   ;;  %v1654_v49 = vmul.f32 %v10008_v16, %v13014_v62  ;;  %v7883_v60 = vld [vmem:[%s12757_s0 + $0x500] sm:$0xff] }
 0x32d   :  { %7381 = vtanh.f32 %v3449_v1  ;;  %v3188_v7 = vadd.f32 %v2932_v8, %v1647_v28  ;;  %6922 = vmatmul.mubr.msk.f32.gmra.mxu0 %vm3892_vm0, %v7368_v0  ;;  %v13015_v8 = vld [vmem:[#allocation48_spill] sm:$0xff] }
 0x32e   :  { %v7370_v4 = vpop.eup %7369  ;;  %7383 = vtanh.f32 %v3450_v41  ;;  %v3189_v17 = vadd.f32 %v2933_v42, %v1648_v24  ;;  %v2172_v18 = vpop.permute.xlu1 %2171  ;;  %v1655_v9 = vmul.f32 %v10008_v16, %v13015_v8  ;;  %v7884_v41 = vld [vmem:[%s12757_s0 + $0x508] sm:$0xff] }
 0x32f   :  { %v7372_v35 = vpop.eup %7371  ;;  %v3451_v54 = vadd.f32 %v10017_v13, %v3188_v7  ;;  %v2934_v56 = vmul.f32 %v10024_v6, %v2172_v18  ;;  %v2176_v47 = vpop.permute.xlu0 %2175  ;;  %2439 = vperm.xlu1 %7212, %v7878_v33   ;;  %6924 = vmatprep.mubr.msk.f32.mxu0 %vm3892_vm0, %v7370_v4  ;;  %v13016_v42 = vld [vmem:[#allocation47_spill] sm:$0xff] }
 0x330   :  { %v3452_v26 = vadd.f32 %v10017_v13, %v3189_v17  ;;  %v2935_v55 = vmul.f32 %v10024_v6, %v2176_v47  ;;  %2443 = vperm.xlu0 %7211, %v7879_v5   ;;  %v1656_v3 = vmul.f32 %v10008_v16, %v13016_v42  ;;  %v7885_v17 = vld [vmem:[%s12757_s0 + $0x510] sm:$0xff] }
 0x331   :  { %7385 = vtanh.f32 %v3451_v54  ;;  %v3190_v11 = vadd.f32 %v2934_v56, %v1649_v53  ;;  %6925 = vmatmul.mubr.msk.f32.gmra.mxu0 %vm3892_vm0, %v7372_v35  ;;  %v13017_v56 = vld [vmem:[#allocation50_spill] sm:$0xff] }
 0x332   :  { %v7374_v12 = vpop.eup %7373  ;;  %7387 = vtanh.f32 %v3452_v26  ;;  %v3191_v43 = vadd.f32 %v2935_v55, %v1650_v25  ;;  %v2180_v48 = vpop.permute.xlu1 %2179  ;;  %v1657_v47 = vmul.f32 %v10008_v16, %v13017_v56  ;;  %v7886_v26 = vld [vmem:[%s12757_s0 + $0x518] sm:$0xff] }
 0x333   :  { %v7376_v44 = vpop.eup %7375  ;;  %v3453_v15 = vadd.f32 %v10017_v13, %v3190_v11  ;;  %v2936_v45 = vmul.f32 %v10024_v6, %v2180_v48  ;;  %v2184_v46 = vpop.permute.xlu0 %2183  ;;  %2447 = vperm.xlu1 %7212, %v7880_v57   ;;  %6927 = vmatprep.mubr.msk.f32.mxu0 %vm3892_vm0, %v7374_v12  ;;  %v13018_v55 = vld [vmem:[#allocation49_spill] sm:$0xff] }
 0x334   :  { %v3454_v40 = vadd.f32 %v10017_v13, %v3191_v43  ;;  %v2937_v14 = vmul.f32 %v10024_v6, %v2184_v46  ;;  %2451 = vperm.xlu0 %7211, %v7881_v39   ;;  %v1658_v5 = vmul.f32 %v10008_v16, %v13018_v55  ;;  %v7887_v43 = vld [vmem:[%s12757_s0 + $0x520] sm:$0xff] }
 0x335   :  { %7389 = vtanh.f32 %v3453_v15  ;;  %v3192_v51 = vadd.f32 %v2936_v45, %v1651_v2  ;;  %6928 = vmatmul.mubr.msk.f32.gmra.mxu0 %vm3892_vm0, %v7376_v44  ;;  %v13019_v45 = vld [vmem:[#allocation52_spill] sm:$0xff] }
 0x336   :  { %v7378_v52 = vpop.eup %7377  ;;  %7391 = vtanh.f32 %v3454_v40  ;;  %v3193_v19 = vadd.f32 %v2937_v14, %v1652_v63  ;;  %v2188_v20 = vpop.permute.xlu1 %2187  ;;  %v1659_v46 = vmul.f32 %v10008_v16, %v13019_v45  ;;  %v7888_v40 = vld [vmem:[%s12757_s0 + $0x528] sm:$0xff] }
 0x337   :  { %v7380_v37 = vpop.eup %7379  ;;  %v3455_v22 = vadd.f32 %v10017_v13, %v3192_v51  ;;  %v2938_v29 = vmul.f32 %v10024_v6, %v2188_v20  ;;  %v2192_v30 = vpop.permute.xlu0 %2191  ;;  %2455 = vperm.xlu1 %7212, %v7882_v61   ;;  %6930 = vmatprep.mubr.msk.f32.mxu0 %vm3892_vm0, %v7378_v52  ;;  %v13020_v14 = vld [vmem:[#allocation51_spill] sm:$0xff] }
 0x338   :  { %v3456_v50 = vadd.f32 %v10017_v13, %v3193_v19  ;;  %v2939_v59 = vmul.f32 %v10024_v6, %v2192_v30  ;;  %2459 = vperm.xlu0 %7211, %v7883_v60   ;;  %v1660_v39 = vmul.f32 %v10008_v16, %v13020_v14  ;;  %v7889_v19 = vld [vmem:[%s12757_s0 + $0x530] sm:$0xff] }
 0x339   :  { %7393 = vtanh.f32 %v3455_v22  ;;  %v3194_v31 = vadd.f32 %v2938_v29, %v1653_v21  ;;  %6931 = vmatmul.mubr.msk.f32.gmra.mxu0 %vm3892_vm0, %v7380_v37  ;;  %v13021_v29 = vld [vmem:[#allocation54_spill] sm:$0xff] }
 0x33a   :  { %v7382_v0 = vpop.eup %7381  ;;  %7395 = vtanh.f32 %v3456_v50  ;;  %v3195_v27 = vadd.f32 %v2939_v59, %v1654_v49  ;;  %v2196_v28 = vpop.permute.xlu1 %2195  ;;  %v1661_v30 = vmul.f32 %v10008_v16, %v13021_v29  ;;  %v7890_v50 = vld [vmem:[%s12757_s0 + $0x538] sm:$0xff] }
 0x33b   :  { %v7384_v1 = vpop.eup %7383  ;;  %v3457_v10 = vadd.f32 %v10017_v13, %v3194_v31  ;;  %v2940_v23 = vmul.f32 %v10024_v6, %v2196_v28  ;;  %v2200_v24 = vpop.permute.xlu0 %2199  ;;  %2463 = vperm.xlu1 %7212, %v7884_v41   ;;  %6933 = vmatprep.mubr.msk.f32.mxu0 %vm3892_vm0, %v7382_v0  ;;  %v13022_v59 = vld [vmem:[#allocation53_spill] sm:$0xff] }
 0x33c   :  { %v3458_v7 = vadd.f32 %v10017_v13, %v3195_v27  ;;  %v2941_v4 = vmul.f32 %v10024_v6, %v2200_v24  ;;  %2467 = vperm.xlu0 %7211, %v7885_v17   ;;  %v1662_v60 = vmul.f32 %v10008_v16, %v13022_v59  ;;  %v7891_v27 = vld [vmem:[%s12757_s0 + $0x540] sm:$0xff] }
 0x33d   :  { %7397 = vtanh.f32 %v3457_v10  ;;  %v3196_v18 = vadd.f32 %v2940_v23, %v1655_v9  ;;  %6934 = vmatmul.mubr.msk.f32.gmra.mxu0 %vm3892_vm0, %v7384_v1  ;;  %v13023_v23 = vld [vmem:[#allocation56_spill] sm:$0xff]  ;;  %v13029_v59 = vld [vmem:[#allocation62_spill] sm:$0xff] }
 0x33e   :  { %v7386_v35 = vpop.eup %7385  ;;  %7399 = vtanh.f32 %v3458_v7  ;;  %v3197_v36 = vadd.f32 %v2941_v4, %v1656_v3  ;;  %v2204_v53 = vpop.permute.xlu1 %2203  ;;  %v1663_v24 = vmul.f32 %v10008_v16, %v13023_v23  ;;  %v7892_v7 = vld [vmem:[%s12757_s0 + $0x548] sm:$0xff] }
 0x33f   :  { %v7388_v54 = vpop.eup %7387  ;;  %v3459_v33 = vadd.f32 %v10017_v13, %v3196_v18  ;;  %v2942_v34 = vmul.f32 %v10024_v6, %v2204_v53  ;;  %v2208_v25 = vpop.permute.xlu0 %2207  ;;  %2471 = vperm.xlu1 %7212, %v7886_v26   ;;  %6936 = vmatprep.mubr.msk.f32.mxu0 %vm3892_vm0, %v7386_v35  ;;  %v13024_v4 = vld [vmem:[#allocation55_spill] sm:$0xff] }
 0x340   :  { %v3460_v11 = vadd.f32 %v10017_v13, %v3197_v36  ;;  %v2943_v12 = vmul.f32 %v10024_v6, %v2208_v25  ;;  %2475 = vperm.xlu0 %7211, %v7887_v43   ;;  %v1664_v17 = vmul.f32 %v10008_v16, %v13024_v4  ;;  %v7893_v36 = vld [vmem:[%s12757_s0 + $0x550] sm:$0xff] }
 0x341   :  { %7401 = vtanh.f32 %v3459_v33  ;;  %v3198_v48 = vadd.f32 %v2942_v34, %v1657_v47  ;;  %6937 = vmatmul.mubr.msk.f32.gmra.mxu0 %vm3892_vm0, %v7388_v54  ;;  %v13025_v34 = vld [vmem:[#allocation58_spill] sm:$0xff] }
 0x342   :  { %v7390_v44 = vpop.eup %7389  ;;  %7403 = vtanh.f32 %v3460_v11  ;;  %v3199_v32 = vadd.f32 %v2943_v12, %v1658_v5  ;;  %v2212_v2 = vpop.permute.xlu1 %2211  ;;  %v1665_v25 = vmul.f32 %v10008_v16, %v13025_v34  ;;  %v7894_v11 = vld [vmem:[%s12757_s0 + $0x558] sm:$0xff]  ;;  %v7900_v34 = vld [vmem:[%s12757_s0 + $0x588] sm:$0xff] }
 0x343   :  { %v7392_v15 = vpop.eup %7391  ;;  %v3461_v57 = vadd.f32 %v10017_v13, %v3198_v48  ;;  %v2944_v58 = vmul.f32 %v10024_v6, %v2212_v2  ;;  %v2216_v63 = vpop.permute.xlu0 %2215  ;;  %2479 = vperm.xlu1 %7212, %v7888_v40   ;;  %6939 = vmatprep.mubr.msk.f32.mxu0 %vm3892_vm0, %v7390_v44  ;;  %v13026_v12 = vld [vmem:[#allocation57_spill] sm:$0xff] }
 0x344   :  { %v3462_v51 = vadd.f32 %v10017_v13, %v3199_v32  ;;  %v2945_v52 = vmul.f32 %v10024_v6, %v2216_v63  ;;  %2483 = vperm.xlu0 %7211, %v7889_v19   ;;  %v1666_v43 = vmul.f32 %v10008_v16, %v13026_v12  ;;  %v7895_v32 = vld [vmem:[%s12757_s0 + $0x560] sm:$0xff]  ;;  %v13028_v19 = vld [vmem:[#allocation59_spill] sm:$0xff]  ;;  %v7901_v12 = vld [vmem:[%s12757_s0 + $0x590] sm:$0xff] }
 0x345   :  { %7405 = vtanh.f32 %v3461_v57  ;;  %v3200_v20 = vadd.f32 %v2944_v58, %v1659_v46  ;;  %6940 = vmatmul.mubr.msk.f32.gmra.mxu0 %vm3892_vm0, %v7392_v15  ;;  %v13027_v58 = vld [vmem:[#allocation60_spill] sm:$0xff] }
 0x346   :  { %v7394_v37 = vpop.eup %7393  ;;  %7407 = vtanh.f32 %v3462_v51  ;;  %v3201_v38 = vadd.f32 %v2945_v52, %v1660_v39  ;;  %v2220_v21 = vpop.permute.xlu1 %2219  ;;  %v1667_v63 = vmul.f32 %v10008_v16, %v13027_v58  ;;  %v7896_v51 = vld [vmem:[%s12757_s0 + $0x568] sm:$0xff]  ;;  %v10399_v52 = vld [vmem:[%s12761_s4] ss:$0 sm:$0xff] }
 0x347   :  { %v7396_v22 = vpop.eup %7395  ;;  %v3463_v61 = vadd.f32 %v10017_v13, %v3200_v20  ;;  %v2946_v62 = vmul.f32 %v10024_v6, %v2220_v21  ;;  %v2224_v49 = vpop.permute.xlu0 %2223  ;;  %2487 = vperm.xlu1 %7212, %v7890_v50   ;;  %6942 = vmatprep.mubr.msk.f32.mxu0 %vm3892_vm0, %v7394_v37  ;;  %v1668_v20 = vmul.f32 %v10008_v16, %v13028_v19  ;;  %v7897_v21 = vld [vmem:[%s12757_s0 + $0x570] sm:$0xff] }
 0x348   :  { %v3464_v31 = vadd.f32 %v10017_v13, %v3201_v38  ;;  %v2947_v0 = vmul.f32 %v10024_v6, %v2224_v49  ;;  %2491 = vperm.xlu0 %7211, %v7891_v27  }
 0x349   :  { %7409 = vtanh.f32 %v3463_v61  ;;  %v3202_v28 = vadd.f32 %v2946_v62, %v1661_v30  ;;  %6943 = vmatmul.mubr.msk.f32.gmra.mxu0 %vm3892_vm0, %v7396_v22 }
 0x34a   :  { %v7398_v1 = vpop.eup %7397  ;;  %7411 = vtanh.f32 %v3464_v31  ;;  %v3203_v8 = vadd.f32 %v2947_v0, %v1662_v60  ;;  %v2228_v9 = vpop.permute.xlu1 %2227  ;;  %v1669_v60 = vmul.f32 %v10008_v16, %v13029_v59  ;;  %v13035_v59 = vld [vmem:[#allocation68_spill] sm:$0xff] }
 0x34b   :  { %v7400_v10 = vpop.eup %7399  ;;  %v3465_v41 = vadd.f32 %v10017_v13, %v3202_v28  ;;  %v2948_v42 = vmul.f32 %v10024_v6, %v2228_v9  ;;  %v2232_v3 = vpop.permute.xlu0 %2231  ;;  %2495 = vperm.xlu1 %7212, %v7892_v7   ;;  %6945 = vmatprep.mubr.msk.f32.mxu0 %vm3892_vm0, %v7398_v1  ;;  %v7898_v1 = vld [vmem:[%s12757_s0 + $0x578] sm:$0xff] }
 0x34c   :  { %v3466_v18 = vadd.f32 %v10017_v13, %v3203_v8  ;;  %v2949_v35 = vmul.f32 %v10024_v6, %v2232_v3  ;;  %2499 = vperm.xlu0 %7211, %v7893_v36   ;;  %v13030_v8 = vld [vmem:[#allocation61_spill] sm:$0xff]  ;;  %v13031_v36 = vld [vmem:[#allocation64_spill] sm:$0xff] }
 0x34d   :  { %7413 = vtanh.f32 %v3465_v41  ;;  %v3204_v53 = vadd.f32 %v2948_v42, %v1663_v24  ;;  %6946 = vmatmul.mubr.msk.f32.gmra.mxu0 %vm3892_vm0, %v7400_v10  ;;  %v1670_v9 = vmul.f32 %v10008_v16, %v13030_v8  ;;  %v7899_v41 = vld [vmem:[%s12757_s0 + $0x580] sm:$0xff]  ;;  %v13036_v8 = vld [vmem:[#allocation67_spill] sm:$0xff] }
 0x34e   :  { %v7402_v54 = vpop.eup %7401  ;;  %7415 = vtanh.f32 %v3466_v18  ;;  %v3205_v56 = vadd.f32 %v2949_v35, %v1664_v17  ;;  %v2236_v47 = vpop.permute.xlu1 %2235 }
 0x34f   :  { %v7404_v33 = vpop.eup %7403  ;;  %v3467_v26 = vadd.f32 %v10017_v13, %v3204_v53  ;;  %v2950_v55 = vmul.f32 %v10024_v6, %v2236_v47  ;;  %v2240_v5 = vpop.permute.xlu0 %2239  ;;  %2503 = vperm.xlu1 %7212, %v7894_v11   ;;  %6948 = vmatprep.mubr.msk.f32.mxu0 %vm3892_vm0, %v7402_v54  ;;  %v1671_v53 = vmul.f32 %v10008_v16, %v13031_v36  ;;  %v13037_v36 = vld [vmem:[#allocation70_spill] sm:$0xff] }
 0x350   :  { %v3468_v48 = vadd.f32 %v10017_v13, %v3205_v56  ;;  %v2951_v44 = vmul.f32 %v10024_v6, %v2240_v5  ;;  %2507 = vperm.xlu0 %7211, %v7895_v32  }
 0x351   :  { %7417 = vtanh.f32 %v3467_v26  ;;  %v3206_v2 = vadd.f32 %v2950_v55, %v1665_v25  ;;  %6949 = vmatmul.mubr.msk.f32.gmra.mxu0 %vm3892_vm0, %v7404_v33  ;;  %v13032_v25 = vld [vmem:[#allocation63_spill] sm:$0xff] }
 0x352   :  { %v7406_v15 = vpop.eup %7405  ;;  %7419 = vtanh.f32 %v3468_v48  ;;  %v3207_v45 = vadd.f32 %v2951_v44, %v1666_v43  ;;  %v2244_v46 = vpop.permute.xlu1 %2243  ;;  %v1672_v26 = vmul.f32 %v10008_v16, %v13032_v25  ;;  %v13038_v25 = vld [vmem:[#allocation69_spill] sm:$0xff] }
 0x353   :  { %v7408_v57 = vpop.eup %7407  ;;  %v3469_v40 = vadd.f32 %v10017_v13, %v3206_v2  ;;  %v2952_v14 = vmul.f32 %v10024_v6, %v2244_v46  ;;  %v2248_v39 = vpop.permute.xlu0 %2247  ;;  %2511 = vperm.xlu1 %7212, %v7896_v51   ;;  %6951 = vmatprep.mubr.msk.f32.mxu0 %vm3892_vm0, %v7406_v15  ;;  %v13033_v46 = vld [vmem:[#allocation66_spill] sm:$0xff]  ;;  %v13034_v51 = vld [vmem:[#allocation65_spill] sm:$0xff] }
 0x354   :  { %v3470_v37 = vadd.f32 %v10017_v13, %v3207_v45  ;;  %v2953_v38 = vmul.f32 %v10024_v6, %v2248_v39  ;;  %2515 = vperm.xlu0 %7211, %v7897_v21   ;;  %v7902_v39 = vld [vmem:[%s12757_s0 + $0x598] sm:$0xff]  ;;  %v1674_v19 = vmul.f32 %v10008_v16, %v13034_v51  ;;  %v7903_v21 = vld [vmem:[%s12757_s0 + $0x5a0] sm:$0xff]  ;;  %v13040_v51 = vld [vmem:[#allocation71_spill] sm:$0xff] }
 0x355   :  { %7421 = vtanh.f32 %v3469_v40  ;;  %v3208_v22 = vadd.f32 %v2952_v14, %v1667_v63  ;;  %v6809_v29 = vpop.f32.mrf.mxu0  ;;  %6952 = vmatmul.mubr.msk.f32.gmra.mxu0 %vm3892_vm0, %v7408_v57  ;;  %v1673_v57 = vmul.f32 %v10008_v16, %v13033_v46  ;;  %v13039_v46 = vld [vmem:[#allocation72_spill] sm:$0xff] }
 0x356   :  { %v7410_v30 = vpop.eup %7409  ;;  %7423 = vtanh.f32 %v3470_v37  ;;  %v3209_v61 = vadd.f32 %v2953_v38, %v1668_v20  ;;  %v4733_v62 = vadd.f32 %v6809_v29, %v10399_v52  ;;  %v2252_v49 = vpop.permute.xlu1 %2251 }
 0x357   :  { %v7412_v50 = vpop.eup %7411  ;;  %v3471_v31 = vadd.f32 %v10017_v13, %v3208_v22  ;;  %v2954_v0 = vmul.f32 %v10024_v6, %v2252_v49  ;;  %v4727_v27 = vpop.f32.mrf.mxu0  ;;  %2519 = vperm.xlu1 %7212, %v7898_v1   ;;  %6954 = vmatprep.mubr.msk.f32.mxu0 %vm3892_vm0, %v7410_v30  ;;  %v7905_v1 = vld [vmem:[%s12757_s0 + $0x5a8] sm:$0xff] }
 0x358   :  { %v2256_v28 = vpop.permute.xlu0 %2255  ;;  %v3472_v10 = vadd.f32 %v10017_v13, %v3209_v61  ;;  %6008 = vst.msk [vmem:[%s12762_s5 + $0x8] sm:$0xff] %vm6006_vm1, %v4733_v62  ;;  %v4728_v23 = vadd.f32 %v10399_v52, %v4727_v27  ;;  %2523 = vperm.xlu0 %7211, %v7899_v41   ;;  %v7908_v41 = vld [vmem:[%s12757_s0 + $0x5b0] sm:$0xff] }
 0x359   :  { %v2955_v24 = vmul.f32 %v10024_v6, %v2256_v28  ;;  %7425 = vtanh.f32 %v3471_v31  ;;  %v3210_v42 = vadd.f32 %v2954_v0, %v1669_v60  ;;  %v6812_v3 = vpop.f32.mrf.mxu0  ;;  %6955 = vmatmul.mubr.msk.f32.gmra.mxu0 %vm3892_vm0, %v7412_v50  ;;  %v10491_v50 = vld [vmem:[%s12759_s1] ss:$0 sm:$0xff] }
 0x35a   :  { %v7414_v7 = vpop.eup %7413  ;;  %7427 = vtanh.f32 %v3472_v10  ;;  %6007 = vst.msk [vmem:[%s12762_s5] sm:$0xff] %vm6006_vm1, %v4728_v23  ;;  %v4743_v17 = vadd.f32 %v6812_v3, %v10399_v52  ;;  %v2260_v18 = vpop.permute.xlu1 %2259  ;;  %v1675_v60 = vmul.f32 %v10491_v50, %v13035_v59  ;;  %v10506_v10 = vld [vmem:[%s12760_s2] ss:$0 sm:$0xff]  ;;  %v10517_v23 = vld [vmem:[%s12759_s1 + $0x1] ss:$0 sm:$0xff] }
 0x35b   :  { %v3211_v4 = vadd.f32 %v2955_v24, %v1670_v9  ;;  %v7416_v35 = vpop.eup %7415  ;;  %v3473_v54 = vadd.f32 %v10017_v13, %v3210_v42  ;;  %v2956_v56 = vmul.f32 %v10024_v6, %v2260_v18  ;;  %v4737_v47 = vpop.f32.mrf.mxu0  ;;  %2527 = vperm.xlu1 %7212, %v7900_v34   ;;  %6957 = vmatprep.mubr.msk.f32.mxu0 %vm3892_vm0, %v7414_v7  ;;  %v7909_v34 = vld [vmem:[%s12757_s0 + $0x5b8] sm:$0xff]  ;;  %v13041_v59 = vld [vmem:[#allocation74_spill] sm:$0xff] }
 0x35c   :  { %v2264_v33 = vpop.permute.xlu0 %2263  ;;  %6010 = vst.msk [vmem:[%s12762_s5 + $0x18] sm:$0xff] %vm6006_vm1, %v4743_v17  ;;  %v4738_v5 = vadd.f32 %v10399_v52, %v4737_v47  ;;  %2531 = vperm.xlu0 %7211, %v7901_v12   ;;  %v1676_v9 = vmul.f32 %v10491_v50, %v13036_v8  ;;  %v7910_v12 = vld [vmem:[%s12757_s0 + $0x5c0] sm:$0xff]  ;;  %v13042_v8 = vld [vmem:[#allocation73_spill] sm:$0xff] }
 0x35d   :  { %v3474_v55 = vadd.f32 %v10017_v13, %v3211_v4  ;;  %v2957_v11 = vmul.f32 %v10024_v6, %v2264_v33  ;;  %7429 = vtanh.f32 %v3473_v54  ;;  %v3212_v43 = vadd.f32 %v2956_v56, %v1671_v53  ;;  %v6815_v48 = vpop.f32.mrf.mxu0  ;;  %6958 = vmatmul.mubr.msk.f32.gmra.mxu0 %vm3892_vm0, %v7416_v35 }
 0x35e   :  { %v7418_v44 = vpop.eup %7417  ;;  %6009 = vst.msk [vmem:[%s12762_s5 + $0x10] sm:$0xff] %vm6006_vm1, %v4738_v5  ;;  %v4753_v2 = vadd.f32 %v6815_v48, %v10399_v52  ;;  %v2268_v15 = vpop.permute.xlu1 %2267  ;;  %v1677_v53 = vmul.f32 %v10491_v50, %v13037_v36  ;;  %v13043_v36 = vld [vmem:[#allocation76_spill] sm:$0xff] }
 0x35f   :  { %7431 = vtanh.f32 %v3474_v55  ;;  %v3213_v32 = vadd.f32 %v2957_v11, %v1672_v26  ;;  %v7420_v45 = vpop.eup %7419  ;;  %v3475_v58 = vadd.f32 %v10017_v13, %v3212_v43  ;;  %v2958_v63 = vmul.f32 %v10024_v6, %v2268_v15  ;;  %v4747_v40 = vpop.f32.mrf.mxu0  ;;  %2535 = vperm.xlu1 %7212, %v7902_v39   ;;  %6960 = vmatprep.mubr.msk.f32.mxu0 %vm3892_vm0, %v7418_v44  ;;  %v7911_v39 = vld [vmem:[%s12757_s0 + $0x5c8] sm:$0xff] }
 0x360   :  { %v2272_v14 = vpop.permute.xlu0 %2271  ;;  %6012 = vst.msk [vmem:[%s12762_s5 + $0x28] sm:$0xff] %vm6006_vm1, %v4753_v2  ;;  %v4748_v37 = vadd.f32 %v10399_v52, %v4747_v40  ;;  %2539 = vperm.xlu0 %7211, %v7903_v21   ;;  %v1678_v26 = vmul.f32 %v10491_v50, %v13038_v25  ;;  %v7912_v21 = vld [vmem:[%s12757_s0 + $0x5d0] sm:$0xff]  ;;  %v13044_v25 = vld [vmem:[#allocation82_spill] sm:$0xff] }
 0x361   :  { %v3476_v20 = vadd.f32 %v10017_v13, %v3213_v32  ;;  %v2959_v38 = vmul.f32 %v10024_v6, %v2272_v14  ;;  %7433 = vtanh.f32 %v3475_v58  ;;  %v3214_v22 = vadd.f32 %v2958_v63, %v1673_v57  ;;  %v6818_v29 = vpop.f32.mrf.mxu0  ;;  %6961 = vmatmul.mubr.msk.f32.gmra.mxu0 %vm3892_vm0, %v7420_v45 }
 0x362   :  { %v7422_v16 = vpop.eup %7421  ;;  %6011 = vst.msk [vmem:[%s12762_s5 + $0x20] sm:$0xff] %vm6006_vm1, %v4748_v37  ;;  %v4763_v61 = vadd.f32 %v6818_v29, %v10399_v52  ;;  %v2276_v62 = vpop.permute.xlu1 %2275  ;;  %v1679_v57 = vmul.f32 %v10491_v50, %v13039_v46  ;;  %v13045_v46 = vld [vmem:[#allocation81_spill] sm:$0xff] }
 0x363   :  { %7435 = vtanh.f32 %v3476_v20  ;;  %v3215_v30 = vadd.f32 %v2959_v38, %v1674_v19  ;;  %v7424_v49 = vpop.eup %7423  ;;  %v3477_v31 = vadd.f32 %v10017_v13, %v3214_v22  ;;  %v2960_v0 = vmul.f32 %v10024_v6, %v2276_v62  ;;  %v4757_v27 = vpop.f32.mrf.mxu0  ;;  %2543 = vperm.xlu1 %7212, %v7905_v1   ;;  %6963 = vmatprep.mubr.msk.f32.mxu0 %vm3892_vm0, %v7422_v16  ;;  %v7913_v1 = vld [vmem:[%s12757_s0 + $0x5d8] sm:$0xff] }
 0x364   :  { %v2280_v28 = vpop.permute.xlu0 %2279  ;;  %6014 = vst.msk [vmem:[%s12762_s5 + $0x38] sm:$0xff] %vm6006_vm1, %v4763_v61  ;;  %v4758_v6 = vadd.f32 %v10399_v52, %v4757_v27  ;;  %2547 = vperm.xlu0 %7211, %v7908_v41   ;;  %v1680_v19 = vmul.f32 %v10491_v50, %v13040_v51  ;;  %v7914_v41 = vld [vmem:[%s12757_s0 + $0x5e0] sm:$0xff]  ;;  %v13046_v51 = vld [vmem:[#allocation84_spill] sm:$0xff] }
 0x365   :  { %v3478_v13 = vadd.f32 %v10506_v10, %v3215_v30  ;;  %v2961_v24 = vmul.f32 %v10517_v23, %v2280_v28  ;;  %7437 = vtanh.f32 %v3477_v31  ;;  %v3216_v42 = vadd.f32 %v2960_v0, %v1675_v60  ;;  %v6821_v3 = vpop.f32.mrf.mxu0  ;;  %6964 = vmatmul.mubr.msk.f32.gmra.mxu0 %vm3892_vm0, %v7424_v49 }
 0x366   :  { %v7426_v7 = vpop.eup %7425  ;;  %6013 = vst.msk [vmem:[%s12762_s5 + $0x30] sm:$0xff] %vm6006_vm1, %v4758_v6  ;;  %v4773_v17 = vadd.f32 %v6821_v3, %v10399_v52  ;;  %v2284_v18 = vpop.permute.xlu1 %2283  ;;  %v1681_v60 = vmul.f32 %v10491_v50, %v13041_v59  ;;  %v13047_v59 = vld [vmem:[#allocation83_spill] sm:$0xff] }
 0x367   :  { %7439 = vtanh.f32 %v3478_v13  ;;  %v3217_v4 = vadd.f32 %v2961_v24, %v1676_v9  ;;  %v7428_v35 = vpop.eup %7427  ;;  %v3479_v54 = vadd.f32 %v10506_v10, %v3216_v42  ;;  %v2962_v56 = vmul.f32 %v10517_v23, %v2284_v18  ;;  %v4767_v47 = vpop.f32.mrf.mxu0  ;;  %2551 = vperm.xlu1 %7212, %v7909_v34   ;;  %6966 = vmatprep.mubr.msk.f32.mxu0 %vm3892_vm0, %v7426_v7  ;;  %v7915_v34 = vld [vmem:[%s12757_s0 + $0x5e8] sm:$0xff] }
 0x368   :  { %v2288_v33 = vpop.permute.xlu0 %2287  ;;  %6016 = vst.msk [vmem:[%s12762_s5 + $0x48] sm:$0xff] %vm6006_vm1, %v4773_v17  ;;  %v4768_v5 = vadd.f32 %v10399_v52, %v4767_v47  ;;  %2555 = vperm.xlu0 %7211, %v7910_v12   ;;  %v1682_v9 = vmul.f32 %v10491_v50, %v13042_v8  ;;  %v7916_v12 = vld [vmem:[%s12757_s0 + $0x5f0] sm:$0xff]  ;;  %v13048_v8 = vld [vmem:[#allocation86_spill] sm:$0xff] }
 0x369   :  { %v3480_v55 = vadd.f32 %v10506_v10, %v3217_v4  ;;  %v2963_v11 = vmul.f32 %v10517_v23, %v2288_v33  ;;  %7441 = vtanh.f32 %v3479_v54  ;;  %v3218_v43 = vadd.f32 %v2962_v56, %v1677_v53  ;;  %v6824_v48 = vpop.f32.mrf.mxu0  ;;  %6967 = vmatmul.mubr.msk.f32.gmra.mxu0 %vm3892_vm0, %v7428_v35 }
 0x36a   :  { %v7430_v44 = vpop.eup %7429  ;;  %6015 = vst.msk [vmem:[%s12762_s5 + $0x40] sm:$0xff] %vm6006_vm1, %v4768_v5  ;;  %v4783_v2 = vadd.f32 %v6824_v48, %v10399_v52  ;;  %v2292_v15 = vpop.permute.xlu1 %2291  ;;  %v1683_v53 = vmul.f32 %v10491_v50, %v13043_v36  ;;  %v13049_v36 = vld [vmem:[#allocation85_spill] sm:$0xff] }
 0x36b   :  { %7443 = vtanh.f32 %v3480_v55  ;;  %v3219_v32 = vadd.f32 %v2963_v11, %v1678_v26  ;;  %v3481_v58 = vadd.f32 %v10506_v10, %v3218_v43  ;;  %v2964_v63 = vmul.f32 %v10517_v23, %v2292_v15  ;;  %v4777_v40 = vpop.f32.mrf.mxu0  ;;  %2559 = vperm.xlu1 %7212, %v7911_v39   ;;  %6969 = vmatprep.mubr.msk.f32.mxu0 %vm3892_vm0, %v7430_v44  ;;  %v7917_v39 = vld [vmem:[%s12757_s0 + $0x5f8] sm:$0xff] }
 0x36c   :  { %v7432_v45 = vpop.eup %7431  ;;  %v2296_v14 = vpop.permute.xlu0 %2295  ;;  %6018 = vst.msk [vmem:[%s12762_s5 + $0x58] sm:$0xff] %vm6006_vm1, %v4783_v2  ;;  %v4778_v37 = vadd.f32 %v10399_v52, %v4777_v40  ;;  %2563 = vperm.xlu0 %7211, %v7912_v21   ;;  %v1689_v26 = vmul.f32 %v10491_v50, %v13044_v25  ;;  %v7918_v21 = vld [vmem:[%s12757_s0 + $0x600] sm:$0xff]  ;;  %v13050_v25 = vld [vmem:[#allocation88_spill] sm:$0xff] }
 0x36d   :  { %v3482_v20 = vadd.f32 %v10506_v10, %v3219_v32  ;;  %v2965_v38 = vmul.f32 %v10517_v23, %v2296_v14  ;;  %7445 = vtanh.f32 %v3481_v58  ;;  %v3220_v22 = vadd.f32 %v2964_v63, %v1679_v57  ;;  %v6827_v29 = vpop.f32.mrf.mxu0  ;;  %6970 = vmatmul.mubr.msk.f32.gmra.mxu0 %vm3892_vm0, %v7432_v45 }
 0x36e   :  { %v7434_v16 = vpop.eup %7433  ;;  %6017 = vst.msk [vmem:[%s12762_s5 + $0x50] sm:$0xff] %vm6006_vm1, %v4778_v37  ;;  %v4793_v61 = vadd.f32 %v6827_v29, %v10399_v52  ;;  %v2300_v62 = vpop.permute.xlu1 %2299  ;;  %v1690_v57 = vmul.f32 %v10491_v50, %v13045_v46  ;;  %v13051_v46 = vld [vmem:[#allocation87_spill] sm:$0xff] }
 0x36f   :  { %7447 = vtanh.f32 %v3482_v20  ;;  %v3221_v30 = vadd.f32 %v2965_v38, %v1680_v19  ;;  %v3483_v31 = vadd.f32 %v10506_v10, %v3220_v22  ;;  %v2966_v0 = vmul.f32 %v10517_v23, %v2300_v62  ;;  %v4787_v27 = vpop.f32.mrf.mxu0  ;;  %2567 = vperm.xlu1 %7212, %v7913_v1   ;;  %6972 = vmatprep.mubr.msk.f32.mxu0 %vm3892_vm0, %v7434_v16  ;;  %v7919_v1 = vld [vmem:[%s12757_s0 + $0x608] sm:$0xff] }
 0x370   :  { %v7436_v49 = vpop.eup %7435  ;;  %v2304_v28 = vpop.permute.xlu0 %2303  ;;  %6020 = vst.msk [vmem:[%s12762_s5 + $0x68] sm:$0xff] %vm6006_vm1, %v4793_v61  ;;  %v4788_v6 = vadd.f32 %v10399_v52, %v4787_v27  ;;  %2571 = vperm.xlu0 %7211, %v7914_v41   ;;  %v1691_v19 = vmul.f32 %v10491_v50, %v13046_v51  ;;  %v7920_v41 = vld [vmem:[%s12757_s0 + $0x610] sm:$0xff]  ;;  %v13052_v51 = vld [vmem:[#allocation90_spill] sm:$0xff] }
 0x371   :  { %v3484_v13 = vadd.f32 %v10506_v10, %v3221_v30  ;;  %v2967_v24 = vmul.f32 %v10517_v23, %v2304_v28  ;;  %7449 = vtanh.f32 %v3483_v31  ;;  %v3222_v42 = vadd.f32 %v2966_v0, %v1681_v60  ;;  %v6830_v3 = vpop.f32.mrf.mxu0  ;;  %6973 = vmatmul.mubr.msk.f32.gmra.mxu0 %vm3892_vm0, %v7436_v49 }
 0x372   :  { %v7438_v7 = vpop.eup %7437  ;;  %6019 = vst.msk [vmem:[%s12762_s5 + $0x60] sm:$0xff] %vm6006_vm1, %v4788_v6  ;;  %v4803_v17 = vadd.f32 %v6830_v3, %v10399_v52  ;;  %v2308_v18 = vpop.permute.xlu1 %2307  ;;  %v1692_v60 = vmul.f32 %v10491_v50, %v13047_v59 }
 0x373   :  { %7451 = vtanh.f32 %v3484_v13  ;;  %v3223_v4 = vadd.f32 %v2967_v24, %v1682_v9  ;;  %v3485_v54 = vadd.f32 %v10506_v10, %v3222_v42  ;;  %v2968_v56 = vmul.f32 %v10517_v23, %v2308_v18  ;;  %v4797_v47 = vpop.f32.mrf.mxu0  ;;  %2575 = vperm.xlu1 %7212, %v7915_v34   ;;  %6975 = vmatprep.mubr.msk.f32.mxu0 %vm3892_vm0, %v7438_v7  ;;  %v7921_v34 = vld [vmem:[%s12757_s0 + $0x618] sm:$0xff] }
 0x374   :  { %v7440_v35 = vpop.eup %7439  ;;  %v2332_v33 = vpop.permute.xlu0 %2331  ;;  %6022 = vst.msk [vmem:[%s12762_s5 + $0x78] sm:$0xff] %vm6006_vm1, %v4803_v17  ;;  %v4798_v5 = vadd.f32 %v10399_v52, %v4797_v47  ;;  %2579 = vperm.xlu0 %7211, %v7916_v12   ;;  %v1693_v9 = vmul.f32 %v10491_v50, %v13048_v8  ;;  %v7922_v12 = vld [vmem:[%s12757_s0 + $0x620] sm:$0xff] }
 0x375   :  { %v3486_v55 = vadd.f32 %v10506_v10, %v3223_v4  ;;  %v2974_v11 = vmul.f32 %v10517_v23, %v2332_v33  ;;  %7453 = vtanh.f32 %v3485_v54  ;;  %v3224_v43 = vadd.f32 %v2968_v56, %v1683_v53  ;;  %v6833_v48 = vpop.f32.mrf.mxu0  ;;  %6976 = vmatmul.mubr.msk.f32.gmra.mxu0 %vm3892_vm0, %v7440_v35 }
 0x376   :  { %v7442_v44 = vpop.eup %7441  ;;  %6021 = vst.msk [vmem:[%s12762_s5 + $0x70] sm:$0xff] %vm6006_vm1, %v4798_v5  ;;  %v4813_v2 = vadd.f32 %v6833_v48, %v10399_v52  ;;  %v2336_v15 = vpop.permute.xlu1 %2335  ;;  %v1694_v53 = vmul.f32 %v10491_v50, %v13049_v36 }
 0x377   :  { %7455 = vtanh.f32 %v3486_v55  ;;  %v3230_v32 = vadd.f32 %v2974_v11, %v1689_v26  ;;  %v3487_v58 = vadd.f32 %v10506_v10, %v3224_v43  ;;  %v2975_v63 = vmul.f32 %v10517_v23, %v2336_v15  ;;  %v4807_v40 = vpop.f32.mrf.mxu0  ;;  %2583 = vperm.xlu1 %7212, %v7917_v39   ;;  %6978 = vmatprep.mubr.msk.f32.mxu0 %vm3892_vm0, %v7442_v44  ;;  %v7923_v39 = vld [vmem:[%s12757_s0 + $0x628] sm:$0xff] }
 0x378   :  { %v7444_v45 = vpop.eup %7443  ;;  %v2340_v14 = vpop.permute.xlu0 %2339  ;;  %6024 = vst.msk [vmem:[%s12762_s5 + $0x88] sm:$0xff] %vm6006_vm1, %v4813_v2  ;;  %v4808_v37 = vadd.f32 %v10399_v52, %v4807_v40  ;;  %2587 = vperm.xlu0 %7211, %v7918_v21   ;;  %v1695_v26 = vmul.f32 %v10491_v50, %v13050_v25  ;;  %v7924_v21 = vld [vmem:[%s12757_s0 + $0x630] sm:$0xff] }
 0x379   :  { %v3493_v20 = vadd.f32 %v10506_v10, %v3230_v32  ;;  %v2976_v38 = vmul.f32 %v10517_v23, %v2340_v14  ;;  %7457 = vtanh.f32 %v3487_v58  ;;  %v3231_v22 = vadd.f32 %v2975_v63, %v1690_v57  ;;  %v6836_v29 = vpop.f32.mrf.mxu0  ;;  %6979 = vmatmul.mubr.msk.f32.gmra.mxu0 %vm3892_vm0, %v7444_v45 }
 0x37a   :  { %v7446_v16 = vpop.eup %7445  ;;  %6023 = vst.msk [vmem:[%s12762_s5 + $0x80] sm:$0xff] %vm6006_vm1, %v4808_v37  ;;  %v4823_v61 = vadd.f32 %v6836_v29, %v10399_v52  ;;  %v2344_v62 = vpop.permute.xlu1 %2343  ;;  %v1696_v57 = vmul.f32 %v10491_v50, %v13051_v46 }
 0x37b   :  { %7459 = vtanh.f32 %v3493_v20  ;;  %v3232_v30 = vadd.f32 %v2976_v38, %v1691_v19  ;;  %v3494_v31 = vadd.f32 %v10506_v10, %v3231_v22  ;;  %v2977_v0 = vmul.f32 %v10517_v23, %v2344_v62  ;;  %v4817_v27 = vpop.f32.mrf.mxu0  ;;  %2591 = vperm.xlu1 %7212, %v7919_v1   ;;  %6981 = vmatprep.mubr.msk.f32.mxu0 %vm3892_vm0, %v7446_v16 }
 0x37c   :  { %v7448_v49 = vpop.eup %7447  ;;  %v2348_v28 = vpop.permute.xlu0 %2347  ;;  %6026 = vst.msk [vmem:[%s12762_s5 + $0x98] sm:$0xff] %vm6006_vm1, %v4823_v61  ;;  %v4818_v6 = vadd.f32 %v10399_v52, %v4817_v27  ;;  %2595 = vperm.xlu0 %7211, %v7920_v41   ;;  %v1697_v19 = vmul.f32 %v10491_v50, %v13052_v51  ;;  %v7926_v41 = vld [vmem:[%s12757_s0 + $0x640] sm:$0xff] }
 0x37d   :  { %v3495_v13 = vadd.f32 %v10506_v10, %v3232_v30  ;;  %v2978_v24 = vmul.f32 %v10517_v23, %v2348_v28  ;;  %7461 = vtanh.f32 %v3494_v31  ;;  %v3233_v42 = vadd.f32 %v2977_v0, %v1692_v60  ;;  %v6839_v3 = vpop.f32.mrf.mxu0  ;;  %6982 = vmatmul.mubr.msk.f32.gmra.mxu0 %vm3892_vm0, %v7448_v49  ;;  %v13053_v30 = vld [vmem:[#allocation89_spill] sm:$0xff]  ;;  %v13054_v31 = vld [vmem:[#allocation92_spill] sm:$0xff] }
 0x37e   :  { %v7450_v7 = vpop.eup %7449  ;;  %6025 = vst.msk [vmem:[%s12762_s5 + $0x90] sm:$0xff] %vm6006_vm1, %v4818_v6  ;;  %v4833_v17 = vadd.f32 %v6839_v3, %v10399_v52  ;;  %v2352_v18 = vpop.permute.xlu1 %2351  ;;  %v1698_v61 = vmul.f32 %v10491_v50, %v13053_v30  ;;  %v1699_v0 = vmul.f32 %v10491_v50, %v13054_v31  ;;  %v13059_v30 = vld [vmem:[#allocation95_spill] sm:$0xff]  ;;  %v13060_v31 = vld [vmem:[#allocation98_spill] sm:$0xff] }
 0x37f   :  { %7463 = vtanh.f32 %v3495_v13  ;;  %v3234_v4 = vadd.f32 %v2978_v24, %v1693_v9  ;;  %v3496_v54 = vadd.f32 %v10506_v10, %v3233_v42  ;;  %v2979_v56 = vmul.f32 %v10517_v23, %v2352_v18  ;;  %v4827_v47 = vpop.f32.mrf.mxu0  ;;  %2599 = vperm.xlu1 %7212, %v7921_v34   ;;  %6984 = vmatprep.mubr.msk.f32.mxu0 %vm3892_vm0, %v7450_v7  ;;  %v7925_v9 = vld [vmem:[%s12757_s0 + $0x638] sm:$0xff] }
 0x380   :  { %v7452_v35 = vpop.eup %7451  ;;  %v2356_v33 = vpop.permute.xlu0 %2355  ;;  %6028 = vst.msk [vmem:[%s12762_s5 + $0xa8] sm:$0xff] %vm6006_vm1, %v4833_v17  ;;  %v4828_v5 = vadd.f32 %v10399_v52, %v4827_v47  ;;  %2603 = vperm.xlu0 %7211, %v7922_v12   ;;  %v7928_v12 = vld [vmem:[%s12757_s0 + $0x650] sm:$0xff] }
 0x381   :  { %v3497_v55 = vadd.f32 %v10506_v10, %v3234_v4  ;;  %v2980_v11 = vmul.f32 %v10517_v23, %v2356_v33  ;;  %7465 = vtanh.f32 %v3496_v54  ;;  %v3235_v43 = vadd.f32 %v2979_v56, %v1694_v53  ;;  %v6842_v48 = vpop.f32.mrf.mxu0  ;;  %6985 = vmatmul.mubr.msk.f32.gmra.mxu0 %vm3892_vm0, %v7452_v35  ;;  %v13055_v4 = vld [vmem:[#allocation91_spill] sm:$0xff]  ;;  %v13056_v54 = vld [vmem:[#allocation94_spill] sm:$0xff] }
 0x382   :  { %v7454_v44 = vpop.eup %7453  ;;  %6027 = vst.msk [vmem:[%s12762_s5 + $0xa0] sm:$0xff] %vm6006_vm1, %v4828_v5  ;;  %v4843_v2 = vadd.f32 %v6842_v48, %v10399_v52  ;;  %v2360_v15 = vpop.permute.xlu1 %2359  ;;  %v1700_v17 = vmul.f32 %v10491_v50, %v13055_v4  ;;  %v1701_v56 = vmul.f32 %v10491_v50, %v13056_v54  ;;  %v13061_v4 = vld [vmem:[#allocation97_spill] sm:$0xff]  ;;  %v13062_v54 = vld [vmem:[#allocation100_spill] sm:$0xff] }
 0x383   :  { %7467 = vtanh.f32 %v3497_v55  ;;  %v3236_v32 = vadd.f32 %v2980_v11, %v1695_v26  ;;  %v3498_v58 = vadd.f32 %v10506_v10, %v3235_v43  ;;  %v2981_v63 = vmul.f32 %v10517_v23, %v2360_v15  ;;  %v4837_v40 = vpop.f32.mrf.mxu0  ;;  %2607 = vperm.xlu1 %7212, %v7923_v39   ;;  %6987 = vmatprep.mubr.msk.f32.mxu0 %vm3892_vm0, %v7454_v44  ;;  %v7927_v26 = vld [vmem:[%s12757_s0 + $0x648] sm:$0xff] }
 0x384   :  { %v7456_v45 = vpop.eup %7455  ;;  %v2364_v14 = vpop.permute.xlu0 %2363  ;;  %6030 = vst.msk [vmem:[%s12762_s5 + $0xb8] sm:$0xff] %vm6006_vm1, %v4843_v2  ;;  %v4838_v37 = vadd.f32 %v10399_v52, %v4837_v40  ;;  %2611 = vperm.xlu0 %7211, %v7924_v21   ;;  %v7930_v21 = vld [vmem:[%s12757_s0 + $0x660] sm:$0xff] }
 0x385   :  { %v3499_v20 = vadd.f32 %v10506_v10, %v3236_v32  ;;  %v2982_v38 = vmul.f32 %v10517_v23, %v2364_v14  ;;  %7469 = vtanh.f32 %v3498_v58  ;;  %v3237_v22 = vadd.f32 %v2981_v63, %v1696_v57  ;;  %v6845_v29 = vpop.f32.mrf.mxu0  ;;  %6988 = vmatmul.mubr.msk.f32.gmra.mxu0 %vm3892_vm0, %v7456_v45  ;;  %v13057_v32 = vld [vmem:[#allocation93_spill] sm:$0xff]  ;;  %v13058_v58 = vld [vmem:[#allocation96_spill] sm:$0xff] }
 0x386   :  { %v7458_v16 = vpop.eup %7457  ;;  %6029 = vst.msk [vmem:[%s12762_s5 + $0xb0] sm:$0xff] %vm6006_vm1, %v4838_v37  ;;  %v4853_v49 = vadd.f32 %v6845_v29, %v10399_v52  ;;  %v2368_v59 = vpop.permute.xlu1 %2367  ;;  %v1702_v2 = vmul.f32 %v10491_v50, %v13057_v32  ;;  %v1703_v63 = vmul.f32 %v10491_v50, %v13058_v58  ;;  %v13063_v32 = vld [vmem:[#allocation99_spill] sm:$0xff]  ;;  %v13064_v58 = vld [vmem:[#allocation102_spill] sm:$0xff] }
 0x387   :  { %7471 = vtanh.f32 %v3499_v20  ;;  %v3238_v62 = vadd.f32 %v2982_v38, %v1697_v19  ;;  %v3500_v27 = vadd.f32 %v10506_v10, %v3237_v22  ;;  %v2983_v28 = vmul.f32 %v10517_v23, %v2368_v59  ;;  %v4847_v1 = vpop.f32.mrf.mxu0  ;;  %2615 = vperm.xlu1 %7212, %v7925_v9   ;;  %6990 = vmatprep.mubr.msk.f32.mxu0 %vm3892_vm0, %v7458_v16  ;;  %v7929_v19 = vld [vmem:[%s12757_s0 + $0x658] sm:$0xff]  ;;  %v7931_v9 = vld [vmem:[%s12757_s0 + $0x668] sm:$0xff] }
 0x388   :  { %v7460_v60 = vpop.eup %7459  ;;  %v2372_v8 = vpop.permute.xlu0 %2371  ;;  %6032 = vst.msk [vmem:[%s12762_s5 + $0xc8] sm:$0xff] %vm6006_vm1, %v4853_v49  ;;  %v4848_v6 = vadd.f32 %v10399_v52, %v4847_v1  ;;  %2619 = vperm.xlu0 %7211, %v7926_v41   ;;  %v7932_v41 = vld [vmem:[%s12757_s0 + $0x670] sm:$0xff] }
 0x389   :  { %v3501_v13 = vadd.f32 %v10506_v10, %v3238_v62  ;;  %v2984_v24 = vmul.f32 %v10517_v23, %v2372_v8  ;;  %6999 = vmatprep.mubr.msk.f32.mxu1 %vm3892_vm0, %v7460_v60  ;;  %7473 = vtanh.f32 %v3500_v27  ;;  %v3239_v42 = vadd.f32 %v2983_v28, %v1698_v61  ;;  %v6848_v3 = vpop.f32.mrf.mxu0 }
 0x38a   :  { %v7462_v7 = vpop.eup %7461  ;;  %6031 = vst.msk [vmem:[%s12762_s5 + $0xc0] sm:$0xff] %vm6006_vm1, %v4848_v6  ;;  %v4863_v35 = vadd.f32 %v6848_v3, %v10399_v52  ;;  %v2376_v36 = vpop.permute.xlu1 %2375  ;;  %v1704_v61 = vmul.f32 %v10491_v50, %v13059_v30  ;;  %v13065_v30 = vld [vmem:[#allocation101_spill] sm:$0xff] }
 0x38b   :  { %7475 = vtanh.f32 %v3501_v13  ;;  %v3240_v18 = vadd.f32 %v2984_v24, %v1699_v0  ;;  %v3502_v47 = vadd.f32 %v10506_v10, %v3239_v42  ;;  %v2985_v33 = vmul.f32 %v10517_v23, %v2376_v36  ;;  %v4857_v34 = vpop.f32.mrf.mxu0  ;;  %2623 = vperm.xlu1 %7212, %v7927_v26   ;;  %7000 = vmatmul.mubr.msk.f32.vlgmr.msra.gmra.mxu1 %vm3892_vm0, %v7462_v7  ;;  %v7933_v26 = vld [vmem:[%s12757_s0 + $0x678] sm:$0xff] }
 0x38c   :  { %v7464_v53 = vpop.eup %7463  ;;  %v2380_v25 = vpop.permute.xlu0 %2379  ;;  %6034 = vst.msk [vmem:[%s12762_s5 + $0xd8] sm:$0xff] %vm6006_vm1, %v4863_v35  ;;  %v4858_v5 = vadd.f32 %v10399_v52, %v4857_v34  ;;  %2627 = vperm.xlu0 %7211, %v7928_v12   ;;  %v1705_v0 = vmul.f32 %v10491_v50, %v13060_v31  ;;  %v7934_v12 = vld [vmem:[%s12757_s0 + $0x680] sm:$0xff]  ;;  %v13066_v31 = vld [vmem:[#allocation104_spill] sm:$0xff] }
 0x38d   :  { %v3503_v55 = vadd.f32 %v10506_v10, %v3240_v18  ;;  %v2986_v11 = vmul.f32 %v10517_v23, %v2380_v25  ;;  %7002 = vmatprep.mubr.msk.f32.mxu1 %vm3892_vm0, %v7464_v53  ;;  %7477 = vtanh.f32 %v3502_v47  ;;  %v3241_v43 = vadd.f32 %v2985_v33, %v1700_v17  ;;  %v6851_v48 = vpop.f32.mrf.mxu0 }
 0x38e   :  { %v7466_v44 = vpop.eup %7465  ;;  %6033 = vst.msk [vmem:[%s12762_s5 + $0xd0] sm:$0xff] %vm6006_vm1, %v4858_v5  ;;  %v4873_v45 = vadd.f32 %v6851_v48, %v10399_v52  ;;  %v2384_v46 = vpop.permute.xlu1 %2383  ;;  %v1706_v17 = vmul.f32 %v10491_v50, %v13061_v4  ;;  %v13067_v4 = vld [vmem:[#allocation103_spill] sm:$0xff] }
 0x38f   :  { %7479 = vtanh.f32 %v3503_v55  ;;  %v3242_v15 = vadd.f32 %v2986_v11, %v1701_v56  ;;  %v3504_v40 = vadd.f32 %v10506_v10, %v3241_v43  ;;  %v2987_v14 = vmul.f32 %v10517_v23, %v2384_v46  ;;  %v4867_v39 = vpop.f32.mrf.mxu0  ;;  %2631 = vperm.xlu1 %7212, %v7929_v19   ;;  %7003 = vmatmul.mubr.msk.f32.gmra.mxu1 %vm3892_vm0, %v7466_v44  ;;  %v7935_v19 = vld [vmem:[%s12757_s0 + $0x688] sm:$0xff] }
 0x390   :  { %v7468_v57 = vpop.eup %7467  ;;  %v2388_v51 = vpop.permute.xlu0 %2387  ;;  %6036 = vst.msk [vmem:[%s12762_s5 + $0xe8] sm:$0xff] %vm6006_vm1, %v4873_v45  ;;  %v4868_v37 = vadd.f32 %v10399_v52, %v4867_v39  ;;  %2635 = vperm.xlu0 %7211, %v7930_v21   ;;  %v1707_v56 = vmul.f32 %v10491_v50, %v13062_v54  ;;  %v7936_v21 = vld [vmem:[%s12757_s0 + $0x690] sm:$0xff]  ;;  %v13068_v54 = vld [vmem:[#allocation106_spill] sm:$0xff] }
 0x391   :  { %v3505_v20 = vadd.f32 %v10506_v10, %v3242_v15  ;;  %v2988_v38 = vmul.f32 %v10517_v23, %v2388_v51  ;;  %7005 = vmatprep.mubr.msk.f32.mxu1 %vm3892_vm0, %v7468_v57  ;;  %7481 = vtanh.f32 %v3504_v40  ;;  %v3243_v22 = vadd.f32 %v2987_v14, %v1702_v2  ;;  %v6854_v29 = vpop.f32.mrf.mxu0 }
 0x392   :  { %v7470_v16 = vpop.eup %7469  ;;  %6035 = vst.msk [vmem:[%s12762_s5 + $0xe0] sm:$0xff] %vm6006_vm1, %v4868_v37  ;;  %v4883_v49 = vadd.f32 %v6854_v29, %v10399_v52  ;;  %v2392_v59 = vpop.permute.xlu1 %2391  ;;  %v1708_v2 = vmul.f32 %v10491_v50, %v13063_v32  ;;  %v13069_v32 = vld [vmem:[#allocation105_spill] sm:$0xff] }
 0x393   :  { %7483 = vtanh.f32 %v3505_v20  ;;  %v3244_v62 = vadd.f32 %v2988_v38, %v1703_v63  ;;  %v3506_v27 = vadd.f32 %v10506_v10, %v3243_v22  ;;  %v2989_v28 = vmul.f32 %v10517_v23, %v2392_v59  ;;  %v4877_v1 = vpop.f32.mrf.mxu0  ;;  %2639 = vperm.xlu1 %7212, %v7931_v9   ;;  %7006 = vmatmul.mubr.msk.f32.gmra.mxu1 %vm3892_vm0, %v7470_v16  ;;  %v7937_v9 = vld [vmem:[%s12757_s0 + $0x698] sm:$0xff] }
 0x394   :  { %v7472_v60 = vpop.eup %7471  ;;  %v2396_v8 = vpop.permute.xlu0 %2395  ;;  %6038 = vst.msk [vmem:[%s12762_s5 + $0xf8] sm:$0xff] %vm6006_vm1, %v4883_v49  ;;  %v4878_v6 = vadd.f32 %v10399_v52, %v4877_v1  ;;  %2643 = vperm.xlu0 %7211, %v7932_v41   ;;  %v1709_v63 = vmul.f32 %v10491_v50, %v13064_v58  ;;  %v7938_v41 = vld [vmem:[%s12757_s0 + $0x6a0] sm:$0xff]  ;;  %v13070_v58 = vld [vmem:[#allocation108_spill] sm:$0xff] }
 0x395   :  { %v3507_v13 = vadd.f32 %v10506_v10, %v3244_v62  ;;  %v2990_v24 = vmul.f32 %v10517_v23, %v2396_v8  ;;  %7008 = vmatprep.mubr.msk.f32.mxu1 %vm3892_vm0, %v7472_v60  ;;  %7485 = vtanh.f32 %v3506_v27  ;;  %v3245_v42 = vadd.f32 %v2989_v28, %v1704_v61  ;;  %v6857_v3 = vpop.f32.mrf.mxu0 }
 0x396   :  { %v7474_v7 = vpop.eup %7473  ;;  %6037 = vst.msk [vmem:[%s12762_s5 + $0xf0] sm:$0xff] %vm6006_vm1, %v4878_v6  ;;  %v4893_v35 = vadd.f32 %v6857_v3, %v10399_v52  ;;  %v2400_v36 = vpop.permute.xlu1 %2399  ;;  %v1710_v61 = vmul.f32 %v10491_v50, %v13065_v30  ;;  %v13071_v30 = vld [vmem:[#allocation107_spill] sm:$0xff] }
 0x397   :  { %7487 = vtanh.f32 %v3507_v13  ;;  %v3246_v18 = vadd.f32 %v2990_v24, %v1705_v0  ;;  %v3508_v47 = vadd.f32 %v10506_v10, %v3245_v42  ;;  %v2991_v33 = vmul.f32 %v10517_v23, %v2400_v36  ;;  %v4887_v34 = vpop.f32.mrf.mxu0  ;;  %2647 = vperm.xlu1 %7212, %v7933_v26   ;;  %7009 = vmatmul.mubr.msk.f32.gmra.mxu1 %vm3892_vm0, %v7474_v7  ;;  %v7939_v26 = vld [vmem:[%s12757_s0 + $0x6a8] sm:$0xff] }
 0x398   :  { %v7476_v53 = vpop.eup %7475  ;;  %v2404_v25 = vpop.permute.xlu0 %2403  ;;  %6040 = vst.msk [vmem:[%s12762_s5 + $0x108] sm:$0xff] %vm6006_vm1, %v4893_v35  ;;  %v4888_v5 = vadd.f32 %v10399_v52, %v4887_v34  ;;  %2651 = vperm.xlu0 %7211, %v7934_v12   ;;  %v1711_v0 = vmul.f32 %v10491_v50, %v13066_v31  ;;  %v7940_v12 = vld [vmem:[%s12757_s0 + $0x6b0] sm:$0xff]  ;;  %v13072_v31 = vld [vmem:[#allocation110_spill] sm:$0xff] }
 0x399   :  { %v3509_v55 = vadd.f32 %v10506_v10, %v3246_v18  ;;  %v2992_v11 = vmul.f32 %v10517_v23, %v2404_v25  ;;  %7011 = vmatprep.mubr.msk.f32.mxu1 %vm3892_vm0, %v7476_v53  ;;  %7489 = vtanh.f32 %v3508_v47  ;;  %v3247_v43 = vadd.f32 %v2991_v33, %v1706_v17  ;;  %v6860_v48 = vpop.f32.mrf.mxu0 }
 0x39a   :  { %v7478_v44 = vpop.eup %7477  ;;  %6039 = vst.msk [vmem:[%s12762_s5 + $0x100] sm:$0xff] %vm6006_vm1, %v4888_v5  ;;  %v4903_v45 = vadd.f32 %v6860_v48, %v10399_v52  ;;  %v2408_v46 = vpop.permute.xlu1 %2407  ;;  %v1712_v17 = vmul.f32 %v10491_v50, %v13067_v4  ;;  %v13073_v4 = vld [vmem:[#allocation109_spill] sm:$0xff] }
 0x39b   :  { %7491 = vtanh.f32 %v3509_v55  ;;  %v3248_v15 = vadd.f32 %v2992_v11, %v1707_v56  ;;  %v3510_v40 = vadd.f32 %v10506_v10, %v3247_v43  ;;  %v2993_v14 = vmul.f32 %v10517_v23, %v2408_v46  ;;  %v4897_v39 = vpop.f32.mrf.mxu0  ;;  %2655 = vperm.xlu1 %7212, %v7935_v19   ;;  %7012 = vmatmul.mubr.msk.f32.gmra.mxu1 %vm3892_vm0, %v7478_v44  ;;  %v7941_v19 = vld [vmem:[%s12757_s0 + $0x6b8] sm:$0xff] }
 0x39c   :  { %v7480_v57 = vpop.eup %7479  ;;  %v2412_v51 = vpop.permute.xlu0 %2411  ;;  %6042 = vst.msk [vmem:[%s12762_s5 + $0x118] sm:$0xff] %vm6006_vm1, %v4903_v45  ;;  %v4898_v37 = vadd.f32 %v10399_v52, %v4897_v39  ;;  %2659 = vperm.xlu0 %7211, %v7936_v21   ;;  %v1713_v56 = vmul.f32 %v10491_v50, %v13068_v54  ;;  %v7942_v21 = vld [vmem:[%s12757_s0 + $0x6c0] sm:$0xff]  ;;  %v13074_v54 = vld [vmem:[#allocation112_spill] sm:$0xff] }
 0x39d   :  { %v3511_v20 = vadd.f32 %v10506_v10, %v3248_v15  ;;  %v2994_v38 = vmul.f32 %v10517_v23, %v2412_v51  ;;  %7014 = vmatprep.mubr.msk.f32.mxu1 %vm3892_vm0, %v7480_v57  ;;  %7493 = vtanh.f32 %v3510_v40  ;;  %v3249_v22 = vadd.f32 %v2993_v14, %v1708_v2  ;;  %v6863_v29 = vpop.f32.mrf.mxu0 }
 0x39e   :  { %v7482_v16 = vpop.eup %7481  ;;  %6041 = vst.msk [vmem:[%s12762_s5 + $0x110] sm:$0xff] %vm6006_vm1, %v4898_v37  ;;  %v4913_v49 = vadd.f32 %v6863_v29, %v10399_v52  ;;  %v2416_v59 = vpop.permute.xlu1 %2415  ;;  %v1714_v2 = vmul.f32 %v10491_v50, %v13069_v32  ;;  %v13075_v32 = vld [vmem:[#allocation111_spill] sm:$0xff] }
 0x39f   :  { %7495 = vtanh.f32 %v3511_v20  ;;  %v3250_v62 = vadd.f32 %v2994_v38, %v1709_v63  ;;  %v3512_v27 = vadd.f32 %v10506_v10, %v3249_v22  ;;  %v2995_v28 = vmul.f32 %v10517_v23, %v2416_v59  ;;  %v4907_v1 = vpop.f32.mrf.mxu0  ;;  %2663 = vperm.xlu1 %7212, %v7937_v9   ;;  %7015 = vmatmul.mubr.msk.f32.gmra.mxu1 %vm3892_vm0, %v7482_v16  ;;  %v7944_v9 = vld [vmem:[%s12757_s0 + $0x6c8] sm:$0xff] }
 0x3a0   :  { %v7484_v60 = vpop.eup %7483  ;;  %v2420_v8 = vpop.permute.xlu0 %2419  ;;  %6044 = vst.msk [vmem:[%s12762_s5 + $0x128] sm:$0xff] %vm6006_vm1, %v4913_v49  ;;  %v4908_v6 = vadd.f32 %v10399_v52, %v4907_v1  ;;  %2667 = vperm.xlu0 %7211, %v7938_v41   ;;  %v1715_v63 = vmul.f32 %v10491_v50, %v13070_v58  ;;  %v7945_v41 = vld [vmem:[%s12757_s0 + $0x6d0] sm:$0xff]  ;;  %v13076_v58 = vld [vmem:[#allocation114_spill] sm:$0xff] }
 0x3a1   :  { %v3513_v13 = vadd.f32 %v10506_v10, %v3250_v62  ;;  %v2996_v24 = vmul.f32 %v10517_v23, %v2420_v8  ;;  %7017 = vmatprep.mubr.msk.f32.mxu1 %vm3892_vm0, %v7484_v60  ;;  %7497 = vtanh.f32 %v3512_v27  ;;  %v3251_v42 = vadd.f32 %v2995_v28, %v1710_v61  ;;  %v6866_v3 = vpop.f32.mrf.mxu0  ;;  %v10975_v62 = vld [vmem:[%s12761_s4] ss:$0 sm:$0xff] }
 0x3a2   :  { %v7486_v7 = vpop.eup %7485  ;;  %6043 = vst.msk [vmem:[%s12762_s5 + $0x120] sm:$0xff] %vm6006_vm1, %v4908_v6  ;;  %v4923_v35 = vadd.f32 %v6866_v3, %v10399_v52  ;;  %v2424_v36 = vpop.permute.xlu1 %2423  ;;  %v1716_v61 = vmul.f32 %v10491_v50, %v13071_v30  ;;  %v13077_v30 = vld [vmem:[#allocation113_spill] sm:$0xff] }
 0x3a3   :  { %7499 = vtanh.f32 %v3513_v13  ;;  %v3252_v18 = vadd.f32 %v2996_v24, %v1711_v0  ;;  %v3514_v47 = vadd.f32 %v10506_v10, %v3251_v42  ;;  %v2997_v33 = vmul.f32 %v10517_v23, %v2424_v36  ;;  %v4917_v34 = vpop.f32.mrf.mxu0  ;;  %2671 = vperm.xlu1 %7212, %v7939_v26   ;;  %7018 = vmatmul.mubr.msk.f32.gmra.mxu1 %vm3892_vm0, %v7486_v7  ;;  %v7946_v26 = vld [vmem:[%s12757_s0 + $0x6d8] sm:$0xff] }
 0x3a4   :  { %v7488_v53 = vpop.eup %7487  ;;  %v2428_v25 = vpop.permute.xlu0 %2427  ;;  %6046 = vst.msk [vmem:[%s12762_s5 + $0x138] sm:$0xff] %vm6006_vm1, %v4923_v35  ;;  %v4918_v5 = vadd.f32 %v10399_v52, %v4917_v34  ;;  %2675 = vperm.xlu0 %7211, %v7940_v12   ;;  %v1717_v0 = vmul.f32 %v10491_v50, %v13072_v31  ;;  %v7947_v12 = vld [vmem:[%s12757_s0 + $0x6e0] sm:$0xff]  ;;  %v13078_v31 = vld [vmem:[#allocation116_spill] sm:$0xff] }
 0x3a5   :  { %v3515_v55 = vadd.f32 %v10506_v10, %v3252_v18  ;;  %v2998_v11 = vmul.f32 %v10517_v23, %v2428_v25  ;;  %7020 = vmatprep.mubr.msk.f32.mxu1 %vm3892_vm0, %v7488_v53  ;;  %7501 = vtanh.f32 %v3514_v47  ;;  %v3253_v43 = vadd.f32 %v2997_v33, %v1712_v17  ;;  %v6869_v48 = vpop.f32.mrf.mxu0 }
 0x3a6   :  { %v7490_v44 = vpop.eup %7489  ;;  %6045 = vst.msk [vmem:[%s12762_s5 + $0x130] sm:$0xff] %vm6006_vm1, %v4918_v5  ;;  %v4933_v45 = vadd.f32 %v6869_v48, %v10399_v52  ;;  %v2432_v46 = vpop.permute.xlu1 %2431  ;;  %v1718_v17 = vmul.f32 %v10491_v50, %v13073_v4 }
 0x3a7   :  { %7503 = vtanh.f32 %v3515_v55  ;;  %v3254_v15 = vadd.f32 %v2998_v11, %v1713_v56  ;;  %v3516_v40 = vadd.f32 %v10506_v10, %v3253_v43  ;;  %v2999_v14 = vmul.f32 %v10517_v23, %v2432_v46  ;;  %v4927_v39 = vpop.f32.mrf.mxu0  ;;  %2679 = vperm.xlu1 %7212, %v7941_v19   ;;  %7021 = vmatmul.mubr.msk.f32.gmra.mxu1 %vm3892_vm0, %v7490_v44  ;;  %v7948_v19 = vld [vmem:[%s12757_s0 + $0x6e8] sm:$0xff] }
 0x3a8   :  { %v7492_v57 = vpop.eup %7491  ;;  %v2436_v51 = vpop.permute.xlu0 %2435  ;;  %6048 = vst.msk [vmem:[%s12762_s5 + $0x148] sm:$0xff] %vm6006_vm1, %v4933_v45  ;;  %v4928_v37 = vadd.f32 %v10399_v52, %v4927_v39  ;;  %2683 = vperm.xlu0 %7211, %v7942_v21   ;;  %v1719_v56 = vmul.f32 %v10491_v50, %v13074_v54  ;;  %v7949_v21 = vld [vmem:[%s12757_s0 + $0x6f0] sm:$0xff]  ;;  %v11092_v54 = vld [vmem:[%s12760_s2] ss:$0 sm:$0xff] }
 0x3a9   :  { %v3517_v20 = vadd.f32 %v10506_v10, %v3254_v15  ;;  %v3000_v38 = vmul.f32 %v10517_v23, %v2436_v51  ;;  %7023 = vmatprep.mubr.msk.f32.mxu1 %vm3892_vm0, %v7492_v57  ;;  %7505 = vtanh.f32 %v3516_v40  ;;  %v3255_v22 = vadd.f32 %v2999_v14, %v1714_v2  ;;  %v6872_v29 = vpop.f32.mrf.mxu0 }
 0x3aa   :  { %v7494_v16 = vpop.eup %7493  ;;  %6047 = vst.msk [vmem:[%s12762_s5 + $0x140] sm:$0xff] %vm6006_vm1, %v4928_v37  ;;  %v4943_v49 = vadd.f32 %v10975_v62, %v6872_v29  ;;  %v2440_v59 = vpop.permute.xlu1 %2439  ;;  %v1720_v2 = vmul.f32 %v10491_v50, %v13075_v32  ;;  %v13081_v32 = vld [vmem:[#allocation117_spill] sm:$0xff] }
 0x3ab   :  { %7507 = vtanh.f32 %v3517_v20  ;;  %v3256_v52 = vadd.f32 %v3000_v38, %v1715_v63  ;;  %v3518_v27 = vadd.f32 %v10506_v10, %v3255_v22  ;;  %v3001_v28 = vmul.f32 %v10517_v23, %v2440_v59  ;;  %v4937_v1 = vpop.f32.mrf.mxu0  ;;  %2687 = vperm.xlu1 %7212, %v7944_v9   ;;  %7024 = vmatmul.mubr.msk.f32.gmra.mxu1 %vm3892_vm0, %v7494_v16  ;;  %v7950_v9 = vld [vmem:[%s12757_s0 + $0x6f8] sm:$0xff] }
 0x3ac   :  { %v7496_v60 = vpop.eup %7495  ;;  %v2444_v8 = vpop.permute.xlu0 %2443  ;;  %6050 = vst.msk [vmem:[%s12762_s5 + $0x158] sm:$0xff] %vm6006_vm1, %v4943_v49  ;;  %v4938_v6 = vadd.f32 %v10975_v62, %v4937_v1  ;;  %2691 = vperm.xlu0 %7211, %v7945_v41   ;;  %v1721_v63 = vmul.f32 %v10491_v50, %v13076_v58  ;;  %v13082_v58 = vld [vmem:[#allocation120_spill] sm:$0xff] }
 0x3ad   :  { %v3519_v13 = vadd.f32 %v10506_v10, %v3256_v52  ;;  %v3002_v24 = vmul.f32 %v10517_v23, %v2444_v8  ;;  %7026 = vmatprep.mubr.msk.f32.mxu1 %vm3892_vm0, %v7496_v60  ;;  %7509 = vtanh.f32 %v3518_v27  ;;  %v3257_v42 = vadd.f32 %v3001_v28, %v1716_v61  ;;  %v6875_v3 = vpop.f32.mrf.mxu0 }
 0x3ae   :  { %v7498_v7 = vpop.eup %7497  ;;  %6049 = vst.msk [vmem:[%s12762_s5 + $0x150] sm:$0xff] %vm6006_vm1, %v4938_v6  ;;  %v4953_v35 = vadd.f32 %v10975_v62, %v6875_v3  ;;  %v2448_v36 = vpop.permute.xlu1 %2447  ;;  %v1722_v61 = vmul.f32 %v10491_v50, %v13077_v30  ;;  %v11078_v3 = vld [vmem:[%s12759_s1] ss:$0 sm:$0xff]  ;;  %v13083_v30 = vld [vmem:[#allocation119_spill] sm:$0xff] }
 0x3af   :  { %7511 = vtanh.f32 %v3519_v13  ;;  %v3258_v18 = vadd.f32 %v3002_v24, %v1717_v0  ;;  %v3520_v47 = vadd.f32 %v10506_v10, %v3257_v42  ;;  %v3003_v33 = vmul.f32 %v10517_v23, %v2448_v36  ;;  %v4947_v34 = vpop.f32.mrf.mxu0  ;;  %2695 = vperm.xlu1 %7212, %v7946_v26   ;;  %7027 = vmatmul.mubr.msk.f32.gmra.mxu1 %vm3892_vm0, %v7498_v7  ;;  %v7951_v24 = vld [vmem:[%s12757_s0 + $0x700] sm:$0xff]  ;;  %v13079_v7 = vld [vmem:[#allocation115_spill] sm:$0xff] }
 0x3b0   :  { %v7500_v53 = vpop.eup %7499  ;;  %v2452_v25 = vpop.permute.xlu0 %2451  ;;  %6052 = vst.msk [vmem:[%s12762_s5 + $0x168] sm:$0xff] %vm6006_vm1, %v4953_v35  ;;  %v4948_v5 = vadd.f32 %v10975_v62, %v4947_v34  ;;  %2699 = vperm.xlu0 %7211, %v7947_v12   ;;  %v1723_v0 = vmul.f32 %v10491_v50, %v13078_v31  ;;  %v1724_v4 = vmul.f32 %v11078_v3, %v13079_v7  ;;  %v13080_v36 = vld [vmem:[#allocation118_spill] sm:$0xff]  ;;  %v7955_v26 = vld [vmem:[%s12757_s0 + $0x708] sm:$0xff]  ;;  %v7956_v12 = vld [vmem:[%s12757_s0 + $0x710] sm:$0xff] }
 0x3b1   :  { %v3521_v55 = vadd.f32 %v10506_v10, %v3258_v18  ;;  %v3004_v11 = vmul.f32 %v10517_v23, %v2452_v25  ;;  %7029 = vmatprep.mubr.msk.f32.mxu1 %vm3892_vm0, %v7500_v53  ;;  %7513 = vtanh.f32 %v3520_v47  ;;  %v3259_v43 = vadd.f32 %v3003_v33, %v1718_v17  ;;  %v6878_v48 = vpop.f32.mrf.mxu0  ;;  %v11098_v47 = vld [vmem:[%s12759_s1 + $0x1] ss:$0 sm:$0xff]  ;;  %v13085_v7 = vld [vmem:[#allocation121_spill] sm:$0xff] }
 0x3b2   :  { %v7502_v44 = vpop.eup %7501  ;;  %6051 = vst.msk [vmem:[%s12762_s5 + $0x160] sm:$0xff] %vm6006_vm1, %v4948_v5  ;;  %v4963_v45 = vadd.f32 %v10975_v62, %v6878_v48  ;;  %v2456_v46 = vpop.permute.xlu1 %2455  ;;  %v1725_v53 = vmul.f32 %v11078_v3, %v13080_v36  ;;  %v13084_v31 = vld [vmem:[#allocation122_spill] sm:$0xff]  ;;  %v13086_v36 = vld [vmem:[#allocation124_spill] sm:$0xff] }
 0x3b3   :  { %7515 = vtanh.f32 %v3521_v55  ;;  %v3260_v15 = vadd.f32 %v3004_v11, %v1719_v56  ;;  %v3522_v40 = vadd.f32 %v10506_v10, %v3259_v43  ;;  %v3005_v14 = vmul.f32 %v10517_v23, %v2456_v46  ;;  %v4957_v39 = vpop.f32.mrf.mxu0  ;;  %2703 = vperm.xlu1 %7212, %v7948_v19   ;;  %7030 = vmatmul.mubr.msk.f32.gmra.mxu1 %vm3892_vm0, %v7502_v44  ;;  %v7957_v19 = vld [vmem:[%s12757_s0 + $0x718] sm:$0xff] }
 0x3b4   :  { %v7504_v57 = vpop.eup %7503  ;;  %v2460_v51 = vpop.permute.xlu0 %2459  ;;  %6054 = vst.msk [vmem:[%s12762_s5 + $0x178] sm:$0xff] %vm6006_vm1, %v4963_v45  ;;  %v4958_v37 = vadd.f32 %v10975_v62, %v4957_v39  ;;  %2707 = vperm.xlu0 %7211, %v7949_v21   ;;  %v7958_v21 = vld [vmem:[%s12757_s0 + $0x720] sm:$0xff] }
 0x3b5   :  { %v3523_v20 = vadd.f32 %v10506_v10, %v3260_v15  ;;  %v3006_v38 = vmul.f32 %v10517_v23, %v2460_v51  ;;  %7032 = vmatprep.mubr.msk.f32.mxu1 %vm3892_vm0, %v7504_v57  ;;  %7517 = vtanh.f32 %v3522_v40  ;;  %v3261_v22 = vadd.f32 %v3005_v14, %v1720_v2  ;;  %v6881_v29 = vpop.f32.mrf.mxu0 }
 0x3b6   :  { %v7506_v16 = vpop.eup %7505  ;;  %6053 = vst.msk [vmem:[%s12762_s5 + $0x170] sm:$0xff] %vm6006_vm1, %v4958_v37  ;;  %v4973_v49 = vadd.f32 %v10975_v62, %v6881_v29  ;;  %v2464_v59 = vpop.permute.xlu1 %2463  ;;  %v1726_v2 = vmul.f32 %v11078_v3, %v13081_v32  ;;  %v13087_v32 = vld [vmem:[#allocation123_spill] sm:$0xff] }
 0x3b7   :  { %7519 = vtanh.f32 %v3523_v20  ;;  %v3262_v52 = vadd.f32 %v3006_v38, %v1721_v63  ;;  %v3524_v27 = vadd.f32 %v10506_v10, %v3261_v22  ;;  %v3007_v28 = vmul.f32 %v10517_v23, %v2464_v59  ;;  %v4967_v1 = vpop.f32.mrf.mxu0  ;;  %2711 = vperm.xlu1 %7212, %v7950_v9   ;;  %7033 = vmatmul.mubr.msk.f32.gmra.mxu1 %vm3892_vm0, %v7506_v16  ;;  %v7959_v9 = vld [vmem:[%s12757_s0 + $0x728] sm:$0xff] }
 0x3b8   :  { %v7508_v60 = vpop.eup %7507  ;;  %v2468_v8 = vpop.permute.xlu0 %2467  ;;  %6056 = vst.msk [vmem:[%s12762_s5 + $0x188] sm:$0xff] %vm6006_vm1, %v4973_v49  ;;  %v4968_v50 = vadd.f32 %v10975_v62, %v4967_v1  ;;  %2715 = vperm.xlu0 %7211, %v7951_v24   ;;  %v1727_v63 = vmul.f32 %v11078_v3, %v13082_v58  ;;  %v7960_v24 = vld [vmem:[%s12757_s0 + $0x730] sm:$0xff]  ;;  %v13088_v58 = vld [vmem:[#allocation126_spill] sm:$0xff] }
 0x3b9   :  { %v3525_v13 = vadd.f32 %v10506_v10, %v3262_v52  ;;  %v3008_v6 = vmul.f32 %v10517_v23, %v2468_v8  ;;  %7035 = vmatprep.mubr.msk.f32.mxu1 %vm3892_vm0, %v7508_v60  ;;  %7521 = vtanh.f32 %v3524_v27  ;;  %v3263_v41 = vadd.f32 %v3007_v28, %v1722_v61  ;;  %v6884_v42 = vpop.f32.mrf.mxu0 }
 0x3ba   :  { %v7510_v10 = vpop.eup %7509  ;;  %6055 = vst.msk [vmem:[%s12762_s5 + $0x180] sm:$0xff] %vm6006_vm1, %v4968_v50  ;;  %v4983_v17 = vadd.f32 %v10975_v62, %v6884_v42  ;;  %v2472_v18 = vpop.permute.xlu1 %2471  ;;  %v1728_v61 = vmul.f32 %v11078_v3, %v13083_v30  ;;  %v13089_v30 = vld [vmem:[#allocation125_spill] sm:$0xff] }
 0x3bb   :  { %7523 = vtanh.f32 %v3525_v13  ;;  %v3264_v23 = vadd.f32 %v3008_v6, %v1723_v0  ;;  %v3526_v56 = vadd.f32 %v11092_v54, %v3263_v41  ;;  %v3009_v33 = vmul.f32 %v11098_v47, %v2472_v18  ;;  %v4977_v34 = vpop.f32.mrf.mxu0  ;;  %2719 = vperm.xlu1 %7212, %v7955_v26   ;;  %7036 = vmatmul.mubr.msk.f32.gmra.mxu1 %vm3892_vm0, %v7510_v10  ;;  %v7961_v26 = vld [vmem:[%s12757_s0 + $0x738] sm:$0xff] }
 0x3bc   :  { %v7512_v35 = vpop.eup %7511  ;;  %v2476_v25 = vpop.permute.xlu0 %2475  ;;  %6058 = vst.msk [vmem:[%s12762_s5 + $0x198] sm:$0xff] %vm6006_vm1, %v4983_v17  ;;  %v4978_v5 = vadd.f32 %v10975_v62, %v4977_v34  ;;  %2723 = vperm.xlu0 %7211, %v7956_v12   ;;  %v1729_v0 = vmul.f32 %v11078_v3, %v13084_v31  ;;  %v7962_v12 = vld [vmem:[%s12757_s0 + $0x740] sm:$0xff]  ;;  %v13090_v31 = vld [vmem:[#allocation128_spill] sm:$0xff] }
 0x3bd   :  { %v3527_v55 = vadd.f32 %v11092_v54, %v3264_v23  ;;  %v3010_v11 = vmul.f32 %v11098_v47, %v2476_v25  ;;  %7038 = vmatprep.mubr.msk.f32.mxu1 %vm3892_vm0, %v7512_v35  ;;  %7525 = vtanh.f32 %v3526_v56  ;;  %v3265_v43 = vadd.f32 %v3009_v33, %v1724_v4  ;;  %v6887_v48 = vpop.f32.mrf.mxu0 }
 0x3be   :  { %v7514_v44 = vpop.eup %7513  ;;  %6057 = vst.msk [vmem:[%s12762_s5 + $0x190] sm:$0xff] %vm6006_vm1, %v4978_v5  ;;  %v4993_v45 = vadd.f32 %v10975_v62, %v6887_v48  ;;  %v2480_v46 = vpop.permute.xlu1 %2479  ;;  %v1730_v4 = vmul.f32 %v11078_v3, %v13085_v7  ;;  %v13091_v7 = vld [vmem:[#allocation127_spill] sm:$0xff] }
 0x3bf   :  { %7527 = vtanh.f32 %v3527_v55  ;;  %v3266_v15 = vadd.f32 %v3010_v11, %v1725_v53  ;;  %v3528_v40 = vadd.f32 %v11092_v54, %v3265_v43  ;;  %v3011_v14 = vmul.f32 %v11098_v47, %v2480_v46  ;;  %v4987_v39 = vpop.f32.mrf.mxu0  ;;  %2727 = vperm.xlu1 %7212, %v7957_v19   ;;  %7039 = vmatmul.mubr.msk.f32.gmra.mxu1 %vm3892_vm0, %v7514_v44  ;;  %v7963_v19 = vld [vmem:[%s12757_s0 + $0x748] sm:$0xff] }
 0x3c0   :  { %v7516_v57 = vpop.eup %7515  ;;  %v2484_v51 = vpop.permute.xlu0 %2483  ;;  %6060 = vst.msk [vmem:[%s12762_s5 + $0x1a8] sm:$0xff] %vm6006_vm1, %v4993_v45  ;;  %v4988_v37 = vadd.f32 %v10975_v62, %v4987_v39  ;;  %2731 = vperm.xlu0 %7211, %v7958_v21   ;;  %v1731_v53 = vmul.f32 %v11078_v3, %v13086_v36  ;;  %v7964_v21 = vld [vmem:[%s12757_s0 + $0x750] sm:$0xff]  ;;  %v13092_v36 = vld [vmem:[#allocation130_spill] sm:$0xff] }
 0x3c1   :  { %v3529_v20 = vadd.f32 %v11092_v54, %v3266_v15  ;;  %v3012_v38 = vmul.f32 %v11098_v47, %v2484_v51  ;;  %7041 = vmatprep.mubr.msk.f32.mxu1 %vm3892_vm0, %v7516_v57  ;;  %7529 = vtanh.f32 %v3528_v40  ;;  %v3267_v22 = vadd.f32 %v3011_v14, %v1726_v2  ;;  %v6890_v29 = vpop.f32.mrf.mxu0 }
 0x3c2   :  { %v7518_v16 = vpop.eup %7517  ;;  %6059 = vst.msk [vmem:[%s12762_s5 + $0x1a0] sm:$0xff] %vm6006_vm1, %v4988_v37  ;;  %v5003_v49 = vadd.f32 %v10975_v62, %v6890_v29  ;;  %v2488_v59 = vpop.permute.xlu1 %2487  ;;  %v1732_v2 = vmul.f32 %v11078_v3, %v13087_v32  ;;  %v13093_v32 = vld [vmem:[#allocation129_spill] sm:$0xff] }
 0x3c3   :  { %7531 = vtanh.f32 %v3529_v20  ;;  %v3268_v52 = vadd.f32 %v3012_v38, %v1727_v63  ;;  %v3530_v27 = vadd.f32 %v11092_v54, %v3267_v22  ;;  %v3013_v28 = vmul.f32 %v11098_v47, %v2488_v59  ;;  %v4997_v1 = vpop.f32.mrf.mxu0  ;;  %2735 = vperm.xlu1 %7212, %v7959_v9   ;;  %7042 = vmatmul.mubr.msk.f32.gmra.mxu1 %vm3892_vm0, %v7518_v16  ;;  %v7965_v9 = vld [vmem:[%s12757_s0 + $0x758] sm:$0xff] }
 0x3c4   :  { %v7520_v60 = vpop.eup %7519  ;;  %v2492_v8 = vpop.permute.xlu0 %2491  ;;  %6062 = vst.msk [vmem:[%s12762_s5 + $0x1b8] sm:$0xff] %vm6006_vm1, %v5003_v49  ;;  %v4998_v50 = vadd.f32 %v10975_v62, %v4997_v1  ;;  %2739 = vperm.xlu0 %7211, %v7960_v24   ;;  %v1733_v63 = vmul.f32 %v11078_v3, %v13088_v58  ;;  %v7966_v24 = vld [vmem:[%s12757_s0 + $0x760] sm:$0xff]  ;;  %v13094_v58 = vld [vmem:[#allocation132_spill] sm:$0xff] }
 0x3c5   :  { %v3531_v13 = vadd.f32 %v11092_v54, %v3268_v52  ;;  %v3014_v6 = vmul.f32 %v11098_v47, %v2492_v8  ;;  %7044 = vmatprep.mubr.msk.f32.mxu1 %vm3892_vm0, %v7520_v60  ;;  %7533 = vtanh.f32 %v3530_v27  ;;  %v3269_v41 = vadd.f32 %v3013_v28, %v1728_v61  ;;  %v6893_v42 = vpop.f32.mrf.mxu0 }
 0x3c6   :  { %v7522_v10 = vpop.eup %7521  ;;  %6061 = vst.msk [vmem:[%s12762_s5 + $0x1b0] sm:$0xff] %vm6006_vm1, %v4998_v50  ;;  %v5013_v17 = vadd.f32 %v10975_v62, %v6893_v42  ;;  %v2496_v18 = vpop.permute.xlu1 %2495  ;;  %v1734_v61 = vmul.f32 %v11078_v3, %v13089_v30  ;;  %v13095_v30 = vld [vmem:[#allocation131_spill] sm:$0xff] }
 0x3c7   :  { %7535 = vtanh.f32 %v3531_v13  ;;  %v3270_v23 = vadd.f32 %v3014_v6, %v1729_v0  ;;  %v3532_v56 = vadd.f32 %v11092_v54, %v3269_v41  ;;  %v3015_v33 = vmul.f32 %v11098_v47, %v2496_v18  ;;  %v5007_v34 = vpop.f32.mrf.mxu0  ;;  %2743 = vperm.xlu1 %7212, %v7961_v26   ;;  %7045 = vmatmul.mubr.msk.f32.gmra.mxu1 %vm3892_vm0, %v7522_v10  ;;  %v7967_v26 = vld [vmem:[%s12757_s0 + $0x768] sm:$0xff] }
 0x3c8   :  { %v7524_v35 = vpop.eup %7523  ;;  %v2500_v25 = vpop.permute.xlu0 %2499  ;;  %6064 = vst.msk [vmem:[%s12762_s5 + $0x1c8] sm:$0xff] %vm6006_vm1, %v5013_v17  ;;  %v5008_v5 = vadd.f32 %v10975_v62, %v5007_v34  ;;  %2747 = vperm.xlu0 %7211, %v7962_v12   ;;  %v1735_v0 = vmul.f32 %v11078_v3, %v13090_v31  ;;  %v7968_v12 = vld [vmem:[%s12757_s0 + $0x770] sm:$0xff]  ;;  %v13096_v31 = vld [vmem:[#allocation134_spill] sm:$0xff] }
 0x3c9   :  { %v3533_v55 = vadd.f32 %v11092_v54, %v3270_v23  ;;  %v3016_v11 = vmul.f32 %v11098_v47, %v2500_v25  ;;  %7047 = vmatprep.mubr.msk.f32.mxu1 %vm3892_vm0, %v7524_v35  ;;  %7537 = vtanh.f32 %v3532_v56  ;;  %v3271_v43 = vadd.f32 %v3015_v33, %v1730_v4  ;;  %v6896_v48 = vpop.f32.mrf.mxu0 }
 0x3ca   :  { %v7526_v44 = vpop.eup %7525  ;;  %6063 = vst.msk [vmem:[%s12762_s5 + $0x1c0] sm:$0xff] %vm6006_vm1, %v5008_v5  ;;  %v5023_v45 = vadd.f32 %v10975_v62, %v6896_v48  ;;  %v2504_v46 = vpop.permute.xlu1 %2503  ;;  %v1736_v4 = vmul.f32 %v11078_v3, %v13091_v7  ;;  %v13097_v7 = vld [vmem:[#allocation133_spill] sm:$0xff] }
 0x3cb   :  { %7539 = vtanh.f32 %v3533_v55  ;;  %v3272_v15 = vadd.f32 %v3016_v11, %v1731_v53  ;;  %v3534_v40 = vadd.f32 %v11092_v54, %v3271_v43  ;;  %v3017_v14 = vmul.f32 %v11098_v47, %v2504_v46  ;;  %v5017_v39 = vpop.f32.mrf.mxu0  ;;  %2751 = vperm.xlu1 %7212, %v7963_v19   ;;  %7048 = vmatmul.mubr.msk.f32.gmra.mxu1 %vm3892_vm0, %v7526_v44  ;;  %v7969_v19 = vld [vmem:[%s12757_s0 + $0x778] sm:$0xff] }
 0x3cc   :  { %v7528_v57 = vpop.eup %7527  ;;  %v2508_v51 = vpop.permute.xlu0 %2507  ;;  %6066 = vst.msk [vmem:[%s12762_s5 + $0x1d8] sm:$0xff] %vm6006_vm1, %v5023_v45  ;;  %v5018_v37 = vadd.f32 %v10975_v62, %v5017_v39  ;;  %2755 = vperm.xlu0 %7211, %v7964_v21   ;;  %v1737_v53 = vmul.f32 %v11078_v3, %v13092_v36  ;;  %v7970_v21 = vld [vmem:[%s12757_s0 + $0x780] sm:$0xff]  ;;  %v13098_v36 = vld [vmem:[#allocation136_spill] sm:$0xff] }
 0x3cd   :  { %v3535_v20 = vadd.f32 %v11092_v54, %v3272_v15  ;;  %v3018_v38 = vmul.f32 %v11098_v47, %v2508_v51  ;;  %7050 = vmatprep.mubr.msk.f32.mxu1 %vm3892_vm0, %v7528_v57  ;;  %7541 = vtanh.f32 %v3534_v40  ;;  %v3273_v22 = vadd.f32 %v3017_v14, %v1732_v2  ;;  %v6899_v29 = vpop.f32.mrf.mxu0 }
 0x3ce   :  { %v7530_v16 = vpop.eup %7529  ;;  %6065 = vst.msk [vmem:[%s12762_s5 + $0x1d0] sm:$0xff] %vm6006_vm1, %v5018_v37  ;;  %v5033_v49 = vadd.f32 %v10975_v62, %v6899_v29  ;;  %v2512_v59 = vpop.permute.xlu1 %2511  ;;  %v1738_v2 = vmul.f32 %v11078_v3, %v13093_v32  ;;  %v13099_v32 = vld [vmem:[#allocation135_spill] sm:$0xff] }
 0x3cf   :  { %7543 = vtanh.f32 %v3535_v20  ;;  %v3274_v52 = vadd.f32 %v3018_v38, %v1733_v63  ;;  %v3536_v27 = vadd.f32 %v11092_v54, %v3273_v22  ;;  %v3019_v28 = vmul.f32 %v11098_v47, %v2512_v59  ;;  %v5027_v1 = vpop.f32.mrf.mxu0  ;;  %2759 = vperm.xlu1 %7212, %v7965_v9   ;;  %7051 = vmatmul.mubr.msk.f32.gmra.mxu1 %vm3892_vm0, %v7530_v16  ;;  %v7971_v9 = vld [vmem:[%s12757_s0 + $0x788] sm:$0xff] }
 0x3d0   :  { %v7532_v60 = vpop.eup %7531  ;;  %v2516_v8 = vpop.permute.xlu0 %2515  ;;  %6068 = vst.msk [vmem:[%s12762_s5 + $0x1e8] sm:$0xff] %vm6006_vm1, %v5033_v49  ;;  %v5028_v50 = vadd.f32 %v10975_v62, %v5027_v1  ;;  %2763 = vperm.xlu0 %7211, %v7966_v24   ;;  %v1739_v63 = vmul.f32 %v11078_v3, %v13094_v58  ;;  %v7972_v24 = vld [vmem:[%s12757_s0 + $0x790] sm:$0xff]  ;;  %v13100_v58 = vld [vmem:[#allocation138_spill] sm:$0xff] }
 0x3d1   :  { %v3537_v13 = vadd.f32 %v11092_v54, %v3274_v52  ;;  %v3020_v6 = vmul.f32 %v11098_v47, %v2516_v8  ;;  %7053 = vmatprep.mubr.msk.f32.mxu1 %vm3892_vm0, %v7532_v60  ;;  %7545 = vtanh.f32 %v3536_v27  ;;  %v3275_v41 = vadd.f32 %v3019_v28, %v1734_v61  ;;  %v6902_v42 = vpop.f32.mrf.mxu0 }
 0x3d2   :  { %v7534_v10 = vpop.eup %7533  ;;  %6067 = vst.msk [vmem:[%s12762_s5 + $0x1e0] sm:$0xff] %vm6006_vm1, %v5028_v50  ;;  %v5043_v17 = vadd.f32 %v10975_v62, %v6902_v42  ;;  %v2520_v18 = vpop.permute.xlu1 %2519  ;;  %v1740_v61 = vmul.f32 %v11078_v3, %v13095_v30  ;;  %v13101_v30 = vld [vmem:[#allocation137_spill] sm:$0xff] }
 0x3d3   :  { %7547 = vtanh.f32 %v3537_v13  ;;  %v3276_v23 = vadd.f32 %v3020_v6, %v1735_v0  ;;  %v3538_v56 = vadd.f32 %v11092_v54, %v3275_v41  ;;  %v3021_v33 = vmul.f32 %v11098_v47, %v2520_v18  ;;  %v5037_v34 = vpop.f32.mrf.mxu0  ;;  %2767 = vperm.xlu1 %7212, %v7967_v26   ;;  %7054 = vmatmul.mubr.msk.f32.gmra.mxu1 %vm3892_vm0, %v7534_v10  ;;  %v7973_v26 = vld [vmem:[%s12757_s0 + $0x798] sm:$0xff] }
 0x3d4   :  { %v7536_v35 = vpop.eup %7535  ;;  %v2524_v25 = vpop.permute.xlu0 %2523  ;;  %6070 = vst.msk [vmem:[%s12762_s5 + $0x1f8] sm:$0xff] %vm6006_vm1, %v5043_v17  ;;  %v5038_v5 = vadd.f32 %v10975_v62, %v5037_v34  ;;  %2771 = vperm.xlu0 %7211, %v7968_v12   ;;  %v1741_v0 = vmul.f32 %v11078_v3, %v13096_v31  ;;  %v7974_v12 = vld [vmem:[%s12757_s0 + $0x7a0] sm:$0xff]  ;;  %v13102_v31 = vld [vmem:[#allocation140_spill] sm:$0xff] }
 0x3d5   :  { %v3539_v55 = vadd.f32 %v11092_v54, %v3276_v23  ;;  %v3022_v11 = vmul.f32 %v11098_v47, %v2524_v25  ;;  %7056 = vmatprep.mubr.msk.f32.mxu1 %vm3892_vm0, %v7536_v35  ;;  %7549 = vtanh.f32 %v3538_v56  ;;  %v3277_v43 = vadd.f32 %v3021_v33, %v1736_v4  ;;  %v6905_v48 = vpop.f32.mrf.mxu0 }
 0x3d6   :  { %v7538_v44 = vpop.eup %7537  ;;  %6069 = vst.msk [vmem:[%s12762_s5 + $0x1f0] sm:$0xff] %vm6006_vm1, %v5038_v5  ;;  %v5053_v45 = vadd.f32 %v10975_v62, %v6905_v48  ;;  %v2528_v46 = vpop.permute.xlu1 %2527  ;;  %v1742_v4 = vmul.f32 %v11078_v3, %v13097_v7  ;;  %v13103_v7 = vld [vmem:[#allocation139_spill] sm:$0xff] }
 0x3d7   :  { %7551 = vtanh.f32 %v3539_v55  ;;  %v3278_v15 = vadd.f32 %v3022_v11, %v1737_v53  ;;  %v3540_v40 = vadd.f32 %v11092_v54, %v3277_v43  ;;  %v3023_v14 = vmul.f32 %v11098_v47, %v2528_v46  ;;  %v5047_v39 = vpop.f32.mrf.mxu0  ;;  %2775 = vperm.xlu1 %7212, %v7969_v19   ;;  %7057 = vmatmul.mubr.msk.f32.gmra.mxu1 %vm3892_vm0, %v7538_v44  ;;  %v7975_v19 = vld [vmem:[%s12757_s0 + $0x7a8] sm:$0xff] }
 0x3d8   :  { %v7540_v57 = vpop.eup %7539  ;;  %v2532_v51 = vpop.permute.xlu0 %2531  ;;  %6072 = vst.msk [vmem:[%s12762_s5 + $0x208] sm:$0xff] %vm6006_vm1, %v5053_v45  ;;  %v5048_v37 = vadd.f32 %v10975_v62, %v5047_v39  ;;  %2779 = vperm.xlu0 %7211, %v7970_v21   ;;  %v1743_v53 = vmul.f32 %v11078_v3, %v13098_v36  ;;  %v7976_v21 = vld [vmem:[%s12757_s0 + $0x7b0] sm:$0xff]  ;;  %v13104_v36 = vld [vmem:[#allocation142_spill] sm:$0xff] }
 0x3d9   :  { %v3541_v20 = vadd.f32 %v11092_v54, %v3278_v15  ;;  %v3024_v38 = vmul.f32 %v11098_v47, %v2532_v51  ;;  %7059 = vmatprep.mubr.msk.f32.mxu1 %vm3892_vm0, %v7540_v57  ;;  %7553 = vtanh.f32 %v3540_v40  ;;  %v3279_v22 = vadd.f32 %v3023_v14, %v1738_v2  ;;  %v6908_v29 = vpop.f32.mrf.mxu0 }
 0x3da   :  { %v7542_v16 = vpop.eup %7541  ;;  %6071 = vst.msk [vmem:[%s12762_s5 + $0x200] sm:$0xff] %vm6006_vm1, %v5048_v37  ;;  %v5063_v49 = vadd.f32 %v10975_v62, %v6908_v29  ;;  %v2536_v59 = vpop.permute.xlu1 %2535  ;;  %v1744_v2 = vmul.f32 %v11078_v3, %v13099_v32  ;;  %v13105_v32 = vld [vmem:[#allocation141_spill] sm:$0xff] }
 0x3db   :  { %7555 = vtanh.f32 %v3541_v20  ;;  %v3280_v52 = vadd.f32 %v3024_v38, %v1739_v63  ;;  %v3542_v27 = vadd.f32 %v11092_v54, %v3279_v22  ;;  %v3025_v28 = vmul.f32 %v11098_v47, %v2536_v59  ;;  %v5057_v1 = vpop.f32.mrf.mxu0  ;;  %2783 = vperm.xlu1 %7212, %v7971_v9   ;;  %7060 = vmatmul.mubr.msk.f32.gmra.mxu1 %vm3892_vm0, %v7542_v16  ;;  %v7977_v9 = vld [vmem:[%s12757_s0 + $0x7b8] sm:$0xff] }
 0x3dc   :  { %v7544_v60 = vpop.eup %7543  ;;  %v2540_v8 = vpop.permute.xlu0 %2539  ;;  %6074 = vst.msk [vmem:[%s12762_s5 + $0x218] sm:$0xff] %vm6006_vm1, %v5063_v49  ;;  %v5058_v50 = vadd.f32 %v10975_v62, %v5057_v1  ;;  %2787 = vperm.xlu0 %7211, %v7972_v24   ;;  %v1745_v63 = vmul.f32 %v11078_v3, %v13100_v58  ;;  %v7978_v24 = vld [vmem:[%s12757_s0 + $0x7c0] sm:$0xff]  ;;  %v13106_v58 = vld [vmem:[#allocation144_spill] sm:$0xff] }
 0x3dd   :  { %v3543_v13 = vadd.f32 %v11092_v54, %v3280_v52  ;;  %v3026_v6 = vmul.f32 %v11098_v47, %v2540_v8  ;;  %7062 = vmatprep.mubr.msk.f32.mxu1 %vm3892_vm0, %v7544_v60  ;;  %7557 = vtanh.f32 %v3542_v27  ;;  %v3281_v41 = vadd.f32 %v3025_v28, %v1740_v61  ;;  %v6911_v42 = vpop.f32.mrf.mxu0 }
 0x3de   :  { %v7546_v10 = vpop.eup %7545  ;;  %6073 = vst.msk [vmem:[%s12762_s5 + $0x210] sm:$0xff] %vm6006_vm1, %v5058_v50  ;;  %v5073_v17 = vadd.f32 %v10975_v62, %v6911_v42  ;;  %v2544_v18 = vpop.permute.xlu1 %2543  ;;  %v1746_v61 = vmul.f32 %v11078_v3, %v13101_v30  ;;  %v13107_v30 = vld [vmem:[#allocation143_spill] sm:$0xff] }
 0x3df   :  { %7559 = vtanh.f32 %v3543_v13  ;;  %v3282_v23 = vadd.f32 %v3026_v6, %v1741_v0  ;;  %v3544_v56 = vadd.f32 %v11092_v54, %v3281_v41  ;;  %v3027_v33 = vmul.f32 %v11098_v47, %v2544_v18  ;;  %v5067_v34 = vpop.f32.mrf.mxu0  ;;  %2791 = vperm.xlu1 %7212, %v7973_v26   ;;  %7063 = vmatmul.mubr.msk.f32.gmra.mxu1 %vm3892_vm0, %v7546_v10  ;;  %v7979_v26 = vld [vmem:[%s12757_s0 + $0x7c8] sm:$0xff] }
 0x3e0   :  { %v7548_v35 = vpop.eup %7547  ;;  %v2548_v25 = vpop.permute.xlu0 %2547  ;;  %6076 = vst.msk [vmem:[%s12762_s5 + $0x228] sm:$0xff] %vm6006_vm1, %v5073_v17  ;;  %v5068_v5 = vadd.f32 %v10975_v62, %v5067_v34  ;;  %2795 = vperm.xlu0 %7211, %v7974_v12   ;;  %v1747_v0 = vmul.f32 %v11078_v3, %v13102_v31  ;;  %v7980_v12 = vld [vmem:[%s12757_s0 + $0x7d0] sm:$0xff]  ;;  %v13108_v31 = vld [vmem:[#allocation146_spill] sm:$0xff] }
 0x3e1   :  { %v3545_v55 = vadd.f32 %v11092_v54, %v3282_v23  ;;  %v3028_v11 = vmul.f32 %v11098_v47, %v2548_v25  ;;  %7065 = vmatprep.mubr.msk.f32.mxu1 %vm3892_vm0, %v7548_v35  ;;  %7561 = vtanh.f32 %v3544_v56  ;;  %v3283_v43 = vadd.f32 %v3027_v33, %v1742_v4  ;;  %v6914_v48 = vpop.f32.mrf.mxu0 }
 0x3e2   :  { %v7550_v44 = vpop.eup %7549  ;;  %6075 = vst.msk [vmem:[%s12762_s5 + $0x220] sm:$0xff] %vm6006_vm1, %v5068_v5  ;;  %v5083_v45 = vadd.f32 %v10975_v62, %v6914_v48  ;;  %v2552_v46 = vpop.permute.xlu1 %2551  ;;  %v1748_v4 = vmul.f32 %v11078_v3, %v13103_v7  ;;  %v13109_v7 = vld [vmem:[#allocation145_spill] sm:$0xff] }
 0x3e3   :  { %7563 = vtanh.f32 %v3545_v55  ;;  %v3284_v15 = vadd.f32 %v3028_v11, %v1743_v53  ;;  %v3546_v40 = vadd.f32 %v11092_v54, %v3283_v43  ;;  %v3029_v14 = vmul.f32 %v11098_v47, %v2552_v46  ;;  %v5077_v39 = vpop.f32.mrf.mxu0  ;;  %2799 = vperm.xlu1 %7212, %v7975_v19   ;;  %7066 = vmatmul.mubr.msk.f32.gmra.mxu1 %vm3892_vm0, %v7550_v44  ;;  %v7981_v19 = vld [vmem:[%s12757_s0 + $0x3d8] sm:$0xff] }
 0x3e4   :  { %v7552_v57 = vpop.eup %7551  ;;  %v2556_v51 = vpop.permute.xlu0 %2555  ;;  %6078 = vst.msk [vmem:[%s12762_s5 + $0x238] sm:$0xff] %vm6006_vm1, %v5083_v45  ;;  %v5078_v37 = vadd.f32 %v10975_v62, %v5077_v39  ;;  %2803 = vperm.xlu0 %7211, %v7976_v21   ;;  %v1749_v53 = vmul.f32 %v11078_v3, %v13104_v36  ;;  %v7982_v21 = vld [vmem:[%s12757_s0 + $0x7d8] sm:$0xff]  ;;  %v13110_v36 = vld [vmem:[#allocation148_spill] sm:$0xff] }
 0x3e5   :  { %v3547_v20 = vadd.f32 %v11092_v54, %v3284_v15  ;;  %v3030_v38 = vmul.f32 %v11098_v47, %v2556_v51  ;;  %7068 = vmatprep.mubr.msk.f32.mxu1 %vm3892_vm0, %v7552_v57  ;;  %7565 = vtanh.f32 %v3546_v40  ;;  %v3285_v22 = vadd.f32 %v3029_v14, %v1744_v2  ;;  %v6917_v29 = vpop.f32.mrf.mxu0 }
 0x3e6   :  { %v7554_v16 = vpop.eup %7553  ;;  %6077 = vst.msk [vmem:[%s12762_s5 + $0x230] sm:$0xff] %vm6006_vm1, %v5078_v37  ;;  %v5093_v49 = vadd.f32 %v10975_v62, %v6917_v29  ;;  %v2560_v59 = vpop.permute.xlu1 %2559  ;;  %v1750_v2 = vmul.f32 %v11078_v3, %v13105_v32  ;;  %v13111_v32 = vld [vmem:[#allocation147_spill] sm:$0xff] }
 0x3e7   :  { %7567 = vtanh.f32 %v3547_v20  ;;  %v3286_v52 = vadd.f32 %v3030_v38, %v1745_v63  ;;  %v3548_v27 = vadd.f32 %v11092_v54, %v3285_v22  ;;  %v3031_v28 = vmul.f32 %v11098_v47, %v2560_v59  ;;  %v5087_v1 = vpop.f32.mrf.mxu0  ;;  %2807 = vperm.xlu1 %7212, %v7977_v9   ;;  %7069 = vmatmul.mubr.msk.f32.gmra.mxu1 %vm3892_vm0, %v7554_v16  ;;  %v7983_v9 = vld [vmem:[%s12757_s0 + $0x3e0] sm:$0xff] }
 0x3e8   :  { %v7556_v60 = vpop.eup %7555  ;;  %v2564_v8 = vpop.permute.xlu0 %2563  ;;  %6080 = vst.msk [vmem:[%s12762_s5 + $0x248] sm:$0xff] %vm6006_vm1, %v5093_v49  ;;  %v5088_v50 = vadd.f32 %v10975_v62, %v5087_v1  ;;  %2811 = vperm.xlu0 %7211, %v7978_v24   ;;  %v1751_v63 = vmul.f32 %v11078_v3, %v13106_v58  ;;  %v7984_v24 = vld [vmem:[%s12757_s0 + $0x7e0] sm:$0xff] }
 0x3e9   :  { %v3549_v13 = vadd.f32 %v11092_v54, %v3286_v52  ;;  %v3032_v6 = vmul.f32 %v11098_v47, %v2564_v8  ;;  %7071 = vmatprep.mubr.msk.f32.mxu1 %vm3892_vm0, %v7556_v60  ;;  %7569 = vtanh.f32 %v3548_v27  ;;  %v3287_v41 = vadd.f32 %v3031_v28, %v1746_v61  ;;  %v6920_v42 = vpop.f32.mrf.mxu0  ;;  %v13112_v58 = vld [vmem:[#allocation150_spill] sm:$0xff] }
 0x3ea   :  { %v7558_v10 = vpop.eup %7557  ;;  %6079 = vst.msk [vmem:[%s12762_s5 + $0x240] sm:$0xff] %vm6006_vm1, %v5088_v50  ;;  %v5103_v17 = vadd.f32 %v10975_v62, %v6920_v42  ;;  %v2568_v18 = vpop.permute.xlu1 %2567  ;;  %v1752_v61 = vmul.f32 %v11078_v3, %v13107_v30  ;;  %v13113_v30 = vld [vmem:[#allocation149_spill] sm:$0xff] }
 0x3eb   :  { %7571 = vtanh.f32 %v3549_v13  ;;  %v3288_v23 = vadd.f32 %v3032_v6, %v1747_v0  ;;  %v3550_v56 = vadd.f32 %v11092_v54, %v3287_v41  ;;  %v3033_v33 = vmul.f32 %v11098_v47, %v2568_v18  ;;  %v5097_v34 = vpop.f32.mrf.mxu0  ;;  %2815 = vperm.xlu1 %7212, %v7979_v26   ;;  %7072 = vmatmul.mubr.msk.f32.gmra.mxu1 %vm3892_vm0, %v7558_v10  ;;  %v7985_v26 = vld [vmem:[%s12757_s0 + $0x3e8] sm:$0xff] }
 0x3ec   :  { %v7560_v35 = vpop.eup %7559  ;;  %v2572_v25 = vpop.permute.xlu0 %2571  ;;  %6082 = vst.msk [vmem:[%s12762_s5 + $0x258] sm:$0xff] %vm6006_vm1, %v5103_v17  ;;  %v5098_v5 = vadd.f32 %v10975_v62, %v5097_v34  ;;  %2819 = vperm.xlu0 %7211, %v7980_v12   ;;  %v1753_v0 = vmul.f32 %v11078_v3, %v13108_v31  ;;  %v7986_v12 = vld [vmem:[%s12757_s0 + $0x7e8] sm:$0xff]  ;;  %v13114_v31 = vld [vmem:[#allocation152_spill] sm:$0xff] }
 0x3ed   :  { %v3551_v55 = vadd.f32 %v11092_v54, %v3288_v23  ;;  %v3034_v11 = vmul.f32 %v11098_v47, %v2572_v25  ;;  %7074 = vmatprep.mubr.msk.f32.mxu1 %vm3892_vm0, %v7560_v35  ;;  %7573 = vtanh.f32 %v3550_v56  ;;  %v3289_v43 = vadd.f32 %v3033_v33, %v1748_v4  ;;  %v6923_v48 = vpop.f32.mrf.mxu0 }
 0x3ee   :  { %v7562_v44 = vpop.eup %7561  ;;  %6081 = vst.msk [vmem:[%s12762_s5 + $0x250] sm:$0xff] %vm6006_vm1, %v5098_v5  ;;  %v5113_v45 = vadd.f32 %v10975_v62, %v6923_v48  ;;  %v2576_v46 = vpop.permute.xlu1 %2575  ;;  %v1754_v4 = vmul.f32 %v11078_v3, %v13109_v7 }
 0x3ef   :  { %7575 = vtanh.f32 %v3551_v55  ;;  %v3290_v15 = vadd.f32 %v3034_v11, %v1749_v53  ;;  %v3552_v40 = vadd.f32 %v11092_v54, %v3289_v43  ;;  %v3035_v14 = vmul.f32 %v11098_v47, %v2576_v46  ;;  %v5107_v39 = vpop.f32.mrf.mxu0  ;;  %2311 = vperm.xlu1 %7212, %v7981_v19   ;;  %7075 = vmatmul.mubr.msk.f32.gmra.mxu1 %vm3892_vm0, %v7562_v44  ;;  %v7987_v19 = vld [vmem:[%s12757_s0 + $0x3f0] sm:$0xff] }
 0x3f0   :  { %v7564_v57 = vpop.eup %7563  ;;  %v2580_v51 = vpop.permute.xlu0 %2579  ;;  %6084 = vst.msk [vmem:[%s12762_s5 + $0x268] sm:$0xff] %vm6006_vm1, %v5113_v45  ;;  %v5108_v37 = vadd.f32 %v10975_v62, %v5107_v39  ;;  %2823 = vperm.xlu0 %7211, %v7982_v21   ;;  %v1755_v53 = vmul.f32 %v11078_v3, %v13110_v36  ;;  %v7988_v21 = vld [vmem:[%s12757_s0 + $0x7f0] sm:$0xff] }
 0x3f1   :  { %v3553_v20 = vadd.f32 %v11092_v54, %v3290_v15  ;;  %v3036_v38 = vmul.f32 %v11098_v47, %v2580_v51  ;;  %7077 = vmatprep.mubr.msk.f32.mxu1 %vm3892_vm0, %v7564_v57  ;;  %7577 = vtanh.f32 %v3552_v40  ;;  %v3291_v22 = vadd.f32 %v3035_v14, %v1750_v2  ;;  %v6926_v29 = vpop.f32.mrf.mxu0 }
 0x3f2   :  { %v7566_v16 = vpop.eup %7565  ;;  %6083 = vst.msk [vmem:[%s12762_s5 + $0x260] sm:$0xff] %vm6006_vm1, %v5108_v37  ;;  %v5123_v49 = vadd.f32 %v10975_v62, %v6926_v29  ;;  %v2584_v59 = vpop.permute.xlu1 %2583  ;;  %v1756_v2 = vmul.f32 %v11078_v3, %v13111_v32 }
 0x3f3   :  { %7579 = vtanh.f32 %v3553_v20  ;;  %v3292_v52 = vadd.f32 %v3036_v38, %v1751_v63  ;;  %v3554_v27 = vadd.f32 %v11092_v54, %v3291_v22  ;;  %v3037_v28 = vmul.f32 %v11098_v47, %v2584_v59  ;;  %v5117_v1 = vpop.f32.mrf.mxu0  ;;  %2315 = vperm.xlu1 %7212, %v7983_v9   ;;  %7078 = vmatmul.mubr.msk.f32.gmra.mxu1 %vm3892_vm0, %v7566_v16  ;;  %v7989_v9 = vld [vmem:[%s12757_s0 + $0x3f8] sm:$0xff] }
 0x3f4   :  { %v7568_v60 = vpop.eup %7567  ;;  %v2588_v8 = vpop.permute.xlu0 %2587  ;;  %6086 = vst.msk [vmem:[%s12762_s5 + $0x278] sm:$0xff] %vm6006_vm1, %v5123_v49  ;;  %v5118_v50 = vadd.f32 %v10975_v62, %v5117_v1  ;;  %2827 = vperm.xlu0 %7211, %v7984_v24   ;;  %v1757_v63 = vmul.f32 %v11078_v3, %v13112_v58  ;;  %v7991_v24 = vld [vmem:[%s12757_s0 + $0x7f8] sm:$0xff] }
 0x3f5   :  { %v3555_v13 = vadd.f32 %v11092_v54, %v3292_v52  ;;  %v3038_v6 = vmul.f32 %v11098_v47, %v2588_v8  ;;  %7080 = vmatprep.mubr.msk.f32.mxu1 %vm3892_vm0, %v7568_v60  ;;  %7581 = vtanh.f32 %v3554_v27  ;;  %v3293_v41 = vadd.f32 %v3037_v28, %v1752_v61  ;;  %v6929_v42 = vpop.f32.mrf.mxu0 }
 0x3f6   :  { %v7570_v10 = vpop.eup %7569  ;;  %6085 = vst.msk [vmem:[%s12762_s5 + $0x270] sm:$0xff] %vm6006_vm1, %v5118_v50  ;;  %v5133_v17 = vadd.f32 %v10975_v62, %v6929_v42  ;;  %v2592_v18 = vpop.permute.xlu1 %2591  ;;  %v1758_v61 = vmul.f32 %v11078_v3, %v13113_v30  ;;  %v13119_v30 = vld [vmem:[#allocation155_spill] sm:$0xff] }
 0x3f7   :  { %7583 = vtanh.f32 %v3555_v13  ;;  %v3294_v23 = vadd.f32 %v3038_v6, %v1753_v0  ;;  %v3556_v56 = vadd.f32 %v11092_v54, %v3293_v41  ;;  %v3039_v33 = vmul.f32 %v11098_v47, %v2592_v18  ;;  %v5127_v34 = vpop.f32.mrf.mxu0  ;;  %2319 = vperm.xlu1 %7212, %v7985_v26   ;;  %7081 = vmatmul.mubr.msk.f32.gmra.mxu1 %vm3892_vm0, %v7570_v10  ;;  %v11555_v13 = vld [vmem:[%s12761_s4] ss:$0 sm:$0xff]  ;;  %v13115_v18 = vld [vmem:[#allocation151_spill] sm:$0xff] }
 0x3f8   :  { %v7572_v35 = vpop.eup %7571  ;;  %v2596_v25 = vpop.permute.xlu0 %2595  ;;  %6088 = vst.msk [vmem:[%s12762_s5 + $0x288] sm:$0xff] %vm6006_vm1, %v5133_v17  ;;  %v5128_v5 = vadd.f32 %v10975_v62, %v5127_v34  ;;  %2831 = vperm.xlu0 %7211, %v7986_v12   ;;  %v1759_v0 = vmul.f32 %v11078_v3, %v13114_v31  ;;  %v13116_v34 = vld [vmem:[#allocation154_spill] sm:$0xff] }
 0x3f9   :  { %v3557_v55 = vadd.f32 %v11092_v54, %v3294_v23  ;;  %v3040_v11 = vmul.f32 %v11098_v47, %v2596_v25  ;;  %7083 = vmatprep.mubr.msk.f32.mxu1 %vm3892_vm0, %v7572_v35  ;;  %7585 = vtanh.f32 %v3556_v56  ;;  %v3295_v43 = vadd.f32 %v3039_v33, %v1754_v4  ;;  %v6932_v48 = vpop.f32.mrf.mxu0  ;;  %v13120_v31 = vld [vmem:[#allocation158_spill] sm:$0xff] }
 0x3fa   :  { %v7574_v44 = vpop.eup %7573  ;;  %6087 = vst.msk [vmem:[%s12762_s5 + $0x280] sm:$0xff] %vm6006_vm1, %v5128_v5  ;;  %v5143_v45 = vadd.f32 %v10975_v62, %v6932_v48  ;;  %v2600_v46 = vpop.permute.xlu1 %2599  ;;  %v1760_v35 = vmul.f32 %v11078_v3, %v13115_v18  ;;  %v1761_v25 = vmul.f32 %v11078_v3, %v13116_v34  ;;  %v13122_v18 = vld [vmem:[#allocation160_spill] sm:$0xff] }
 0x3fb   :  { %7587 = vtanh.f32 %v3557_v55  ;;  %v3296_v15 = vadd.f32 %v3040_v11, %v1755_v53  ;;  %v3558_v40 = vadd.f32 %v11092_v54, %v3295_v43  ;;  %v3041_v14 = vmul.f32 %v11098_v47, %v2600_v46  ;;  %v5137_v39 = vpop.f32.mrf.mxu0  ;;  %2323 = vperm.xlu1 %7212, %v7987_v19   ;;  %7084 = vmatmul.mubr.msk.f32.gmra.mxu1 %vm3892_vm0, %v7574_v44 }
 0x3fc   :  { %v7576_v57 = vpop.eup %7575  ;;  %v2604_v51 = vpop.permute.xlu0 %2603  ;;  %6090 = vst.msk [vmem:[%s12762_s5 + $0x298] sm:$0xff] %vm6006_vm1, %v5143_v45  ;;  %v5138_v37 = vadd.f32 %v10975_v62, %v5137_v39  ;;  %2835 = vperm.xlu0 %7211, %v7988_v21  }
 0x3fd   :  { %v3559_v20 = vadd.f32 %v11092_v54, %v3296_v15  ;;  %v3042_v38 = vmul.f32 %v11098_v47, %v2604_v51  ;;  %7086 = vmatprep.mubr.msk.f32.mxu1 %vm3892_vm0, %v7576_v57  ;;  %7589 = vtanh.f32 %v3558_v40  ;;  %v3297_v22 = vadd.f32 %v3041_v14, %v1756_v2  ;;  %v6935_v29 = vpop.f32.mrf.mxu0  ;;  %v13117_v15 = vld [vmem:[#allocation153_spill] sm:$0xff]  ;;  %v13118_v40 = vld [vmem:[#allocation156_spill] sm:$0xff] }
 0x3fe   :  { %v7578_v16 = vpop.eup %7577  ;;  %6089 = vst.msk [vmem:[%s12762_s5 + $0x290] sm:$0xff] %vm6006_vm1, %v5138_v37  ;;  %v5153_v49 = vadd.f32 %v10975_v62, %v6935_v29  ;;  %v2608_v59 = vpop.permute.xlu1 %2607  ;;  %v1762_v45 = vmul.f32 %v11078_v3, %v13117_v15  ;;  %v1763_v14 = vmul.f32 %v11078_v3, %v13118_v40  ;;  %v13124_v15 = vld [vmem:[#allocation162_spill] sm:$0xff] }
 0x3ff   :  { %7591 = vtanh.f32 %v3559_v20  ;;  %v3298_v52 = vadd.f32 %v3042_v38, %v1757_v63  ;;  %v3560_v27 = vadd.f32 %v11092_v54, %v3297_v22  ;;  %v3043_v28 = vmul.f32 %v11098_v47, %v2608_v59  ;;  %v5147_v1 = vpop.f32.mrf.mxu0  ;;  %2327 = vperm.xlu1 %7212, %v7989_v9   ;;  %7087 = vmatmul.mubr.msk.f32.gmra.mxu1 %vm3892_vm0, %v7578_v16 }
 0x400   :  { %v7580_v60 = vpop.eup %7579  ;;  %v2612_v8 = vpop.permute.xlu0 %2611  ;;  %6092 = vst.msk [vmem:[%s12762_s5 + $0x2a8] sm:$0xff] %vm6006_vm1, %v5153_v49  ;;  %v5148_v50 = vadd.f32 %v11555_v13, %v5147_v1  ;;  %2839 = vperm.xlu0 %7211, %v7991_v24  }
 0x401   :  { %v3561_v62 = vadd.f32 %v11092_v54, %v3298_v52  ;;  %v3044_v6 = vmul.f32 %v11098_v47, %v2612_v8  ;;  %7089 = vmatprep.mubr.msk.f32.mxu1 %vm3892_vm0, %v7580_v60  ;;  %7593 = vtanh.f32 %v3560_v27  ;;  %v3299_v41 = vadd.f32 %v3043_v28, %v1758_v61  ;;  %v6938_v42 = vpop.f32.mrf.mxu0 }
 0x402   :  { %v7582_v10 = vpop.eup %7581  ;;  %6091 = vst.msk [vmem:[%s12762_s5 + $0x2a0] sm:$0xff] %vm6006_vm1, %v5148_v50  ;;  %v5163_v4 = vadd.f32 %v11555_v13, %v6938_v42  ;;  %v2616_v23 = vpop.permute.xlu1 %2615  ;;  %v1764_v61 = vmul.f32 %v11078_v3, %v13119_v30  ;;  %v13121_v42 = vld [vmem:[#allocation157_spill] sm:$0xff]  ;;  %v13126_v30 = vld [vmem:[#allocation164_spill] sm:$0xff] }
 0x403   :  { %7595 = vtanh.f32 %v3561_v62  ;;  %v3300_v7 = vadd.f32 %v3044_v6, %v1759_v0  ;;  %v3562_v36 = vadd.f32 %v11092_v54, %v3299_v41  ;;  %v3045_v53 = vmul.f32 %v11098_v47, %v2616_v23  ;;  %v5157_v56 = vpop.f32.mrf.mxu0  ;;  %7090 = vmatmul.mubr.msk.f32.gmra.mxu1 %vm3892_vm0, %v7582_v10 }
 0x404   :  { %v7584_v17 = vpop.eup %7583  ;;  %v2620_v33 = vpop.permute.xlu0 %2619  ;;  %6094 = vst.msk [vmem:[%s12762_s5 + $0x2b8] sm:$0xff] %vm6006_vm1, %v5163_v4  ;;  %v5158_v55 = vadd.f32 %v11555_v13, %v5157_v56  ;;  %v1765_v0 = vmul.f32 %v11078_v3, %v13120_v31  ;;  %v1766_v10 = vmul.f32 %v11078_v3, %v13121_v42  ;;  %v13128_v42 = vld [vmem:[#allocation166_spill] sm:$0xff] }
 0x405   :  { %v3563_v26 = vadd.f32 %v11092_v54, %v3300_v7  ;;  %v3046_v5 = vmul.f32 %v11098_v47, %v2620_v33  ;;  %7092 = vmatprep.mubr.msk.f32.mxu1 %vm3892_vm0, %v7584_v17  ;;  %7597 = vtanh.f32 %v3562_v36  ;;  %v3301_v11 = vadd.f32 %v3045_v53, %v1760_v35  ;;  %v6941_v12 = vpop.f32.mrf.mxu0 }
 0x406   :  { %v7586_v43 = vpop.eup %7585  ;;  %6093 = vst.msk [vmem:[%s12762_s5 + $0x2b0] sm:$0xff] %vm6006_vm1, %v5158_v55  ;;  %v5173_v44 = vadd.f32 %v11555_v13, %v6941_v12  ;;  %v2624_v32 = vpop.permute.xlu1 %2623  ;;  %v1767_v35 = vmul.f32 %v11078_v3, %v13122_v18  ;;  %v11658_v12 = vld [vmem:[%s12760_s2] ss:$0 sm:$0xff] }
 0x407   :  { %7599 = vtanh.f32 %v3563_v26  ;;  %v3302_v48 = vadd.f32 %v3046_v5, %v1761_v25  ;;  %v3564_v46 = vadd.f32 %v11092_v54, %v3301_v11  ;;  %v3047_v57 = vmul.f32 %v11098_v47, %v2624_v32  ;;  %v5167_v58 = vpop.f32.mrf.mxu0  ;;  %7093 = vmatmul.mubr.msk.f32.gmra.mxu1 %vm3892_vm0, %v7586_v43  ;;  %v13123_v5 = vld [vmem:[#allocation159_spill] sm:$0xff] }
 0x408   :  { %v7588_v2 = vpop.eup %7587  ;;  %v2628_v63 = vpop.permute.xlu0 %2627  ;;  %6096 = vst.msk [vmem:[%s12762_s5 + $0x2c8] sm:$0xff] %vm6006_vm1, %v5173_v44  ;;  %v5168_v51 = vadd.f32 %v11555_v13, %v5167_v58 }
 0x409   :  { %v3565_v39 = vadd.f32 %v11092_v54, %v3302_v48  ;;  %v3048_v19 = vmul.f32 %v11098_v47, %v2628_v63  ;;  %7095 = vmatprep.mubr.msk.f32.mxu1 %vm3892_vm0, %v7588_v2  ;;  %7601 = vtanh.f32 %v3564_v46  ;;  %v3303_v20 = vadd.f32 %v3047_v57, %v1762_v45  ;;  %v6944_v37 = vpop.f32.mrf.mxu0  ;;  %v11664_v48 = vld [vmem:[%s12759_s1 + $0x1] ss:$0 sm:$0xff] }
 0x40a   :  { %v7590_v38 = vpop.eup %7589  ;;  %6095 = vst.msk [vmem:[%s12762_s5 + $0x2c0] sm:$0xff] %vm6006_vm1, %v5168_v51  ;;  %v5183_v22 = vadd.f32 %v11555_v13, %v6944_v37  ;;  %v2632_v29 = vpop.permute.xlu1 %2631  ;;  %v13125_v37 = vld [vmem:[#allocation161_spill] sm:$0xff] }
 0x40b   :  { %7603 = vtanh.f32 %v3565_v39  ;;  %v3304_v21 = vadd.f32 %v3048_v19, %v1763_v14  ;;  %v3566_v52 = vadd.f32 %v11092_v54, %v3303_v20  ;;  %v3049_v49 = vmul.f32 %v11098_v47, %v2632_v29  ;;  %v5177_v59 = vpop.f32.mrf.mxu0  ;;  %7096 = vmatmul.mubr.msk.f32.gmra.mxu1 %vm3892_vm0, %v7590_v38 }
 0x40c   :  { %v7592_v16 = vpop.eup %7591  ;;  %v2636_v60 = vpop.permute.xlu0 %2635  ;;  %6098 = vst.msk [vmem:[%s12762_s5 + $0x2d8] sm:$0xff] %vm6006_vm1, %v5183_v22  ;;  %v5178_v28 = vadd.f32 %v11555_v13, %v5177_v59 }
 0x40d   :  { %v3567_v27 = vadd.f32 %v11092_v54, %v3304_v21  ;;  %v3050_v1 = vmul.f32 %v11098_v47, %v2636_v60  ;;  %7098 = vmatprep.mubr.msk.f32.mxu1 %vm3892_vm0, %v7592_v16  ;;  %7605 = vtanh.f32 %v3566_v52  ;;  %v3305_v8 = vadd.f32 %v3049_v49, %v1764_v61  ;;  %v6947_v9 = vpop.f32.mrf.mxu0 }
 0x40e   :  { %v7594_v62 = vpop.eup %7593  ;;  %6097 = vst.msk [vmem:[%s12762_s5 + $0x2d0] sm:$0xff] %vm6006_vm1, %v5178_v28  ;;  %v5193_v6 = vadd.f32 %v11555_v13, %v6947_v9  ;;  %v2640_v24 = vpop.permute.xlu1 %2639  ;;  %v13127_v9 = vld [vmem:[#allocation163_spill] sm:$0xff] }
 0x40f   :  { %7607 = vtanh.f32 %v3567_v27  ;;  %v3306_v50 = vadd.f32 %v3050_v1, %v1765_v0  ;;  %v3568_v7 = vadd.f32 %v11092_v54, %v3305_v8  ;;  %v3051_v4 = vmul.f32 %v11098_v47, %v2640_v24  ;;  %v5187_v23 = vpop.f32.mrf.mxu0  ;;  %7099 = vmatmul.mubr.msk.f32.gmra.mxu1 %vm3892_vm0, %v7594_v62 }
 0x410   :  { %v7596_v41 = vpop.eup %7595  ;;  %v2644_v17 = vpop.permute.xlu0 %2643  ;;  %6100 = vst.msk [vmem:[%s12762_s5 + $0x2e8] sm:$0xff] %vm6006_vm1, %v5193_v6  ;;  %v5188_v53 = vadd.f32 %v11555_v13, %v5187_v23 }
 0x411   :  { %v3569_v36 = vadd.f32 %v11092_v54, %v3306_v50  ;;  %v3052_v56 = vmul.f32 %v11098_v47, %v2644_v17  ;;  %7101 = vmatprep.mubr.msk.f32.mxu1 %vm3892_vm0, %v7596_v41  ;;  %7609 = vtanh.f32 %v3568_v7  ;;  %v3307_v33 = vadd.f32 %v3051_v4, %v1766_v10  ;;  %v6950_v34 = vpop.f32.mrf.mxu0  ;;  %v11651_v47 = vld [vmem:[%s12759_s1] ss:$0 sm:$0xff] }
 0x412   :  { %v7598_v25 = vpop.eup %7597  ;;  %6099 = vst.msk [vmem:[%s12762_s5 + $0x2e0] sm:$0xff] %vm6006_vm1, %v5188_v53  ;;  %v5203_v54 = vadd.f32 %v11555_v13, %v6950_v34  ;;  %v2648_v26 = vpop.permute.xlu1 %2647  ;;  %v1768_v11 = vmul.f32 %v11651_v47, %v13123_v5  ;;  %v1769_v45 = vmul.f32 %v11651_v47, %v13124_v15  ;;  %v1770_v38 = vmul.f32 %v11651_v47, %v13125_v37  ;;  %v13129_v34 = vld [vmem:[#allocation165_spill] sm:$0xff]  ;;  %v13130_v5 = vld [vmem:[#allocation168_spill] sm:$0xff]  ;;  %v13132_v37 = vld [vmem:[#allocation170_spill] sm:$0xff] }
 0x413   :  { %7611 = vtanh.f32 %v3569_v36  ;;  %v3308_v3 = vadd.f32 %v3052_v56, %v1767_v35  ;;  %v3570_v43 = vadd.f32 %v11658_v12, %v3307_v33  ;;  %v3053_v44 = vmul.f32 %v11664_v48, %v2648_v26  ;;  %v5197_v32 = vpop.f32.mrf.mxu0  ;;  %7102 = vmatmul.mubr.msk.f32.gmra.mxu1 %vm3892_vm0, %v7598_v25 }
 0x414   :  { %v7600_v55 = vpop.eup %7599  ;;  %v2652_v2 = vpop.permute.xlu0 %2651  ;;  %6102 = vst.msk [vmem:[%s12762_s5 + $0x2f8] sm:$0xff] %vm6006_vm1, %v5203_v54  ;;  %v5198_v57 = vadd.f32 %v11555_v13, %v5197_v32  ;;  %v1771_v61 = vmul.f32 %v11651_v47, %v13126_v30  ;;  %v1772_v62 = vmul.f32 %v11651_v47, %v13127_v9  ;;  %v1773_v10 = vmul.f32 %v11651_v47, %v13128_v42  ;;  %v13134_v9 = vld [vmem:[#allocation172_spill] sm:$0xff] }
 0x415   :  { %v3571_v46 = vadd.f32 %v11658_v12, %v3308_v3  ;;  %v3054_v58 = vmul.f32 %v11664_v48, %v2652_v2  ;;  %7104 = vmatprep.mubr.msk.f32.mxu1 %vm3892_vm0, %v7600_v55  ;;  %7613 = vtanh.f32 %v3570_v43  ;;  %v3309_v63 = vadd.f32 %v3053_v44, %v1768_v11  ;;  %v6953_v40 = vpop.f32.mrf.mxu0 }
 0x416   :  { %v7602_v14 = vpop.eup %7601  ;;  %6101 = vst.msk [vmem:[%s12762_s5 + $0x2f0] sm:$0xff] %vm6006_vm1, %v5198_v57  ;;  %v5213_v51 = vadd.f32 %v11555_v13, %v6953_v40  ;;  %v2656_v19 = vpop.permute.xlu1 %2655  ;;  %v1774_v25 = vmul.f32 %v11651_v47, %v13129_v34  ;;  %v1775_v11 = vmul.f32 %v11651_v47, %v13130_v5  ;;  %v13131_v40 = vld [vmem:[#allocation167_spill] sm:$0xff]  ;;  %v13136_v34 = vld [vmem:[#allocation174_spill] sm:$0xff] }
 0x417   :  { %7615 = vtanh.f32 %v3571_v46  ;;  %v3310_v39 = vadd.f32 %v3054_v58, %v1769_v45  ;;  %v3572_v21 = vadd.f32 %v11658_v12, %v3309_v63  ;;  %v3055_v22 = vmul.f32 %v11664_v48, %v2656_v19  ;;  %v5207_v29 = vpop.f32.mrf.mxu0  ;;  %7105 = vmatmul.mubr.msk.f32.gmra.mxu1 %vm3892_vm0, %v7602_v14 }
 0x418   :  { %v7604_v20 = vpop.eup %7603  ;;  %v2660_v16 = vpop.permute.xlu0 %2659  ;;  %6104 = vst.msk [vmem:[%s12762_s5 + $0x308] sm:$0xff] %vm6006_vm1, %v5213_v51  ;;  %v5208_v49 = vadd.f32 %v11555_v13, %v5207_v29  ;;  %v1776_v14 = vmul.f32 %v11651_v47, %v13131_v40  ;;  %v13138_v40 = vld [vmem:[#allocation176_spill] sm:$0xff] }
 0x419   :  { %v3573_v52 = vadd.f32 %v11658_v12, %v3310_v39  ;;  %v3056_v59 = vmul.f32 %v11664_v48, %v2660_v16  ;;  %7107 = vmatprep.mubr.msk.f32.mxu1 %vm3892_vm0, %v7604_v20  ;;  %7617 = vtanh.f32 %v3572_v21  ;;  %v3311_v60 = vadd.f32 %v3055_v22, %v1770_v38  ;;  %v6956_v31 = vpop.f32.mrf.mxu0 }
 0x41a   :  { %v7606_v0 = vpop.eup %7605  ;;  %6103 = vst.msk [vmem:[%s12762_s5 + $0x300] sm:$0xff] %vm6006_vm1, %v5208_v49  ;;  %v5223_v28 = vadd.f32 %v11555_v13, %v6956_v31  ;;  %v2664_v1 = vpop.permute.xlu1 %2663  ;;  %v1777_v38 = vmul.f32 %v11651_v47, %v13132_v37  ;;  %v13133_v31 = vld [vmem:[#allocation169_spill] sm:$0xff] }
 0x41b   :  { %7619 = vtanh.f32 %v3573_v52  ;;  %v3312_v27 = vadd.f32 %v3056_v59, %v1771_v61  ;;  %v3574_v50 = vadd.f32 %v11658_v12, %v3311_v60  ;;  %v3057_v6 = vmul.f32 %v11664_v48, %v2664_v1  ;;  %v5217_v24 = vpop.f32.mrf.mxu0  ;;  %7108 = vmatmul.mubr.msk.f32.gmra.mxu1 %vm3892_vm0, %v7606_v0 }
 0x41c   :  { %v7608_v8 = vpop.eup %7607  ;;  %v2668_v41 = vpop.permute.xlu0 %2667  ;;  %6106 = vst.msk [vmem:[%s12762_s5 + $0x318] sm:$0xff] %vm6006_vm1, %v5223_v28  ;;  %v5218_v4 = vadd.f32 %v11555_v13, %v5217_v24  ;;  %v1778_v0 = vmul.f32 %v11651_v47, %v13133_v31  ;;  %v13140_v31 = vld [vmem:[#allocation178_spill] sm:$0xff] }
 0x41d   :  { %v3575_v7 = vadd.f32 %v11658_v12, %v3312_v27  ;;  %v3058_v23 = vmul.f32 %v11664_v48, %v2668_v41  ;;  %7110 = vmatprep.mubr.msk.f32.mxu1 %vm3892_vm0, %v7608_v8  ;;  %7621 = vtanh.f32 %v3574_v50  ;;  %v3313_v17 = vadd.f32 %v3057_v6, %v1772_v62  ;;  %v6959_v18 = vpop.f32.mrf.mxu0 }
 0x41e   :  { %v7610_v35 = vpop.eup %7609  ;;  %6105 = vst.msk [vmem:[%s12762_s5 + $0x310] sm:$0xff] %vm6006_vm1, %v5218_v4  ;;  %v5233_v53 = vadd.f32 %v11555_v13, %v6959_v18  ;;  %v2672_v56 = vpop.permute.xlu1 %2671  ;;  %v1779_v62 = vmul.f32 %v11651_v47, %v13134_v9  ;;  %v13135_v18 = vld [vmem:[#allocation171_spill] sm:$0xff] }
 0x41f   :  { %7623 = vtanh.f32 %v3575_v7  ;;  %v3314_v36 = vadd.f32 %v3058_v23, %v1773_v10  ;;  %v3576_v3 = vadd.f32 %v11658_v12, %v3313_v17  ;;  %v3059_v54 = vmul.f32 %v11664_v48, %v2672_v56  ;;  %v5227_v26 = vpop.f32.mrf.mxu0  ;;  %7111 = vmatmul.mubr.msk.f32.gmra.mxu1 %vm3892_vm0, %v7610_v35 }
 0x420   :  { %v7612_v33 = vpop.eup %7611  ;;  %v2676_v55 = vpop.permute.xlu0 %2675  ;;  %6108 = vst.msk [vmem:[%s12762_s5 + $0x328] sm:$0xff] %vm6006_vm1, %v5233_v53  ;;  %v5228_v44 = vadd.f32 %v11555_v13, %v5227_v26  ;;  %v1780_v35 = vmul.f32 %v11651_v47, %v13135_v18  ;;  %v13142_v18 = vld [vmem:[#allocation180_spill] sm:$0xff] }
 0x421   :  { %v3577_v43 = vadd.f32 %v11658_v12, %v3314_v36  ;;  %v3060_v32 = vmul.f32 %v11664_v48, %v2676_v55  ;;  %7113 = vmatprep.mubr.msk.f32.mxu1 %vm3892_vm0, %v7612_v33  ;;  %7625 = vtanh.f32 %v3576_v3  ;;  %v3315_v2 = vadd.f32 %v3059_v54, %v1774_v25  ;;  %v6962_v15 = vpop.f32.mrf.mxu0 }
 0x422   :  { %v7614_v45 = vpop.eup %7613  ;;  %6107 = vst.msk [vmem:[%s12762_s5 + $0x320] sm:$0xff] %vm6006_vm1, %v5228_v44  ;;  %v5243_v57 = vadd.f32 %v11555_v13, %v6962_v15  ;;  %v2680_v58 = vpop.permute.xlu1 %2679  ;;  %v1781_v25 = vmul.f32 %v11651_v47, %v13136_v34  ;;  %v13137_v15 = vld [vmem:[#allocation173_spill] sm:$0xff] }
 0x423   :  { %7627 = vtanh.f32 %v3577_v43  ;;  %v3316_v46 = vadd.f32 %v3060_v32, %v1775_v11  ;;  %v3578_v39 = vadd.f32 %v11658_v12, %v3315_v2  ;;  %v3061_v51 = vmul.f32 %v11664_v48, %v2680_v58  ;;  %v5237_v19 = vpop.f32.mrf.mxu0  ;;  %7114 = vmatmul.mubr.msk.f32.gmra.mxu1 %vm3892_vm0, %v7614_v45 }
 0x424   :  { %v7616_v63 = vpop.eup %7615  ;;  %v2684_v20 = vpop.permute.xlu0 %2683  ;;  %6110 = vst.msk [vmem:[%s12762_s5 + $0x338] sm:$0xff] %vm6006_vm1, %v5243_v57  ;;  %v5238_v22 = vadd.f32 %v11555_v13, %v5237_v19  ;;  %v1782_v45 = vmul.f32 %v11651_v47, %v13137_v15  ;;  %v13144_v15 = vld [vmem:[#allocation182_spill] sm:$0xff] }
 0x425   :  { %v3579_v21 = vadd.f32 %v11658_v12, %v3316_v46  ;;  %v3062_v29 = vmul.f32 %v11664_v48, %v2684_v20  ;;  %7116 = vmatprep.mubr.msk.f32.mxu1 %vm3892_vm0, %v7616_v63  ;;  %7629 = vtanh.f32 %v3578_v39  ;;  %v3317_v16 = vadd.f32 %v3061_v51, %v1776_v14  ;;  %v6965_v30 = vpop.f32.mrf.mxu0 }
 0x426   :  { %v7618_v61 = vpop.eup %7617  ;;  %6109 = vst.msk [vmem:[%s12762_s5 + $0x330] sm:$0xff] %vm6006_vm1, %v5238_v22  ;;  %v5253_v49 = vadd.f32 %v11555_v13, %v6965_v30  ;;  %v2688_v59 = vpop.permute.xlu1 %2687  ;;  %v1783_v14 = vmul.f32 %v11651_v47, %v13138_v40  ;;  %v13139_v30 = vld [vmem:[#allocation175_spill] sm:$0xff] }
 0x427   :  { %7631 = vtanh.f32 %v3579_v21  ;;  %v3318_v52 = vadd.f32 %v3062_v29, %v1777_v38  ;;  %v3580_v27 = vadd.f32 %v11658_v12, %v3317_v16  ;;  %v3063_v28 = vmul.f32 %v11664_v48, %v2688_v59  ;;  %v5247_v1 = vpop.f32.mrf.mxu0  ;;  %7117 = vmatmul.mubr.msk.f32.gmra.mxu1 %vm3892_vm0, %v7618_v61 }
 0x428   :  { %v7620_v60 = vpop.eup %7619  ;;  %v2692_v8 = vpop.permute.xlu0 %2691  ;;  %6112 = vst.msk [vmem:[%s12762_s5 + $0x348] sm:$0xff] %vm6006_vm1, %v5253_v49  ;;  %v5248_v6 = vadd.f32 %v11555_v13, %v5247_v1  ;;  %v1784_v61 = vmul.f32 %v11651_v47, %v13139_v30  ;;  %v13146_v30 = vld [vmem:[#allocation184_spill] sm:$0xff] }
 0x429   :  { %v3581_v50 = vadd.f32 %v11658_v12, %v3318_v52  ;;  %v3064_v24 = vmul.f32 %v11664_v48, %v2692_v8  ;;  %7119 = vmatprep.mubr.msk.f32.mxu1 %vm3892_vm0, %v7620_v60  ;;  %7633 = vtanh.f32 %v3580_v27  ;;  %v3319_v41 = vadd.f32 %v3063_v28, %v1778_v0  ;;  %v6968_v42 = vpop.f32.mrf.mxu0 }
 0x42a   :  { %v7622_v10 = vpop.eup %7621  ;;  %6111 = vst.msk [vmem:[%s12762_s5 + $0x340] sm:$0xff] %vm6006_vm1, %v5248_v6  ;;  %v5263_v4 = vadd.f32 %v11555_v13, %v6968_v42  ;;  %v2696_v23 = vpop.permute.xlu1 %2695  ;;  %v1785_v0 = vmul.f32 %v11651_v47, %v13140_v31  ;;  %v13141_v42 = vld [vmem:[#allocation177_spill] sm:$0xff] }
 0x42b   :  { %7635 = vtanh.f32 %v3581_v50  ;;  %v3320_v7 = vadd.f32 %v3064_v24, %v1779_v62  ;;  %v3582_v36 = vadd.f32 %v11658_v12, %v3319_v41  ;;  %v3065_v53 = vmul.f32 %v11664_v48, %v2696_v23  ;;  %v5257_v56 = vpop.f32.mrf.mxu0  ;;  %7120 = vmatmul.mubr.msk.f32.gmra.mxu1 %vm3892_vm0, %v7622_v10 }
 0x42c   :  { %v7624_v17 = vpop.eup %7623  ;;  %v2700_v33 = vpop.permute.xlu0 %2699  ;;  %6114 = vst.msk [vmem:[%s12762_s5 + $0x358] sm:$0xff] %vm6006_vm1, %v5263_v4  ;;  %v5258_v54 = vadd.f32 %v11555_v13, %v5257_v56  ;;  %v1786_v10 = vmul.f32 %v11651_v47, %v13141_v42  ;;  %v13148_v42 = vld [vmem:[#allocation186_spill] sm:$0xff] }
 0x42d   :  { %v3583_v3 = vadd.f32 %v11658_v12, %v3320_v7  ;;  %v3066_v26 = vmul.f32 %v11664_v48, %v2700_v33  ;;  %7122 = vmatprep.mubr.msk.f32.mxu1 %vm3892_vm0, %v7624_v17  ;;  %7637 = vtanh.f32 %v3582_v36  ;;  %v3321_v55 = vadd.f32 %v3065_v53, %v1780_v35  ;;  %v6971_v5 = vpop.f32.mrf.mxu0 }
 0x42e   :  { %v7626_v11 = vpop.eup %7625  ;;  %6113 = vst.msk [vmem:[%s12762_s5 + $0x350] sm:$0xff] %vm6006_vm1, %v5258_v54  ;;  %v5273_v44 = vadd.f32 %v11555_v13, %v6971_v5  ;;  %v2704_v32 = vpop.permute.xlu1 %2703  ;;  %v1787_v35 = vmul.f32 %v11651_v47, %v13142_v18  ;;  %v13143_v5 = vld [vmem:[#allocation179_spill] sm:$0xff] }
 0x42f   :  { %7639 = vtanh.f32 %v3583_v3  ;;  %v3322_v43 = vadd.f32 %v3066_v26, %v1781_v25  ;;  %v3584_v46 = vadd.f32 %v11658_v12, %v3321_v55  ;;  %v3067_v57 = vmul.f32 %v11664_v48, %v2704_v32  ;;  %v5267_v58 = vpop.f32.mrf.mxu0  ;;  %7123 = vmatmul.mubr.msk.f32.gmra.mxu1 %vm3892_vm0, %v7626_v11 }
 0x430   :  { %v7628_v2 = vpop.eup %7627  ;;  %v2708_v63 = vpop.permute.xlu0 %2707  ;;  %6116 = vst.msk [vmem:[%s12762_s5 + $0x368] sm:$0xff] %vm6006_vm1, %v5273_v44  ;;  %v5268_v51 = vadd.f32 %v11555_v13, %v5267_v58  ;;  %v1788_v11 = vmul.f32 %v11651_v47, %v13143_v5  ;;  %v13150_v5 = vld [vmem:[#allocation188_spill] sm:$0xff] }
 0x431   :  { %v3585_v39 = vadd.f32 %v11658_v12, %v3322_v43  ;;  %v3068_v19 = vmul.f32 %v11664_v48, %v2708_v63  ;;  %7125 = vmatprep.mubr.msk.f32.mxu1 %vm3892_vm0, %v7628_v2  ;;  %7641 = vtanh.f32 %v3584_v46  ;;  %v3323_v20 = vadd.f32 %v3067_v57, %v1782_v45  ;;  %v6974_v37 = vpop.f32.mrf.mxu0 }
 0x432   :  { %v7630_v38 = vpop.eup %7629  ;;  %6115 = vst.msk [vmem:[%s12762_s5 + $0x360] sm:$0xff] %vm6006_vm1, %v5268_v51  ;;  %v5283_v22 = vadd.f32 %v11555_v13, %v6974_v37  ;;  %v2712_v29 = vpop.permute.xlu1 %2711  ;;  %v1789_v45 = vmul.f32 %v11651_v47, %v13144_v15  ;;  %v13145_v37 = vld [vmem:[#allocation181_spill] sm:$0xff] }
 0x433   :  { %7643 = vtanh.f32 %v3585_v39  ;;  %v3324_v21 = vadd.f32 %v3068_v19, %v1783_v14  ;;  %v3586_v52 = vadd.f32 %v11658_v12, %v3323_v20  ;;  %v3069_v49 = vmul.f32 %v11664_v48, %v2712_v29  ;;  %v5277_v59 = vpop.f32.mrf.mxu0  ;;  %7126 = vmatmul.mubr.msk.f32.gmra.mxu1 %vm3892_vm0, %v7630_v38 }
 0x434   :  { %v7632_v16 = vpop.eup %7631  ;;  %v2716_v60 = vpop.permute.xlu0 %2715  ;;  %6118 = vst.msk [vmem:[%s12762_s5 + $0x378] sm:$0xff] %vm6006_vm1, %v5283_v22  ;;  %v5278_v28 = vadd.f32 %v11555_v13, %v5277_v59  ;;  %v1790_v38 = vmul.f32 %v11651_v47, %v13145_v37 }
 0x435   :  { %v3587_v27 = vadd.f32 %v11658_v12, %v3324_v21  ;;  %v3070_v1 = vmul.f32 %v11664_v48, %v2716_v60  ;;  %7128 = vmatprep.mubr.msk.f32.mxu1 %vm3892_vm0, %v7632_v16  ;;  %7645 = vtanh.f32 %v3586_v52  ;;  %v3325_v8 = vadd.f32 %v3069_v49, %v1784_v61  ;;  %v6977_v9 = vpop.f32.mrf.mxu0 }
 0x436   :  { %v7634_v62 = vpop.eup %7633  ;;  %6117 = vst.msk [vmem:[%s12762_s5 + $0x370] sm:$0xff] %vm6006_vm1, %v5278_v28  ;;  %v5293_v6 = vadd.f32 %v11555_v13, %v6977_v9  ;;  %v2720_v24 = vpop.permute.xlu1 %2719  ;;  %v1791_v61 = vmul.f32 %v11651_v47, %v13146_v30  ;;  %v13147_v9 = vld [vmem:[#allocation183_spill] sm:$0xff] }
 0x437   :  { %7647 = vtanh.f32 %v3587_v27  ;;  %v3326_v50 = vadd.f32 %v3070_v1, %v1785_v0  ;;  %v3588_v7 = vadd.f32 %v11658_v12, %v3325_v8  ;;  %v3071_v4 = vmul.f32 %v11664_v48, %v2720_v24  ;;  %v5287_v23 = vpop.f32.mrf.mxu0  ;;  %7129 = vmatmul.mubr.msk.f32.gmra.mxu1 %vm3892_vm0, %v7634_v62 }
 0x438   :  { %v7636_v41 = vpop.eup %7635  ;;  %v2724_v17 = vpop.permute.xlu0 %2723  ;;  %6120 = vst.msk [vmem:[%s12762_s5 + $0x388] sm:$0xff] %vm6006_vm1, %v5293_v6  ;;  %v5288_v53 = vadd.f32 %v11555_v13, %v5287_v23  ;;  %v1792_v62 = vmul.f32 %v11651_v47, %v13147_v9 }
 0x439   :  { %v3589_v36 = vadd.f32 %v11658_v12, %v3326_v50  ;;  %v3072_v56 = vmul.f32 %v11664_v48, %v2724_v17  ;;  %7131 = vmatprep.mubr.msk.f32.mxu1 %vm3892_vm0, %v7636_v41  ;;  %7649 = vtanh.f32 %v3588_v7  ;;  %v3327_v33 = vadd.f32 %v3071_v4, %v1786_v10  ;;  %v6980_v34 = vpop.f32.mrf.mxu0 }
 0x43a   :  { %v7638_v25 = vpop.eup %7637  ;;  %6119 = vst.msk [vmem:[%s12762_s5 + $0x380] sm:$0xff] %vm6006_vm1, %v5288_v53  ;;  %v5303_v54 = vadd.f32 %v11555_v13, %v6980_v34  ;;  %v2728_v26 = vpop.permute.xlu1 %2727  ;;  %v1793_v10 = vmul.f32 %v11651_v47, %v13148_v42  ;;  %v13149_v34 = vld [vmem:[#allocation185_spill] sm:$0xff] }
 0x43b   :  { %7651 = vtanh.f32 %v3589_v36  ;;  %v3328_v3 = vadd.f32 %v3072_v56, %v1787_v35  ;;  %v3590_v43 = vadd.f32 %v11658_v12, %v3327_v33  ;;  %v3073_v44 = vmul.f32 %v11664_v48, %v2728_v26  ;;  %v5297_v32 = vpop.f32.mrf.mxu0  ;;  %7132 = vmatmul.mubr.msk.f32.gmra.mxu1 %vm3892_vm0, %v7638_v25 }
 0x43c   :  { %v7640_v55 = vpop.eup %7639  ;;  %v2732_v2 = vpop.permute.xlu0 %2731  ;;  %6122 = vst.msk [vmem:[%s12762_s5 + $0x398] sm:$0xff] %vm6006_vm1, %v5303_v54  ;;  %v5298_v57 = vadd.f32 %v11555_v13, %v5297_v32  ;;  %v1794_v25 = vmul.f32 %v11651_v47, %v13149_v34 }
 0x43d   :  { %v3591_v46 = vadd.f32 %v11658_v12, %v3328_v3  ;;  %v3074_v58 = vmul.f32 %v11664_v48, %v2732_v2  ;;  %7134 = vmatprep.mubr.msk.f32.mxu1 %vm3892_vm0, %v7640_v55  ;;  %7653 = vtanh.f32 %v3590_v43  ;;  %v3329_v63 = vadd.f32 %v3073_v44, %v1788_v11  ;;  %v6983_v40 = vpop.f32.mrf.mxu0 }
 0x43e   :  { %v7642_v14 = vpop.eup %7641  ;;  %6121 = vst.msk [vmem:[%s12762_s5 + $0x390] sm:$0xff] %vm6006_vm1, %v5298_v57  ;;  %v5313_v51 = vadd.f32 %v11555_v13, %v6983_v40  ;;  %v2736_v19 = vpop.permute.xlu1 %2735  ;;  %v1795_v11 = vmul.f32 %v11651_v47, %v13150_v5 }
 0x43f   :  { %7655 = vtanh.f32 %v3591_v46  ;;  %v3330_v39 = vadd.f32 %v3074_v58, %v1789_v45  ;;  %v3592_v21 = vadd.f32 %v11658_v12, %v3329_v63  ;;  %v3075_v22 = vmul.f32 %v11664_v48, %v2736_v19  ;;  %v5307_v29 = vpop.f32.mrf.mxu0  ;;  %7135 = vmatmul.mubr.msk.f32.gmra.mxu1 %vm3892_vm0, %v7642_v14  ;;  %v13151_v58 = vld [vmem:[#allocation187_spill] sm:$0xff]  ;;  %v13152_v19 = vld [vmem:[#allocation190_spill] sm:$0xff] }
 0x440   :  { %v7644_v20 = vpop.eup %7643  ;;  %v2740_v16 = vpop.permute.xlu0 %2739  ;;  %6124 = vst.msk [vmem:[%s12762_s5 + $0x3a8] sm:$0xff] %vm6006_vm1, %v5313_v51  ;;  %v5308_v49 = vadd.f32 %v11555_v13, %v5307_v29  ;;  %v1796_v63 = vmul.f32 %v11651_v47, %v13151_v58  ;;  %v13158_v58 = vld [vmem:[#allocation196_spill] sm:$0xff] }
 0x441   :  { %v3593_v52 = vadd.f32 %v11658_v12, %v3330_v39  ;;  %v3076_v59 = vmul.f32 %v11664_v48, %v2740_v16  ;;  %7137 = vmatprep.mubr.msk.f32.mxu1 %vm3892_vm0, %v7644_v20  ;;  %7657 = vtanh.f32 %v3592_v21  ;;  %v3331_v60 = vadd.f32 %v3075_v22, %v1790_v38  ;;  %v6986_v31 = vpop.f32.mrf.mxu0 }
 0x442   :  { %v7646_v0 = vpop.eup %7645  ;;  %6123 = vst.msk [vmem:[%s12762_s5 + $0x3a0] sm:$0xff] %vm6006_vm1, %v5308_v49  ;;  %v5323_v28 = vadd.f32 %v11555_v13, %v6986_v31  ;;  %v2744_v1 = vpop.permute.xlu1 %2743  ;;  %v1797_v20 = vmul.f32 %v11651_v47, %v13152_v19 }
 0x443   :  { %7659 = vtanh.f32 %v3593_v52  ;;  %v3332_v27 = vadd.f32 %v3076_v59, %v1791_v61  ;;  %v3594_v50 = vadd.f32 %v11658_v12, %v3331_v60  ;;  %v3077_v6 = vmul.f32 %v11664_v48, %v2744_v1  ;;  %v5317_v24 = vpop.f32.mrf.mxu0  ;;  %7138 = vmatmul.mubr.msk.f32.gmra.mxu1 %vm3892_vm0, %v7646_v0  ;;  %v13153_v59 = vld [vmem:[#allocation189_spill] sm:$0xff]  ;;  %v13154_v1 = vld [vmem:[#allocation192_spill] sm:$0xff] }
 0x444   :  { %v7648_v8 = vpop.eup %7647  ;;  %v2748_v41 = vpop.permute.xlu0 %2747  ;;  %6126 = vst.msk [vmem:[%s12762_s5 + $0x3b8] sm:$0xff] %vm6006_vm1, %v5323_v28  ;;  %v5318_v4 = vadd.f32 %v11555_v13, %v5317_v24  ;;  %v1798_v60 = vmul.f32 %v11651_v47, %v13153_v59  ;;  %v13160_v59 = vld [vmem:[#allocation198_spill] sm:$0xff] }
 0x445   :  { %v3595_v7 = vadd.f32 %v11658_v12, %v3332_v27  ;;  %v3078_v23 = vmul.f32 %v11664_v48, %v2748_v41  ;;  %7140 = vmatprep.mubr.msk.f32.mxu1 %vm3892_vm0, %v7648_v8  ;;  %7661 = vtanh.f32 %v3594_v50  ;;  %v3333_v17 = vadd.f32 %v3077_v6, %v1792_v62  ;;  %v6989_v18 = vpop.f32.mrf.mxu0 }
 0x446   :  { %v7650_v35 = vpop.eup %7649  ;;  %6125 = vst.msk [vmem:[%s12762_s5 + $0x3b0] sm:$0xff] %vm6006_vm1, %v5318_v4  ;;  %v5333_v53 = vadd.f32 %v11555_v13, %v6989_v18  ;;  %v2752_v56 = vpop.permute.xlu1 %2751  ;;  %v1799_v8 = vmul.f32 %v11651_v47, %v13154_v1 }
 0x447   :  { %7663 = vtanh.f32 %v3595_v7  ;;  %v3334_v36 = vadd.f32 %v3078_v23, %v1793_v10  ;;  %v3596_v3 = vadd.f32 %v11658_v12, %v3333_v17  ;;  %v3079_v54 = vmul.f32 %v11664_v48, %v2752_v56  ;;  %v5327_v26 = vpop.f32.mrf.mxu0  ;;  %7141 = vmatmul.mubr.msk.f32.gmra.mxu1 %vm3892_vm0, %v7650_v35  ;;  %v13155_v23 = vld [vmem:[#allocation191_spill] sm:$0xff]  ;;  %v13156_v56 = vld [vmem:[#allocation194_spill] sm:$0xff] }
 0x448   :  { %v7652_v33 = vpop.eup %7651  ;;  %v2756_v55 = vpop.permute.xlu0 %2755  ;;  %6128 = vst.msk [vmem:[%s12762_s5 + $0x3c8] sm:$0xff] %vm6006_vm1, %v5333_v53  ;;  %v5328_v44 = vadd.f32 %v11555_v13, %v5327_v26  ;;  %v1800_v17 = vmul.f32 %v11651_v47, %v13155_v23  ;;  %v13162_v23 = vld [vmem:[#allocation200_spill] sm:$0xff] }
 0x449   :  { %v3597_v43 = vadd.f32 %v11658_v12, %v3334_v36  ;;  %v3080_v32 = vmul.f32 %v11664_v48, %v2756_v55  ;;  %7143 = vmatprep.mubr.msk.f32.mxu1 %vm3892_vm0, %v7652_v33  ;;  %7665 = vtanh.f32 %v3596_v3  ;;  %v3335_v2 = vadd.f32 %v3079_v54, %v1794_v25 }
 0x44a   :  { %v7654_v15 = vpop.eup %7653  ;;  %6127 = vst.msk [vmem:[%s12762_s5 + $0x3c0] sm:$0xff] %vm6006_vm1, %v5328_v44  ;;  %v2760_v46 = vpop.permute.xlu1 %2759  ;;  %v1801_v33 = vmul.f32 %v11651_v47, %v13156_v56 }
 0x44b   :  { %7667 = vtanh.f32 %v3597_v43  ;;  %v3336_v45 = vadd.f32 %v3080_v32, %v1795_v11  ;;  %v3598_v40 = vadd.f32 %v11658_v12, %v3335_v2  ;;  %v3081_v14 = vmul.f32 %v11664_v48, %v2760_v46  ;;  %v7001_v51 = vpop.f32.mrf.mxu1  ;;  %7144 = vmatmul.mubr.msk.f32.gmra.mxu1 %vm3892_vm0, %v7654_v15  ;;  %v13157_v32 = vld [vmem:[#allocation193_spill] sm:$0xff] }
 0x44c   :  { %v7656_v57 = vpop.eup %7655  ;;  %v2764_v39 = vpop.permute.xlu0 %2763  ;;  %v5373_v21 = vadd.f32 %v11555_v13, %v7001_v51  ;;  %v1802_v2 = vmul.f32 %v11651_v47, %v13157_v32  ;;  %v13164_v32 = vld [vmem:[#allocation202_spill] sm:$0xff] }
 0x44d   :  { %v3599_v37 = vadd.f32 %v11658_v12, %v3336_v45  ;;  %v3082_v38 = vmul.f32 %v11664_v48, %v2764_v39  ;;  %7146 = vmatprep.mubr.msk.f32.mxu1 %vm3892_vm0, %v7656_v57  ;;  %7669 = vtanh.f32 %v3598_v40  ;;  %v3337_v22 = vadd.f32 %v3081_v14, %v1796_v63  ;;  %v5367_v29 = vpop.f32.mrf.mxu1 }
 0x44e   :  { %v7658_v16 = vpop.eup %7657  ;;  %6136 = vst.msk [vmem:[%s12762_s5 + $0x408] sm:$0xff] %vm6006_vm1, %v5373_v21  ;;  %v5368_v61 = vadd.f32 %v11555_v13, %v5367_v29  ;;  %v2768_v52 = vpop.permute.xlu1 %2767  ;;  %v1803_v63 = vmul.f32 %v11651_v47, %v13158_v58  ;;  %v13159_v29 = vld [vmem:[#allocation195_spill] sm:$0xff] }
 0x44f   :  { %7671 = vtanh.f32 %v3599_v37  ;;  %v3338_v30 = vadd.f32 %v3082_v38, %v1797_v20  ;;  %v3600_v31 = vadd.f32 %v11658_v12, %v3337_v22  ;;  %v3083_v0 = vmul.f32 %v11664_v48, %v2768_v52  ;;  %v7004_v28 = vpop.f32.mrf.mxu1  ;;  %7147 = vmatmul.mubr.msk.f32.gmra.mxu1 %vm3892_vm0, %v7658_v16 }
 0x450   :  { %v7660_v49 = vpop.eup %7659  ;;  %v2772_v27 = vpop.permute.xlu0 %2771  ;;  %6135 = vst.msk [vmem:[%s12762_s5 + $0x400] sm:$0xff] %vm6006_vm1, %v5368_v61  ;;  %v5383_v50 = vadd.f32 %v11555_v13, %v7004_v28  ;;  %v1804_v16 = vmul.f32 %v11651_v47, %v13159_v29  ;;  %v13166_v29 = vld [vmem:[#allocation204_spill] sm:$0xff] }
 0x451   :  { %v3601_v9 = vadd.f32 %v11658_v12, %v3338_v30  ;;  %v3084_v62 = vmul.f32 %v11664_v48, %v2772_v27  ;;  %7149 = vmatprep.mubr.msk.f32.mxu1 %vm3892_vm0, %v7660_v49  ;;  %7673 = vtanh.f32 %v3600_v31  ;;  %v3339_v6 = vadd.f32 %v3083_v0, %v1798_v60  ;;  %v5377_v24 = vpop.f32.mrf.mxu1 }
 0x452   :  { %v7662_v41 = vpop.eup %7661  ;;  %6138 = vst.msk [vmem:[%s12762_s5 + $0x418] sm:$0xff] %vm6006_vm1, %v5383_v50  ;;  %v5378_v10 = vadd.f32 %v11555_v13, %v5377_v24  ;;  %v2776_v7 = vpop.permute.xlu1 %2775  ;;  %v1805_v60 = vmul.f32 %v11651_v47, %v13160_v59  ;;  %v13161_v24 = vld [vmem:[#allocation197_spill] sm:$0xff] }
 0x453   :  { %7675 = vtanh.f32 %v3601_v9  ;;  %v3340_v42 = vadd.f32 %v3084_v62, %v1799_v8  ;;  %v3602_v18 = vadd.f32 %v11658_v12, %v3339_v6  ;;  %v3085_v35 = vmul.f32 %v11664_v48, %v2776_v7  ;;  %v7007_v53 = vpop.f32.mrf.mxu1  ;;  %7150 = vmatmul.mubr.msk.f32.gmra.mxu1 %vm3892_vm0, %v7662_v41  ;;  %v12040_v62 = vld [vmem:[%s12761_s4] ss:$0 sm:$0xff] }
 0x454   :  { %v7664_v4 = vpop.eup %7663  ;;  %v2780_v36 = vpop.permute.xlu0 %2779  ;;  %6137 = vst.msk [vmem:[%s12762_s5 + $0x410] sm:$0xff] %vm6006_vm1, %v5378_v10  ;;  %v5393_v3 = vadd.f32 %v11555_v13, %v7007_v53  ;;  %v1806_v41 = vmul.f32 %v11651_v47, %v13161_v24  ;;  %v13168_v24 = vld [vmem:[#allocation203_spill] sm:$0xff] }
 0x455   :  { %v3603_v34 = vadd.f32 %v11658_v12, %v3340_v42  ;;  %v3086_v25 = vmul.f32 %v11664_v48, %v2780_v36  ;;  %7152 = vmatprep.mubr.msk.f32.mxu1 %vm3892_vm0, %v7664_v4  ;;  %7677 = vtanh.f32 %v3602_v18  ;;  %v3341_v54 = vadd.f32 %v3085_v35, %v1800_v17  ;;  %v5387_v26 = vpop.f32.mrf.mxu1 }
 0x456   :  { %v7666_v55 = vpop.eup %7665  ;;  %6140 = vst.msk [vmem:[%s12762_s5 + $0x428] sm:$0xff] %vm6006_vm1, %v5393_v3  ;;  %v5388_v11 = vadd.f32 %v11555_v13, %v5387_v26  ;;  %v2784_v43 = vpop.permute.xlu1 %2783  ;;  %v1807_v17 = vmul.f32 %v11651_v47, %v13162_v23  ;;  %v13163_v26 = vld [vmem:[#allocation199_spill] sm:$0xff] }
 0x457   :  { %7679 = vtanh.f32 %v3603_v34  ;;  %v3342_v5 = vadd.f32 %v3086_v25, %v1801_v33  ;;  %v3604_v15 = vadd.f32 %v11658_v12, %v3341_v54  ;;  %v3087_v45 = vmul.f32 %v11664_v48, %v2784_v43  ;;  %v7010_v57 = vpop.f32.mrf.mxu1  ;;  %7153 = vmatmul.mubr.msk.f32.gmra.mxu1 %vm3892_vm0, %v7666_v55 }
 0x458   :  { %v7668_v44 = vpop.eup %7667  ;;  %v2788_v46 = vpop.permute.xlu0 %2787  ;;  %6139 = vst.msk [vmem:[%s12762_s5 + $0x420] sm:$0xff] %vm6006_vm1, %v5388_v11  ;;  %v5403_v39 = vadd.f32 %v11555_v13, %v7010_v57  ;;  %v1808_v55 = vmul.f32 %v11651_v47, %v13163_v26  ;;  %v13170_v26 = vld [vmem:[#allocation206_spill] sm:$0xff] }
 0x459   :  { %v3605_v40 = vadd.f32 %v11658_v12, %v3342_v5  ;;  %v3088_v14 = vmul.f32 %v11664_v48, %v2788_v46  ;;  %7155 = vmatprep.mubr.msk.f32.mxu1 %vm3892_vm0, %v7668_v44  ;;  %7681 = vtanh.f32 %v3604_v15  ;;  %v3343_v51 = vadd.f32 %v3087_v45, %v1802_v2  ;;  %v5397_v19 = vpop.f32.mrf.mxu1 }
 0x45a   :  { %v7670_v20 = vpop.eup %7669  ;;  %6142 = vst.msk [vmem:[%s12762_s5 + $0x438] sm:$0xff] %vm6006_vm1, %v5403_v39  ;;  %v5398_v38 = vadd.f32 %v11555_v13, %v5397_v19  ;;  %v2792_v21 = vpop.permute.xlu1 %2791  ;;  %v1809_v2 = vmul.f32 %v11651_v47, %v13164_v32  ;;  %v13165_v19 = vld [vmem:[#allocation201_spill] sm:$0xff] }
 0x45b   :  { %7683 = vtanh.f32 %v3605_v40  ;;  %v3344_v37 = vadd.f32 %v3088_v14, %v1803_v63  ;;  %v3606_v30 = vadd.f32 %v11658_v12, %v3343_v51  ;;  %v3089_v61 = vmul.f32 %v11664_v48, %v2792_v21  ;;  %v7013_v49 = vpop.f32.mrf.mxu1  ;;  %7156 = vmatmul.mubr.msk.f32.gmra.mxu1 %vm3892_vm0, %v7670_v20 }
 0x45c   :  { %v7672_v22 = vpop.eup %7671  ;;  %v2796_v52 = vpop.permute.xlu0 %2795  ;;  %6141 = vst.msk [vmem:[%s12762_s5 + $0x430] sm:$0xff] %vm6006_vm1, %v5398_v38  ;;  %v5413_v27 = vadd.f32 %v11555_v13, %v7013_v49  ;;  %v1810_v20 = vmul.f32 %v11651_v47, %v13165_v19  ;;  %v13172_v19 = vld [vmem:[#allocation205_spill] sm:$0xff] }
 0x45d   :  { %v3607_v31 = vadd.f32 %v11658_v12, %v3344_v37  ;;  %v3090_v0 = vmul.f32 %v11664_v48, %v2796_v52  ;;  %7158 = vmatprep.mubr.msk.f32.mxu1 %vm3892_vm0, %v7672_v22  ;;  %7685 = vtanh.f32 %v3606_v30  ;;  %v3345_v28 = vadd.f32 %v3089_v61, %v1804_v16  ;;  %v5407_v1 = vpop.f32.mrf.mxu1 }
 0x45e   :  { %v7674_v8 = vpop.eup %7673  ;;  %6144 = vst.msk [vmem:[%s12762_s5 + $0x448] sm:$0xff] %vm6006_vm1, %v5413_v27  ;;  %v5408_v13 = vadd.f32 %v12040_v62, %v5407_v1  ;;  %v2800_v50 = vpop.permute.xlu1 %2799  ;;  %v1811_v16 = vmul.f32 %v11651_v47, %v13166_v29  ;;  %v13167_v1 = vld [vmem:[#allocation75_spill] sm:$0xff] }
 0x45f   :  { %7687 = vtanh.f32 %v3607_v31  ;;  %v3346_v9 = vadd.f32 %v3090_v0, %v1805_v60  ;;  %v3608_v42 = vadd.f32 %v11658_v12, %v3345_v28  ;;  %v3091_v10 = vmul.f32 %v11664_v48, %v2800_v50  ;;  %v7016_v4 = vpop.f32.mrf.mxu1  ;;  %7159 = vmatmul.mubr.msk.f32.gmra.mxu1 %vm3892_vm0, %v7674_v8 }
 0x460   :  { %v7676_v6 = vpop.eup %7675  ;;  %v2804_v7 = vpop.permute.xlu0 %2803  ;;  %6143 = vst.msk [vmem:[%s12762_s5 + $0x440] sm:$0xff] %vm6006_vm1, %v5408_v13  ;;  %v5423_v36 = vadd.f32 %v12040_v62, %v7016_v4  ;;  %v1684_v8 = vmul.f32 %v11651_v47, %v13167_v1  ;;  %v13174_v1 = vld [vmem:[#allocation208_spill] sm:$0xff] }
 0x461   :  { %v3609_v18 = vadd.f32 %v11658_v12, %v3346_v9  ;;  %v3092_v35 = vmul.f32 %v11664_v48, %v2804_v7  ;;  %7161 = vmatprep.mubr.msk.f32.mxu1 %vm3892_vm0, %v7676_v6  ;;  %7689 = vtanh.f32 %v3608_v42  ;;  %v3347_v53 = vadd.f32 %v3091_v10, %v1806_v41  ;;  %v5417_v56 = vpop.f32.mrf.mxu1 }
 0x462   :  { %v7678_v33 = vpop.eup %7677  ;;  %6146 = vst.msk [vmem:[%s12762_s5 + $0x458] sm:$0xff] %vm6006_vm1, %v5423_v36  ;;  %v5418_v25 = vadd.f32 %v12040_v62, %v5417_v56  ;;  %v2808_v3 = vpop.permute.xlu1 %2807  ;;  %v1812_v41 = vmul.f32 %v11651_v47, %v13168_v24  ;;  %v13169_v56 = vld [vmem:[#allocation78_spill] sm:$0xff] }
 0x463   :  { %7691 = vtanh.f32 %v3609_v18  ;;  %v3348_v34 = vadd.f32 %v3092_v35, %v1807_v17  ;;  %v3610_v5 = vadd.f32 %v11658_v12, %v3347_v53  ;;  %v3093_v11 = vmul.f32 %v11664_v48, %v2808_v3  ;;  %v7019_v44 = vpop.f32.mrf.mxu1  ;;  %7162 = vmatmul.mubr.msk.f32.gmra.mxu1 %vm3892_vm0, %v7678_v33 }
 0x464   :  { %v7680_v54 = vpop.eup %7679  ;;  %v2812_v43 = vpop.permute.xlu0 %2811  ;;  %6145 = vst.msk [vmem:[%s12762_s5 + $0x450] sm:$0xff] %vm6006_vm1, %v5418_v25  ;;  %v5433_v46 = vadd.f32 %v12040_v62, %v7019_v44  ;;  %v1685_v33 = vmul.f32 %v11651_v47, %v13169_v56  ;;  %v13176_v56 = vld [vmem:[#allocation207_spill] sm:$0xff] }
 0x465   :  { %v3611_v15 = vadd.f32 %v11658_v12, %v3348_v34  ;;  %v3094_v45 = vmul.f32 %v11664_v48, %v2812_v43  ;;  %7164 = vmatprep.mubr.msk.f32.mxu1 %vm3892_vm0, %v7680_v54  ;;  %7693 = vtanh.f32 %v3610_v5  ;;  %v3349_v57 = vadd.f32 %v3093_v11, %v1808_v55  ;;  %v5427_v58 = vpop.f32.mrf.mxu1 }
 0x466   :  { %v7682_v63 = vpop.eup %7681  ;;  %6148 = vst.msk [vmem:[%s12762_s5 + $0x468] sm:$0xff] %vm6006_vm1, %v5433_v46  ;;  %v5428_v14 = vadd.f32 %v12040_v62, %v5427_v58  ;;  %v2816_v39 = vpop.permute.xlu1 %2815  ;;  %v1813_v55 = vmul.f32 %v11651_v47, %v13170_v26  ;;  %v13171_v46 = vld [vmem:[#allocation77_spill] sm:$0xff]  ;;  %v12150_v58 = vld [vmem:[%s12760_s2] ss:$0 sm:$0xff] }
 0x467   :  { %7695 = vtanh.f32 %v3611_v15  ;;  %v3350_v40 = vadd.f32 %v3094_v45, %v1809_v2  ;;  %v3612_v37 = vadd.f32 %v11658_v12, %v3349_v57  ;;  %v3095_v38 = vmul.f32 %v11664_v48, %v2816_v39  ;;  %v7022_v22 = vpop.f32.mrf.mxu1  ;;  %7165 = vmatmul.mubr.msk.f32.gmra.mxu1 %vm3892_vm0, %v7682_v63 }
 0x468   :  { %v7684_v51 = vpop.eup %7683  ;;  %v2820_v21 = vpop.permute.xlu0 %2819  ;;  %6147 = vst.msk [vmem:[%s12762_s5 + $0x460] sm:$0xff] %vm6006_vm1, %v5428_v14  ;;  %v5443_v52 = vadd.f32 %v12040_v62, %v7022_v22 }
 0x469   :  { %v3613_v30 = vadd.f32 %v11658_v12, %v3350_v40  ;;  %v3096_v61 = vmul.f32 %v11664_v48, %v2820_v21  ;;  %7167 = vmatprep.mubr.msk.f32.mxu1 %vm3892_vm0, %v7684_v51  ;;  %7697 = vtanh.f32 %v3612_v37  ;;  %v3351_v49 = vadd.f32 %v3095_v38, %v1810_v20  ;;  %v5437_v59 = vpop.f32.mrf.mxu1  ;;  %v7998_v40 = vld [vmem:[%s12759_s1 + $0x1] ss:$0 sm:$0xff] }
 0x46a   :  { %v7686_v60 = vpop.eup %7685  ;;  %6150 = vst.msk [vmem:[%s12762_s5 + $0x478] sm:$0xff] %vm6006_vm1, %v5443_v52  ;;  %v5438_v0 = vadd.f32 %v12040_v62, %v5437_v59  ;;  %v2312_v27 = vpop.permute.xlu1 %2311  ;;  %v13173_v59 = vld [vmem:[#allocation80_spill] sm:$0xff] }
 0x46b   :  { %7699 = vtanh.f32 %v3613_v30  ;;  %v3352_v31 = vadd.f32 %v3096_v61, %v1811_v16  ;;  %v3614_v9 = vadd.f32 %v11658_v12, %v3351_v49  ;;  %v2969_v13 = vmul.f32 %v11664_v48, %v2312_v27  ;;  %v7025_v6 = vpop.f32.mrf.mxu1  ;;  %7168 = vmatmul.mubr.msk.f32.gmra.mxu1 %vm3892_vm0, %v7686_v60 }
 0x46c   :  { %v7688_v28 = vpop.eup %7687  ;;  %v2824_v50 = vpop.permute.xlu0 %2823  ;;  %6149 = vst.msk [vmem:[%s12762_s5 + $0x470] sm:$0xff] %vm6006_vm1, %v5438_v0  ;;  %v5453_v7 = vadd.f32 %v12040_v62, %v7025_v6 }
 0x46d   :  { %v3615_v42 = vadd.f32 %v11658_v12, %v3352_v31  ;;  %v3097_v10 = vmul.f32 %v11664_v48, %v2824_v50  ;;  %7170 = vmatprep.mubr.msk.f32.mxu1 %vm3892_vm0, %v7688_v28  ;;  %7701 = vtanh.f32 %v3614_v9  ;;  %v3225_v4 = vadd.f32 %v2969_v13, %v1684_v8  ;;  %v5447_v23 = vpop.f32.mrf.mxu1 }
 0x46e   :  { %v7690_v17 = vpop.eup %7689  ;;  %6152 = vst.msk [vmem:[%s12762_s5 + $0x488] sm:$0xff] %vm6006_vm1, %v5453_v7  ;;  %v5448_v35 = vadd.f32 %v12040_v62, %v5447_v23  ;;  %v2316_v36 = vpop.permute.xlu1 %2315  ;;  %v13175_v23 = vld [vmem:[#allocation79_spill] sm:$0xff] }
 0x46f   :  { %7703 = vtanh.f32 %v3615_v42  ;;  %v3353_v18 = vadd.f32 %v3097_v10, %v1812_v41  ;;  %v3488_v34 = vadd.f32 %v11658_v12, %v3225_v4  ;;  %v2970_v25 = vmul.f32 %v11664_v48, %v2316_v36  ;;  %v7028_v54 = vpop.f32.mrf.mxu1  ;;  %7171 = vmatmul.mubr.msk.f32.gmra.mxu1 %vm3892_vm0, %v7690_v17 }
 0x470   :  { %v7692_v53 = vpop.eup %7691  ;;  %v2828_v3 = vpop.permute.xlu0 %2827  ;;  %6151 = vst.msk [vmem:[%s12762_s5 + $0x480] sm:$0xff] %vm6006_vm1, %v5448_v35  ;;  %v5463_v43 = vadd.f32 %v12040_v62, %v7028_v54 }
 0x471   :  { %v3616_v5 = vadd.f32 %v11658_v12, %v3353_v18  ;;  %v3098_v11 = vmul.f32 %v11664_v48, %v2828_v3  ;;  %7173 = vmatprep.mubr.msk.f32.mxu1 %vm3892_vm0, %v7692_v53  ;;  %7705 = vtanh.f32 %v3488_v34  ;;  %v3226_v44 = vadd.f32 %v2970_v25, %v1685_v33  ;;  %v5457_v32 = vpop.f32.mrf.mxu1  ;;  %v7996_v48 = vld [vmem:[%s12759_s1] ss:$0 sm:$0xff] }
 0x472   :  { %v7694_v2 = vpop.eup %7693  ;;  %6154 = vst.msk [vmem:[%s12762_s5 + $0x498] sm:$0xff] %vm6006_vm1, %v5463_v43  ;;  %v5458_v47 = vadd.f32 %v12040_v62, %v5457_v32  ;;  %v2320_v12 = vpop.permute.xlu1 %2319  ;;  %v1686_v57 = vmul.f32 %v7996_v48, %v13171_v46  ;;  %v1814_v20 = vmul.f32 %v7996_v48, %v13172_v19  ;;  %v1687_v60 = vmul.f32 %v7996_v48, %v13173_v59 }
 0x473   :  { %7707 = vtanh.f32 %v3616_v5  ;;  %v3354_v15 = vadd.f32 %v3098_v11, %v1813_v55  ;;  %v3489_v63 = vadd.f32 %v12150_v58, %v3226_v44  ;;  %v2971_v14 = vmul.f32 %v7998_v40, %v2320_v12  ;;  %v7031_v51 = vpop.f32.mrf.mxu1  ;;  %7174 = vmatmul.mubr.msk.f32.gmra.mxu1 %vm3892_vm0, %v7694_v2 }
 0x474   :  { %v7696_v45 = vpop.eup %7695  ;;  %v2832_v39 = vpop.permute.xlu0 %2831  ;;  %6153 = vst.msk [vmem:[%s12762_s5 + $0x490] sm:$0xff] %vm6006_vm1, %v5458_v47  ;;  %v5473_v21 = vadd.f32 %v12040_v62, %v7031_v51  ;;  %v1815_v8 = vmul.f32 %v7996_v48, %v13174_v1  ;;  %v1688_v17 = vmul.f32 %v7996_v48, %v13175_v23  ;;  %v1816_v33 = vmul.f32 %v7996_v48, %v13176_v56 }
 0x475   :  { %v3617_v37 = vadd.f32 %v12150_v58, %v3354_v15  ;;  %v3099_v38 = vmul.f32 %v7998_v40, %v2832_v39  ;;  %7176 = vmatprep.mubr.msk.f32.mxu1 %vm3892_vm0, %v7696_v45  ;;  %7709 = vtanh.f32 %v3489_v63  ;;  %v3227_v22 = vadd.f32 %v2971_v14, %v1686_v57  ;;  %v5467_v29 = vpop.f32.mrf.mxu1 }
 0x476   :  { %v7698_v16 = vpop.eup %7697  ;;  %6156 = vst.msk [vmem:[%s12762_s5 + $0x4a8] sm:$0xff] %vm6006_vm1, %v5473_v21  ;;  %v5468_v61 = vadd.f32 %v12040_v62, %v5467_v29  ;;  %v2324_v52 = vpop.permute.xlu1 %2323 }
 0x477   :  { %7711 = vtanh.f32 %v3617_v37  ;;  %v3355_v30 = vadd.f32 %v3099_v38, %v1814_v20  ;;  %v3490_v31 = vadd.f32 %v12150_v58, %v3227_v22  ;;  %v2972_v0 = vmul.f32 %v7998_v40, %v2324_v52  ;;  %v7034_v28 = vpop.f32.mrf.mxu1  ;;  %7177 = vmatmul.mubr.msk.f32.gmra.mxu1 %vm3892_vm0, %v7698_v16 }
 0x478   :  { %v7700_v49 = vpop.eup %7699  ;;  %v2836_v27 = vpop.permute.xlu0 %2835  ;;  %6155 = vst.msk [vmem:[%s12762_s5 + $0x4a0] sm:$0xff] %vm6006_vm1, %v5468_v61  ;;  %v5483_v50 = vadd.f32 %v12040_v62, %v7034_v28 }
 0x479   :  { %v3618_v9 = vadd.f32 %v12150_v58, %v3355_v30  ;;  %v3100_v13 = vmul.f32 %v7998_v40, %v2836_v27  ;;  %7179 = vmatprep.mubr.msk.f32.mxu1 %vm3892_vm0, %v7700_v49  ;;  %7713 = vtanh.f32 %v3490_v31  ;;  %v3228_v6 = vadd.f32 %v2972_v0, %v1687_v60  ;;  %v5477_v24 = vpop.f32.mrf.mxu1 }
 0x47a   :  { %v7702_v41 = vpop.eup %7701  ;;  %6158 = vst.msk [vmem:[%s12762_s5 + $0x4b8] sm:$0xff] %vm6006_vm1, %v5483_v50  ;;  %v5478_v10 = vadd.f32 %v12040_v62, %v5477_v24  ;;  %v2328_v7 = vpop.permute.xlu1 %2327 }
 0x47b   :  { %7715 = vtanh.f32 %v3618_v9  ;;  %v3356_v42 = vadd.f32 %v3100_v13, %v1815_v8  ;;  %v3491_v18 = vadd.f32 %v12150_v58, %v3228_v6  ;;  %v2973_v35 = vmul.f32 %v7998_v40, %v2328_v7  ;;  %v7037_v53 = vpop.f32.mrf.mxu1  ;;  %7180 = vmatmul.mubr.msk.f32.gmra.mxu1 %vm3892_vm0, %v7702_v41 }
 0x47c   :  { %v7704_v4 = vpop.eup %7703  ;;  %v2840_v36 = vpop.permute.xlu0 %2839  ;;  %6157 = vst.msk [vmem:[%s12762_s5 + $0x4b0] sm:$0xff] %vm6006_vm1, %v5478_v10  ;;  %v5493_v3 = vadd.f32 %v12040_v62, %v7037_v53 }
 0x47d   :  { %v3619_v34 = vadd.f32 %v12150_v58, %v3356_v42  ;;  %v3101_v25 = vmul.f32 %v7998_v40, %v2840_v36  ;;  %7182 = vmatprep.mubr.msk.f32.mxu1 %vm3892_vm0, %v7704_v4  ;;  %7717 = vtanh.f32 %v3491_v18  ;;  %v3229_v54 = vadd.f32 %v2973_v35, %v1688_v17  ;;  %v5487_v26 = vpop.f32.mrf.mxu1 }
 0x47e   :  { %v7706_v55 = vpop.eup %7705  ;;  %6160 = vst.msk [vmem:[%s12762_s5 + $0x4c8] sm:$0xff] %vm6006_vm1, %v5493_v3  ;;  %v5488_v11 = vadd.f32 %v12040_v62, %v5487_v26 }
 0x47f   :  { %7719 = vtanh.f32 %v3619_v34  ;;  %v3357_v5 = vadd.f32 %v3101_v25, %v1816_v33  ;;  %v3492_v44 = vadd.f32 %v12150_v58, %v3229_v54  ;;  %6991 = vmatmul.mubr.msk.f32.gmra.mxu0 %vm3892_vm0, %v7706_v55  ;;  %v7040_v32 = vpop.f32.mrf.mxu1 }
 0x480   :  { %v7708_v43 = vpop.eup %7707  ;;  %6159 = vst.msk [vmem:[%s12762_s5 + $0x4c0] sm:$0xff] %vm6006_vm1, %v5488_v11  ;;  %v5503_v15 = vadd.f32 %v12040_v62, %v7040_v32 }
 0x481   :  { %v3620_v2 = vadd.f32 %v12150_v58, %v3357_v5  ;;  %7183 = vmatmul.mubr.msk.f32.gmra.mxu1 %vm3892_vm0, %v7708_v43  ;;  %7721 = vtanh.f32 %v3492_v44  ;;  %v5497_v47 = vpop.f32.mrf.mxu1 }
 0x482   :  { %v7710_v12 = vpop.eup %7709  ;;  %6162 = vst.msk [vmem:[%s12762_s5 + $0x4d8] sm:$0xff] %vm6006_vm1, %v5503_v15  ;;  %v5498_v45 = vadd.f32 %v12040_v62, %v5497_v47 }
 0x483   :  { %7723 = vtanh.f32 %v3620_v2  ;;  %6993 = vmatprep.mubr.msk.f32.mxu0 %vm3892_vm0, %v7710_v12  ;;  %v7043_v46 = vpop.f32.mrf.mxu1 }
 0x484   :  { %v7712_v48 = vpop.eup %7711  ;;  %6161 = vst.msk [vmem:[%s12762_s5 + $0x4d0] sm:$0xff] %vm6006_vm1, %v5498_v45  ;;  %v5513_v57 = vadd.f32 %v12040_v62, %v7043_v46 }
 0x485   :  { %7185 = vmatprep.mubr.msk.f32.mxu1 %vm3892_vm0, %v7712_v48  ;;  %v5507_v58 = vpop.f32.mrf.mxu1 }
 0x486   :  { %v7714_v63 = vpop.eup %7713  ;;  %6164 = vst.msk [vmem:[%s12762_s5 + $0x4e8] sm:$0xff] %vm6006_vm1, %v5513_v57  ;;  %v5508_v40 = vadd.f32 %v12040_v62, %v5507_v58 }
 0x487   :  { %6994 = vmatmul.mubr.msk.f32.gmra.mxu0 %vm3892_vm0, %v7714_v63  ;;  %v7046_v39 = vpop.f32.mrf.mxu1 }
 0x488   :  { %v7716_v14 = vpop.eup %7715  ;;  %6163 = vst.msk [vmem:[%s12762_s5 + $0x4e0] sm:$0xff] %vm6006_vm1, %v5508_v40  ;;  %v5523_v51 = vadd.f32 %v12040_v62, %v7046_v39 }
 0x489   :  { %7186 = vmatmul.mubr.msk.f32.gmra.mxu1 %vm3892_vm0, %v7716_v14  ;;  %v5517_v19 = vpop.f32.mrf.mxu1 }
 0x48a   :  { %v7718_v20 = vpop.eup %7717  ;;  %6166 = vst.msk [vmem:[%s12762_s5 + $0x4f8] sm:$0xff] %vm6006_vm1, %v5523_v51  ;;  %v5518_v37 = vadd.f32 %v12040_v62, %v5517_v19 }
 0x48b   :  { %6996 = vmatprep.mubr.msk.f32.mxu0 %vm3892_vm0, %v7718_v20  ;;  %v7049_v21 = vpop.f32.mrf.mxu1 }
 0x48c   :  { %v7720_v38 = vpop.eup %7719  ;;  %6165 = vst.msk [vmem:[%s12762_s5 + $0x4f0] sm:$0xff] %vm6006_vm1, %v5518_v37  ;;  %v5533_v22 = vadd.f32 %v12040_v62, %v7049_v21 }
 0x48d   :  { %7188 = vmatprep.mubr.msk.f32.mxu1 %vm3892_vm0, %v7720_v38  ;;  %v5527_v29 = vpop.f32.mrf.mxu1 }
 0x48e   :  { %v7722_v16 = vpop.eup %7721  ;;  %6168 = vst.msk [vmem:[%s12762_s5 + $0x508] sm:$0xff] %vm6006_vm1, %v5533_v22  ;;  %v5528_v30 = vadd.f32 %v12040_v62, %v5527_v29 }
 0x48f   :  { %6997 = vmatmul.mubr.msk.f32.gmra.mxu0 %vm3892_vm0, %v7722_v16  ;;  %v7052_v52 = vpop.f32.mrf.mxu1 }
 0x490   :  { %v7724_v61 = vpop.eup %7723  ;;  %6167 = vst.msk [vmem:[%s12762_s5 + $0x500] sm:$0xff] %vm6006_vm1, %v5528_v30  ;;  %v5543_v49 = vadd.f32 %v12040_v62, %v7052_v52 }
 0x491   :  { %7189 = vmatmul.mubr.msk.f32.gmra.mxu1 %vm3892_vm0, %v7724_v61  ;;  %v5537_v59 = vpop.f32.mrf.mxu1 }
 0x492   :  { %6170 = vst.msk [vmem:[%s12762_s5 + $0x518] sm:$0xff] %vm6006_vm1, %v5543_v49  ;;  %v5538_v60 = vadd.f32 %v12040_v62, %v5537_v59 }
 0x493   :  { %v7055_v31 = vpop.f32.mrf.mxu1 }
 0x494   :  { %6169 = vst.msk [vmem:[%s12762_s5 + $0x510] sm:$0xff] %vm6006_vm1, %v5538_v60  ;;  %v5553_v0 = vadd.f32 %v12040_v62, %v7055_v31 }
 0x495   :  { %v5547_v27 = vpop.f32.mrf.mxu1 }
 0x496   :  { %6172 = vst.msk [vmem:[%s12762_s5 + $0x528] sm:$0xff] %vm6006_vm1, %v5553_v0  ;;  %v5548_v28 = vadd.f32 %v12040_v62, %v5547_v27 }
 0x497   :  { %v7058_v1 = vpop.f32.mrf.mxu1 }
 0x498   :  { %6171 = vst.msk [vmem:[%s12762_s5 + $0x520] sm:$0xff] %vm6006_vm1, %v5548_v28  ;;  %v5563_v8 = vadd.f32 %v12040_v62, %v7058_v1 }
 0x499   :  { %v5557_v9 = vpop.f32.mrf.mxu1 }
 0x49a   :  { %6174 = vst.msk [vmem:[%s12762_s5 + $0x538] sm:$0xff] %vm6006_vm1, %v5563_v8  ;;  %v5558_v13 = vadd.f32 %v12040_v62, %v5557_v9 }
 0x49b   :  { %v7061_v50 = vpop.f32.mrf.mxu1 }
 0x49c   :  { %6173 = vst.msk [vmem:[%s12762_s5 + $0x530] sm:$0xff] %vm6006_vm1, %v5558_v13  ;;  %v5573_v6 = vadd.f32 %v12040_v62, %v7061_v50 }
 0x49d   :  { %v5567_v24 = vpop.f32.mrf.mxu1 }
 0x49e   :  { %6176 = vst.msk [vmem:[%s12762_s5 + $0x548] sm:$0xff] %vm6006_vm1, %v5573_v6  ;;  %v5568_v41 = vadd.f32 %v12040_v62, %v5567_v24 }
 0x49f   :  { %v7064_v42 = vpop.f32.mrf.mxu1 }
 0x4a0   :  { %6175 = vst.msk [vmem:[%s12762_s5 + $0x540] sm:$0xff] %vm6006_vm1, %v5568_v41  ;;  %v5583_v10 = vadd.f32 %v12040_v62, %v7064_v42 }
 0x4a1   :  { %v5577_v7 = vpop.f32.mrf.mxu1 }
 0x4a2   :  { %6178 = vst.msk [vmem:[%s12762_s5 + $0x558] sm:$0xff] %vm6006_vm1, %v5583_v10  ;;  %v5578_v4 = vadd.f32 %v12040_v62, %v5577_v7 }
 0x4a3   :  { %v7067_v23 = vpop.f32.mrf.mxu1 }
 0x4a4   :  { %6177 = vst.msk [vmem:[%s12762_s5 + $0x550] sm:$0xff] %vm6006_vm1, %v5578_v4  ;;  %v5593_v17 = vadd.f32 %v12040_v62, %v7067_v23 }
 0x4a5   :  { %v5587_v18 = vpop.f32.mrf.mxu1 }
 0x4a6   :  { %6180 = vst.msk [vmem:[%s12762_s5 + $0x568] sm:$0xff] %vm6006_vm1, %v5593_v17  ;;  %v5588_v35 = vadd.f32 %v12040_v62, %v5587_v18 }
 0x4a7   :  { %v7070_v36 = vpop.f32.mrf.mxu1 }
 0x4a8   :  { %6179 = vst.msk [vmem:[%s12762_s5 + $0x560] sm:$0xff] %vm6006_vm1, %v5588_v35  ;;  %v5603_v53 = vadd.f32 %v12040_v62, %v7070_v36 }
 0x4a9   :  { %v5597_v56 = vpop.f32.mrf.mxu1 }
 0x4aa   :  { %6182 = vst.msk [vmem:[%s12762_s5 + $0x578] sm:$0xff] %vm6006_vm1, %v5603_v53  ;;  %v5598_v33 = vadd.f32 %v12040_v62, %v5597_v56 }
 0x4ab   :  { %v7073_v34 = vpop.f32.mrf.mxu1 }
 0x4ac   :  { %6181 = vst.msk [vmem:[%s12762_s5 + $0x570] sm:$0xff] %vm6006_vm1, %v5598_v33  ;;  %v5613_v25 = vadd.f32 %v12040_v62, %v7073_v34 }
 0x4ad   :  { %v5607_v3 = vpop.f32.mrf.mxu1 }
 0x4ae   :  { %6184 = vst.msk [vmem:[%s12762_s5 + $0x588] sm:$0xff] %vm6006_vm1, %v5613_v25  ;;  %v5608_v54 = vadd.f32 %v12040_v62, %v5607_v3 }
 0x4af   :  { %v7076_v26 = vpop.f32.mrf.mxu1 }
 0x4b0   :  { %6183 = vst.msk [vmem:[%s12762_s5 + $0x580] sm:$0xff] %vm6006_vm1, %v5608_v54  ;;  %v5623_v55 = vadd.f32 %v12040_v62, %v7076_v26 }
 0x4b1   :  { %v5617_v5 = vpop.f32.mrf.mxu1 }
 0x4b2   :  { %6186 = vst.msk [vmem:[%s12762_s5 + $0x598] sm:$0xff] %vm6006_vm1, %v5623_v55  ;;  %v5618_v11 = vadd.f32 %v12040_v62, %v5617_v5 }
 0x4b3   :  { %v7079_v43 = vpop.f32.mrf.mxu1 }
 0x4b4   :  { %6185 = vst.msk [vmem:[%s12762_s5 + $0x590] sm:$0xff] %vm6006_vm1, %v5618_v11  ;;  %v5633_v44 = vadd.f32 %v12040_v62, %v7079_v43 }
 0x4b5   :  { %v5627_v32 = vpop.f32.mrf.mxu1 }
 0x4b6   :  { %6188 = vst.msk [vmem:[%s12762_s5 + $0x5a8] sm:$0xff] %vm6006_vm1, %v5633_v44  ;;  %v5628_v2 = vadd.f32 %v12040_v62, %v5627_v32 }
 0x4b7   :  { %v7082_v15 = vpop.f32.mrf.mxu1 }
 0x4b8   :  { %6187 = vst.msk [vmem:[%s12762_s5 + $0x5a0] sm:$0xff] %vm6006_vm1, %v5628_v2  ;;  %v5643_v47 = vadd.f32 %v12040_v62, %v7082_v15 }
 0x4b9   :  { %v5637_v12 = vpop.f32.mrf.mxu1 }
 0x4ba   :  { %6190 = vst.msk [vmem:[%s12762_s5 + $0x5b8] sm:$0xff] %vm6006_vm1, %v5643_v47  ;;  %v5638_v45 = vadd.f32 %v12040_v62, %v5637_v12 }
 0x4bb   :  { %v7085_v48 = vpop.f32.mrf.mxu1 }
 0x4bc   :  { %6189 = vst.msk [vmem:[%s12762_s5 + $0x5b0] sm:$0xff] %vm6006_vm1, %v5638_v45  ;;  %v5653_v46 = vadd.f32 %v12040_v62, %v7085_v48 }
 0x4bd   :  { %v5647_v57 = vpop.f32.mrf.mxu1 }
 0x4be   :  { %6192 = vst.msk [vmem:[%s12762_s5 + $0x5c8] sm:$0xff] %vm6006_vm1, %v5653_v46  ;;  %v5648_v58 = vadd.f32 %v12040_v62, %v5647_v57 }
 0x4bf   :  { %v7088_v63 = vpop.f32.mrf.mxu1 }
 0x4c0   :  { %6191 = vst.msk [vmem:[%s12762_s5 + $0x5c0] sm:$0xff] %vm6006_vm1, %v5648_v58  ;;  %v5663_v40 = vadd.f32 %v12040_v62, %v7088_v63 }
 0x4c1   :  { %v5657_v14 = vpop.f32.mrf.mxu1 }
 0x4c2   :  { %6194 = vst.msk [vmem:[%s12762_s5 + $0x5d8] sm:$0xff] %vm6006_vm1, %v5663_v40  ;;  %v5658_v39 = vadd.f32 %v12040_v62, %v5657_v14 }
 0x4c3   :  { %v7091_v51 = vpop.f32.mrf.mxu1 }
 0x4c4   :  { %6193 = vst.msk [vmem:[%s12762_s5 + $0x5d0] sm:$0xff] %vm6006_vm1, %v5658_v39  ;;  %v5673_v19 = vadd.f32 %v12040_v62, %v7091_v51 }
 0x4c5   :  { %v5667_v20 = vpop.f32.mrf.mxu1 }
 0x4c6   :  { %6196 = vst.msk [vmem:[%s12762_s5 + $0x5e8] sm:$0xff] %vm6006_vm1, %v5673_v19  ;;  %v5668_v37 = vadd.f32 %v12040_v62, %v5667_v20 }
 0x4c7   :  { %v7094_v38 = vpop.f32.mrf.mxu1 }
 0x4c8   :  { %6195 = vst.msk [vmem:[%s12762_s5 + $0x5e0] sm:$0xff] %vm6006_vm1, %v5668_v37  ;;  %v5683_v21 = vadd.f32 %v12040_v62, %v7094_v38 }
 0x4c9   :  { %v5677_v22 = vpop.f32.mrf.mxu1 }
 0x4ca   :  { %6198 = vst.msk [vmem:[%s12762_s5 + $0x5f8] sm:$0xff] %vm6006_vm1, %v5683_v21  ;;  %v5678_v29 = vadd.f32 %v12040_v62, %v5677_v22 }
 0x4cb   :  { %v7097_v16 = vpop.f32.mrf.mxu1 }
 0x4cc   :  { %6197 = vst.msk [vmem:[%s12762_s5 + $0x5f0] sm:$0xff] %vm6006_vm1, %v5678_v29  ;;  %v5693_v30 = vadd.f32 %v12040_v62, %v7097_v16 }
 0x4cd   :  { %v5687_v61 = vpop.f32.mrf.mxu1 }
 0x4ce   :  { %6200 = vst.msk [vmem:[%s12762_s5 + $0x608] sm:$0xff] %vm6006_vm1, %v5693_v30  ;;  %v5688_v52 = vadd.f32 %v12040_v62, %v5687_v61 }
 0x4cf   :  { %v7100_v49 = vpop.f32.mrf.mxu1 }
 0x4d0   :  { %6199 = vst.msk [vmem:[%s12762_s5 + $0x600] sm:$0xff] %vm6006_vm1, %v5688_v52  ;;  %v5703_v59 = vadd.f32 %v12040_v62, %v7100_v49 }
 0x4d1   :  { %v5697_v60 = vpop.f32.mrf.mxu1 }
 0x4d2   :  { %6202 = vst.msk [vmem:[%s12762_s5 + $0x618] sm:$0xff] %vm6006_vm1, %v5703_v59  ;;  %v5698_v31 = vadd.f32 %v12040_v62, %v5697_v60 }
 0x4d3   :  { %v7103_v0 = vpop.f32.mrf.mxu1 }
 0x4d4   :  { %6201 = vst.msk [vmem:[%s12762_s5 + $0x610] sm:$0xff] %vm6006_vm1, %v5698_v31  ;;  %v5713_v27 = vadd.f32 %v12040_v62, %v7103_v0 }
 0x4d5   :  { %v5707_v28 = vpop.f32.mrf.mxu1 }
 0x4d6   :  { %6204 = vst.msk [vmem:[%s12762_s5 + $0x628] sm:$0xff] %vm6006_vm1, %v5713_v27  ;;  %v5708_v1 = vadd.f32 %v12040_v62, %v5707_v28 }
 0x4d7   :  { %v7106_v8 = vpop.f32.mrf.mxu1 }
 0x4d8   :  { %6203 = vst.msk [vmem:[%s12762_s5 + $0x620] sm:$0xff] %vm6006_vm1, %v5708_v1  ;;  %v5723_v9 = vadd.f32 %v12040_v62, %v7106_v8 }
 0x4d9   :  { %v5717_v13 = vpop.f32.mrf.mxu1 }
 0x4da   :  { %6206 = vst.msk [vmem:[%s12762_s5 + $0x638] sm:$0xff] %vm6006_vm1, %v5723_v9  ;;  %v5718_v50 = vadd.f32 %v12040_v62, %v5717_v13 }
 0x4db   :  { %v7109_v6 = vpop.f32.mrf.mxu1 }
 0x4dc   :  { %6205 = vst.msk [vmem:[%s12762_s5 + $0x630] sm:$0xff] %vm6006_vm1, %v5718_v50  ;;  %v5733_v24 = vadd.f32 %v12040_v62, %v7109_v6 }
 0x4dd   :  { %v5727_v41 = vpop.f32.mrf.mxu1 }
 0x4de   :  { %6208 = vst.msk [vmem:[%s12762_s5 + $0x648] sm:$0xff] %vm6006_vm1, %v5733_v24  ;;  %v5728_v42 = vadd.f32 %v12040_v62, %v5727_v41 }
 0x4df   :  { %v7112_v10 = vpop.f32.mrf.mxu1 }
 0x4e0   :  { %6207 = vst.msk [vmem:[%s12762_s5 + $0x640] sm:$0xff] %vm6006_vm1, %v5728_v42  ;;  %v5743_v7 = vadd.f32 %v12040_v62, %v7112_v10 }
 0x4e1   :  { %v5737_v4 = vpop.f32.mrf.mxu1 }
 0x4e2   :  { %6210 = vst.msk [vmem:[%s12762_s5 + $0x658] sm:$0xff] %vm6006_vm1, %v5743_v7  ;;  %v5738_v23 = vadd.f32 %v12040_v62, %v5737_v4 }
 0x4e3   :  { %v7115_v17 = vpop.f32.mrf.mxu1 }
 0x4e4   :  { %6209 = vst.msk [vmem:[%s12762_s5 + $0x650] sm:$0xff] %vm6006_vm1, %v5738_v23  ;;  %v5753_v18 = vadd.f32 %v12040_v62, %v7115_v17 }
 0x4e5   :  { %v5747_v35 = vpop.f32.mrf.mxu1 }
 0x4e6   :  { %6212 = vst.msk [vmem:[%s12762_s5 + $0x668] sm:$0xff] %vm6006_vm1, %v5753_v18  ;;  %v5748_v36 = vadd.f32 %v12040_v62, %v5747_v35 }
 0x4e7   :  { %v7118_v53 = vpop.f32.mrf.mxu1 }
 0x4e8   :  { %6211 = vst.msk [vmem:[%s12762_s5 + $0x660] sm:$0xff] %vm6006_vm1, %v5748_v36  ;;  %v5763_v56 = vadd.f32 %v12040_v62, %v7118_v53 }
 0x4e9   :  { %v5757_v33 = vpop.f32.mrf.mxu1 }
 0x4ea   :  { %6214 = vst.msk [vmem:[%s12762_s5 + $0x678] sm:$0xff] %vm6006_vm1, %v5763_v56  ;;  %v5758_v34 = vadd.f32 %v12040_v62, %v5757_v33 }
 0x4eb   :  { %v7121_v25 = vpop.f32.mrf.mxu1 }
 0x4ec   :  { %6213 = vst.msk [vmem:[%s12762_s5 + $0x670] sm:$0xff] %vm6006_vm1, %v5758_v34  ;;  %v5773_v3 = vadd.f32 %v12040_v62, %v7121_v25 }
 0x4ed   :  { %v5767_v54 = vpop.f32.mrf.mxu1 }
 0x4ee   :  { %6216 = vst.msk [vmem:[%s12762_s5 + $0x688] sm:$0xff] %vm6006_vm1, %v5773_v3  ;;  %v5768_v26 = vadd.f32 %v12040_v62, %v5767_v54 }
 0x4ef   :  { %v7124_v55 = vpop.f32.mrf.mxu1 }
 0x4f0   :  { %6215 = vst.msk [vmem:[%s12762_s5 + $0x680] sm:$0xff] %vm6006_vm1, %v5768_v26  ;;  %v5783_v5 = vadd.f32 %v12040_v62, %v7124_v55 }
 0x4f1   :  { %v5777_v11 = vpop.f32.mrf.mxu1 }
 0x4f2   :  { %6218 = vst.msk [vmem:[%s12762_s5 + $0x698] sm:$0xff] %vm6006_vm1, %v5783_v5  ;;  %v5778_v43 = vadd.f32 %v12040_v62, %v5777_v11 }
 0x4f3   :  { %v7127_v44 = vpop.f32.mrf.mxu1 }
 0x4f4   :  { %6217 = vst.msk [vmem:[%s12762_s5 + $0x690] sm:$0xff] %vm6006_vm1, %v5778_v43  ;;  %v5793_v32 = vadd.f32 %v12040_v62, %v7127_v44 }
 0x4f5   :  { %v5787_v2 = vpop.f32.mrf.mxu1 }
 0x4f6   :  { %6220 = vst.msk [vmem:[%s12762_s5 + $0x6a8] sm:$0xff] %vm6006_vm1, %v5793_v32  ;;  %v5788_v15 = vadd.f32 %v12040_v62, %v5787_v2 }
 0x4f7   :  { %v7130_v47 = vpop.f32.mrf.mxu1 }
 0x4f8   :  { %6219 = vst.msk [vmem:[%s12762_s5 + $0x6a0] sm:$0xff] %vm6006_vm1, %v5788_v15  ;;  %v5803_v12 = vadd.f32 %v12040_v62, %v7130_v47 }
 0x4f9   :  { %v5797_v45 = vpop.f32.mrf.mxu1 }
 0x4fa   :  { %6222 = vst.msk [vmem:[%s12762_s5 + $0x6b8] sm:$0xff] %vm6006_vm1, %v5803_v12  ;;  %v5798_v48 = vadd.f32 %v12040_v62, %v5797_v45 }
 0x4fb   :  { %v7133_v46 = vpop.f32.mrf.mxu1 }
 0x4fc   :  { %6221 = vst.msk [vmem:[%s12762_s5 + $0x6b0] sm:$0xff] %vm6006_vm1, %v5798_v48  ;;  %v5813_v57 = vadd.f32 %v12040_v62, %v7133_v46 }
 0x4fd   :  { %v5807_v58 = vpop.f32.mrf.mxu1 }
 0x4fe   :  { %6224 = vst.msk [vmem:[%s12762_s5 + $0x6c8] sm:$0xff] %vm6006_vm1, %v5813_v57  ;;  %v5808_v63 = vadd.f32 %v12040_v62, %v5807_v58 }
 0x4ff   :  { %v7136_v40 = vpop.f32.mrf.mxu1 }
 0x500   :  { %6223 = vst.msk [vmem:[%s12762_s5 + $0x6c0] sm:$0xff] %vm6006_vm1, %v5808_v63  ;;  %v5823_v14 = vadd.f32 %v12040_v62, %v7136_v40 }
 0x501   :  { %v5817_v39 = vpop.f32.mrf.mxu1 }
 0x502   :  { %6226 = vst.msk [vmem:[%s12762_s5 + $0x6d8] sm:$0xff] %vm6006_vm1, %v5823_v14  ;;  %v5818_v51 = vadd.f32 %v12040_v62, %v5817_v39 }
 0x503   :  { %v7139_v19 = vpop.f32.mrf.mxu1 }
 0x504   :  { %6225 = vst.msk [vmem:[%s12762_s5 + $0x6d0] sm:$0xff] %vm6006_vm1, %v5818_v51  ;;  %v5833_v20 = vadd.f32 %v12040_v62, %v7139_v19 }
 0x505   :  { %v5827_v37 = vpop.f32.mrf.mxu1 }
 0x506   :  { %6228 = vst.msk [vmem:[%s12762_s5 + $0x6e8] sm:$0xff] %vm6006_vm1, %v5833_v20  ;;  %v5828_v38 = vadd.f32 %v12040_v62, %v5827_v37 }
 0x507   :  { %v7142_v21 = vpop.f32.mrf.mxu1 }
 0x508   :  { %6227 = vst.msk [vmem:[%s12762_s5 + $0x6e0] sm:$0xff] %vm6006_vm1, %v5828_v38  ;;  %v5843_v22 = vadd.f32 %v12040_v62, %v7142_v21 }
 0x509   :  { %v5837_v29 = vpop.f32.mrf.mxu1 }
 0x50a   :  { %6230 = vst.msk [vmem:[%s12762_s5 + $0x6f8] sm:$0xff] %vm6006_vm1, %v5843_v22  ;;  %v5838_v16 = vadd.f32 %v12040_v62, %v5837_v29 }
 0x50b   :  { %v7145_v30 = vpop.f32.mrf.mxu1 }
 0x50c   :  { %6229 = vst.msk [vmem:[%s12762_s5 + $0x6f0] sm:$0xff] %vm6006_vm1, %v5838_v16  ;;  %v5853_v61 = vadd.f32 %v12040_v62, %v7145_v30 }
 0x50d   :  { %v5847_v52 = vpop.f32.mrf.mxu1 }
 0x50e   :  { %6232 = vst.msk [vmem:[%s12762_s5 + $0x708] sm:$0xff] %vm6006_vm1, %v5853_v61  ;;  %v5848_v49 = vadd.f32 %v12040_v62, %v5847_v52 }
 0x50f   :  { %v7148_v59 = vpop.f32.mrf.mxu1 }
 0x510   :  { %6231 = vst.msk [vmem:[%s12762_s5 + $0x700] sm:$0xff] %vm6006_vm1, %v5848_v49  ;;  %v5863_v60 = vadd.f32 %v12040_v62, %v7148_v59 }
 0x511   :  { %v5857_v31 = vpop.f32.mrf.mxu1 }
 0x512   :  { %6234 = vst.msk [vmem:[%s12762_s5 + $0x718] sm:$0xff] %vm6006_vm1, %v5863_v60  ;;  %v5858_v0 = vadd.f32 %v12040_v62, %v5857_v31  ;;  %v7999_v31 = vld [vmem:[%s12761_s4] ss:$0 sm:$0xff] }
 0x513   :  { %v7151_v27 = vpop.f32.mrf.mxu1 }
 0x514   :  { %6233 = vst.msk [vmem:[%s12762_s5 + $0x710] sm:$0xff] %vm6006_vm1, %v5858_v0  ;;  %v5873_v28 = vadd.f32 %v12040_v62, %v7151_v27 }
 0x515   :  { %v5867_v1 = vpop.f32.mrf.mxu1 }
 0x516   :  { %6236 = vst.msk [vmem:[%s12762_s5 + $0x728] sm:$0xff] %vm6006_vm1, %v5873_v28  ;;  %v5868_v8 = vadd.f32 %v12040_v62, %v5867_v1 }
 0x517   :  { %v7154_v9 = vpop.f32.mrf.mxu1 }
 0x518   :  { %6235 = vst.msk [vmem:[%s12762_s5 + $0x720] sm:$0xff] %vm6006_vm1, %v5868_v8  ;;  %v5883_v13 = vadd.f32 %v12040_v62, %v7154_v9 }
 0x519   :  { %v5877_v50 = vpop.f32.mrf.mxu1 }
 0x51a   :  { %6238 = vst.msk [vmem:[%s12762_s5 + $0x738] sm:$0xff] %vm6006_vm1, %v5883_v13  ;;  %v5878_v6 = vadd.f32 %v12040_v62, %v5877_v50 }
 0x51b   :  { %v7157_v24 = vpop.f32.mrf.mxu1 }
 0x51c   :  { %6237 = vst.msk [vmem:[%s12762_s5 + $0x730] sm:$0xff] %vm6006_vm1, %v5878_v6  ;;  %v5893_v41 = vadd.f32 %v12040_v62, %v7157_v24 }
 0x51d   :  { %v5887_v42 = vpop.f32.mrf.mxu1 }
 0x51e   :  { %6240 = vst.msk [vmem:[%s12762_s5 + $0x748] sm:$0xff] %vm6006_vm1, %v5893_v41  ;;  %v5888_v10 = vadd.f32 %v12040_v62, %v5887_v42 }
 0x51f   :  { %v7160_v7 = vpop.f32.mrf.mxu1 }
 0x520   :  { %6239 = vst.msk [vmem:[%s12762_s5 + $0x740] sm:$0xff] %vm6006_vm1, %v5888_v10  ;;  %v5903_v4 = vadd.f32 %v12040_v62, %v7160_v7 }
 0x521   :  { %v5897_v23 = vpop.f32.mrf.mxu1 }
 0x522   :  { %6242 = vst.msk [vmem:[%s12762_s5 + $0x758] sm:$0xff] %vm6006_vm1, %v5903_v4  ;;  %v5898_v17 = vadd.f32 %v12040_v62, %v5897_v23 }
 0x523   :  { %v7163_v18 = vpop.f32.mrf.mxu1 }
 0x524   :  { %6241 = vst.msk [vmem:[%s12762_s5 + $0x750] sm:$0xff] %vm6006_vm1, %v5898_v17  ;;  %v5913_v35 = vadd.f32 %v12040_v62, %v7163_v18 }
 0x525   :  { %v5907_v36 = vpop.f32.mrf.mxu1 }
 0x526   :  { %6244 = vst.msk [vmem:[%s12762_s5 + $0x768] sm:$0xff] %vm6006_vm1, %v5913_v35  ;;  %v5908_v53 = vadd.f32 %v12040_v62, %v5907_v36 }
 0x527   :  { %v7166_v56 = vpop.f32.mrf.mxu1 }
 0x528   :  { %6243 = vst.msk [vmem:[%s12762_s5 + $0x760] sm:$0xff] %vm6006_vm1, %v5908_v53  ;;  %v5923_v33 = vadd.f32 %v12040_v62, %v7166_v56 }
 0x529   :  { %v5917_v34 = vpop.f32.mrf.mxu1 }
 0x52a   :  { %6246 = vst.msk [vmem:[%s12762_s5 + $0x778] sm:$0xff] %vm6006_vm1, %v5923_v33  ;;  %v5918_v25 = vadd.f32 %v12040_v62, %v5917_v34 }
 0x52b   :  { %v7169_v3 = vpop.f32.mrf.mxu1 }
 0x52c   :  { %6245 = vst.msk [vmem:[%s12762_s5 + $0x770] sm:$0xff] %vm6006_vm1, %v5918_v25  ;;  %v5933_v54 = vadd.f32 %v12040_v62, %v7169_v3 }
 0x52d   :  { %v5927_v26 = vpop.f32.mrf.mxu1 }
 0x52e   :  { %6248 = vst.msk [vmem:[%s12762_s5 + $0x788] sm:$0xff] %vm6006_vm1, %v5933_v54  ;;  %v5928_v55 = vadd.f32 %v12040_v62, %v5927_v26 }
 0x52f   :  { %v7172_v5 = vpop.f32.mrf.mxu1 }
 0x530   :  { %6247 = vst.msk [vmem:[%s12762_s5 + $0x780] sm:$0xff] %vm6006_vm1, %v5928_v55  ;;  %v5943_v11 = vadd.f32 %v12040_v62, %v7172_v5 }
 0x531   :  { %v5937_v43 = vpop.f32.mrf.mxu1 }
 0x532   :  { %6250 = vst.msk [vmem:[%s12762_s5 + $0x798] sm:$0xff] %vm6006_vm1, %v5943_v11  ;;  %v5938_v44 = vadd.f32 %v12040_v62, %v5937_v43 }
 0x533   :  { %v7175_v32 = vpop.f32.mrf.mxu1 }
 0x534   :  { %6249 = vst.msk [vmem:[%s12762_s5 + $0x790] sm:$0xff] %vm6006_vm1, %v5938_v44  ;;  %v5953_v2 = vadd.f32 %v12040_v62, %v7175_v32 }
 0x535   :  { %v5947_v15 = vpop.f32.mrf.mxu1 }
 0x536   :  { %6252 = vst.msk [vmem:[%s12762_s5 + $0x7a8] sm:$0xff] %vm6006_vm1, %v5953_v2  ;;  %v5948_v47 = vadd.f32 %v12040_v62, %v5947_v15 }
 0x537   :  { %v7178_v12 = vpop.f32.mrf.mxu1 }
 0x538   :  { %6251 = vst.msk [vmem:[%s12762_s5 + $0x7a0] sm:$0xff] %vm6006_vm1, %v5948_v47  ;;  %v5963_v45 = vadd.f32 %v12040_v62, %v7178_v12 }
 0x539   :  { %v5957_v48 = vpop.f32.mrf.mxu1 }
 0x53a   :  { %6254 = vst.msk [vmem:[%s12762_s5 + $0x7b8] sm:$0xff] %vm6006_vm1, %v5963_v45  ;;  %v5958_v46 = vadd.f32 %v12040_v62, %v5957_v48 }
 0x53b   :  { %v7181_v57 = vpop.f32.mrf.mxu1 }
 0x53c   :  { %6253 = vst.msk [vmem:[%s12762_s5 + $0x7b0] sm:$0xff] %vm6006_vm1, %v5958_v46  ;;  %v5973_v58 = vadd.f32 %v12040_v62, %v7181_v57 }
 0x53d   :  { %v5967_v63 = vpop.f32.mrf.mxu1 }
 0x53e   :  { %6256 = vst.msk [vmem:[%s12762_s5 + $0x7c8] sm:$0xff] %vm6006_vm1, %v5973_v58  ;;  %v5968_v40 = vadd.f32 %v12040_v62, %v5967_v63 }
 0x53f   :  { %v6992_v14 = vpop.f32.mrf.mxu0 }
 0x540   :  { %6255 = vst.msk [vmem:[%s12762_s5 + $0x7c0] sm:$0xff] %vm6006_vm1, %v5968_v40  ;;  %v5343_v39 = vadd.f32 %v12040_v62, %v6992_v14 }
 0x541   :  { %v7184_v51 = vpop.f32.mrf.mxu1  ;;  %v5337_v20 = vpop.f32.mrf.mxu0 }
 0x542   :  { %v5983_v19 = vadd.f32 %v12040_v62, %v7184_v51  ;;  %6130 = vst.msk [vmem:[%s12762_s5 + $0x3d8] sm:$0xff] %vm6006_vm1, %v5343_v39  ;;  %v5338_v37 = vadd.f32 %v12040_v62, %v5337_v20 }
 0x543   :  { %v5977_v38 = vpop.f32.mrf.mxu1 }
 0x544   :  { %6258 = vst.msk [vmem:[%s12762_s5 + $0x7d8] sm:$0xff] %vm6006_vm1, %v5983_v19  ;;  %v5978_v21 = vadd.f32 %v12040_v62, %v5977_v38  ;;  %6129 = vst.msk [vmem:[%s12762_s5 + $0x3d0] sm:$0xff] %vm6006_vm1, %v5338_v37 }
 0x546   :  { %6257 = vst.msk [vmem:[%s12762_s5 + $0x7d0] sm:$0xff] %vm6006_vm1, %v5978_v21 }
 0x547   :  { %v6995_v22 = vpop.f32.mrf.mxu0 }
 0x548   :  { %v5353_v29 = vadd.f32 %v12040_v62, %v6995_v22 }
 0x549   :  { %v7187_v16 = vpop.f32.mrf.mxu1  ;;  %v5347_v61 = vpop.f32.mrf.mxu0 }
 0x54a   :  { %v5993_v30 = vadd.f32 %v12040_v62, %v7187_v16  ;;  %6132 = vst.msk [vmem:[%s12762_s5 + $0x3e8] sm:$0xff] %vm6006_vm1, %v5353_v29  ;;  %v5348_v52 = vadd.f32 %v12040_v62, %v5347_v61 }
 0x54b   :  { %v5987_v49 = vpop.f32.mrf.mxu1 }
 0x54c   :  { %6260 = vst.msk [vmem:[%s12762_s5 + $0x7e8] sm:$0xff] %vm6006_vm1, %v5993_v30  ;;  %v5988_v59 = vadd.f32 %v12040_v62, %v5987_v49  ;;  %6131 = vst.msk [vmem:[%s12762_s5 + $0x3e0] sm:$0xff] %vm6006_vm1, %v5348_v52 }
 0x54e   :  { %6259 = vst.msk [vmem:[%s12762_s5 + $0x7e0] sm:$0xff] %vm6006_vm1, %v5988_v59 }
 0x54f   :  { %v6998_v60 = vpop.f32.mrf.mxu0 }
 0x550   :  { %v5363_v0 = vadd.f32 %v7999_v31, %v6998_v60 }
 0x551   :  { %v7190_v27 = vpop.f32.mrf.mxu1  ;;  %v5357_v1 = vpop.f32.mrf.mxu0 }
 0x552   :  { %v6003_v28 = vadd.f32 %v7999_v31, %v7190_v27  ;;  %6134 = vst.msk [vmem:[%s12762_s5 + $0x3f8] sm:$0xff] %vm6006_vm1, %v5363_v0  ;;  %v5358_v62 = vadd.f32 %v7999_v31, %v5357_v1 }
 0x553   :  { %v5997_v8 = vpop.f32.mrf.mxu1 }
 0x554   :  { %6262 = vst.msk [vmem:[%s12762_s5 + $0x7f8] sm:$0xff] %vm6006_vm1, %v6003_v28  ;;  %v5998_v9 = vadd.f32 %v7999_v31, %v5997_v8  ;;  %6133 = vst.msk [vmem:[%s12762_s5 + $0x3f0] sm:$0xff] %vm6006_vm1, %v5358_v62 }
 0x556   :  { %6261 = vst.msk [vmem:[%s12762_s5 + $0x7f0] sm:$0xff] %vm6006_vm1, %v5998_v9 }

</bundles_post_ra>
